<compile_context>
chip_gen: v5e
topology: v5e:2x2
jax: 0.10.0
libtpu: 0.0.40
codegen_flags: <defaults>
</compile_context>

<pallas_src>
import functools

import jax
import jax.numpy as jnp
from jax.experimental import pallas as pl
from jax.experimental.pallas import tpu as pltpu


# ----------------------------------------------------------------------------
# Fused Pallas kernel: conv3d(+relu) -> c1(+relu) -> c2(+relu) -> c3(+relu)
# ----------------------------------------------------------------------------
def _make_fused_kernel(H, W, F, CIN0):
    """H, W: spatial size; F: features; CIN0: (padded) channel count of layer 0."""

    def conv3x3_relu(window, cin, w_ref, b_ref):
        # window(kh, kw) -> (H, W, cin) shifted view of the zero-padded input.
        # Per-kh tap folding: lhs (H*W, 3*cin), one MXU matmul per kh (K = 3*cin).
        acc = None
        for kh in range(3):
            lhs = jnp.concatenate(
                [window(kh, kw) for kw in range(3)], axis=-1
            ).reshape(H * W, 3 * cin)
            part = jnp.dot(lhs, w_ref[kh], preferred_element_type=jnp.float32)
            acc = part if acc is None else acc + part
        return jnp.maximum(acc + b_ref[...], 0.0)          # fused bias + relu

    def kernel(fr_ref, w0_ref, b0_ref, w1_ref, b1_ref, w2_ref, b2_ref,
               w3_ref, b3_ref, o_ref, pf_ref):
        # fr_ref : (1, H+2, W+2, CIN0)  zero-padded stacked frames (depth as channels)
        # w0_ref : (3, 3*CIN0, F)       conv3d weights, taps folded into K
        # wi_ref : (3, 3*F, F)          c1/c2/c3 weights, taps folded into K
        # bi_ref : (1, F)
        # o_ref  : (1, H, W, F)
        # pf_ref : VMEM scratch (H+2, W+2, F) — in-kernel zero padding for c1/c2/c3

        # --- layer 0: Conv3d(5,3,3) == 3x3 conv over the 5 stacked frames -------
        y = conv3x3_relu(lambda kh, kw: fr_ref[0, kh:kh + H, kw:kw + W, :],
                         CIN0, w0_ref, b0_ref)              # (H*W, F)

        # --- c1 / c2 / c3: intermediates stay in VMEM ---------------------------
        # Zero the padded scratch once; the border stays zero because only the
        # interior is rewritten for each layer (zero padding done in-kernel).
        pf_ref[...] = jnp.zeros(pf_ref.shape, pf_ref.dtype)
        for w_ref, b_ref in ((w1_ref, b1_ref), (w2_ref, b2_ref), (w3_ref, b3_ref)):
            pf_ref[1:1 + H, 1:1 + W, :] = y.reshape(H, W, F)
            y = conv3x3_relu(lambda kh, kw: pf_ref[kh:kh + H, kw:kw + W, :],
                             F, w_ref, b_ref)

        o_ref[...] = y.reshape(1, H, W, F)                  # single store

    return kernel


# ----------------------------------------------------------------------------
# Wrapper
# ----------------------------------------------------------------------------
def _3dconv_forward(params, f1, f2, f3, f4, f5):
    """Frames: (B, H, W, 1) NHWC each (PyTorch: (B, 1, H, W)). Returns (B, H, W, F)."""
    F = params["c1"]["w"].shape[-1]
    frames = jnp.concatenate([f1, f2, f3, f4, f5], axis=-1)     # (B, H, W, 5)
    B, H, W, D = frames.shape
    CIN0 = 8                                                    # pad 5 -> 8 channels
    Hp, Wp = H + 2, W + 2

    # One-time tiny pad of the network input (spatial halo + channel alignment).
    x = jnp.pad(frames, ((0, 0), (1, 1), (1, 1), (0, CIN0 - D)))

    # Pack weights with the 3 kw-taps folded into the contraction dimension.
    w0 = jnp.pad(params["conv3d"]["w"], ((0, 0), (0, 0), (0, CIN0 - D), (0, 0)))
    w0 = w0.reshape(3, 3 * CIN0, F)
    b0 = params["conv3d"]["b"].reshape(1, F)
    ws = [params[n]["w"].reshape(3, 3 * F, F) for n in ("c1", "c2", "c3")]
    bs = [params[n]["b"].reshape(1, F) for n in ("c1", "c2", "c3")]

    kernel = _make_fused_kernel(H, W, F, CIN0)
    wspec = pl.BlockSpec((3, 3 * F, F), lambda b: (0, 0, 0))
    bspec = pl.BlockSpec((1, F), lambda b: (0, 0))

    out = pl.pallas_call(
        kernel,
        out_shape=jax.ShapeDtypeStruct((B, H, W, F), jnp.float32),
        grid=(B,),
        in_specs=[
            pl.BlockSpec((1, Hp, Wp, CIN0), lambda b: (b, 0, 0, 0)),
            pl.BlockSpec((3, 3 * CIN0, F), lambda b: (0, 0, 0)),
            bspec,
            wspec, bspec,
            wspec, bspec,
            wspec, bspec,
        ],
        out_specs=pl.BlockSpec((1, H, W, F), lambda b: (b, 0, 0, 0)),
        scratch_shapes=[pltpu.VMEM((Hp, Wp, F), jnp.float32)],
        compiler_params=pltpu.CompilerParams(
            dimension_semantics=("parallel",),
            vmem_limit_bytes=48 * 1024 * 1024,
        ),
    )(x, w0, b0, ws[0], bs[0], ws[1], bs[1], ws[2], bs[2])
    return out


# ----------------------------------------------------------------------------
# Pure-JAX reference (same math as the PyTorch module) for in-script validation
# ----------------------------------------------------------------------------
def _reference_forward(params, f1, f2, f3, f4, f5):
    frames = jnp.concatenate([f1, f2, f3, f4, f5], axis=-1)     # (B, H, W, 5)

    def conv(x, w, b):
        y = jax.lax.conv_general_dilated(
            x, w, window_strides=(1, 1), padding="SAME",
            dimension_numbers=("NHWC", "HWIO", "NHWC"),
            precision=jax.lax.Precision.HIGHEST)
        return jax.nn.relu(y + b)

    y = conv(frames, params["conv3d"]["w"], params["conv3d"]["b"])
    for n in ("c1", "c2", "c3"):
        y = conv(y, params[n]["w"], params[n]["b"])
    return y


# ----------------------------------------------------------------------------
# Deterministic synthetic parameters (PyTorch-default-like init scales)
# ----------------------------------------------------------------------------
def _uniform(key, shape, bound):
    return jax.random.uniform(key, shape, jnp.float32, -bound, bound)


def init_params(key, features=64):
    ks = jax.random.split(key, 8)
    p = {}
    # Conv3d(1, F, (5,3,3)): torch weight (F,1,5,3,3); here HWIO with the 5-frame
    # depth axis folded into input channels -> (3, 3, 5, F). fan_in = 1*5*3*3 = 45.
    b3 = 1.0 / jnp.sqrt(45.0)
    p["conv3d"] = {"w": _uniform(ks[0], (3, 3, 5, features), b3),
                   "b": _uniform(ks[1], (features,), b3)}
    # Conv2d(F, F, 3): fan_in = F*3*3.
    b2 = 1.0 / jnp.sqrt(float(features * 9))
    for i, name in enumerate(("c1", "c2", "c3")):
        p[name] = {"w": _uniform(ks[2 + 2 * i], (3, 3, features, features), b2),
                   "b": _uniform(ks[3 + 2 * i], (features,), b2)}
    return p


# ----------------------------------------------------------------------------
if __name__ == "__main__":
    key = jax.random.PRNGKey(0)
    pkey, dkey = jax.random.split(key)
    features = 64
    params = init_params(pkey, features=features)

    B, H, W = 2, 16, 16
    dkeys = jax.random.split(dkey, 5)
    # PyTorch-equivalent inputs: 5 frames of shape (B, 1, H, W); here NHWC (B, H, W, 1)
    frames = [jax.random.normal(dkeys[i], (B, H, W, 1), jnp.float32) for i in range(5)]

    fwd = jax.jit(functools.partial(_3dconv_forward, params))
    out = jax.block_until_ready(fwd(*frames))

    assert out.shape == (B, H, W, features), out.shape
    assert bool(jnp.all(jnp.isfinite(out)))

    ref = jax.block_until_ready(
        jax.jit(functools.partial(_reference_forward, params))(*frames))
    max_err = float(jnp.max(jnp.abs(out - ref)))
    # Tolerance covers possible reduced-precision MXU passes for f32 matmuls.
    assert bool(jnp.allclose(out, ref, atol=5e-2, rtol=5e-2)), max_err

    print("KERNEL_OK")
</pallas_src>

<mosaic_0001>
module attributes {stable_mosaic.version = 11 : i64} {
  func.func @kernel(%arg0: i32, %arg1: memref<1x18x18x8xf32, #tpu.memory_space<vmem>>, %arg2: memref<3x24x64xf32, #tpu.memory_space<vmem>>, %arg3: memref<1x64xf32, #tpu.memory_space<vmem>>, %arg4: memref<3x192x64xf32, #tpu.memory_space<vmem>>, %arg5: memref<1x64xf32, #tpu.memory_space<vmem>>, %arg6: memref<3x192x64xf32, #tpu.memory_space<vmem>>, %arg7: memref<1x64xf32, #tpu.memory_space<vmem>>, %arg8: memref<3x192x64xf32, #tpu.memory_space<vmem>>, %arg9: memref<1x64xf32, #tpu.memory_space<vmem>>, %arg10: memref<1x16x16x64xf32, #tpu.memory_space<vmem>>, %arg11: memref<18x18x64xf32, #tpu.memory_space<vmem>>) attributes {dimension_semantics = [#tpu.dimension_semantics<parallel>], iteration_bounds = array<i64: 2>, scalar_prefetch = 0 : i64, scratch_operands = 1 : i64, tpu.core_type = #tpu.core_type<tc>, window_params = [{transform_indices = @transform_0, window_bounds = array<i64: 1, 18, 18, 8>}, {pipeline_mode = #tpu.pipeline_mode<synchronous>, transform_indices = @transform_1, window_bounds = array<i64: 3, 24, 64>}, {pipeline_mode = #tpu.pipeline_mode<synchronous>, transform_indices = @transform_2, window_bounds = array<i64: 1, 64>}, {pipeline_mode = #tpu.pipeline_mode<synchronous>, transform_indices = @transform_3, window_bounds = array<i64: 3, 192, 64>}, {pipeline_mode = #tpu.pipeline_mode<synchronous>, transform_indices = @transform_4, window_bounds = array<i64: 1, 64>}, {pipeline_mode = #tpu.pipeline_mode<synchronous>, transform_indices = @transform_5, window_bounds = array<i64: 3, 192, 64>}, {pipeline_mode = #tpu.pipeline_mode<synchronous>, transform_indices = @transform_6, window_bounds = array<i64: 1, 64>}, {pipeline_mode = #tpu.pipeline_mode<synchronous>, transform_indices = @transform_7, window_bounds = array<i64: 3, 192, 64>}, {pipeline_mode = #tpu.pipeline_mode<synchronous>, transform_indices = @transform_8, window_bounds = array<i64: 1, 64>}, {transform_indices = @transform_9, window_bounds = array<i64: 1, 16, 16, 64>}]} {
    %c0 = arith.constant 0 : index
    %c0_0 = arith.constant 0 : index
    %c0_1 = arith.constant 0 : index
    %c0_2 = arith.constant 0 : index
    %0 = vector.load %arg1[%c0, %c0_0, %c0_1, %c0_2] : memref<1x18x18x8xf32, #tpu.memory_space<vmem>>, vector<1x16x16x8xf32>
    %1 = vector.shape_cast %0 : vector<1x16x16x8xf32> to vector<16x16x8xf32>
    %c0_3 = arith.constant 0 : index
    %c0_4 = arith.constant 0 : index
    %c1 = arith.constant 1 : index
    %c0_5 = arith.constant 0 : index
    %2 = vector.load %arg1[%c0_3, %c0_4, %c1, %c0_5] : memref<1x18x18x8xf32, #tpu.memory_space<vmem>>, vector<1x16x16x8xf32>
    %3 = vector.shape_cast %2 : vector<1x16x16x8xf32> to vector<16x16x8xf32>
    %c0_6 = arith.constant 0 : index
    %c0_7 = arith.constant 0 : index
    %c2 = arith.constant 2 : index
    %c0_8 = arith.constant 0 : index
    %4 = vector.load %arg1[%c0_6, %c0_7, %c2, %c0_8] : memref<1x18x18x8xf32, #tpu.memory_space<vmem>>, vector<1x16x16x8xf32>
    %5 = vector.shape_cast %4 : vector<1x16x16x8xf32> to vector<16x16x8xf32>
    %6 = tpu.concatenate %1, %3, %5 in 2 : vector<16x16x8xf32>, vector<16x16x8xf32>, vector<16x16x8xf32> -> vector<16x16x24xf32>
    %7 = vector.shape_cast %6 : vector<16x16x24xf32> to vector<256x24xf32>
    %c0_9 = arith.constant 0 : index
    %c0_10 = arith.constant 0 : index
    %c0_11 = arith.constant 0 : index
    %8 = vector.load %arg2[%c0_9, %c0_10, %c0_11] : memref<3x24x64xf32, #tpu.memory_space<vmem>>, vector<1x24x64xf32>
    %9 = vector.shape_cast %8 : vector<1x24x64xf32> to vector<24x64xf32>
    %cst = arith.constant dense<0.000000e+00> : vector<256x64xf32>
    %10 = tpu.matmul %7, %9, %cst {dimension_numbers = #tpu.dot_dimension_numbers<[1], [0], [0], [1], [0, 0, 1, 1], [], []>} : vector<256x24xf32>, vector<24x64xf32>, vector<256x64xf32> -> vector<256x64xf32>
    %c0_12 = arith.constant 0 : index
    %c1_13 = arith.constant 1 : index
    %c0_14 = arith.constant 0 : index
    %c0_15 = arith.constant 0 : index
    %11 = vector.load %arg1[%c0_12, %c1_13, %c0_14, %c0_15] : memref<1x18x18x8xf32, #tpu.memory_space<vmem>>, vector<1x16x16x8xf32>
    %12 = vector.shape_cast %11 : vector<1x16x16x8xf32> to vector<16x16x8xf32>
    %c0_16 = arith.constant 0 : index
    %c1_17 = arith.constant 1 : index
    %c1_18 = arith.constant 1 : index
    %c0_19 = arith.constant 0 : index
    %13 = vector.load %arg1[%c0_16, %c1_17, %c1_18, %c0_19] : memref<1x18x18x8xf32, #tpu.memory_space<vmem>>, vector<1x16x16x8xf32>
    %14 = vector.shape_cast %13 : vector<1x16x16x8xf32> to vector<16x16x8xf32>
    %c0_20 = arith.constant 0 : index
    %c1_21 = arith.constant 1 : index
    %c2_22 = arith.constant 2 : index
    %c0_23 = arith.constant 0 : index
    %15 = vector.load %arg1[%c0_20, %c1_21, %c2_22, %c0_23] : memref<1x18x18x8xf32, #tpu.memory_space<vmem>>, vector<1x16x16x8xf32>
    %16 = vector.shape_cast %15 : vector<1x16x16x8xf32> to vector<16x16x8xf32>
    %17 = tpu.concatenate %12, %14, %16 in 2 : vector<16x16x8xf32>, vector<16x16x8xf32>, vector<16x16x8xf32> -> vector<16x16x24xf32>
    %18 = vector.shape_cast %17 : vector<16x16x24xf32> to vector<256x24xf32>
    %c1_24 = arith.constant 1 : index
    %c0_25 = arith.constant 0 : index
    %c0_26 = arith.constant 0 : index
    %19 = vector.load %arg2[%c1_24, %c0_25, %c0_26] : memref<3x24x64xf32, #tpu.memory_space<vmem>>, vector<1x24x64xf32>
    %20 = vector.shape_cast %19 : vector<1x24x64xf32> to vector<24x64xf32>
    %cst_27 = arith.constant dense<0.000000e+00> : vector<256x64xf32>
    %21 = tpu.matmul %18, %20, %cst_27 {dimension_numbers = #tpu.dot_dimension_numbers<[1], [0], [0], [1], [0, 0, 1, 1], [], []>} : vector<256x24xf32>, vector<24x64xf32>, vector<256x64xf32> -> vector<256x64xf32>
    %22 = arith.addf %10, %21 : vector<256x64xf32>
    %c0_28 = arith.constant 0 : index
    %c2_29 = arith.constant 2 : index
    %c0_30 = arith.constant 0 : index
    %c0_31 = arith.constant 0 : index
    %23 = vector.load %arg1[%c0_28, %c2_29, %c0_30, %c0_31] : memref<1x18x18x8xf32, #tpu.memory_space<vmem>>, vector<1x16x16x8xf32>
    %24 = vector.shape_cast %23 : vector<1x16x16x8xf32> to vector<16x16x8xf32>
    %c0_32 = arith.constant 0 : index
    %c2_33 = arith.constant 2 : index
    %c1_34 = arith.constant 1 : index
    %c0_35 = arith.constant 0 : index
    %25 = vector.load %arg1[%c0_32, %c2_33, %c1_34, %c0_35] : memref<1x18x18x8xf32, #tpu.memory_space<vmem>>, vector<1x16x16x8xf32>
    %26 = vector.shape_cast %25 : vector<1x16x16x8xf32> to vector<16x16x8xf32>
    %c0_36 = arith.constant 0 : index
    %c2_37 = arith.constant 2 : index
    %c2_38 = arith.constant 2 : index
    %c0_39 = arith.constant 0 : index
    %27 = vector.load %arg1[%c0_36, %c2_37, %c2_38, %c0_39] : memref<1x18x18x8xf32, #tpu.memory_space<vmem>>, vector<1x16x16x8xf32>
    %28 = vector.shape_cast %27 : vector<1x16x16x8xf32> to vector<16x16x8xf32>
    %29 = tpu.concatenate %24, %26, %28 in 2 : vector<16x16x8xf32>, vector<16x16x8xf32>, vector<16x16x8xf32> -> vector<16x16x24xf32>
    %30 = vector.shape_cast %29 : vector<16x16x24xf32> to vector<256x24xf32>
    %c2_40 = arith.constant 2 : index
    %c0_41 = arith.constant 0 : index
    %c0_42 = arith.constant 0 : index
    %31 = vector.load %arg2[%c2_40, %c0_41, %c0_42] : memref<3x24x64xf32, #tpu.memory_space<vmem>>, vector<1x24x64xf32>
    %32 = vector.shape_cast %31 : vector<1x24x64xf32> to vector<24x64xf32>
    %cst_43 = arith.constant dense<0.000000e+00> : vector<256x64xf32>
    %33 = tpu.matmul %30, %32, %cst_43 {dimension_numbers = #tpu.dot_dimension_numbers<[1], [0], [0], [1], [0, 0, 1, 1], [], []>} : vector<256x24xf32>, vector<24x64xf32>, vector<256x64xf32> -> vector<256x64xf32>
    %34 = arith.addf %22, %33 : vector<256x64xf32>
    %c0_44 = arith.constant 0 : index
    %c0_45 = arith.constant 0 : index
    %35 = vector.load %arg3[%c0_44, %c0_45] : memref<1x64xf32, #tpu.memory_space<vmem>>, vector<1x64xf32>
    %36 = vector.broadcast %35 : vector<1x64xf32> to vector<256x64xf32>
    %37 = arith.addf %34, %36 : vector<256x64xf32>
    %cst_46 = arith.constant 0.000000e+00 : f32
    %38 = vector.broadcast %cst_46 : f32 to vector<256x64xf32>
    %39 = arith.maximumf %37, %38 : vector<256x64xf32>
    %cst_47 = arith.constant 0.000000e+00 : f32
    %40 = vector.broadcast %cst_47 : f32 to vector<18x18x64xf32>
    %c0_48 = arith.constant 0 : index
    %c0_49 = arith.constant 0 : index
    %c0_50 = arith.constant 0 : index
    %41 = vector.load %arg11[%c0_48, %c0_49, %c0_50] : memref<18x18x64xf32, #tpu.memory_space<vmem>>, vector<18x18x64xf32>
    tpu.vector_store %arg11[%c0_48, %c0_49, %c0_50], %40 {strides = array<i32>} : memref<18x18x64xf32, #tpu.memory_space<vmem>>, vector<18x18x64xf32>,
    %42 = vector.shape_cast %39 : vector<256x64xf32> to vector<16x16x64xf32>
    %c1_51 = arith.constant 1 : index
    %c1_52 = arith.constant 1 : index
    %c0_53 = arith.constant 0 : index
    %43 = vector.load %arg11[%c1_51, %c1_52, %c0_53] : memref<18x18x64xf32, #tpu.memory_space<vmem>>, vector<16x16x64xf32>
    tpu.vector_store %arg11[%c1_51, %c1_52, %c0_53], %42 {strides = array<i32>} : memref<18x18x64xf32, #tpu.memory_space<vmem>>, vector<16x16x64xf32>,
    %c0_54 = arith.constant 0 : index
    %c0_55 = arith.constant 0 : index
    %c0_56 = arith.constant 0 : index
    %44 = vector.load %arg11[%c0_54, %c0_55, %c0_56] : memref<18x18x64xf32, #tpu.memory_space<vmem>>, vector<16x16x64xf32>
    %c0_57 = arith.constant 0 : index
    %c1_58 = arith.constant 1 : index
    %c0_59 = arith.constant 0 : index
    %45 = vector.load %arg11[%c0_57, %c1_58, %c0_59] : memref<18x18x64xf32, #tpu.memory_space<vmem>>, vector<16x16x64xf32>
    %c0_60 = arith.constant 0 : index
    %c2_61 = arith.constant 2 : index
    %c0_62 = arith.constant 0 : index
    %46 = vector.load %arg11[%c0_60, %c2_61, %c0_62] : memref<18x18x64xf32, #tpu.memory_space<vmem>>, vector<16x16x64xf32>
    %47 = tpu.concatenate %44, %45, %46 in 2 : vector<16x16x64xf32>, vector<16x16x64xf32>, vector<16x16x64xf32> -> vector<16x16x192xf32>
    %48 = vector.shape_cast %47 : vector<16x16x192xf32> to vector<256x192xf32>
    %c0_63 = arith.constant 0 : index
    %c0_64 = arith.constant 0 : index
    %c0_65 = arith.constant 0 : index
    %49 = vector.load %arg4[%c0_63, %c0_64, %c0_65] : memref<3x192x64xf32, #tpu.memory_space<vmem>>, vector<1x192x64xf32>
    %50 = vector.shape_cast %49 : vector<1x192x64xf32> to vector<192x64xf32>
    %cst_66 = arith.constant dense<0.000000e+00> : vector<256x64xf32>
    %51 = tpu.matmul %48, %50, %cst_66 {dimension_numbers = #tpu.dot_dimension_numbers<[1], [0], [0], [1], [0, 0, 1, 1], [], []>} : vector<256x192xf32>, vector<192x64xf32>, vector<256x64xf32> -> vector<256x64xf32>
    %c1_67 = arith.constant 1 : index
    %c0_68 = arith.constant 0 : index
    %c0_69 = arith.constant 0 : index
    %52 = vector.load %arg11[%c1_67, %c0_68, %c0_69] : memref<18x18x64xf32, #tpu.memory_space<vmem>>, vector<16x16x64xf32>
    %c1_70 = arith.constant 1 : index
    %c1_71 = arith.constant 1 : index
    %c0_72 = arith.constant 0 : index
    %53 = vector.load %arg11[%c1_70, %c1_71, %c0_72] : memref<18x18x64xf32, #tpu.memory_space<vmem>>, vector<16x16x64xf32>
    %c1_73 = arith.constant 1 : index
    %c2_74 = arith.constant 2 : index
    %c0_75 = arith.constant 0 : index
    %54 = vector.load %arg11[%c1_73, %c2_74, %c0_75] : memref<18x18x64xf32, #tpu.memory_space<vmem>>, vector<16x16x64xf32>
    %55 = tpu.concatenate %52, %53, %54 in 2 : vector<16x16x64xf32>, vector<16x16x64xf32>, vector<16x16x64xf32> -> vector<16x16x192xf32>
    %56 = vector.shape_cast %55 : vector<16x16x192xf32> to vector<256x192xf32>
    %c1_76 = arith.constant 1 : index
    %c0_77 = arith.constant 0 : index
    %c0_78 = arith.constant 0 : index
    %57 = vector.load %arg4[%c1_76, %c0_77, %c0_78] : memref<3x192x64xf32, #tpu.memory_space<vmem>>, vector<1x192x64xf32>
    %58 = vector.shape_cast %57 : vector<1x192x64xf32> to vector<192x64xf32>
    %cst_79 = arith.constant dense<0.000000e+00> : vector<256x64xf32>
    %59 = tpu.matmul %56, %58, %cst_79 {dimension_numbers = #tpu.dot_dimension_numbers<[1], [0], [0], [1], [0, 0, 1, 1], [], []>} : vector<256x192xf32>, vector<192x64xf32>, vector<256x64xf32> -> vector<256x64xf32>
    %60 = arith.addf %51, %59 : vector<256x64xf32>
    %c2_80 = arith.constant 2 : index
    %c0_81 = arith.constant 0 : index
    %c0_82 = arith.constant 0 : index
    %61 = vector.load %arg11[%c2_80, %c0_81, %c0_82] : memref<18x18x64xf32, #tpu.memory_space<vmem>>, vector<16x16x64xf32>
    %c2_83 = arith.constant 2 : index
    %c1_84 = arith.constant 1 : index
    %c0_85 = arith.constant 0 : index
    %62 = vector.load %arg11[%c2_83, %c1_84, %c0_85] : memref<18x18x64xf32, #tpu.memory_space<vmem>>, vector<16x16x64xf32>
    %c2_86 = arith.constant 2 : index
    %c2_87 = arith.constant 2 : index
    %c0_88 = arith.constant 0 : index
    %63 = vector.load %arg11[%c2_86, %c2_87, %c0_88] : memref<18x18x64xf32, #tpu.memory_space<vmem>>, vector<16x16x64xf32>
    %64 = tpu.concatenate %61, %62, %63 in 2 : vector<16x16x64xf32>, vector<16x16x64xf32>, vector<16x16x64xf32> -> vector<16x16x192xf32>
    %65 = vector.shape_cast %64 : vector<16x16x192xf32> to vector<256x192xf32>
    %c2_89 = arith.constant 2 : index
    %c0_90 = arith.constant 0 : index
    %c0_91 = arith.constant 0 : index
    %66 = vector.load %arg4[%c2_89, %c0_90, %c0_91] : memref<3x192x64xf32, #tpu.memory_space<vmem>>, vector<1x192x64xf32>
    %67 = vector.shape_cast %66 : vector<1x192x64xf32> to vector<192x64xf32>
    %cst_92 = arith.constant dense<0.000000e+00> : vector<256x64xf32>
    %68 = tpu.matmul %65, %67, %cst_92 {dimension_numbers = #tpu.dot_dimension_numbers<[1], [0], [0], [1], [0, 0, 1, 1], [], []>} : vector<256x192xf32>, vector<192x64xf32>, vector<256x64xf32> -> vector<256x64xf32>
    %69 = arith.addf %60, %68 : vector<256x64xf32>
    %c0_93 = arith.constant 0 : index
    %c0_94 = arith.constant 0 : index
    %70 = vector.load %arg5[%c0_93, %c0_94] : memref<1x64xf32, #tpu.memory_space<vmem>>, vector<1x64xf32>
    %71 = vector.broadcast %70 : vector<1x64xf32> to vector<256x64xf32>
    %72 = arith.addf %69, %71 : vector<256x64xf32>
    %cst_95 = arith.constant 0.000000e+00 : f32
    %73 = vector.broadcast %cst_95 : f32 to vector<256x64xf32>
    %74 = arith.maximumf %72, %73 : vector<256x64xf32>
    %75 = vector.shape_cast %74 : vector<256x64xf32> to vector<16x16x64xf32>
    %c1_96 = arith.constant 1 : index
    %c1_97 = arith.constant 1 : index
    %c0_98 = arith.constant 0 : index
    %76 = vector.load %arg11[%c1_96, %c1_97, %c0_98] : memref<18x18x64xf32, #tpu.memory_space<vmem>>, vector<16x16x64xf32>
    tpu.vector_store %arg11[%c1_96, %c1_97, %c0_98], %75 {strides = array<i32>} : memref<18x18x64xf32, #tpu.memory_space<vmem>>, vector<16x16x64xf32>,
    %c0_99 = arith.constant 0 : index
    %c0_100 = arith.constant 0 : index
    %c0_101 = arith.constant 0 : index
    %77 = vector.load %arg11[%c0_99, %c0_100, %c0_101] : memref<18x18x64xf32, #tpu.memory_space<vmem>>, vector<16x16x64xf32>
    %c0_102 = arith.constant 0 : index
    %c1_103 = arith.constant 1 : index
    %c0_104 = arith.constant 0 : index
    %78 = vector.load %arg11[%c0_102, %c1_103, %c0_104] : memref<18x18x64xf32, #tpu.memory_space<vmem>>, vector<16x16x64xf32>
    %c0_105 = arith.constant 0 : index
    %c2_106 = arith.constant 2 : index
    %c0_107 = arith.constant 0 : index
    %79 = vector.load %arg11[%c0_105, %c2_106, %c0_107] : memref<18x18x64xf32, #tpu.memory_space<vmem>>, vector<16x16x64xf32>
    %80 = tpu.concatenate %77, %78, %79 in 2 : vector<16x16x64xf32>, vector<16x16x64xf32>, vector<16x16x64xf32> -> vector<16x16x192xf32>
    %81 = vector.shape_cast %80 : vector<16x16x192xf32> to vector<256x192xf32>
    %c0_108 = arith.constant 0 : index
    %c0_109 = arith.constant 0 : index
    %c0_110 = arith.constant 0 : index
    %82 = vector.load %arg6[%c0_108, %c0_109, %c0_110] : memref<3x192x64xf32, #tpu.memory_space<vmem>>, vector<1x192x64xf32>
    %83 = vector.shape_cast %82 : vector<1x192x64xf32> to vector<192x64xf32>
    %cst_111 = arith.constant dense<0.000000e+00> : vector<256x64xf32>
    %84 = tpu.matmul %81, %83, %cst_111 {dimension_numbers = #tpu.dot_dimension_numbers<[1], [0], [0], [1], [0, 0, 1, 1], [], []>} : vector<256x192xf32>, vector<192x64xf32>, vector<256x64xf32> -> vector<256x64xf32>
    %c1_112 = arith.constant 1 : index
    %c0_113 = arith.constant 0 : index
    %c0_114 = arith.constant 0 : index
    %85 = vector.load %arg11[%c1_112, %c0_113, %c0_114] : memref<18x18x64xf32, #tpu.memory_space<vmem>>, vector<16x16x64xf32>
    %c1_115 = arith.constant 1 : index
    %c1_116 = arith.constant 1 : index
    %c0_117 = arith.constant 0 : index
    %86 = vector.load %arg11[%c1_115, %c1_116, %c0_117] : memref<18x18x64xf32, #tpu.memory_space<vmem>>, vector<16x16x64xf32>
    %c1_118 = arith.constant 1 : index
    %c2_119 = arith.constant 2 : index
    %c0_120 = arith.constant 0 : index
    %87 = vector.load %arg11[%c1_118, %c2_119, %c0_120] : memref<18x18x64xf32, #tpu.memory_space<vmem>>, vector<16x16x64xf32>
    %88 = tpu.concatenate %85, %86, %87 in 2 : vector<16x16x64xf32>, vector<16x16x64xf32>, vector<16x16x64xf32> -> vector<16x16x192xf32>
    %89 = vector.shape_cast %88 : vector<16x16x192xf32> to vector<256x192xf32>
    %c1_121 = arith.constant 1 : index
    %c0_122 = arith.constant 0 : index
    %c0_123 = arith.constant 0 : index
    %90 = vector.load %arg6[%c1_121, %c0_122, %c0_123] : memref<3x192x64xf32, #tpu.memory_space<vmem>>, vector<1x192x64xf32>
    %91 = vector.shape_cast %90 : vector<1x192x64xf32> to vector<192x64xf32>
    %cst_124 = arith.constant dense<0.000000e+00> : vector<256x64xf32>
    %92 = tpu.matmul %89, %91, %cst_124 {dimension_numbers = #tpu.dot_dimension_numbers<[1], [0], [0], [1], [0, 0, 1, 1], [], []>} : vector<256x192xf32>, vector<192x64xf32>, vector<256x64xf32> -> vector<256x64xf32>
    %93 = arith.addf %84, %92 : vector<256x64xf32>
    %c2_125 = arith.constant 2 : index
    %c0_126 = arith.constant 0 : index
    %c0_127 = arith.constant 0 : index
    %94 = vector.load %arg11[%c2_125, %c0_126, %c0_127] : memref<18x18x64xf32, #tpu.memory_space<vmem>>, vector<16x16x64xf32>
    %c2_128 = arith.constant 2 : index
    %c1_129 = arith.constant 1 : index
    %c0_130 = arith.constant 0 : index
    %95 = vector.load %arg11[%c2_128, %c1_129, %c0_130] : memref<18x18x64xf32, #tpu.memory_space<vmem>>, vector<16x16x64xf32>
    %c2_131 = arith.constant 2 : index
    %c2_132 = arith.constant 2 : index
    %c0_133 = arith.constant 0 : index
    %96 = vector.load %arg11[%c2_131, %c2_132, %c0_133] : memref<18x18x64xf32, #tpu.memory_space<vmem>>, vector<16x16x64xf32>
    %97 = tpu.concatenate %94, %95, %96 in 2 : vector<16x16x64xf32>, vector<16x16x64xf32>, vector<16x16x64xf32> -> vector<16x16x192xf32>
    %98 = vector.shape_cast %97 : vector<16x16x192xf32> to vector<256x192xf32>
    %c2_134 = arith.constant 2 : index
    %c0_135 = arith.constant 0 : index
    %c0_136 = arith.constant 0 : index
    %99 = vector.load %arg6[%c2_134, %c0_135, %c0_136] : memref<3x192x64xf32, #tpu.memory_space<vmem>>, vector<1x192x64xf32>
    %100 = vector.shape_cast %99 : vector<1x192x64xf32> to vector<192x64xf32>
    %cst_137 = arith.constant dense<0.000000e+00> : vector<256x64xf32>
    %101 = tpu.matmul %98, %100, %cst_137 {dimension_numbers = #tpu.dot_dimension_numbers<[1], [0], [0], [1], [0, 0, 1, 1], [], []>} : vector<256x192xf32>, vector<192x64xf32>, vector<256x64xf32> -> vector<256x64xf32>
    %102 = arith.addf %93, %101 : vector<256x64xf32>
    %c0_138 = arith.constant 0 : index
    %c0_139 = arith.constant 0 : index
    %103 = vector.load %arg7[%c0_138, %c0_139] : memref<1x64xf32, #tpu.memory_space<vmem>>, vector<1x64xf32>
    %104 = vector.broadcast %103 : vector<1x64xf32> to vector<256x64xf32>
    %105 = arith.addf %102, %104 : vector<256x64xf32>
    %cst_140 = arith.constant 0.000000e+00 : f32
    %106 = vector.broadcast %cst_140 : f32 to vector<256x64xf32>
    %107 = arith.maximumf %105, %106 : vector<256x64xf32>
    %108 = vector.shape_cast %107 : vector<256x64xf32> to vector<16x16x64xf32>
    %c1_141 = arith.constant 1 : index
    %c1_142 = arith.constant 1 : index
    %c0_143 = arith.constant 0 : index
    %109 = vector.load %arg11[%c1_141, %c1_142, %c0_143] : memref<18x18x64xf32, #tpu.memory_space<vmem>>, vector<16x16x64xf32>
    tpu.vector_store %arg11[%c1_141, %c1_142, %c0_143], %108 {strides = array<i32>} : memref<18x18x64xf32, #tpu.memory_space<vmem>>, vector<16x16x64xf32>,
    %c0_144 = arith.constant 0 : index
    %c0_145 = arith.constant 0 : index
    %c0_146 = arith.constant 0 : index
    %110 = vector.load %arg11[%c0_144, %c0_145, %c0_146] : memref<18x18x64xf32, #tpu.memory_space<vmem>>, vector<16x16x64xf32>
    %c0_147 = arith.constant 0 : index
    %c1_148 = arith.constant 1 : index
    %c0_149 = arith.constant 0 : index
    %111 = vector.load %arg11[%c0_147, %c1_148, %c0_149] : memref<18x18x64xf32, #tpu.memory_space<vmem>>, vector<16x16x64xf32>
    %c0_150 = arith.constant 0 : index
    %c2_151 = arith.constant 2 : index
    %c0_152 = arith.constant 0 : index
    %112 = vector.load %arg11[%c0_150, %c2_151, %c0_152] : memref<18x18x64xf32, #tpu.memory_space<vmem>>, vector<16x16x64xf32>
    %113 = tpu.concatenate %110, %111, %112 in 2 : vector<16x16x64xf32>, vector<16x16x64xf32>, vector<16x16x64xf32> -> vector<16x16x192xf32>
    %114 = vector.shape_cast %113 : vector<16x16x192xf32> to vector<256x192xf32>
    %c0_153 = arith.constant 0 : index
    %c0_154 = arith.constant 0 : index
    %c0_155 = arith.constant 0 : index
    %115 = vector.load %arg8[%c0_153, %c0_154, %c0_155] : memref<3x192x64xf32, #tpu.memory_space<vmem>>, vector<1x192x64xf32>
    %116 = vector.shape_cast %115 : vector<1x192x64xf32> to vector<192x64xf32>
    %cst_156 = arith.constant dense<0.000000e+00> : vector<256x64xf32>
    %117 = tpu.matmul %114, %116, %cst_156 {dimension_numbers = #tpu.dot_dimension_numbers<[1], [0], [0], [1], [0, 0, 1, 1], [], []>} : vector<256x192xf32>, vector<192x64xf32>, vector<256x64xf32> -> vector<256x64xf32>
    %c1_157 = arith.constant 1 : index
    %c0_158 = arith.constant 0 : index
    %c0_159 = arith.constant 0 : index
    %118 = vector.load %arg11[%c1_157, %c0_158, %c0_159] : memref<18x18x64xf32, #tpu.memory_space<vmem>>, vector<16x16x64xf32>
    %c1_160 = arith.constant 1 : index
    %c1_161 = arith.constant 1 : index
    %c0_162 = arith.constant 0 : index
    %119 = vector.load %arg11[%c1_160, %c1_161, %c0_162] : memref<18x18x64xf32, #tpu.memory_space<vmem>>, vector<16x16x64xf32>
    %c1_163 = arith.constant 1 : index
    %c2_164 = arith.constant 2 : index
    %c0_165 = arith.constant 0 : index
    %120 = vector.load %arg11[%c1_163, %c2_164, %c0_165] : memref<18x18x64xf32, #tpu.memory_space<vmem>>, vector<16x16x64xf32>
    %121 = tpu.concatenate %118, %119, %120 in 2 : vector<16x16x64xf32>, vector<16x16x64xf32>, vector<16x16x64xf32> -> vector<16x16x192xf32>
    %122 = vector.shape_cast %121 : vector<16x16x192xf32> to vector<256x192xf32>
    %c1_166 = arith.constant 1 : index
    %c0_167 = arith.constant 0 : index
    %c0_168 = arith.constant 0 : index
    %123 = vector.load %arg8[%c1_166, %c0_167, %c0_168] : memref<3x192x64xf32, #tpu.memory_space<vmem>>, vector<1x192x64xf32>
    %124 = vector.shape_cast %123 : vector<1x192x64xf32> to vector<192x64xf32>
    %cst_169 = arith.constant dense<0.000000e+00> : vector<256x64xf32>
    %125 = tpu.matmul %122, %124, %cst_169 {dimension_numbers = #tpu.dot_dimension_numbers<[1], [0], [0], [1], [0, 0, 1, 1], [], []>} : vector<256x192xf32>, vector<192x64xf32>, vector<256x64xf32> -> vector<256x64xf32>
    %126 = arith.addf %117, %125 : vector<256x64xf32>
    %c2_170 = arith.constant 2 : index
    %c0_171 = arith.constant 0 : index
    %c0_172 = arith.constant 0 : index
    %127 = vector.load %arg11[%c2_170, %c0_171, %c0_172] : memref<18x18x64xf32, #tpu.memory_space<vmem>>, vector<16x16x64xf32>
    %c2_173 = arith.constant 2 : index
    %c1_174 = arith.constant 1 : index
    %c0_175 = arith.constant 0 : index
    %128 = vector.load %arg11[%c2_173, %c1_174, %c0_175] : memref<18x18x64xf32, #tpu.memory_space<vmem>>, vector<16x16x64xf32>
    %c2_176 = arith.constant 2 : index
    %c2_177 = arith.constant 2 : index
    %c0_178 = arith.constant 0 : index
    %129 = vector.load %arg11[%c2_176, %c2_177, %c0_178] : memref<18x18x64xf32, #tpu.memory_space<vmem>>, vector<16x16x64xf32>
    %130 = tpu.concatenate %127, %128, %129 in 2 : vector<16x16x64xf32>, vector<16x16x64xf32>, vector<16x16x64xf32> -> vector<16x16x192xf32>
    %131 = vector.shape_cast %130 : vector<16x16x192xf32> to vector<256x192xf32>
    %c2_179 = arith.constant 2 : index
    %c0_180 = arith.constant 0 : index
    %c0_181 = arith.constant 0 : index
    %132 = vector.load %arg8[%c2_179, %c0_180, %c0_181] : memref<3x192x64xf32, #tpu.memory_space<vmem>>, vector<1x192x64xf32>
    %133 = vector.shape_cast %132 : vector<1x192x64xf32> to vector<192x64xf32>
    %cst_182 = arith.constant dense<0.000000e+00> : vector<256x64xf32>
    %134 = tpu.matmul %131, %133, %cst_182 {dimension_numbers = #tpu.dot_dimension_numbers<[1], [0], [0], [1], [0, 0, 1, 1], [], []>} : vector<256x192xf32>, vector<192x64xf32>, vector<256x64xf32> -> vector<256x64xf32>
    %135 = arith.addf %126, %134 : vector<256x64xf32>
    %c0_183 = arith.constant 0 : index
    %c0_184 = arith.constant 0 : index
    %136 = vector.load %arg9[%c0_183, %c0_184] : memref<1x64xf32, #tpu.memory_space<vmem>>, vector<1x64xf32>
    %137 = vector.broadcast %136 : vector<1x64xf32> to vector<256x64xf32>
    %138 = arith.addf %135, %137 : vector<256x64xf32>
    %cst_185 = arith.constant 0.000000e+00 : f32
    %139 = vector.broadcast %cst_185 : f32 to vector<256x64xf32>
    %140 = arith.maximumf %138, %139 : vector<256x64xf32>
    %141 = vector.shape_cast %140 : vector<256x64xf32> to vector<1x16x16x64xf32>
    %c0_186 = arith.constant 0 : index
    %c0_187 = arith.constant 0 : index
    %c0_188 = arith.constant 0 : index
    %c0_189 = arith.constant 0 : index
    %142 = vector.load %arg10[%c0_186, %c0_187, %c0_188, %c0_189] : memref<1x16x16x64xf32, #tpu.memory_space<vmem>>, vector<1x16x16x64xf32>
    tpu.vector_store %arg10[%c0_186, %c0_187, %c0_188, %c0_189], %141 {strides = array<i32>} : memref<1x16x16x64xf32, #tpu.memory_space<vmem>>, vector<1x16x16x64xf32>,
    return
  }
  func.func @transform_0(%arg0: i32) -> (i32, i32, i32, i32) {
    %c0_i32 = arith.constant 0 : i32
    %c0_i32_0 = arith.constant 0 : i32
    %c0_i32_1 = arith.constant 0 : i32
    %c0_i32_2 = arith.constant 0 : i32
    return %arg0, %c0_i32, %c0_i32_0, %c0_i32_1 : i32, i32, i32, i32
  }
  func.func @transform_1(%arg0: i32) -> (i32, i32, i32) {
    %c0_i32 = arith.constant 0 : i32
    %c0_i32_0 = arith.constant 0 : i32
    %c0_i32_1 = arith.constant 0 : i32
    %c0_i32_2 = arith.constant 0 : i32
    return %c0_i32, %c0_i32_0, %c0_i32_1 : i32, i32, i32
  }
  func.func @transform_2(%arg0: i32) -> (i32, i32) {
    %c0_i32 = arith.constant 0 : i32
    %c0_i32_0 = arith.constant 0 : i32
    %c0_i32_1 = arith.constant 0 : i32
    return %c0_i32, %c0_i32_0 : i32, i32
  }
  func.func @transform_3(%arg0: i32) -> (i32, i32, i32) {
    %c0_i32 = arith.constant 0 : i32
    %c0_i32_0 = arith.constant 0 : i32
    %c0_i32_1 = arith.constant 0 : i32
    %c0_i32_2 = arith.constant 0 : i32
    return %c0_i32, %c0_i32_0, %c0_i32_1 : i32, i32, i32
  }
  func.func @transform_4(%arg0: i32) -> (i32, i32) {
    %c0_i32 = arith.constant 0 : i32
    %c0_i32_0 = arith.constant 0 : i32
    %c0_i32_1 = arith.constant 0 : i32
    return %c0_i32, %c0_i32_0 : i32, i32
  }
  func.func @transform_5(%arg0: i32) -> (i32, i32, i32) {
    %c0_i32 = arith.constant 0 : i32
    %c0_i32_0 = arith.constant 0 : i32
    %c0_i32_1 = arith.constant 0 : i32
    %c0_i32_2 = arith.constant 0 : i32
    return %c0_i32, %c0_i32_0, %c0_i32_1 : i32, i32, i32
  }
  func.func @transform_6(%arg0: i32) -> (i32, i32) {
    %c0_i32 = arith.constant 0 : i32
    %c0_i32_0 = arith.constant 0 : i32
    %c0_i32_1 = arith.constant 0 : i32
    return %c0_i32, %c0_i32_0 : i32, i32
  }
  func.func @transform_7(%arg0: i32) -> (i32, i32, i32) {
    %c0_i32 = arith.constant 0 : i32
    %c0_i32_0 = arith.constant 0 : i32
    %c0_i32_1 = arith.constant 0 : i32
    %c0_i32_2 = arith.constant 0 : i32
    return %c0_i32, %c0_i32_0, %c0_i32_1 : i32, i32, i32
  }
  func.func @transform_8(%arg0: i32) -> (i32, i32) {
    %c0_i32 = arith.constant 0 : i32
    %c0_i32_0 = arith.constant 0 : i32
    %c0_i32_1 = arith.constant 0 : i32
    return %c0_i32, %c0_i32_0 : i32, i32
  }
  func.func @transform_9(%arg0: i32) -> (i32, i32, i32, i32) {
    %c0_i32 = arith.constant 0 : i32
    %c0_i32_0 = arith.constant 0 : i32
    %c0_i32_1 = arith.constant 0 : i32
    %c0_i32_2 = arith.constant 0 : i32
    return %arg0, %c0_i32, %c0_i32_0, %c0_i32_1 : i32, i32, i32, i32
  }
}

</mosaic_0001>

<bundles_post_ra>
// kernel: _3dconv_forward.1
= control target key start
LH: loop header
LB: loop body
LE: loop exit
PB: predicated region body
PF: predicated region fallthrough
CT: control target
= control target key end

     0   :  { %14 = vsyncpa [#allocation4], 0  ;;  %s14550_s0 = inlined_call_operand.vmem [shape: f32[2,18,18,8], index: 0, kind: input, shape index: {}]   ;;  %s14551_s1 = inlined_call_operand.vmem [shape: f32[3,24,64], index: 1, kind: input, shape index: {}]   ;;  %s14552_s2 = inlined_call_operand.vmem [shape: f32[1,64], index: 2, kind: input, shape index: {}]   ;;  %s14553_s3 = inlined_call_operand.vmem [shape: f32[3,192,64], index: 3, kind: input, shape index: {}]   ;;  %s14554_s4 = inlined_call_operand.vmem [shape: f32[1,64], index: 4, kind: input, shape index: {}]   ;;  %s14555_s5 = inlined_call_operand.vmem [shape: f32[3,192,64], index: 5, kind: input, shape index: {}]   ;;  %s14556_s6 = inlined_call_operand.vmem [shape: f32[1,64], index: 6, kind: input, shape index: {}]   ;;  %s14557_s7 = inlined_call_operand.vmem [shape: f32[3,192,64], index: 7, kind: input, shape index: {}]   ;;  %s14558_s8 = inlined_call_operand.vmem [shape: f32[1,64], index: 8, kind: input, shape index: {}]   ;;  %s14559_s9 = inlined_call_operand.hbm [shape: f32[2,16,16,64], index: 9, kind: output, shape index: {}]  }
   0x1   :  { %16 = vsyncpa [#allocation4 + $0x1], 0  ;;  %s9461_s30 = smov 0   ;;  %s9463_s10 = smov 0  }
   0x2   :  { %s9465_s11 = smov 0   ;;  %s9467_s12 = smov 0  }
   0x3 LB: > { %s9482_s13 = sadd.s32 4294967295, %s9404_s12   ;;  %s8310_s14 = sadd.s32 4294967294, %s9404_s12   ;;  %s9404_s12 = sphi %s9467_s12, %s14864_s12   ;;  %s9400_s11 = sphi %s9465_s11, %s14863_s11   ;;  %s9396_s10 = sphi %s9463_s10, %s14862_s10   ;;  %s9392_s30 = sphi %s9461_s30, %s14861_s30  }
   0x4   : > { %s9486_s15 = sadd.s32 1, %s9404_s12   ;;  %s223_s16 = sadd.s32 1, %s9400_s11 }
   0x5   : > { %s220_s17 = ssub.s32 %s9404_s12, %s9486_s15  ;;  %p233_p0 = scmp.ne.s32.totalorder %s9400_s11, %s9396_s10 }
   0x6   : > { %p221_p1 = scmp.eq.s32.totalorder %s220_s17, 0  ;;  %p234_p2 = scmp.eq.s32.totalorder %s9482_s13, 1 }
   0x7   : > { %p239_p3 = scmp.ne.s32.totalorder %s9396_s10, %s9392_s30  ;;  %p240_p4 = scmp.eq.s32.totalorder %s8310_s14, 1 }
   0x8   : > { %s9497_s18 = scalar_select %p221_p1, %s9400_s11, %s223_s16  }
   0x9   : > { %p9499_p5 = por %p234_p2, %p233_p0  ;;  %p9503_p6 = por %p240_p4, %p239_p3 }
   0xa   : > { %p8313_p7 = scmp.ge.s32.totalorder %s9404_s12, 1  ;;  %p290_p8 = scmp.lt.s32.totalorder %s9404_s12, 3 }
   0xc   : > { %p291_p9 = pnand %p8313_p7, %p290_p8 }
   0xe   : > { %294 = sbr.rel (%p291_p9) target bundleno = 2518 (0x9d6), region = 56 }
  0x13   : > { %p326_p10 = scmp.lt.s32.totalorder %s9482_s13, 1  ;;  %s9406_s26 = smov 8   ;;  %v8414_v33 = vld [vmem:[%s14551_s1 + $0x28] sm:$0xff]  ;;  %v8413_v37 = vld [vmem:[%s14551_s1 + $0x20] sm:$0xff]  ;;  %v8412_v39 = vld [vmem:[%s14551_s1 + $0x18] sm:$0xff]  ;;  %vm683_vm0 = vcmask 64512  }
  0x14   : > { %s9407_s27 = smov 16   ;;  %9048 = vmatpush.msra.mxu1 %v8414_v33  ;;  %9049 = vmatpush.msra.mxu2 %v8414_v33  ;;  %vm1173_vm1 = vcmask 195584   ;;  %vm716_vm2 = vcmask 130048   ;;  %vm2322_vm3 = vcmask 523264   ;;  %vm2325_vm4 = vcmask 517120   ;;  %s9409_s28 = smov 64  }
  0x15   : > { %s327_s21 = scalar_select %p326_p10, %s9482_s13, 1  ;;  %1283 = vmatpush.msra.mxu0 %v8414_v33  ;;  %9050 = vmatpush.msra.mxu3 %v8414_v33 }
  0x16   : > { %9051 = vmatpush.msra.mxu1 %v8413_v37  ;;  %9052 = vmatpush.msra.mxu2 %v8413_v37  ;;  %s9362_s29 = scalar_lea.hbm %s14559_s9, 512 }
  0x17   : > { %s9065_s22 = smul.u32 432, %s327_s21  ;;  %1284 = vmatpush.msra.mxu0 %v8413_v37  ;;  %9053 = vmatpush.msra.mxu3 %v8413_v37 }
  0x18   : > { %9054 = vmatpush.msra.mxu1 %v8412_v39  ;;  %9055 = vmatpush.msra.mxu2 %v8412_v39 }
  0x19   : > { %s9514_s25 = scalar_lea.vmem %s14550_s0, %s9065_s22  ;;  %1285 = vmatpush.msra.mxu0 %v8412_v39  ;;  %9056 = vmatpush.msra.mxu3 %v8412_v39 }
  0x1a   : > { %v9517_v0 = vld [vmem:[%s9514_s25 + $0xf1] sm:$0xff]  ;;  %v9523_v2 = vld [vmem:[%s9514_s25 + $0x81] sm:$0xff]  ;;  %v9550_v7 = vld [vmem:[%s9514_s25 + $0x99] sm:$0xff] }
  0x1b   : > { %v9520_v1 = vld [vmem:[%s9514_s25 + $0x91] sm:$0xff]  ;;  %917 = vrot.lane.b32.xlu1 %v9517_v0, %s9406_s26  ;;  %899 = vrot.lane.b32.xlu0 %v9523_v2, %s9406_s26  ;;  %v9538_v5 = vld [vmem:[%s9514_s25 + $0x82] sm:$0xff] }
  0x1c   : > { %901 = vrot.lane.b32.xlu2 %v9520_v1, %s9406_s26  ;;  %v9532_v3 = vld [vmem:[%s9514_s25 + $0xf2] sm:$0xff]  ;;  %v9547_v6 = vld [vmem:[%s9514_s25 + $0xfa] sm:$0xff]  ;;  %v8368_v9 = vld [vmem:[%s9514_s25 + $0x109] sm:$0xff] }
  0x1d   : > { %v9535_v4 = vld [vmem:[%s9514_s25 + $0x92] sm:$0xff]  ;;  %v8400_v10 = vld [vmem:[%s9514_s25 + $0x10a] sm:$0xff]  ;;  %v9564_v11 = vld [vmem:[%s9514_s25 + $0x9a] sm:$0xff] }
  0x1e   : > { %v9553_v8 = vld [vmem:[%s9514_s25 + $0xf9] sm:$0xff]  ;;  %v9571_v12 = vld [vmem:[%s9514_s25 + $0xaa] sm:$0xff]  ;;  %v8402_v18 = vld [vmem:[%s9514_s25 + $0x122] sm:$0xff] }
  0x1f   : > { %v8369_v13 = vld [vmem:[%s9514_s25 + $0x111] sm:$0xff]  ;;  %v9575_v14 = vld [vmem:[%s9514_s25 + $0xa9] sm:$0xff]  ;;  %v9596_v19 = vld [vmem:[%s9514_s25 + $0xc1] sm:$0xff] }
  0x20   : > { %v9583_v15 = vld [vmem:[%s9514_s25 + $0xb1] sm:$0xff]  ;;  %v8370_v20 = vld [vmem:[%s9514_s25 + $0x121] sm:$0xff]  ;;  %v8371_v21 = vld [vmem:[%s9514_s25 + $0x129] sm:$0xff] }
  0x21   : > { %v9586_v16 = vld [vmem:[%s9514_s25 + $0xb2] sm:$0xff]  ;;  %v8403_v22 = vld [vmem:[%s9514_s25 + $0x12a] sm:$0xff]  ;;  %v9606_v23 = vld [vmem:[%s9514_s25 + $0xc2] sm:$0xff] }
  0x22   : > { %v8401_v17 = vld [vmem:[%s9514_s25 + $0x112] sm:$0xff]  ;;  %v9613_v24 = vld [vmem:[%s9514_s25 + $0xca] sm:$0xff]  ;;  %v9628_v28 = vld [vmem:[%s9514_s25 + $0xda] sm:$0xff] }
  0x23   : > { %1045 = vrot.lane.b32.xlu1 %v9532_v3, %s9407_s27  ;;  %1027 = vrot.lane.b32.xlu0 %v9538_v5, %s9407_s27  ;;  %v8372_v25 = vld [vmem:[%s9514_s25 + $0x139] sm:$0xff]  ;;  %v9617_v26 = vld [vmem:[%s9514_s25 + $0xc9] sm:$0xff] }
  0x24   : > { %1029 = vrot.lane.b32.xlu2 %v9535_v4, %s9407_s27  ;;  %v9625_v27 = vld [vmem:[%s9514_s25 + $0xd9] sm:$0xff]  ;;  %v8405_v30 = vld [vmem:[%s9514_s25 + $0x142] sm:$0xff]  ;;  %v9649_v34 = vld [vmem:[%s9514_s25 + $0x31] sm:$0xff] }
  0x25   : > { %v8404_v29 = vld [vmem:[%s9514_s25 + $0x13a] sm:$0xff]  ;;  %v9652_v35 = vld [vmem:[%s9514_s25 + $0x32] sm:$0xff]  ;;  %v9655_v36 = vld [vmem:[%s9514_s25 + $0xe2] sm:$0xff] }
  0x26   : > { %v9638_v31 = vld [vmem:[%s9514_s25 + $0xe1] sm:$0xff]  ;;  %v8348_v40 = vld [vmem:[%s9514_s25 + $0x19] sm:$0xff]  ;;  %v396_v49 = vld [vmem:[%s9514_s25 + $0xa] sm:$0xff] }
  0x27   : > { %v8373_v32 = vld [vmem:[%s9514_s25 + $0x141] sm:$0xff]  ;;  %v9676_v44 = vld [vmem:[%s9514_s25 + $0x39] sm:$0xff]  ;;  %v364_v50 = vld [vmem:[%s9514_s25 + $0x9] sm:$0xff] }
  0x28   : > { %v395_v41 = vld [vmem:[%s9514_s25 + $0x2] sm:$0xff]  ;;  %v9679_v45 = vld [vmem:[%s9514_s25 + $0x3a] sm:$0xff]  ;;  %v9697_v55 = vld [vmem:[%s9514_s25 + $0x4a] sm:$0xff] }
  0x29   : > { %v363_v42 = vld [vmem:[%s9514_s25 + $0x1] sm:$0xff]  ;;  %v9694_v54 = vld [vmem:[%s9514_s25 + $0x49] sm:$0xff]  ;;  %v9734_v33 = vld [vmem:[%s9514_s25 + $0x52] sm:$0xff] }
  0x2a   : > { %v8380_v46 = vld [vmem:[%s9514_s25 + $0x1a] sm:$0xff]  ;;  %v8381_v56 = vld [vmem:[%s9514_s25 + $0x22] sm:$0xff]  ;;  %v8334_v57 = vld [vmem:[%s9514_s25 + $0xf0] sm:$0xff] }
  0x2b   : > { %1047 = vrot.lane.b32.xlu1 %v9547_v6, %s9407_s27  ;;  %919 = vrot.lane.b32.xlu0 %v9553_v8, %s9406_s26  ;;  %v8349_v48 = vld [vmem:[%s9514_s25 + $0x21] sm:$0xff]  ;;  %v8327_v37 = vld [vmem:[%s9514_s25 + $0x98] sm:$0xff] }
  0x2c   : > { %903 = vrot.lane.b32.xlu2 %v9550_v7, %s9406_s26  ;;  %v9702_v58 = vld [vmem:[%s9514_s25 + $0x80] sm:$0xff] }
  0x33   : > { %921 = vrot.lane.b32.xlu1 %v8368_v9, %s9406_s26  ;;  %1031 = vrot.lane.b32.xlu0 %v9564_v11, %s9407_s27 }
  0x34   : > { %1049 = vrot.lane.b32.xlu2 %v8400_v10, %s9407_s27 }
  0x3b   : > { %1033 = vrot.lane.b32.xlu1 %v9571_v12, %s9407_s27  ;;  %905 = vrot.lane.b32.xlu0 %v9575_v14, %s9406_s26 }
  0x3c   : > { %923 = vrot.lane.b32.xlu2 %v8369_v13, %s9406_s26  ;;  %v9717_v13 = vld [vmem:[%s9514_s25 + $0x90] sm:$0xff] }
  0x43   : > { %907 = vrot.lane.b32.xlu1 %v9583_v15, %s9406_s26  ;;  %1051 = vrot.lane.b32.xlu0 %v8401_v17, %s9407_s27 }
  0x44   : > { %1035 = vrot.lane.b32.xlu2 %v9586_v16, %s9407_s27 }
  0x4b   : > { %1053 = vrot.lane.b32.xlu1 %v8402_v18, %s9407_s27  ;;  %925 = vrot.lane.b32.xlu0 %v8370_v20, %s9406_s26  ;;  %v8335_v18 = vld [vmem:[%s9514_s25 + $0xf8] sm:$0xff] }
  0x4c   : > { %909 = vrot.lane.b32.xlu2 %v9596_v19, %s9406_s26 }
  0x53   : > { %927 = vrot.lane.b32.xlu1 %v8371_v21, %s9406_s26  ;;  %1037 = vrot.lane.b32.xlu0 %v9606_v23, %s9407_s27 }
  0x54   : > { %1055 = vrot.lane.b32.xlu2 %v8403_v22, %s9407_s27 }
  0x5b   : > { %1039 = vrot.lane.b32.xlu1 %v9613_v24, %s9407_s27  ;;  %911 = vrot.lane.b32.xlu0 %v9617_v26, %s9406_s26 }
  0x5c   : > { %929 = vrot.lane.b32.xlu2 %v8372_v25, %s9406_s26 }
  0x63   : > { %913 = vrot.lane.b32.xlu1 %v9625_v27, %s9406_s26  ;;  %1057 = vrot.lane.b32.xlu0 %v8404_v29, %s9407_s27 }
  0x64   : > { %1041 = vrot.lane.b32.xlu2 %v9628_v28, %s9407_s27 }
  0x6b   : > { %1059 = vrot.lane.b32.xlu1 %v8405_v30, %s9407_s27  ;;  %931 = vrot.lane.b32.xlu0 %v8373_v32, %s9406_s26  ;;  %v9731_v32 = vld [vmem:[%s9514_s25 + $0x51] sm:$0xff] }
  0x6c   : > { %915 = vrot.lane.b32.xlu2 %v9638_v31, %s9406_s26 }
  0x73   : > { %1721 = vrot.lane.b32.xlu1 %v9649_v34, %s9406_s26  ;;  %1043 = vrot.lane.b32.xlu0 %v9655_v36, %s9407_s27 }
  0x74   : > { %1849 = vrot.lane.b32.xlu2 %v9652_v35, %s9407_s27 }
  0x76   : > { %v902_v38 = vpop.permute.xlu2 %901 }
  0x77   : > { %v1115_v17 = vsel %vm683_vm0, %v9717_v13, %v902_v38  ;;  %v8336_v38 = vld [vmem:[%s9514_s25 + $0x108] sm:$0xff] }
  0x7b   : > { %881 = vrot.lane.b32.xlu1 %v8348_v40, %s9406_s26  ;;  %459 = vrot.lane.b32.xlu0 %v363_v42, %s9406_s26 }
  0x7c   : > { %587 = vrot.lane.b32.xlu2 %v395_v41, %s9407_s27 }
  0x7e   : > { %v1030_v43 = vpop.permute.xlu2 %1029 }
  0x7f   : > { %v1147_v29 = vsel %vm716_vm2, %v1115_v17, %v1030_v43 }
  0x83   : > { %1723 = vrot.lane.b32.xlu1 %v9676_v44, %s9406_s26  ;;  %1009 = vrot.lane.b32.xlu0 %v8380_v46, %s9407_s27 }
  0x84   : > { %1851 = vrot.lane.b32.xlu2 %v9679_v45, %s9407_s27 }
  0x86   : > { %v904_v47 = vpop.permute.xlu2 %903 }
  0x87   : > { %v1116_v41 = vsel %vm683_vm0, %v8327_v37, %v904_v47  ;;  %v9756_v47 = vld [vmem:[%s9514_s25 + $0xa8] sm:$0xff] }
  0x88   : > { %v9794_v37 = vld [vmem:[%s9514_s25 + $0x69] sm:$0xff] }
  0x8b   : > { %883 = vrot.lane.b32.xlu1 %v8349_v48, %s9406_s26  ;;  %461 = vrot.lane.b32.xlu0 %v364_v50, %s9406_s26 }
  0x8c   : > { %589 = vrot.lane.b32.xlu2 %v396_v49, %s9407_s27 }
  0x8d   : > { %v918_v51 = vpop.permute.xlu1 %917  ;;  %v900_v53 = vpop.permute.xlu0 %899 }
  0x8e   : > { %v1050_v52 = vpop.permute.xlu2 %1049  ;;  %v1123_v59 = vsel %vm683_vm0, %v8334_v57, %v918_v51  ;;  %v1114_v62 = vsel %vm683_vm0, %v9702_v58, %v900_v53 }
  0x93   : > { %1725 = vrot.lane.b32.xlu1 %v9694_v54, %s9406_s26  ;;  %1011 = vrot.lane.b32.xlu0 %v8381_v56, %s9407_s27 }
  0x94   : > { %1853 = vrot.lane.b32.xlu2 %v9697_v55, %s9407_s27 }
  0x95   : > { %v1046_v60 = vpop.permute.xlu1 %1045  ;;  %v1028_v63 = vpop.permute.xlu0 %1027 }
  0x96   : > { %v924_v61 = vpop.permute.xlu2 %923  ;;  %v1155_v9 = vsel %vm716_vm2, %v1123_v59, %v1046_v60  ;;  %v1146_v10 = vsel %vm716_vm2, %v1114_v62, %v1028_v63  ;;  %v9762_v59 = vld [vmem:[%s9514_s25 + $0x61] sm:$0xff]  ;;  %v8337_v62 = vld [vmem:[%s9514_s25 + $0x110] sm:$0xff] }
  0x97   : > { %8433 = vmatmul.msk.f32.vlgmr.msra.gmra.mxu2 %vm1173_vm1, %v1155_v9  ;;  %8424 = vmatmul.msk.f32.vlgmr.msra.gmra.mxu1 %vm1173_vm1, %v1146_v10  ;;  %v9765_v60 = vld [vmem:[%s9514_s25 + $0x62] sm:$0xff]  ;;  %v1126_v9 = vsel %vm683_vm0, %v8337_v62, %v924_v61 }
  0x98   : > { %v8338_v61 = vld [vmem:[%s9514_s25 + $0x120] sm:$0xff]  ;;  %v750_v62 = vld [vmem:[%s14551_s1 + $0x8] sm:$0xff] }
  0x9b   : > { %885 = vrot.lane.b32.xlu1 %v9649_v34, %s9406_s26  ;;  %463 = vrot.lane.b32.xlu0 %v8348_v40, %s9406_s26 }
  0x9c   : > { %591 = vrot.lane.b32.xlu2 %v8380_v46, %s9407_s27 }
  0x9d   : > { %v1048_v20 = vpop.permute.xlu1 %1047  ;;  %v920_v22 = vpop.permute.xlu0 %919 }
  0x9e   : > { %v1036_v21 = vpop.permute.xlu2 %1035  ;;  %v1124_v25 = vsel %vm683_vm0, %v8335_v18, %v920_v22 }
  0x9f   : > { %8425 = vmatmul.msk.f32.gmra.mxu1 %vm1173_vm1, %v1147_v29  ;;  %v1156_v30 = vsel %vm716_vm2, %v1124_v25, %v1048_v20 }
  0xa0   : > { %8434 = vmatmul.msk.f32.gmra.mxu2 %vm1173_vm1, %v1156_v30 }
  0xa3   : > { %1727 = vrot.lane.b32.xlu1 %v9731_v32, %s9406_s26  ;;  %1013 = vrot.lane.b32.xlu0 %v9652_v35, %s9407_s27 }
  0xa4   : > { %1855 = vrot.lane.b32.xlu2 %v9734_v33, %s9407_s27 }
  0xa5   : > { %v922_v39 = vpop.permute.xlu1 %921  ;;  %v1032_v43 = vpop.permute.xlu0 %1031 }
  0xa6   : > { %v910_v40 = vpop.permute.xlu2 %909  ;;  %v1125_v42 = vsel %vm683_vm0, %v8336_v38, %v922_v39  ;;  %v1148_v46 = vsel %vm716_vm2, %v1116_v41, %v1032_v43  ;;  %v9797_v38 = vld [vmem:[%s9514_s25 + $0x6a] sm:$0xff]  ;;  %v8330_v39 = vld [vmem:[%s9514_s25 + $0xc0] sm:$0xff] }
  0xa7   : > { %v1157_v49 = vsel %vm716_vm2, %v1125_v42, %v1050_v52  ;;  %8426 = vmatmul.msk.f32.gmra.mxu1 %vm1173_vm1, %v1148_v46  ;;  %v1119_v42 = vsel %vm683_vm0, %v8330_v39, %v910_v40  ;;  %v751_v40 = vld [vmem:[%s14551_s1 + $0x10] sm:$0xff] }
  0xa8   : > { %8435 = vmatmul.msk.f32.gmra.mxu2 %vm1173_vm1, %v1157_v49  ;;  %v8577_v49 = vld [vmem:[%s14551_s1 + $0x40] sm:$0xff]  ;;  %1492 = vmatpush.msrb.mxu1 %v751_v40 }
  0xa9   : > { %2122 = vmatpush.msrb.mxu2 %v8577_v49 }
  0xaa   : > { %1493 = vmatpush.msrb.mxu1 %v750_v62 }
  0xab   : > { %887 = vrot.lane.b32.xlu1 %v9676_v44, %s9406_s26  ;;  %465 = vrot.lane.b32.xlu0 %v8349_v48, %s9406_s26  ;;  %v8329_v48 = vld [vmem:[%s9514_s25 + $0xb0] sm:$0xff] }
  0xac   : > { %593 = vrot.lane.b32.xlu2 %v8381_v56, %s9407_s27 }
  0xad   : > { %v1034_v50 = vpop.permute.xlu1 %1033  ;;  %v906_v53 = vpop.permute.xlu0 %905 }
  0xae   : > { %v1056_v51 = vpop.permute.xlu2 %1055  ;;  %v1117_v52 = vsel %vm683_vm0, %v9756_v47, %v906_v53 }
  0xaf   : > { %v1149_v57 = vsel %vm716_vm2, %v1117_v52, %v1034_v50  ;;  %v8576_v52 = vld [vmem:[%s14551_s1 + $0x38] sm:$0xff] }
  0xb0   : > { %8427 = vmatmul.msk.f32.gmra.mxu1 %vm1173_vm1, %v1149_v57  ;;  %v8575_v57 = vld [vmem:[%s14551_s1 + $0x30] sm:$0xff]  ;;  %2123 = vmatpush.msrb.mxu2 %v8576_v52 }
  0xb2   : > { %2124 = vmatpush.msrb.mxu2 %v8575_v57 }
  0xb3   : > { %1729 = vrot.lane.b32.xlu1 %v9762_v59, %s9406_s26  ;;  %1015 = vrot.lane.b32.xlu0 %v9679_v45, %s9407_s27 }
  0xb4   : > { %1857 = vrot.lane.b32.xlu2 %v9765_v60, %s9407_s27 }
  0xb5   : > { %v908_v56 = vpop.permute.xlu1 %907  ;;  %v1052_v17 = vpop.permute.xlu0 %1051 }
  0xb6   : > { %v9776_v63 = vpop.permute.xlu2 %929  ;;  %v1118_v10 = vsel %vm683_vm0, %v8329_v48, %v908_v56  ;;  %v1158_v18 = vsel %vm716_vm2, %v1126_v9, %v1052_v17  ;;  %v9847_v17 = vld [vmem:[%s9514_s25 + $0x79] sm:$0xff] }
  0xb7   : > { %v1150_v20 = vsel %vm716_vm2, %v1118_v10, %v1036_v21  ;;  %8436 = vmatmul.msk.f32.gmra.mxu2 %vm1173_vm1, %v1158_v18  ;;  %v9850_v18 = vld [vmem:[%s9514_s25 + $0x7a] sm:$0xff] }
  0xb8   : > { %8428 = vmatmul.msk.f32.gmra.mxu1 %vm1173_vm1, %v1150_v20  ;;  %v8340_v20 = vld [vmem:[%s9514_s25 + $0x138] sm:$0xff] }
  0xbb   : > { %889 = vrot.lane.b32.xlu1 %v9694_v54, %s9406_s26  ;;  %467 = vrot.lane.b32.xlu0 %v9649_v34, %s9406_s26  ;;  %v8339_v34 = vld [vmem:[%s9514_s25 + $0x128] sm:$0xff] }
  0xbc   : > { %595 = vrot.lane.b32.xlu2 %v9652_v35, %s9407_s27 }
  0xbd   : > { %v1054_v22 = vpop.permute.xlu1 %1053  ;;  %v926_v29 = vpop.permute.xlu0 %925 }
  0xbe   : > { %v1042_v25 = vpop.permute.xlu2 %1041  ;;  %v1127_v21 = vsel %vm683_vm0, %v8338_v61, %v926_v29  ;;  %v8332_v61 = vld [vmem:[%s9514_s25 + $0xd8] sm:$0xff] }
  0xbf   : > { %v1159_v30 = vsel %vm716_vm2, %v1127_v21, %v1054_v22  ;;  %v1129_v21 = vsel %vm683_vm0, %v8340_v20, %v9776_v63  ;;  %v8341_v63 = vld [vmem:[%s9514_s25 + $0x140] sm:$0xff]  ;;  %v8316_v20 = vld [vmem:[%s9514_s25 + $0x18] sm:$0xff] }
  0xc0   : > { %8437 = vmatmul.msk.f32.gmra.mxu2 %vm1173_vm1, %v1159_v30 }
  0xc3   : > { %1731 = vrot.lane.b32.xlu1 %v9794_v37, %s9406_s26  ;;  %1017 = vrot.lane.b32.xlu0 %v9697_v55, %s9407_s27 }
  0xc4   : > { %1859 = vrot.lane.b32.xlu2 %v9797_v38, %s9407_s27 }
  0xc5   : > { %v928_v35 = vpop.permute.xlu1 %927  ;;  %v1038_v46 = vpop.permute.xlu0 %1037 }
  0xc6   : > { %v9808_v41 = vpop.permute.xlu2 %915  ;;  %v1128_v43 = vsel %vm683_vm0, %v8339_v34, %v928_v35  ;;  %v1151_v50 = vsel %vm716_vm2, %v1119_v42, %v1038_v46 }
  0xc7   : > { %v1160_v53 = vsel %vm716_vm2, %v1128_v43, %v1056_v51  ;;  %8429 = vmatmul.msk.f32.gmra.mxu1 %vm1173_vm1, %v1151_v50  ;;  %v9835_v51 = vld [vmem:[%s9514_s25 + $0xc8] sm:$0xff]  ;;  %v8333_v50 = vld [vmem:[%s9514_s25 + $0xe0] sm:$0xff] }
  0xc8   : > { %8438 = vmatmul.msk.f32.gmra.mxu2 %vm1173_vm1, %v1160_v53  ;;  %v1122_v52 = vsel %vm683_vm0, %v8333_v50, %v9808_v41  ;;  %v331_v41 = vld [vmem:[%s9514_s25] sm:$0xff] }
  0xcb   : > { %891 = vrot.lane.b32.xlu1 %v9731_v32, %s9406_s26  ;;  %469 = vrot.lane.b32.xlu0 %v9676_v44, %s9406_s26 }
  0xcc   : > { %597 = vrot.lane.b32.xlu2 %v9679_v45, %s9407_s27  ;;  %v749_v45 = vld [vmem:[%s14551_s1] sm:$0xff] }
  0xcd   : > { %v1040_v48 = vpop.permute.xlu1 %1039  ;;  %v912_v9 = vpop.permute.xlu0 %911  ;;  %1494 = vmatpush.msrb.mxu1 %v749_v45 }
  0xce   : > { %v1850_v56 = vpop.permute.xlu2 %1849  ;;  %v1120_v10 = vsel %vm683_vm0, %v9835_v51, %v912_v9 }
  0xcf   : > { %v1152_v44 = vsel %vm716_vm2, %v1120_v10, %v1040_v48 }
  0xd0   : > { %8430 = vmatmul.msk.f32.gmra.mxu1 %vm1173_vm1, %v1152_v44 }
  0xd3   : > { %1733 = vrot.lane.b32.xlu1 %v9847_v17, %s9406_s26  ;;  %1019 = vrot.lane.b32.xlu0 %v9734_v33, %s9407_s27 }
  0xd4   : > { %1861 = vrot.lane.b32.xlu2 %v9850_v18, %s9407_s27 }
  0xd5   : > { %v914_v22 = vpop.permute.xlu1 %913  ;;  %v1058_v39 = vpop.permute.xlu0 %1057 }
  0xd6   : > { %v588_v29 = vpop.permute.xlu2 %587  ;;  %v1121_v30 = vsel %vm683_vm0, %v8332_v61, %v914_v22  ;;  %v1161_v34 = vsel %vm716_vm2, %v1129_v21, %v1058_v39 }
  0xd7   : > { %v1153_v35 = vsel %vm716_vm2, %v1121_v30, %v1042_v25  ;;  %8439 = vmatmul.msk.f32.gmra.mxu2 %vm1173_vm1, %v1161_v34  ;;  %v332_v34 = vld [vmem:[%s9514_s25 + $0x8] sm:$0xff] }
  0xd8   : > { %8431 = vmatmul.msk.f32.gmra.mxu1 %vm1173_vm1, %v1153_v35 }
  0xdb   : > { %893 = vrot.lane.b32.xlu1 %v9762_v59, %s9406_s26  ;;  %471 = vrot.lane.b32.xlu0 %v9694_v54, %s9406_s26 }
  0xdc   : > { %599 = vrot.lane.b32.xlu2 %v9697_v55, %s9407_s27  ;;  %v9884_v55 = vld [vmem:[%s9514_s25 + $0x30] sm:$0xff] }
  0xdd   : > { %v1060_v42 = vpop.permute.xlu1 %1059  ;;  %v932_v46 = vpop.permute.xlu0 %931 }
  0xde   : > { %v1852_v43 = vpop.permute.xlu2 %1851  ;;  %v1130_v25 = vsel %vm683_vm0, %v8341_v63, %v932_v46 }
  0xdf   : > { %v1162_v49 = vsel %vm716_vm2, %v1130_v25, %v1060_v42  ;;  %v8317_v25 = vld [vmem:[%s9514_s25 + $0x20] sm:$0xff] }
  0xe0   : > { %8440 = vmatmul.msk.f32.gmra.mxu2 %vm1173_vm1, %v1162_v49 }
  0xe3   : > { %1735 = vrot.lane.b32.xlu1 %v9523_v2, %s9406_s26  ;;  %1021 = vrot.lane.b32.xlu0 %v9765_v60, %s9407_s27 }
  0xe4   : > { %1863 = vrot.lane.b32.xlu2 %v9538_v5, %s9407_s27 }
  0xe5   : > { %v1722_v54 = vpop.permute.xlu1 %1721  ;;  %v1044_v57 = vpop.permute.xlu0 %1043 }
  0xe6   : > { %v590_v53 = vpop.permute.xlu2 %589  ;;  %v1945_v40 = vsel %vm683_vm0, %v9884_v55, %v1722_v54  ;;  %v1154_v62 = vsel %vm716_vm2, %v1122_v52, %v1044_v57 }
  0xe7   : > { %v1977_v48 = vsel %vm716_vm2, %v1945_v40, %v1850_v56  ;;  %8432 = vmatmul.msk.f32.gmra.mxu1 %vm1173_vm1, %v1154_v62 }
  0xe8   : > { %8578 = vmatmul.msk.f32.vlgmr.msrb.gmra.mxu2 %vm1173_vm1, %v1977_v48 }
  0xeb   : > { %895 = vrot.lane.b32.xlu1 %v9794_v37, %s9406_s26  ;;  %473 = vrot.lane.b32.xlu0 %v9731_v32, %s9406_s26 }
  0xec   : > { %601 = vrot.lane.b32.xlu2 %v9734_v33, %s9407_s27  ;;  %v9912_v33 = vld [vmem:[%s9514_s25 + $0x38] sm:$0xff] }
  0xed   : > { %v882_v9 = vpop.permute.xlu1 %881  ;;  %v460_v45 = vpop.permute.xlu0 %459 }
  0xee   : > { %v1854_v10 = vpop.permute.xlu2 %1853  ;;  %v684_v56 = vsel %vm683_vm0, %v331_v41, %v460_v45  ;;  %v1105_v22 = vsel %vm683_vm0, %v8316_v20, %v882_v9 }
  0xef   : > { %v717_v44 = vsel %vm716_vm2, %v684_v56, %v588_v29 }
  0xf0   : > { %8447 = vmatmul.msk.f32.vlgmr.msrb.gmra.mxu1 %vm1173_vm1, %v717_v44 }
  0xf3   : > { %1737 = vrot.lane.b32.xlu1 %v9520_v1, %s9406_s26  ;;  %1023 = vrot.lane.b32.xlu0 %v9797_v38, %s9407_s27 }
  0xf4   : > { %1865 = vrot.lane.b32.xlu2 %v9535_v4, %s9407_s27 }
  0xf5   : > { %v1724_v32 = vpop.permute.xlu1 %1723  ;;  %v1010_v21 = vpop.permute.xlu0 %1009 }
  0xf6   : > { %v592_v61 = vpop.permute.xlu2 %591  ;;  %v1946_v29 = vsel %vm683_vm0, %v9912_v33, %v1724_v32  ;;  %v1137_v30 = vsel %vm716_vm2, %v1105_v22, %v1010_v21 }
  0xf7   : > { %v1978_v39 = vsel %vm716_vm2, %v1946_v29, %v1852_v43  ;;  %8415 = vmatmul.msk.f32.vlgmr.msra.gmra.mxu0 %vm1173_vm1, %v1137_v30 }
  0xf8   : > { %8579 = vmatmul.msk.f32.gmra.mxu2 %vm1173_vm1, %v1978_v39 }
  0xfb   : > { %897 = vrot.lane.b32.xlu1 %v9847_v17, %s9406_s26  ;;  %475 = vrot.lane.b32.xlu0 %v9762_v59, %s9406_s26 }
  0xfc   : > { %603 = vrot.lane.b32.xlu2 %v9765_v60, %s9407_s27  ;;  %v9939_v60 = vld [vmem:[%s9514_s25 + $0x48] sm:$0xff] }
  0xfd   : > { %v884_v35 = vpop.permute.xlu1 %883  ;;  %v462_v42 = vpop.permute.xlu0 %461 }
  0xfe   : > { %v1856_v63 = vpop.permute.xlu2 %1855  ;;  %v685_v43 = vsel %vm683_vm0, %v332_v34, %v462_v42  ;;  %v1106_v50 = vsel %vm683_vm0, %v8317_v25, %v884_v35 }
  0xff   : > { %v718_v46 = vsel %vm716_vm2, %v685_v43, %v590_v53 }
 0x100   : > { %8448 = vmatmul.msk.f32.gmra.mxu1 %vm1173_vm1, %v718_v46 }
 0x103   : > { %1739 = vrot.lane.b32.xlu1 %v9550_v7, %s9406_s26  ;;  %1025 = vrot.lane.b32.xlu0 %v9850_v18, %s9407_s27 }
 0x104   : > { %1867 = vrot.lane.b32.xlu2 %v9564_v11, %s9407_s27 }
 0x105   : > { %v1726_v59 = vpop.permute.xlu1 %1725  ;;  %v1012_v53 = vpop.permute.xlu0 %1011 }
 0x106   : > { %v594_v49 = vpop.permute.xlu2 %593  ;;  %v1947_v54 = vsel %vm683_vm0, %v9939_v60, %v1726_v59  ;;  %v1138_v52 = vsel %vm716_vm2, %v1106_v50, %v1012_v53 }
 0x107   : > { %v1979_v40 = vsel %vm716_vm2, %v1947_v54, %v1854_v10  ;;  %8416 = vmatmul.msk.f32.gmra.mxu0 %vm1173_vm1, %v1138_v52 }
 0x108   : > { %8580 = vmatmul.msk.f32.gmra.mxu2 %vm1173_vm1, %v1979_v40 }
 0x10b   : > { %605 = vrot.lane.b32.xlu1 %v9797_v38, %s9407_s27  ;;  %477 = vrot.lane.b32.xlu0 %v9794_v37, %s9406_s26  ;;  %v9964_v38 = vld [vmem:[%s9514_s25 + $0x50] sm:$0xff] }
 0x10c   : > { %1741 = vrot.lane.b32.xlu2 %v9575_v14, %s9406_s26 }
 0x10d   : > { %v886_v57 = vpop.permute.xlu1 %885  ;;  %v464_v48 = vpop.permute.xlu0 %463 }
 0x10e   : > { %v1858_v62 = vpop.permute.xlu2 %1857  ;;  %v686_v41 = vsel %vm683_vm0, %v8316_v20, %v464_v48  ;;  %v1107_v10 = vsel %vm683_vm0, %v9884_v55, %v886_v57 }
 0x10f   : > { %v719_v9 = vsel %vm716_vm2, %v686_v41, %v592_v61 }
 0x110   : > { %8449 = vmatmul.msk.f32.gmra.mxu1 %vm1173_vm1, %v719_v9 }
 0x113   : > { %479 = vrot.lane.b32.xlu1 %v9847_v17, %s9406_s26  ;;  %1869 = vrot.lane.b32.xlu0 %v9571_v12, %s9407_s27 }
 0x114   : > { %607 = vrot.lane.b32.xlu2 %v9850_v18, %s9407_s27  ;;  %v9985_v21 = vpop.f32.mrf.mxu1 }
 0x115   : > { %v1728_v37 = vpop.permute.xlu1 %1727  ;;  %v1014_v44 = vpop.permute.xlu0 %1013 }
 0x116   : > { %v1948_v45 = vsel %vm683_vm0, %v9964_v38, %v1728_v37  ;;  %v596_v56 = vpop.permute.xlu2 %595  ;;  %v1139_v20 = vsel %vm716_vm2, %v1107_v10, %v1014_v44 }
 0x117   : > { %v1980_v18 = vsel %vm716_vm2, %v1948_v45, %v1856_v63  ;;  %8417 = vmatmul.msk.f32.gmra.mxu0 %vm1173_vm1, %v1139_v20 }
 0x118   : > { %8581 = vmatmul.msk.f32.gmra.mxu2 %vm1173_vm1, %v1980_v18 }
 0x11a   : > { %v10014_v50 = vpop.f32.mrf.mxu2 }
 0x11b   : > { %1871 = vrot.lane.b32.xlu1 %v9586_v16, %s9407_s27  ;;  %1743 = vrot.lane.b32.xlu0 %v9583_v15, %s9406_s26 }
 0x11c   : > { %481 = vrot.lane.b32.xlu2 %v9523_v2, %s9406_s26  ;;  %v9992_v2 = vld [vmem:[%s9514_s25 + $0x60] sm:$0xff] }
 0x11d   : > { %v888_v17 = vpop.permute.xlu1 %887  ;;  %v466_v61 = vpop.permute.xlu0 %465 }
 0x11e   : > { %v1860_v32 = vpop.permute.xlu2 %1859  ;;  %v687_v22 = vsel %vm683_vm0, %v8317_v25, %v466_v61  ;;  %v1108_v39 = vsel %vm683_vm0, %v9912_v33, %v888_v17 }
 0x11f   : > { %v720_v29 = vsel %vm716_vm2, %v687_v22, %v594_v49 }
 0x120   : > { %8450 = vmatmul.msk.f32.gmra.mxu1 %vm1173_vm1, %v720_v29 }
 0x123   : > { %1745 = vrot.lane.b32.xlu1 %v9596_v19, %s9406_s26  ;;  %609 = vrot.lane.b32.xlu0 %v9538_v5, %s9407_s27  ;;  %v10008_v5 = vpop.f32.mrf.mxu1 }
 0x124   : > { %1873 = vrot.lane.b32.xlu2 %v9606_v23, %s9407_s27 }
 0x125   : > { %v1730_v30 = vpop.permute.xlu1 %1729  ;;  %v1016_v63 = vpop.permute.xlu0 %1015 }
 0x126   : > { %v1949_v34 = vsel %vm683_vm0, %v9992_v2, %v1730_v30  ;;  %v598_v35 = vpop.permute.xlu2 %597  ;;  %v1140_v42 = vsel %vm716_vm2, %v1108_v39, %v1016_v63 }
 0x127   : > { %v1981_v43 = vsel %vm716_vm2, %v1949_v34, %v1858_v62  ;;  %8418 = vmatmul.msk.f32.gmra.mxu0 %vm1173_vm1, %v1140_v42  ;;  %v10037_v62 = vpop.f32.mrf.mxu2  ;;  %v9408_v42 = vmov 0.0  }
 0x128   : > { %8582 = vmatmul.msk.f32.gmra.mxu2 %vm1173_vm1, %v1981_v43  ;;  %2327 = vst.msk [vmem:[#allocation2 + $0x18] sm:$0xff] %vm2322_vm3, %v9408_v42 }
 0x129   : > { %2328 = vst.msk [vmem:[#allocation2 + $0x20] sm:$0xff] %vm2322_vm3, %v9408_v42 }
 0x12a   : > { %2323 = vst.msk [vmem:[#allocation2] sm:$0xff] %vm2322_vm3, %v9408_v42 }
 0x12b   : > { %611 = vrot.lane.b32.xlu1 %v9535_v4, %s9407_s27  ;;  %483 = vrot.lane.b32.xlu0 %v9520_v1, %s9406_s26  ;;  %v10023_v4 = vld [vmem:[%s9514_s25 + $0x68] sm:$0xff]  ;;  %v10027_v53 = vpop.f32.mrf.mxu1  ;;  %2324 = vst.msk [vmem:[#allocation2 + $0x8] sm:$0xff] %vm2322_vm3, %v9408_v42 }
 0x12c   : > { %1747 = vrot.lane.b32.xlu2 %v9617_v26, %s9406_s26  ;;  %2330 = vst.msk [vmem:[#allocation2 + $0x30] sm:$0xff] %vm2322_vm3, %v9408_v42 }
 0x12d   : > { %v890_v46 = vpop.permute.xlu1 %889  ;;  %v468_v59 = vpop.permute.xlu0 %467  ;;  %2331 = vst.msk [vmem:[#allocation2 + $0x38] sm:$0xff] %vm2322_vm3, %v9408_v42 }
 0x12e   : > { %v1862_v25 = vpop.permute.xlu2 %1861  ;;  %v688_v49 = vsel %vm683_vm0, %v9884_v55, %v468_v59  ;;  %v1109_v40 = vsel %vm683_vm0, %v9939_v60, %v890_v46  ;;  %2333 = vst.msk [vmem:[#allocation2 + $0x48] sm:$0xff] %vm2322_vm3, %v9408_v42 }
 0x12f   : > { %v721_v54 = vsel %vm716_vm2, %v688_v49, %v596_v56  ;;  %v10051_v56 = vpop.f32.mrf.mxu2  ;;  %2334 = vst.msk [vmem:[#allocation2 + $0x50] sm:$0xff] %vm2322_vm3, %v9408_v42 }
 0x130   : > { %8451 = vmatmul.msk.f32.gmra.mxu1 %vm1173_vm1, %v721_v54  ;;  %2336 = vst.msk [vmem:[#allocation2 + $0x60] sm:$0xff] %vm2322_vm3, %v9408_v42 }
 0x131   : > { %2337 = vst.msk [vmem:[#allocation2 + $0x68] sm:$0xff] %vm2322_vm3, %v9408_v42 }
 0x132   : > { %2339 = vst.msk [vmem:[#allocation2 + $0x78] sm:$0xff] %vm2322_vm3, %v9408_v42 }
 0x133   : > { %485 = vrot.lane.b32.xlu1 %v9550_v7, %s9406_s26  ;;  %1875 = vrot.lane.b32.xlu0 %v9613_v24, %s9407_s27  ;;  %v10045_v37 = vpop.f32.mrf.mxu1  ;;  %2340 = vst.msk [vmem:[#allocation2 + $0x80] sm:$0xff] %vm2322_vm3, %v9408_v42 }
 0x134   : > { %613 = vrot.lane.b32.xlu2 %v9564_v11, %s9407_s27  ;;  %2342 = vst.msk [vmem:[#allocation2 + $0x90] sm:$0xff] %vm2322_vm3, %v9408_v42 }
 0x135   : > { %v1732_v1 = vpop.permute.xlu1 %1731  ;;  %v1018_v57 = vpop.permute.xlu0 %1017  ;;  %2343 = vst.msk [vmem:[#allocation2 + $0x98] sm:$0xff] %vm2322_vm3, %v9408_v42 }
 0x136   : > { %v1950_v55 = vsel %vm683_vm0, %v10023_v4, %v1732_v1  ;;  %v600_v52 = vpop.permute.xlu2 %599  ;;  %v1141_v7 = vsel %vm716_vm2, %v1109_v40, %v1018_v57  ;;  %v10171_v40 = vld [vmem:[%s9514_s25 + $0x159] sm:$0xff]  ;;  %v10174_v57 = vld [vmem:[%s9514_s25 + $0x10a] sm:$0xff]  ;;  %2345 = vst.msk [vmem:[#allocation2 + $0xa8] sm:$0xff] %vm2322_vm3, %v9408_v42 }
 0x137   : > { %v1982_v11 = vsel %vm716_vm2, %v1950_v55, %v1860_v32  ;;  %8419 = vmatmul.msk.f32.gmra.mxu0 %vm1173_vm1, %v1141_v7  ;;  %v8632_v7 = vld [vmem:[%s14553_s3 + $0x170] sm:$0xff]  ;;  %2346 = vst.msk [vmem:[#allocation2 + $0xb0] sm:$0xff] %vm2322_vm3, %v9408_v42 }
 0x138   : > { %8583 = vmatmul.msk.f32.gmra.mxu2 %vm1173_vm1, %v1982_v11  ;;  %v10180_v11 = vld [vmem:[%s9514_s25 + $0x109] sm:$0xff]  ;;  %2348 = vst.msk [vmem:[#allocation2 + $0xc0] sm:$0xff] %vm2322_vm3, %v9408_v42 }
 0x139   : > { %2349 = vst.msk [vmem:[#allocation2 + $0xc8] sm:$0xff] %vm2322_vm3, %v9408_v42 }
 0x13a   : > { %2351 = vst.msk [vmem:[#allocation2 + $0xd8] sm:$0xff] %vm2322_vm3, %v9408_v42 }
 0x13b   : > { %1877 = vrot.lane.b32.xlu1 %v9628_v28, %s9407_s27  ;;  %1749 = vrot.lane.b32.xlu0 %v9625_v27, %s9406_s26  ;;  %2352 = vst.msk [vmem:[#allocation2 + $0xe0] sm:$0xff] %vm2322_vm3, %v9408_v42 }
 0x13c   : > { %487 = vrot.lane.b32.xlu2 %v9575_v14, %s9406_s26  ;;  %v10058_v14 = vld [vmem:[%s9514_s25 + $0x78] sm:$0xff]  ;;  %2354 = vst.msk [vmem:[#allocation2 + $0xf0] sm:$0xff] %vm2322_vm3, %v9408_v42 }
 0x13d   : > { %v892_v48 = vpop.permute.xlu1 %891  ;;  %v470_v9 = vpop.permute.xlu0 %469  ;;  %2355 = vst.msk [vmem:[#allocation2 + $0xf8] sm:$0xff] %vm2322_vm3, %v9408_v42 }
 0x13e   : > { %v1864_v41 = vpop.permute.xlu2 %1863  ;;  %v689_v10 = vsel %vm683_vm0, %v9912_v33, %v470_v9  ;;  %v1110_v44 = vsel %vm683_vm0, %v9964_v38, %v892_v48  ;;  %2357 = vst.msk [vmem:[#allocation2 + $0x108] sm:$0xff] %vm2322_vm3, %v9408_v42 }
 0x13f   : > { %v722_v45 = vsel %vm716_vm2, %v689_v10, %v598_v35  ;;  %v8630_v10 = vld [vmem:[%s14553_s3 + $0x160] sm:$0xff]  ;;  %2358 = vst.msk [vmem:[#allocation2 + $0x110] sm:$0xff] %vm2322_vm3, %v9408_v42 }
 0x140   : > { %8452 = vmatmul.msk.f32.gmra.mxu1 %vm1173_vm1, %v722_v45  ;;  %2360 = vst.msk [vmem:[#allocation2 + $0x120] sm:$0xff] %vm2322_vm3, %v9408_v42 }
 0x141   : > { %2361 = vst.msk [vmem:[#allocation2 + $0x128] sm:$0xff] %vm2322_vm3, %v9408_v42 }
 0x142   : > { %2363 = vst.msk [vmem:[#allocation2 + $0x138] sm:$0xff] %vm2322_vm3, %v9408_v42 }
 0x143   : > { %1751 = vrot.lane.b32.xlu1 %v9638_v31, %s9406_s26  ;;  %615 = vrot.lane.b32.xlu0 %v9571_v12, %s9407_s27  ;;  %v10072_v12 = vpop.f32.mrf.mxu2  ;;  %2364 = vst.msk [vmem:[#allocation2 + $0x140] sm:$0xff] %vm2322_vm3, %v9408_v42 }
 0x144   : > { %1879 = vrot.lane.b32.xlu2 %v9655_v36, %s9407_s27  ;;  %v10067_v36 = vpop.f32.mrf.mxu1  ;;  %2366 = vst.msk [vmem:[#allocation2 + $0x150] sm:$0xff] %vm2322_vm3, %v9408_v42 }
 0x145   : > { %v1734_v27 = vpop.permute.xlu1 %1733  ;;  %v1020_v20 = vpop.permute.xlu0 %1019  ;;  %2367 = vst.msk [vmem:[#allocation2 + $0x158] sm:$0xff] %vm2322_vm3, %v9408_v42 }
 0x146   : > { %v1951_v28 = vsel %vm683_vm0, %v10058_v14, %v1734_v27  ;;  %v602_v33 = vpop.permute.xlu2 %601  ;;  %v1142_v31 = vsel %vm716_vm2, %v1110_v44, %v1020_v20  ;;  %v413_v20 = vld [vmem:[%s9514_s25 + $0xda] sm:$0xff]  ;;  %2369 = vst.msk [vmem:[#allocation2 + $0x168] sm:$0xff] %vm2322_vm3, %v9408_v42 }
 0x147   : > { %v1983_v18 = vsel %vm716_vm2, %v1951_v28, %v1862_v25  ;;  %8420 = vmatmul.msk.f32.gmra.mxu0 %vm1173_vm1, %v1142_v31  ;;  %v10131_v25 = vld [vmem:[%s9514_s25 + $0x152] sm:$0xff]  ;;  %2370 = vst.msk [vmem:[#allocation2 + $0x170] sm:$0xff] %vm2322_vm3, %v9408_v42 }
 0x148   : > { %8584 = vmatmul.msk.f32.gmra.mxu2 %vm1173_vm1, %v1983_v18  ;;  %v381_v18 = vld [vmem:[%s9514_s25 + $0xd9] sm:$0xff]  ;;  %2372 = vst.msk [vmem:[#allocation2 + $0x180] sm:$0xff] %vm2322_vm3, %v9408_v42 }
 0x149   : > { %2373 = vst.msk [vmem:[#allocation2 + $0x188] sm:$0xff] %vm2322_vm3, %v9408_v42 }
 0x14a   : > { %2375 = vst.msk [vmem:[#allocation2 + $0x198] sm:$0xff] %vm2322_vm3, %v9408_v42 }
 0x14b   : > { %617 = vrot.lane.b32.xlu1 %v9586_v16, %s9407_s27  ;;  %489 = vrot.lane.b32.xlu0 %v9583_v15, %s9406_s26  ;;  %2376 = vst.msk [vmem:[#allocation2 + $0x1a0] sm:$0xff] %vm2322_vm3, %v9408_v42 }
 0x14c   : > { %1753 = vrot.lane.b32.xlu2 %v9517_v0, %s9406_s26  ;;  %v10080_v22 = vpop.f32.mrf.mxu1  ;;  %v10092_v0 = vpop.f32.mrf.mxu2  ;;  %2329 = vst.msk [vmem:[#allocation2 + $0x28] sm:$0x3] %vm2325_vm4, %v9408_v42 }
 0x14d   : > { %v894_v17 = vpop.permute.xlu1 %893  ;;  %v472_v61 = vpop.permute.xlu0 %471  ;;  %2326 = vst.msk [vmem:[#allocation2 + $0x10] sm:$0x3] %vm2325_vm4, %v9408_v42 }
 0x14e   : > { %v1866_v32 = vpop.permute.xlu2 %1865  ;;  %v690_v29 = vsel %vm683_vm0, %v9939_v60, %v472_v61  ;;  %v1111_v39 = vsel %vm683_vm0, %v9992_v2, %v894_v17  ;;  %v10229_v17 = vld [vmem:[%s9514_s25 + $0x15a] sm:$0xff]  ;;  %v8627_v61 = vld [vmem:[%s14553_s3 + $0x148] sm:$0xff]  ;;  %2332 = vst.msk [vmem:[#allocation2 + $0x40] sm:$0x3] %vm2325_vm4, %v9408_v42 }
 0x14f   : > { %v723_v30 = vsel %vm716_vm2, %v690_v29, %v600_v52  ;;  %v8633_v52 = vld [vmem:[%s14553_s3 + $0x178] sm:$0xff]  ;;  %2335 = vst.msk [vmem:[#allocation2 + $0x58] sm:$0x3] %vm2325_vm4, %v9408_v42 }
 0x150   : > { %8453 = vmatmul.msk.f32.gmra.mxu1 %vm1173_vm1, %v723_v30  ;;  %3189 = vmatpush.msrb.mxu0 %v8633_v52  ;;  %2338 = vst.msk [vmem:[#allocation2 + $0x70] sm:$0x3] %vm2325_vm4, %v9408_v42 }
 0x151   : > { %2341 = vst.msk [vmem:[#allocation2 + $0x88] sm:$0x3] %vm2325_vm4, %v9408_v42 }
 0x152   : > { %3190 = vmatpush.msrb.mxu0 %v8632_v7  ;;  %2344 = vst.msk [vmem:[#allocation2 + $0xa0] sm:$0x3] %vm2325_vm4, %v9408_v42 }
 0x153   : > { %491 = vrot.lane.b32.xlu1 %v9596_v19, %s9406_s26  ;;  %1881 = vrot.lane.b32.xlu0 %v9532_v3, %s9407_s27  ;;  %v10104_v19 = vld [vmem:[%s9514_s25 + $0x151] sm:$0xff]  ;;  %2347 = vst.msk [vmem:[#allocation2 + $0xb8] sm:$0x3] %vm2325_vm4, %v9408_v42 }
 0x154   : > { %619 = vrot.lane.b32.xlu2 %v9606_v23, %s9407_s27  ;;  %v10107_v3 = vpop.f32.mrf.mxu1  ;;  %2350 = vst.msk [vmem:[#allocation2 + $0xd0] sm:$0x3] %vm2325_vm4, %v9408_v42 }
 0x155   : > { %v1736_v15 = vpop.permute.xlu1 %1735  ;;  %v1022_v34 = vpop.permute.xlu0 %1021  ;;  %2353 = vst.msk [vmem:[#allocation2 + $0xe8] sm:$0x3] %vm2325_vm4, %v9408_v42 }
 0x156   : > { %v1952_v16 = vsel %vm683_vm0, %v9702_v58, %v1736_v15  ;;  %v10096_v60 = vpop.permute.xlu2 %603  ;;  %v1143_v35 = vsel %vm716_vm2, %v1111_v39, %v1022_v34  ;;  %v10115_v58 = vpop.f32.mrf.mxu2  ;;  %v10261_v39 = vld [vmem:[%s14552_s2] ss:$0 sm:$0xff]  ;;  %2356 = vst.msk [vmem:[#allocation2 + $0x100] sm:$0x3] %vm2325_vm4, %v9408_v42 }
 0x157   : > { %v1984_v23 = vsel %vm716_vm2, %v1952_v16, %v1864_v41  ;;  %8421 = vmatmul.msk.f32.gmra.mxu0 %vm1173_vm1, %v1143_v35  ;;  %v8631_v41 = vld [vmem:[%s14553_s3 + $0x168] sm:$0xff]  ;;  %v8626_v16 = vld [vmem:[%s14553_s3 + $0x140] sm:$0xff]  ;;  %2359 = vst.msk [vmem:[#allocation2 + $0x118] sm:$0x3] %vm2325_vm4, %v9408_v42 }
 0x158   : > { %8585 = vmatmul.msk.f32.gmra.mxu2 %vm1173_vm1, %v1984_v23  ;;  %3191 = vmatpush.msrb.mxu0 %v8631_v41  ;;  %2362 = vst.msk [vmem:[#allocation2 + $0x130] sm:$0x3] %vm2325_vm4, %v9408_v42 }
 0x159   : > { %2365 = vst.msk [vmem:[#allocation2 + $0x148] sm:$0x3] %vm2325_vm4, %v9408_v42 }
 0x15a   : > { %3192 = vmatpush.msrb.mxu0 %v8630_v10  ;;  %v382_v10 = vld [vmem:[%s9514_s25 + $0xe1] sm:$0xff]  ;;  %2368 = vst.msk [vmem:[#allocation2 + $0x160] sm:$0x3] %vm2325_vm4, %v9408_v42 }
 0x15b   : > { %1883 = vrot.lane.b32.xlu1 %v9547_v6, %s9407_s27  ;;  %1755 = vrot.lane.b32.xlu0 %v9553_v8, %s9406_s26  ;;  %2371 = vst.msk [vmem:[#allocation2 + $0x178] sm:$0x3] %vm2325_vm4, %v9408_v42 }
 0x15c   : > { %933 = vrot.lane.b32.xlu2 %v10104_v19, %s9406_s26  ;;  %v10135_v59 = vpop.f32.mrf.mxu1  ;;  %2374 = vst.msk [vmem:[#allocation2 + $0x190] sm:$0x3] %vm2325_vm4, %v9408_v42 }
 0x15d   : > { %v896_v63 = vpop.permute.xlu1 %895  ;;  %v474_v46 = vpop.permute.xlu0 %473  ;;  %2377 = vst.msk [vmem:[#allocation2 + $0x1a8] sm:$0x3] %vm2325_vm4, %v9408_v42 }
 0x15e   : > { %v10119_v43 = vpop.permute.xlu2 %1867  ;;  %v691_v6 = vsel %vm683_vm0, %v9964_v38, %v474_v46  ;;  %v10150_v38 = vpop.f32.mrf.mxu2  ;;  %v1112_v54 = vsel %vm683_vm0, %v10023_v4, %v896_v63 }
 0x15f   : > { %v724_v8 = vsel %vm716_vm2, %v691_v6, %v602_v33  ;;  %v8629_v33 = vld [vmem:[%s14553_s3 + $0x158] sm:$0xff] }
 0x160   : > { %8454 = vmatmul.msk.f32.gmra.mxu1 %vm1173_vm1, %v724_v8  ;;  %3193 = vmatpush.msrb.mxu0 %v8629_v33  ;;  %v10321_v33 = vld [vmem:[%s9514_s25 + $0x16a] sm:$0xff] }
 0x163   : > { %493 = vrot.lane.b32.xlu1 %v9617_v26, %s9406_s26  ;;  %1061 = vrot.lane.b32.xlu0 %v10131_v25, %s9407_s27 }
 0x164   : > { %621 = vrot.lane.b32.xlu2 %v9613_v24, %s9407_s27  ;;  %v10187_v48 = vpop.f32.mrf.mxu1 }
 0x165   : > { %v1738_v49 = vpop.permute.xlu1 %1737  ;;  %v1024_v1 = vpop.permute.xlu0 %1023 }
 0x166   : > { %v1953_v24 = vsel %vm683_vm0, %v9717_v13, %v1738_v49  ;;  %v10156_v26 = vpop.permute.xlu2 %1741  ;;  %v1144_v13 = vsel %vm716_vm2, %v1112_v54, %v1024_v1  ;;  %v10213_v27 = vpop.f32.mrf.mxu2  ;;  %v10283_v54 = vld [vmem:[%s9514_s25 + $0x112] sm:$0xff] }
 0x167   : > { %v1985_v55 = vsel %vm716_vm2, %v1953_v24, %v1866_v32  ;;  %8422 = vmatmul.msk.f32.gmra.mxu0 %vm1173_vm1, %v1144_v13  ;;  %v8628_v32 = vld [vmem:[%s14553_s3 + $0x150] sm:$0xff] }
 0x168   : > { %8586 = vmatmul.msk.f32.gmra.mxu2 %vm1173_vm1, %v1985_v55  ;;  %3194 = vmatpush.msrb.mxu0 %v8628_v32  ;;  %v10280_v24 = vld [vmem:[%s9514_s25 + $0x169] sm:$0xff]  ;;  %v10289_v1 = vld [vmem:[%s9514_s25 + $0x111] sm:$0xff] }
 0x16a   : > { %3195 = vmatpush.msrb.mxu0 %v8627_v61  ;;  %v1955_v61 = vsel %vm683_vm0, %v9756_v47, %v10156_v26  ;;  %v10362_v47 = vld [vmem:[%s9514_s25 + $0x121] sm:$0xff] }
 0x16b   : > { %1885 = vrot.lane.b32.xlu1 %v10174_v57, %s9407_s27  ;;  %1757 = vrot.lane.b32.xlu0 %v10180_v11, %s9406_s26 }
 0x16c   : > { %935 = vrot.lane.b32.xlu2 %v10171_v40, %s9406_s26  ;;  %3196 = vmatpush.msrb.mxu0 %v8626_v16 }
 0x16d   : > { %v898_v9 = vpop.permute.xlu1 %897  ;;  %v476_v28 = vpop.permute.xlu0 %475 }
 0x16e   : > { %v10209_v45 = vpop.permute.xlu2 %607  ;;  %v692_v44 = vsel %vm683_vm0, %v9992_v2, %v476_v28  ;;  %v10244_v2 = vld [vmem:[%s9514_s25 + $0x98] sm:$0xff]  ;;  %v1496_v29 = vpop.f32.mrf.mxu1  ;;  %v1113_v35 = vsel %vm683_vm0, %v10058_v14, %v898_v9  ;;  %v414_v9 = vld [vmem:[%s9514_s25 + $0xe2] sm:$0xff] }
 0x16f   : > { %v725_v31 = vsel %vm716_vm2, %v692_v44, %v10096_v60  ;;  %v2126_v63 = vpop.f32.mrf.mxu2 }
 0x170   : > { %8455 = vmatmul.msk.f32.gmra.mxu1 %vm1173_vm1, %v725_v31 }
 0x173   : > { %495 = vrot.lane.b32.xlu1 %v381_v18, %s9406_s26  ;;  %1063 = vrot.lane.b32.xlu0 %v10229_v17, %s9407_s27 }
 0x174   : > { %623 = vrot.lane.b32.xlu2 %v413_v20, %s9407_s27  ;;  %v1287_v30 = vpop.f32.mrf.mxu0 }
 0x175   : > { %v1740_v15 = vpop.permute.xlu1 %1739  ;;  %v1497_v60 = vadd.f32 %v1496_v29, %v1287_v30  ;;  %v1026_v46 = vpop.permute.xlu0 %1025 }
 0x176   : > { %v1954_v34 = vsel %vm683_vm0, %v10244_v2, %v1740_v15  ;;  %v10267_v23 = vpop.permute.xlu2 %481  ;;  %v1145_v49 = vsel %vm716_vm2, %v1113_v35, %v1026_v46 }
 0x177   : > { %v1986_v6 = vsel %vm716_vm2, %v1954_v34, %v10119_v43  ;;  %v2222_v8 = vadd.f32 %v2126_v63, %v1497_v60  ;;  %8423 = vmatmul.msk.f32.gmra.mxu0 %vm1173_vm1, %v1145_v49  ;;  %v10353_v34 = vld [vmem:[%s9514_s25 + $0x171] sm:$0xff] }
 0x178   : > { %8587 = vmatmul.msk.f32.gmra.mxu2 %vm1173_vm1, %v1986_v6  ;;  %v10381_v63 = vld [vmem:[%s9514_s25 + $0xb0] sm:$0xff] }
 0x179   : > { %v2258_v43 = vadd.f32 %v10261_v39, %v2222_v8  ;;  %v415_v49 = vld [vmem:[%s9514_s25 + $0xf2] sm:$0xff] }
 0x17b   : > { %1887 = vrot.lane.b32.xlu1 %v10283_v54, %s9407_s27  ;;  %v2290_v55 = vmax.f32 %v2258_v43, 0.0  ;;  %1759 = vrot.lane.b32.xlu0 %v10289_v1, %s9406_s26  ;;  %v2129_v29 = vpop.f32.mrf.mxu2  ;;  %v383_v43 = vld [vmem:[%s9514_s25 + $0xf1] sm:$0xff] }
 0x17c   : > { %937 = vrot.lane.b32.xlu2 %v10280_v24, %s9406_s26 }
 0x17d   : > { %v606_v52 = vpop.permute.xlu1 %605  ;;  %2379 = vst.msk [vmem:[#allocation2 + $0x19] sm:$0xff] %vm2322_vm3, %v2290_v55  ;;  %v478_v7 = vpop.permute.xlu0 %477 }
 0x17e   : > { %v10307_v13 = vpop.permute.xlu2 %1873  ;;  %v693_v41 = vsel %vm683_vm0, %v10023_v4, %v478_v7  ;;  %v1499_v4 = vpop.f32.mrf.mxu1  ;;  %v10408_v7 = vld [vmem:[%s9514_s25 + $0xc0] sm:$0xff] }
 0x17f   : > { %v726_v28 = vsel %vm716_vm2, %v693_v41, %v606_v52  ;;  %v10398_v52 = vld [vmem:[%s9514_s25 + $0x172] sm:$0xff]  ;;  %v342_v41 = vld [vmem:[%s9514_s25 + $0x80] sm:$0xff] }
 0x180   : > { %8456 = vmatmul.msk.f32.gmra.mxu1 %vm1173_vm1, %v726_v28  ;;  %v695_v42 = vsel %vm683_vm0, %v342_v41, %v10267_v23  ;;  %v384_v41 = vld [vmem:[%s9514_s25 + $0xf9] sm:$0xff] }
 0x183   : > { %497 = vrot.lane.b32.xlu1 %v382_v10, %s9406_s26  ;;  %1065 = vrot.lane.b32.xlu0 %v10321_v33, %s9407_s27 }
 0x184   : > { %625 = vrot.lane.b32.xlu2 %v414_v9, %s9407_s27  ;;  %v1290_v44 = vpop.f32.mrf.mxu0 }
 0x185   : > { %v480_v20 = vpop.permute.xlu1 %479  ;;  %v1500_v18 = vadd.f32 %v1499_v4, %v1290_v44  ;;  %v1870_v30 = vpop.permute.xlu0 %1869 }
 0x186   : > { %v10338_v31 = vpop.permute.xlu2 %1747  ;;  %v694_v32 = vsel %vm683_vm0, %v10058_v14, %v480_v20  ;;  %v1987_v60 = vsel %vm716_vm2, %v1955_v61, %v1870_v30  ;;  %v10356_v14 = vld [vmem:[%s9514_s25 + $0x122] sm:$0xff] }
 0x187   : > { %v727_v15 = vsel %vm716_vm2, %v694_v32, %v10209_v45  ;;  %v2223_v16 = vadd.f32 %v2129_v29, %v1500_v18  ;;  %8588 = vmatmul.msk.f32.gmra.mxu2 %vm1173_vm1, %v1987_v60  ;;  %v10429_v60 = vld [vmem:[%s9514_s25 + $0x12a] sm:$0xff] }
 0x188   : > { %8457 = vmatmul.msk.f32.gmra.mxu1 %vm1173_vm1, %v727_v15 }
 0x189   : > { %v2259_v26 = vadd.f32 %v10261_v39, %v2223_v16  ;;  %v10426_v16 = vld [vmem:[%s9514_s25 + $0x181] sm:$0xff] }
 0x18b   : > { %1889 = vrot.lane.b32.xlu1 %v10356_v14, %s9407_s27  ;;  %v2291_v45 = vmax.f32 %v2259_v26, 0.0  ;;  %1761 = vrot.lane.b32.xlu0 %v10362_v47, %s9406_s26  ;;  %v2132_v32 = vpop.f32.mrf.mxu2  ;;  %v10433_v26 = vld [vmem:[%s9514_s25 + $0x129] sm:$0xff] }
 0x18c   : > { %939 = vrot.lane.b32.xlu2 %v10353_v34, %s9406_s26 }
 0x18d   : > { %v1872_v35 = vpop.permute.xlu1 %1871  ;;  %2380 = vst.msk [vmem:[#allocation2 + $0x21] sm:$0xff] %vm2322_vm3, %v2291_v45  ;;  %v1744_v6 = vpop.permute.xlu0 %1743 }
 0x18e   : > { %v10384_v46 = vpop.permute.xlu2 %613  ;;  %v1956_v8 = vsel %vm683_vm0, %v10381_v63, %v1744_v6  ;;  %v1502_v9 = vpop.f32.mrf.mxu1 }
 0x18f   : > { %v1988_v55 = vsel %vm716_vm2, %v1956_v8, %v1872_v35  ;;  %v343_v35 = vld [vmem:[%s9514_s25 + $0x90] sm:$0xff] }
 0x190   : > { %8589 = vmatmul.msk.f32.gmra.mxu2 %vm1173_vm1, %v1988_v55  ;;  %v416_v55 = vld [vmem:[%s9514_s25 + $0xfa] sm:$0xff] }
 0x193   : > { %499 = vrot.lane.b32.xlu1 %v383_v43, %s9406_s26  ;;  %1067 = vrot.lane.b32.xlu0 %v10398_v52, %s9407_s27 }
 0x194   : > { %627 = vrot.lane.b32.xlu2 %v415_v49, %s9407_s27  ;;  %v1293_v10 = vpop.f32.mrf.mxu0  ;;  %v2755_v4 = vld [vmem:[#allocation2 + $0x1a] sm:$0xff]  ;;  %v2756_v6 = vld [vmem:[#allocation2 + $0x22] sm:$0xff] }
 0x195   : > { %v1746_v28 = vpop.permute.xlu1 %1745  ;;  %v1503_v44 = vadd.f32 %v1502_v9, %v1293_v10  ;;  %8634 = vmatmul.msk.f32.vlgmr.msrb.gmra.mxu0 %vm2322_vm3, %v2755_v4  ;;  %v610_v61 = vpop.permute.xlu0 %609  ;;  %v10451_v10 = vld [vmem:[%s9514_s25 + $0x182] sm:$0xff] }
 0x196   : > { %v10415_v20 = vpop.permute.xlu2 %487  ;;  %v1957_v18 = vsel %vm683_vm0, %v10408_v7, %v1746_v28  ;;  %v728_v15 = vsel %vm716_vm2, %v695_v42, %v610_v61  ;;  %v1958_v61 = vsel %vm683_vm0, %v9835_v51, %v10338_v31 }
 0x197   : > { %v1989_v29 = vsel %vm716_vm2, %v1957_v18, %v10307_v13  ;;  %v2224_v30 = vadd.f32 %v2132_v32, %v1503_v44  ;;  %8458 = vmatmul.msk.f32.gmra.mxu1 %vm1173_vm1, %v728_v15 }
 0x198   : > { %8590 = vmatmul.msk.f32.gmra.mxu2 %vm1173_vm1, %v1989_v29 }
 0x199   : > { %v2260_v23 = vadd.f32 %v10261_v39, %v2224_v30 }
 0x19b   : > { %1891 = vrot.lane.b32.xlu1 %v10429_v60, %s9407_s27  ;;  %v2292_v13 = vmax.f32 %v2260_v23, 0.0  ;;  %1763 = vrot.lane.b32.xlu0 %v10433_v26, %s9406_s26  ;;  %v2135_v29 = vpop.f32.mrf.mxu2 }
 0x19c   : > { %941 = vrot.lane.b32.xlu2 %v10426_v16, %s9406_s26 }
 0x19d   : > { %v612_v45 = vpop.permute.xlu1 %611  ;;  %2381 = vst.msk [vmem:[#allocation2 + $0x31] sm:$0xff] %vm2322_vm3, %v2292_v13  ;;  %8635 = vmatmul.msk.f32.gmra.mxu0 %vm2322_vm3, %v2756_v6  ;;  %v484_v49 = vpop.permute.xlu0 %483  ;;  %v10487_v6 = vld [vmem:[%s9514_s25 + $0xd8] sm:$0xff] }
 0x19e   : > { %v1880_v8 = vpop.permute.xlu2 %1879  ;;  %v696_v43 = vsel %vm683_vm0, %v343_v35, %v484_v49  ;;  %v1505_v28 = vpop.f32.mrf.mxu1  ;;  %v10472_v35 = vld [vmem:[%s9514_s25 + $0x13a] sm:$0xff] }
 0x19f   : > { %v729_v9 = vsel %vm716_vm2, %v696_v43, %v612_v45  ;;  %v10469_v45 = vld [vmem:[%s9514_s25 + $0x189] sm:$0xff] }
 0x1a0   : > { %8459 = vmatmul.msk.f32.gmra.mxu1 %vm1173_vm1, %v729_v9  ;;  %v10494_v9 = vld [vmem:[%s9514_s25 + $0x18a] sm:$0xff] }
 0x1a3   : > { %501 = vrot.lane.b32.xlu1 %v384_v41, %s9406_s26  ;;  %1069 = vrot.lane.b32.xlu0 %v10451_v10, %s9407_s27 }
 0x1a4   : > { %629 = vrot.lane.b32.xlu2 %v416_v55, %s9407_s27  ;;  %v1296_v4 = vpop.f32.mrf.mxu0 }
 0x1a5   : > { %v486_v44 = vpop.permute.xlu1 %485  ;;  %v1506_v18 = vadd.f32 %v1505_v28, %v1296_v4  ;;  %v1876_v30 = vpop.permute.xlu0 %1875  ;;  %v10502_v28 = vld [vmem:[%s9514_s25 + $0xe0] sm:$0xff]  ;;  %v345_v4 = vld [vmem:[%s9514_s25 + $0xa8] sm:$0xff] }
 0x1a6   : > { %v10458_v42 = vpop.permute.xlu2 %1753  ;;  %v697_v32 = vsel %vm683_vm0, %v10244_v2, %v486_v44  ;;  %v1990_v13 = vsel %vm716_vm2, %v1958_v61, %v1876_v30  ;;  %v10476_v2 = vld [vmem:[%s9514_s25 + $0x139] sm:$0xff]  ;;  %v698_v30 = vsel %vm683_vm0, %v345_v4, %v10415_v20 }
 0x1a7   : > { %v730_v15 = vsel %vm716_vm2, %v697_v32, %v10384_v46  ;;  %v2225_v23 = vadd.f32 %v2135_v29, %v1506_v18  ;;  %8591 = vmatmul.msk.f32.gmra.mxu2 %vm1173_vm1, %v1990_v13 }
 0x1a8   : > { %8460 = vmatmul.msk.f32.gmra.mxu1 %vm1173_vm1, %v730_v15 }
 0x1a9   : > { %v2261_v51 = vadd.f32 %v10261_v39, %v2225_v23 }
 0x1ab   : > { %1893 = vrot.lane.b32.xlu1 %v10472_v35, %s9407_s27  ;;  %v2293_v31 = vmax.f32 %v2261_v51, 0.0  ;;  %1765 = vrot.lane.b32.xlu0 %v10476_v2, %s9406_s26  ;;  %v2138_v51 = vpop.f32.mrf.mxu2 }
 0x1ac   : > { %943 = vrot.lane.b32.xlu2 %v10469_v45, %s9406_s26 }
 0x1ad   : > { %v1878_v46 = vpop.permute.xlu1 %1877  ;;  %2382 = vst.msk [vmem:[#allocation2 + $0x39] sm:$0xff] %vm2322_vm3, %v2293_v31  ;;  %v1750_v43 = vpop.permute.xlu0 %1749 }
 0x1ae   : > { %v620_v49 = vpop.permute.xlu2 %619  ;;  %v1959_v55 = vsel %vm683_vm0, %v10487_v6, %v1750_v43  ;;  %v1508_v44 = vpop.f32.mrf.mxu1  ;;  %v2723_v43 = vld [vmem:[#allocation2 + $0x19] sm:$0xff] }
 0x1af   : > { %v1991_v41 = vsel %vm716_vm2, %v1959_v55, %v1878_v46  ;;  %v10517_v46 = vld [vmem:[%s9514_s25 + $0x142] sm:$0xff] }
 0x1b0   : > { %8592 = vmatmul.msk.f32.gmra.mxu2 %vm1173_vm1, %v1991_v41  ;;  %v10521_v41 = vld [vmem:[%s9514_s25 + $0x141] sm:$0xff] }
 0x1b3   : > { %503 = vrot.lane.b32.xlu1 %v10180_v11, %s9406_s26  ;;  %1071 = vrot.lane.b32.xlu0 %v10494_v9, %s9407_s27  ;;  %v2724_v11 = vld [vmem:[#allocation2 + $0x21] sm:$0xff] }
 0x1b4   : > { %631 = vrot.lane.b32.xlu2 %v10174_v57, %s9407_s27  ;;  %v2757_v32 = vld [vmem:[#allocation2 + $0x32] sm:$0xff]  ;;  %v1299_v61 = vpop.f32.mrf.mxu0 }
 0x1b5   : > { %v1752_v18 = vpop.permute.xlu1 %1751  ;;  %8636 = vmatmul.msk.f32.gmra.mxu0 %vm2322_vm3, %v2757_v32  ;;  %v1509_v15 = vadd.f32 %v1508_v44, %v1299_v61  ;;  %v616_v23 = vpop.permute.xlu0 %615  ;;  %v2758_v44 = vld [vmem:[#allocation2 + $0x3a] sm:$0xff] }
 0x1b6   : > { %v10507_v29 = vpop.permute.xlu2 %933  ;;  %v1960_v57 = vsel %vm683_vm0, %v10502_v28, %v1752_v18  ;;  %v731_v31 = vsel %vm716_vm2, %v698_v30, %v616_v23  ;;  %v9110_v18 = vpack.i.bf16 %v2724_v11, %v2723_v43  ;;  %v10541_v30 = vld [vmem:[%s9514_s25 + $0xf0] sm:$0xff] }
 0x1b7   : > { %v1992_v13 = vsel %vm716_vm2, %v1960_v57, %v1880_v8  ;;  %v2226_v55 = vadd.f32 %v2138_v51, %v1509_v15  ;;  %8461 = vmatmul.msk.f32.gmra.mxu1 %vm1173_vm1, %v731_v31 }
 0x1b8   : > { %8593 = vmatmul.msk.f32.gmra.mxu2 %vm1173_vm1, %v1992_v13 }
 0x1b9   : > { %v2262_v20 = vadd.f32 %v10261_v39, %v2226_v55 }
 0x1bb   : > { %1895 = vrot.lane.b32.xlu1 %v10517_v46, %s9407_s27  ;;  %1767 = vrot.lane.b32.xlu0 %v10521_v41, %s9406_s26  ;;  %v2294_v8 = vmax.f32 %v2262_v20, 0.0 }
 0x1bc   : > { %9111 = vrot.lane.b32.xlu2 %v9110_v18, %s9409_s28  ;;  %v2141_v18 = vpop.f32.mrf.mxu2 }
 0x1bd   : > { %v618_v4 = vpop.permute.xlu1 %617  ;;  %8637 = vmatmul.msk.f32.gmra.mxu0 %vm2322_vm3, %v2758_v44  ;;  %2383 = vst.msk [vmem:[#allocation2 + $0x49] sm:$0xff] %vm2322_vm3, %v2294_v8  ;;  %v490_v61 = vpop.permute.xlu0 %489  ;;  %v2726_v44 = vld [vmem:[#allocation2 + $0x39] sm:$0xff] }
 0x1be   : > { %v622_v32 = vpop.permute.xlu2 %621  ;;  %v699_v57 = vsel %vm683_vm0, %v10381_v63, %v490_v61  ;;  %v1511_v15 = vpop.f32.mrf.mxu1 }
 0x1bf   : > { %v732_v11 = vsel %vm716_vm2, %v699_v57, %v618_v4  ;;  %v2725_v57 = vld [vmem:[#allocation2 + $0x31] sm:$0xff] }
 0x1c0   : > { %8462 = vmatmul.msk.f32.gmra.mxu1 %vm1173_vm1, %v732_v11  ;;  %v9115_v11 = vpack.i.bf16 %v2726_v44, %v2725_v57 }
 0x1c3   : > { %633 = vrot.lane.b32.xlu1 %v10283_v54, %s9407_s27  ;;  %505 = vrot.lane.b32.xlu0 %v10289_v1, %s9406_s26  ;;  %v1961_v54 = vsel %vm683_vm0, %v10541_v30, %v10458_v42 }
 0x1c4   : > { %1769 = vrot.lane.b32.xlu2 %v10104_v19, %s9406_s26  ;;  %v1302_v13 = vpop.f32.mrf.mxu0 }
 0x1c5   : > { %v492_v23 = vpop.permute.xlu1 %491  ;;  %v1512_v31 = vadd.f32 %v1511_v15, %v1302_v13  ;;  %v1882_v43 = vpop.permute.xlu0 %1881  ;;  %v348_v15 = vld [vmem:[%s9514_s25 + $0xc8] sm:$0xff] }
 0x1c6   : > { %v10545_v51 = vpop.permute.xlu2 %935  ;;  %v700_v63 = vsel %vm683_vm0, %v10408_v7, %v492_v23  ;;  %v1993_v1 = vsel %vm716_vm2, %v1961_v54, %v1882_v43  ;;  %v10576_v23 = vld [vmem:[%s9514_s25 + $0x150] sm:$0xff] }
 0x1c7   : > { %v733_v55 = vsel %vm716_vm2, %v700_v63, %v620_v49  ;;  %v2227_v20 = vadd.f32 %v2141_v18, %v1512_v31  ;;  %8594 = vmatmul.msk.f32.gmra.mxu2 %vm1173_vm1, %v1993_v1  ;;  %v10564_v49 = vld [vmem:[%s9514_s25 + $0xf8] sm:$0xff]  ;;  %v1131_v18 = vsel %vm683_vm0, %v10576_v23, %v10507_v29 }
 0x1c8   : > { %8463 = vmatmul.msk.f32.gmra.mxu1 %vm1173_vm1, %v733_v55 }
 0x1c9   : > { %v2263_v8 = vadd.f32 %v10261_v39, %v2227_v20 }
 0x1cb   : > { %507 = vrot.lane.b32.xlu1 %v10362_v47, %s9406_s26  ;;  %1897 = vrot.lane.b32.xlu0 %v10131_v25, %s9407_s27  ;;  %v2295_v7 = vmax.f32 %v2263_v8, 0.0 }
 0x1cc   : > { %635 = vrot.lane.b32.xlu2 %v10356_v14, %s9407_s27 }
 0x1cd   : > { %v1884_v42 = vpop.permute.xlu1 %1883  ;;  %2384 = vst.msk [vmem:[#allocation2 + $0x51] sm:$0xff] %vm2322_vm3, %v2295_v7  ;;  %v1756_v61 = vpop.permute.xlu0 %1755 }
 0x1ce   : > { %v624_v4 = vpop.permute.xlu2 %623  ;;  %v1962_v47 = vsel %vm683_vm0, %v10564_v49, %v1756_v61  ;;  %v1514_v13 = vpop.f32.mrf.mxu1 }
 0x1cf   : > { %v1994_v14 = vsel %vm716_vm2, %v1962_v47, %v1884_v42  ;;  %v2144_v7 = vpop.f32.mrf.mxu2  ;;  %v10599_v47 = vld [vmem:[%s9514_s25 + $0x108] sm:$0xff] }
 0x1d0   : > { %8595 = vmatmul.msk.f32.gmra.mxu2 %vm1173_vm1, %v1994_v14 }
 0x1d3   : > { %1899 = vrot.lane.b32.xlu1 %v10229_v17, %s9407_s27  ;;  %1771 = vrot.lane.b32.xlu0 %v10171_v40, %s9406_s26 }
 0x1d4   : > { %9116 = vrot.lane.b32.xlu2 %v9115_v11, %s9409_s28  ;;  %v1305_v54 = vpop.f32.mrf.mxu0  ;;  %v2759_v55 = vld [vmem:[#allocation2 + $0x4a] sm:$0xff]  ;;  %v2760_v14 = vld [vmem:[#allocation2 + $0x52] sm:$0xff] }
 0x1d5   : > { %v494_v63 = vpop.permute.xlu1 %493  ;;  %v1515_v1 = vadd.f32 %v1514_v13, %v1305_v54  ;;  %v1062_v20 = vpop.permute.xlu0 %1061  ;;  %8638 = vmatmul.msk.f32.gmra.mxu0 %vm2322_vm3, %v2759_v55 }
 0x1d6   : > { %v10580_v31 = vpop.permute.xlu2 %937  ;;  %v701_v43 = vsel %vm683_vm0, %v348_v15, %v494_v63  ;;  %v1163_v42 = vsel %vm716_vm2, %v1131_v18, %v1062_v20  ;;  %v2728_v18 = vld [vmem:[#allocation2 + $0x51] sm:$0xff] }
 0x1d7   : > { %v734_v8 = vsel %vm716_vm2, %v701_v43, %v622_v32  ;;  %v2228_v44 = vadd.f32 %v2144_v7, %v1515_v1  ;;  %8441 = vmatmul.msk.f32.vlgmr.msra.gmra.mxu3 %vm1173_vm1, %v1163_v42  ;;  %v2727_v42 = vld [vmem:[#allocation2 + $0x49] sm:$0xff] }
 0x1d8   : > { %8464 = vmatmul.msk.f32.gmra.mxu1 %vm1173_vm1, %v734_v8 }
 0x1d9   : > { %v2264_v61 = vadd.f32 %v10261_v39, %v2228_v44 }
 0x1db   : > { %637 = vrot.lane.b32.xlu1 %v10429_v60, %s9407_s27  ;;  %509 = vrot.lane.b32.xlu0 %v10433_v26, %s9406_s26  ;;  %v2296_v29 = vmax.f32 %v2264_v61, 0.0  ;;  %v10614_v26 = vld [vmem:[%s9514_s25 + $0x158] sm:$0xff]  ;;  %v2147_v8 = vpop.f32.mrf.mxu2 }
 0x1dc   : > { %1773 = vrot.lane.b32.xlu2 %v10280_v24, %s9406_s26 }
 0x1dd   : > { %v1886_v32 = vpop.permute.xlu1 %1885  ;;  %2385 = vst.msk [vmem:[#allocation2 + $0x61] sm:$0xff] %vm2322_vm3, %v2296_v29  ;;  %v1758_v11 = vpop.permute.xlu0 %1757  ;;  %8639 = vmatmul.msk.f32.gmra.mxu0 %vm2322_vm3, %v2760_v14  ;;  %v10636_v29 = vld [vmem:[%s9514_s25 + $0x110] sm:$0xff] }
 0x1de   : > { %v10601_v57 = vpop.permute.xlu2 %625  ;;  %v1963_v60 = vsel %vm683_vm0, %v10599_v47, %v1758_v11  ;;  %v1517_v13 = vpop.f32.mrf.mxu1 }
 0x1df   : > { %v1995_v15 = vsel %vm716_vm2, %v1963_v60, %v1886_v32 }
 0x1e0   : > { %8596 = vmatmul.msk.f32.gmra.mxu2 %vm1173_vm1, %v1995_v15  ;;  %v8625_v15 = vld [vmem:[%s14553_s3 + $0x138] sm:$0xff] }
 0x1e1   : > { %3068 = vmatpush.msrb.mxu3 %v8625_v15 }
 0x1e3   : > { %511 = vrot.lane.b32.xlu1 %v10476_v2, %s9406_s26  ;;  %1901 = vrot.lane.b32.xlu0 %v10321_v33, %s9407_s27  ;;  %v1132_v2 = vsel %vm683_vm0, %v10614_v26, %v10545_v51 }
 0x1e4   : > { %639 = vrot.lane.b32.xlu2 %v10472_v35, %s9407_s27  ;;  %v1308_v54 = vpop.f32.mrf.mxu0 }
 0x1e5   : > { %v496_v63 = vpop.permute.xlu1 %495  ;;  %v1518_v1 = vadd.f32 %v1517_v13, %v1308_v54  ;;  %v1064_v35 = vpop.permute.xlu0 %1063  ;;  %v8624_v13 = vld [vmem:[%s14553_s3 + $0x130] sm:$0xff] }
 0x1e6   : > { %v10618_v43 = vpop.permute.xlu2 %939  ;;  %v702_v55 = vsel %vm683_vm0, %v10487_v6, %v496_v63  ;;  %v1164_v7 = vsel %vm716_vm2, %v1132_v2, %v1064_v35  ;;  %v9120_v6 = vpack.i.bf16 %v2728_v18, %v2727_v42  ;;  %v10656_v63 = vld [vmem:[%s9514_s25 + $0x168] sm:$0xff]  ;;  %3069 = vmatpush.msrb.mxu3 %v8624_v13  ;;  %v8622_v42 = vld [vmem:[%s14553_s3 + $0x120] sm:$0xff] }
 0x1e7   : > { %v735_v20 = vsel %vm716_vm2, %v702_v55, %v624_v4  ;;  %v2229_v44 = vadd.f32 %v2147_v8, %v1518_v1  ;;  %8442 = vmatmul.msk.f32.gmra.mxu3 %vm1173_vm1, %v1164_v7 }
 0x1e8   : > { %8465 = vmatmul.msk.f32.gmra.mxu1 %vm1173_vm1, %v735_v20  ;;  %v1133_v20 = vsel %vm683_vm0, %v10656_v63, %v10580_v31  ;;  %v8621_v31 = vld [vmem:[%s14553_s3 + $0x118] sm:$0xff] }
 0x1e9   : > { %v2265_v61 = vadd.f32 %v10261_v39, %v2229_v44 }
 0x1eb   : > { %1903 = vrot.lane.b32.xlu1 %v10398_v52, %s9407_s27  ;;  %1775 = vrot.lane.b32.xlu0 %v10353_v34, %s9406_s26  ;;  %v2297_v51 = vmax.f32 %v2265_v61, 0.0  ;;  %v2150_v54 = vpop.f32.mrf.mxu2 }
 0x1ec   : > { %9121 = vrot.lane.b32.xlu2 %v9120_v6, %s9409_s28  ;;  %v8620_v6 = vld [vmem:[%s14553_s3 + $0x110] sm:$0xff] }
 0x1ed   : > { %v1888_v4 = vpop.permute.xlu1 %1887  ;;  %2386 = vst.msk [vmem:[#allocation2 + $0x69] sm:$0xff] %vm2322_vm3, %v2297_v51  ;;  %v1760_v14 = vpop.permute.xlu0 %1759 }
 0x1ee   : > { %v10638_v32 = vpop.permute.xlu2 %627  ;;  %v1964_v11 = vsel %vm683_vm0, %v10636_v29, %v1760_v14  ;;  %v1520_v55 = vpop.f32.mrf.mxu1  ;;  %v8619_v14 = vld [vmem:[%s14553_s3 + $0x108] sm:$0xff] }
 0x1ef   : > { %v1996_v60 = vsel %vm716_vm2, %v1964_v11, %v1888_v4  ;;  %v10693_v4 = vld [vmem:[%s9514_s25 + $0x120] sm:$0xff] }
 0x1f0   : > { %8597 = vmatmul.msk.f32.gmra.mxu2 %vm1173_vm1, %v1996_v60 }
 0x1f3   : > { %641 = vrot.lane.b32.xlu1 %v10517_v46, %s9407_s27  ;;  %513 = vrot.lane.b32.xlu0 %v10521_v41, %s9406_s26  ;;  %v8623_v46 = vld [vmem:[%s14553_s3 + $0x128] sm:$0xff] }
 0x1f4   : > { %1777 = vrot.lane.b32.xlu2 %v10426_v16, %s9406_s26  ;;  %v1311_v2 = vpop.f32.mrf.mxu0  ;;  %v2761_v35 = vld [vmem:[#allocation2 + $0x62] sm:$0xff]  ;;  %3070 = vmatpush.msrb.mxu3 %v8623_v46  ;;  %v2762_v11 = vld [vmem:[#allocation2 + $0x6a] sm:$0xff] }
 0x1f5   : > { %v498_v18 = vpop.permute.xlu1 %497  ;;  %v1521_v41 = vadd.f32 %v1520_v55, %v1311_v2  ;;  %v1066_v8 = vpop.permute.xlu0 %1065  ;;  %8640 = vmatmul.msk.f32.gmra.mxu0 %vm2322_vm3, %v2761_v35  ;;  %v2730_v60 = vld [vmem:[#allocation2 + $0x69] sm:$0xff] }
 0x1f6   : > { %v10663_v1 = vpop.permute.xlu2 %941  ;;  %v703_v16 = vsel %vm683_vm0, %v10502_v28, %v498_v18  ;;  %v1165_v28 = vsel %vm716_vm2, %v1133_v20, %v1066_v8  ;;  %3071 = vmatpush.msrb.mxu3 %v8622_v42  ;;  %v2729_v18 = vld [vmem:[#allocation2 + $0x61] sm:$0xff]  ;;  %v10720_v20 = vld [vmem:[%s9514_s25 + $0x170] sm:$0xff] }
 0x1f7   : > { %v736_v7 = vsel %vm716_vm2, %v703_v16, %v10601_v57  ;;  %v2230_v44 = vadd.f32 %v2150_v54, %v1521_v41  ;;  %8443 = vmatmul.msk.f32.gmra.mxu3 %vm1173_vm1, %v1165_v28  ;;  %v9125_v2 = vpack.i.bf16 %v2730_v60, %v2729_v18  ;;  %v8617_v16 = vld [vmem:[%s14553_s3 + $0xf8] sm:$0xff]  ;;  %v10758_v60 = vld [vmem:[%s9514_s25 + $0x128] sm:$0xff] }
 0x1f8   : > { %8466 = vmatmul.msk.f32.gmra.mxu1 %vm1173_vm1, %v736_v7  ;;  %3072 = vmatpush.msrb.mxu3 %v8621_v31 }
 0x1f9   : > { %v2266_v57 = vadd.f32 %v10261_v39, %v2230_v44  ;;  %v1134_v44 = vsel %vm683_vm0, %v10720_v20, %v10618_v43  ;;  %v8613_v43 = vld [vmem:[%s14553_s3 + $0xd8] sm:$0xff] }
 0x1fa   : > { %3073 = vmatpush.msrb.mxu3 %v8620_v6 }
 0x1fb   : > { %515 = vrot.lane.b32.xlu1 %v10104_v19, %s9406_s26  ;;  %1905 = vrot.lane.b32.xlu0 %v10451_v10, %s9407_s27  ;;  %v2298_v61 = vmax.f32 %v2266_v57, 0.0  ;;  %v8618_v10 = vld [vmem:[%s14553_s3 + $0x100] sm:$0xff] }
 0x1fc   : > { %643 = vrot.lane.b32.xlu2 %v10131_v25, %s9407_s27  ;;  %v2153_v25 = vpop.f32.mrf.mxu2  ;;  %3074 = vmatpush.msrb.mxu3 %v8619_v14  ;;  %v8614_v57 = vld [vmem:[%s14553_s3 + $0xe0] sm:$0xff] }
 0x1fd   : > { %v1890_v51 = vpop.permute.xlu1 %1889  ;;  %2387 = vst.msk [vmem:[#allocation2 + $0x79] sm:$0xff] %vm2322_vm3, %v2298_v61  ;;  %v1762_v15 = vpop.permute.xlu0 %1761  ;;  %8641 = vmatmul.msk.f32.gmra.mxu0 %vm2322_vm3, %v2762_v11 }
 0x1fe   : > { %v10698_v19 = vpop.permute.xlu2 %629  ;;  %v1523_v13 = vpop.f32.mrf.mxu1  ;;  %v1965_v54 = vsel %vm683_vm0, %v10693_v4, %v1762_v15  ;;  %3075 = vmatpush.msrb.mxu3 %v8618_v10 }
 0x1ff   : > { %v1524_v55 = vadd.f32 %v1523_v13, %v9985_v21  ;;  %v1997_v46 = vsel %vm716_vm2, %v1965_v54, %v1890_v51  ;;  %v8616_v21 = vld [vmem:[%s14553_s3 + $0xf0] sm:$0xff]  ;;  %v8610_v54 = vld [vmem:[%s14553_s3 + $0xc0] sm:$0xff] }
 0x200   : > { %8598 = vmatmul.msk.f32.gmra.mxu2 %vm1173_vm1, %v1997_v46  ;;  %3076 = vmatpush.msrb.mxu3 %v8617_v16  ;;  %v8612_v51 = vld [vmem:[%s14553_s3 + $0xd0] sm:$0xff]  ;;  %v8573_v46 = vld [vmem:[%s9514_s25 + $0x19a] sm:$0xff] }
 0x201   : > { %v2231_v35 = vadd.f32 %v2153_v25, %v1524_v55 }
 0x202   : > { %3077 = vmatpush.msrb.mxu3 %v8616_v21 }
 0x203   : > { %1907 = vrot.lane.b32.xlu1 %v10494_v9, %s9407_s27  ;;  %v2267_v41 = vadd.f32 %v10261_v39, %v2231_v35  ;;  %1779 = vrot.lane.b32.xlu0 %v10469_v45, %s9406_s26  ;;  %v8615_v9 = vld [vmem:[%s14553_s3 + $0xe8] sm:$0xff] }
 0x204   : > { %9126 = vrot.lane.b32.xlu2 %v9125_v2, %s9409_s28  ;;  %3078 = vmatpush.msrb.mxu3 %v8615_v9  ;;  %v10781_v2 = vld [vmem:[%s9514_s25 + $0x180] sm:$0xff] }
 0x205   : > { %v500_v8 = vpop.permute.xlu1 %499  ;;  %v2299_v7 = vmax.f32 %v2267_v41, 0.0  ;;  %v1068_v31 = vpop.permute.xlu0 %1067 }
 0x206   : > { %v10728_v42 = vpop.permute.xlu2 %943  ;;  %v704_v28 = vsel %vm683_vm0, %v10541_v30, %v500_v8  ;;  %v1526_v6 = vpop.f32.mrf.mxu1  ;;  %v1166_v61 = vsel %vm716_vm2, %v1134_v44, %v1068_v31  ;;  %v8541_v30 = vld [vmem:[%s9514_s25 + $0x199] sm:$0xff]  ;;  %3079 = vmatpush.msrb.mxu3 %v8614_v57 }
 0x207   : > { %v737_v45 = vsel %vm716_vm2, %v704_v28, %v10638_v32  ;;  %2388 = vst.msk [vmem:[#allocation2 + $0x81] sm:$0xff] %vm2322_vm3, %v2299_v7  ;;  %8444 = vmatmul.msk.f32.gmra.mxu3 %vm1173_vm1, %v1166_v61  ;;  %v1527_v32 = vadd.f32 %v1526_v6, %v10008_v5  ;;  %v8611_v5 = vld [vmem:[%s14553_s3 + $0xc8] sm:$0xff]  ;;  %v10805_v6 = vld [vmem:[%s9514_s25 + $0x138] sm:$0xff] }
 0x208   : > { %8467 = vmatmul.msk.f32.gmra.mxu1 %vm1173_vm1, %v737_v45  ;;  %3080 = vmatpush.msrb.mxu3 %v8613_v43  ;;  %v8542_v45 = vld [vmem:[%s9514_s25 + $0x1a1] sm:$0xff] }
 0x20a   : > { %v2156_v14 = vpop.f32.mrf.mxu2  ;;  %3081 = vmatpush.msrb.mxu3 %v8612_v51 }
 0x20b   : > { %645 = vrot.lane.b32.xlu1 %v10229_v17, %s9407_s27  ;;  %517 = vrot.lane.b32.xlu0 %v10171_v40, %s9406_s26  ;;  %v2232_v11 = vadd.f32 %v2156_v14, %v1527_v32 }
 0x20c   : > { %1781 = vrot.lane.b32.xlu2 %v8541_v30, %s9406_s26  ;;  %3082 = vmatpush.msrb.mxu3 %v8611_v5 }
 0x20d   : > { %v1892_v25 = vpop.permute.xlu1 %1891  ;;  %v2268_v15 = vadd.f32 %v10261_v39, %v2232_v11  ;;  %v1764_v13 = vpop.permute.xlu0 %1763 }
 0x20e   : > { %v10763_v17 = vpop.permute.xlu2 %631  ;;  %v2763_v10 = vld [vmem:[#allocation2 + $0x7a] sm:$0xff]  ;;  %v1966_v40 = vsel %vm683_vm0, %v10758_v60, %v1764_v13  ;;  %3083 = vmatpush.msrb.mxu3 %v8610_v54  ;;  %v2764_v7 = vld [vmem:[#allocation2 + $0x82] sm:$0xff] }
 0x20f   : > { %8642 = vmatmul.msk.f32.gmra.mxu0 %vm2322_vm3, %v2763_v10  ;;  %v2300_v55 = vmax.f32 %v2268_v15, 0.0  ;;  %v1998_v18 = vsel %vm716_vm2, %v1966_v40, %v1892_v25  ;;  %v2732_v5 = vld [vmem:[#allocation2 + $0x81] sm:$0xff] }
 0x210   : > { %8599 = vmatmul.msk.f32.gmra.mxu2 %vm1173_vm1, %v1998_v18  ;;  %v10819_v15 = vld [vmem:[%s9514_s25 + $0x188] sm:$0xff] }
 0x211   : > { %2389 = vst.msk [vmem:[#allocation2 + $0x91] sm:$0xff] %vm2322_vm3, %v2300_v55 }
 0x213   : > { %519 = vrot.lane.b32.xlu1 %v10280_v24, %s9406_s26  ;;  %1909 = vrot.lane.b32.xlu0 %v8573_v46, %s9407_s27  ;;  %v2159_v16 = vpop.f32.mrf.mxu2  ;;  %v1135_v24 = vsel %vm683_vm0, %v10781_v2, %v10663_v1  ;;  %v2731_v1 = vld [vmem:[#allocation2 + $0x79] sm:$0xff] }
 0x214   : > { %647 = vrot.lane.b32.xlu2 %v10321_v33, %s9407_s27  ;;  %v1529_v21 = vpop.f32.mrf.mxu1 }
 0x215   : > { %v502_v35 = vpop.permute.xlu1 %501  ;;  %v1530_v33 = vadd.f32 %v1529_v21, %v10027_v53  ;;  %v1070_v9 = vpop.permute.xlu0 %1069 }
 0x216   : > { %v705_v41 = vsel %vm683_vm0, %v10564_v49, %v502_v35  ;;  %v10786_v8 = vpop.permute.xlu2 %9111  ;;  %v1167_v44 = vsel %vm716_vm2, %v1135_v24, %v1070_v9  ;;  %v8574_v49 = vld [vmem:[%s9514_s25 + $0x1a2] sm:$0xff] }
 0x217   : > { %v738_v28 = vsel %vm716_vm2, %v705_v41, %v10698_v19  ;;  %8643 = vmatmul.msk.f32.gmra.mxu0 %vm2322_vm3, %v2764_v7  ;;  %v2233_v31 = vadd.f32 %v2159_v16, %v1530_v33  ;;  %8445 = vmatmul.msk.f32.gmra.mxu3 %vm1173_vm1, %v1167_v44  ;;  %v9113_v21 = vunpack.i.l.bf16 %v10786_v8  ;;  %v10846_v33 = vld [vmem:[%s9514_s25 + $0x140] sm:$0xff] }
 0x218   : > { %8468 = vmatmul.msk.f32.gmra.mxu1 %vm1173_vm1, %v738_v28  ;;  %v2733_v35 = vld [vmem:[#allocation2 + $0x91] sm:$0xff] }
 0x219   : > { %v2269_v53 = vadd.f32 %v10261_v39, %v2233_v31 }
 0x21b   : > { %1911 = vrot.lane.b32.xlu1 %v8574_v49, %s9407_s27  ;;  %1783 = vrot.lane.b32.xlu0 %v8542_v45, %s9406_s26  ;;  %v2301_v19 = vmax.f32 %v2269_v53, 0.0  ;;  %v2162_v30 = vpop.f32.mrf.mxu2  ;;  %v2691_v49 = vld [vmem:[#allocation2 + $0x18] sm:$0xff] }
 0x21c   : > { %2835 = vrot.lane.b32.xlu2 %v2731_v1, %s9409_s28  ;;  %v2915_v45 = vsel %vm2322_vm3, %v2691_v49, %v9113_v21 }
 0x21d   : > { %v1894_v57 = vpop.permute.xlu1 %1893  ;;  %2390 = vst.msk [vmem:[#allocation2 + $0x99] sm:$0xff] %vm2322_vm3, %v2301_v19  ;;  %v1766_v43 = vpop.permute.xlu0 %1765 }
 0x21e   : > { %v10807_v61 = vpop.permute.xlu2 %1769  ;;  %v1532_v32 = vpop.f32.mrf.mxu1  ;;  %v1967_v51 = vsel %vm683_vm0, %v10805_v6, %v1766_v43 }
 0x21f   : > { %v1533_v14 = vadd.f32 %v1532_v32, %v10045_v37  ;;  %v1999_v11 = vsel %vm716_vm2, %v1967_v51, %v1894_v57 }
 0x220   : > { %8600 = vmatmul.msk.f32.gmra.mxu2 %vm1173_vm1, %v1999_v11 }
 0x221   : > { %v2234_v25 = vadd.f32 %v2162_v30, %v1533_v14  ;;  %v2692_v14 = vld [vmem:[#allocation2 + $0x20] sm:$0xff] }
 0x223   : > { %649 = vrot.lane.b32.xlu1 %v10398_v52, %s9407_s27  ;;  %v2270_v13 = vadd.f32 %v10261_v39, %v2234_v25  ;;  %521 = vrot.lane.b32.xlu0 %v10353_v34, %s9406_s26  ;;  %v1136_v52 = vsel %vm683_vm0, %v10819_v15, %v10728_v42  ;;  %s9047_s27 = sshll.u32 %s9482_s13, 8 }
 0x224   : > { %2837 = vrot.lane.b32.xlu2 %v2732_v5, %s9409_s28  ;;  %v10826_v54 = vld [vmem:[#allocation2 + $0x92] sm:$0xff]  ;;  %v10848_v9 = vld [vmem:[#allocation2 + $0x9a] sm:$0xff]  ;;  %s8244_s16 = scalar_lea.hbm %s14559_s9, %s9047_s27 }
 0x225   : > { %v504_v10 = vpop.permute.xlu1 %503  ;;  %v2302_v37 = vmax.f32 %v2270_v13, 0.0  ;;  %v1072_v18 = vpop.permute.xlu0 %1071  ;;  %8644 = vmatmul.msk.f32.gmra.mxu0 %vm2322_vm3, %v10826_v54  ;;  %v2734_v16 = vld [vmem:[#allocation2 + $0x99] sm:$0xff]  ;;  %s8247_s21 = sshll.u32 %s8244_s16, 4  ;;  %s8248_s21 = int_to_ptr.hbm [resolvable:$true] %s8247_s21 }
 0x226   : > { %v706_v40 = vsel %vm683_vm0, %v10599_v47, %v504_v10  ;;  %v10828_v55 = vpop.permute.xlu2 %635  ;;  %v1535_v46 = vpop.f32.mrf.mxu1  ;;  %v1168_v47 = vsel %vm716_vm2, %v1136_v52, %v1072_v18  ;;  %s9356_s22 = sshra.s32 %s8248_s21, 4  ;;  %s9357_s22 = int_to_ptr.hbm [resolvable:$true] %s9356_s22 }
 0x227   : > { %v739_v34 = vsel %vm716_vm2, %v706_v40, %v10763_v17  ;;  %2391 = vst.msk [vmem:[#allocation2 + $0xa9] sm:$0xff] %vm2322_vm3, %v2302_v37  ;;  %8446 = vmatmul.msk.f32.gmra.mxu3 %vm1173_vm1, %v1168_v47  ;;  %v1536_v42 = vadd.f32 %v1535_v46, %v10067_v36  ;;  %v1969_v47 = vsel %vm683_vm0, %v10576_v23, %v10807_v61  ;;  %s9358_s23 = scalar_lea.hbm %s9357_s22, 256  ;;  %p9363_p0 = scmp.lt.s32.totalorder %s9357_s22, %s14559_s9 }
 0x228   : > { %8469 = vmatmul.msk.f32.gmra.mxu1 %vm1173_vm1, %v739_v34  ;;  %p9359_p11 = scmp.ne.s32.totalorder %s9357_s22, %s9358_s23  ;;  %p9364_p1 = scmp.lt.s32.totalorder %s9362_s29, %s9358_s23 }
 0x22a   : > { %v2165_v41 = vpop.f32.mrf.mxu2  ;;  %p9360_p12 = pnand %p9359_p11, %p9499_p5  ;;  %p9365_p2 = por %p9364_p1, %p9363_p0 }
 0x22b   : > { %2841 = vrot.lane.b32.xlu1 %v2734_v16, %s9409_s28  ;;  %2839 = vrot.lane.b32.xlu0 %v2733_v35, %s9409_s28  ;;  %v2235_v17 = vadd.f32 %v2165_v41, %v1536_v42  ;;  %v2693_v35 = vld [vmem:[#allocation2 + $0x30] sm:$0xff] }
 0x22c   : > { %p9361_p13 = pneg %p9360_p12 }
 0x22d   : > { %v1896_v24 = vpop.permute.xlu1 %1895  ;;  %v2271_v28 = vadd.f32 %v10261_v39, %v2235_v17  ;;  %v1768_v44 = vpop.permute.xlu0 %1767  ;;  %8645 = vmatmul.msk.f32.gmra.mxu0 %vm2322_vm3, %v10848_v9  ;;  %v9114_v39 = vunpack.i.h.bf16 %v10786_v8 }
 0x22e   : > { %v10850_v7 = vpop.permute.xlu2 %9116  ;;  %v2735_v36 = vld [vmem:[#allocation2 + $0xa9] sm:$0xff]  ;;  %v1968_v31 = vsel %vm683_vm0, %v10846_v33, %v1768_v44  ;;  %p9366_p3 = pnand %p9365_p2, %p9361_p13 }
 0x22f   : > { %2843 = vrot.lane.b32.xlu2 %v2735_v36, %s9409_s28  ;;  %v2303_v1 = vmax.f32 %v2271_v28, 0.0  ;;  %3084 = vmatmul.f32.vlgmr.msrb.gmra.mxu3 %v2915_v45  ;;  %v2000_v53 = vsel %vm716_vm2, %v1968_v31, %v1896_v24  ;;  %v2916_v25 = vsel %vm2322_vm3, %v2692_v14, %v9114_v39  ;;  %v9119_v61 = vunpack.i.h.bf16 %v10850_v7  ;;  %v2694_v31 = vld [vmem:[#allocation2 + $0x38] sm:$0xff] }
 0x230   : > { %8601 = vmatmul.msk.f32.gmra.mxu2 %vm1173_vm1, %v2000_v53 }
 0x231   : > { %2392 = vst.msk [vmem:[#allocation2 + $0xb1] sm:$0xff] %vm2322_vm3, %v2303_v1  ;;  %v2918_v53 = vsel %vm2322_vm3, %v2694_v31, %v9119_v61 }
 0x233   : > { %v2168_v19 = vpop.f32.mrf.mxu2 }
 0x234   : > { %v1538_v30 = vpop.f32.mrf.mxu1 }
 0x235   : > { %v634_v57 = vpop.permute.xlu1 %633  ;;  %v1539_v32 = vadd.f32 %v1538_v30, %v10080_v22  ;;  %v506_v51 = vpop.permute.xlu0 %505  ;;  %v10876_v22 = vld [vmem:[%s14552_s2] ss:$0 sm:$0xff] }
 0x236   : > { %v10863_v43 = vpop.permute.xlu2 %1773  ;;  %v707_v11 = vsel %vm683_vm0, %v10636_v29, %v506_v51  ;;  %v9118_v29 = vunpack.i.l.bf16 %v10850_v7 }
 0x237   : > { %v2236_v5 = vadd.f32 %v2168_v19, %v1539_v32  ;;  %3087 = vmatmul.f32.gmra.mxu3 %v2916_v25  ;;  %v740_v13 = vsel %vm716_vm2, %v707_v11, %v634_v57 }
 0x238   : > { %8470 = vmatmul.msk.f32.gmra.mxu1 %vm1173_vm1, %v740_v13  ;;  %v2736_v8 = vld [vmem:[#allocation2 + $0xb1] sm:$0xff]  ;;  %v2695_v13 = vld [vmem:[#allocation2 + $0x48] sm:$0xff] }
 0x239   : > { %v10871_v10 = vld [vmem:[#allocation2 + $0xaa] sm:$0xff]  ;;  %v2272_v37 = vadd.f32 %v10876_v22, %v2236_v5  ;;  %2845 = vrot.lane.b32.xlu0 %v2736_v8, %s9409_s28  ;;  %v10898_v23 = vld [vmem:[#allocation2 + $0xb2] sm:$0xff] }
 0x23a   : > { %8646 = vmatmul.msk.f32.gmra.mxu0 %vm2322_vm3, %v10871_v10 }
 0x23b   : > { %v2304_v40 = vmax.f32 %v2272_v37, 0.0  ;;  %v2171_v46 = vpop.f32.mrf.mxu2 }
 0x23d   : > { %v508_v52 = vpop.permute.xlu1 %507  ;;  %2393 = vst.msk [vmem:[#allocation2 + $0xc1] sm:$0xff] %vm2322_vm3, %v2304_v40  ;;  %v1898_v16 = vpop.permute.xlu0 %1897 }
 0x23e   : > { %v708_v18 = vsel %vm683_vm0, %v10693_v4, %v508_v52  ;;  %v10885_v34 = vpop.permute.xlu2 %639  ;;  %v1541_v42 = vpop.f32.mrf.mxu1  ;;  %v2001_v41 = vsel %vm716_vm2, %v1969_v47, %v1898_v16  ;;  %v2917_v4 = vsel %vm2322_vm3, %v2693_v35, %v9118_v29  ;;  %v1971_v47 = vsel %vm683_vm0, %v10656_v63, %v10863_v43 }
 0x23f   : > { %v741_v21 = vsel %vm716_vm2, %v708_v18, %v10828_v55  ;;  %v1542_v17 = vadd.f32 %v1541_v42, %v10107_v3  ;;  %8602 = vmatmul.msk.f32.gmra.mxu2 %vm1173_vm1, %v2001_v41  ;;  %3090 = vmatmul.f32.gmra.mxu3 %v2917_v4 }
 0x240   : > { %8471 = vmatmul.msk.f32.gmra.mxu1 %vm1173_vm1, %v741_v21  ;;  %v2696_v21 = vld [vmem:[#allocation2 + $0x50] sm:$0xff] }
 0x241   : > { %v2237_v24 = vadd.f32 %v2171_v46, %v1542_v17 }
 0x242   : > { %8647 = vmatmul.msk.f32.gmra.mxu0 %vm2322_vm3, %v10898_v23 }
 0x243   : > { %v2273_v55 = vadd.f32 %v10876_v22, %v2237_v24 }
 0x244   : > { %v2737_v3 = vld [vmem:[#allocation2 + $0xc1] sm:$0xff] }
 0x245   : > { %v1900_v28 = vpop.permute.xlu1 %1899  ;;  %v2305_v44 = vmax.f32 %v2273_v55, 0.0  ;;  %v1772_v49 = vpop.permute.xlu0 %1771  ;;  %2847 = vrot.lane.b32.xlu1 %v2737_v3, %s9409_s28 }
 0x246   : > { %v9122_v36 = vpop.permute.xlu2 %9121  ;;  %v1970_v45 = vsel %vm683_vm0, %v10614_v26, %v1772_v49  ;;  %v1544_v1 = vpop.f32.mrf.mxu1 }
 0x247   : > { %2394 = vst.msk [vmem:[#allocation2 + $0xc9] sm:$0xff] %vm2322_vm3, %v2305_v44  ;;  %3093 = vmatmul.f32.gmra.mxu3 %v2918_v53  ;;  %v2002_v7 = vsel %vm716_vm2, %v1970_v45, %v1900_v28  ;;  %v1545_v39 = vadd.f32 %v1544_v1, %v10135_v59  ;;  %v9123_v19 = vunpack.i.l.bf16 %v9122_v36  ;;  %v9124_v40 = vunpack.i.h.bf16 %v9122_v36  ;;  %v2697_v36 = vld [vmem:[#allocation2 + $0x60] sm:$0xff] }
 0x248   : > { %8603 = vmatmul.msk.f32.gmra.mxu2 %vm1173_vm1, %v2002_v7 }
 0x249   : > { %v2919_v59 = vsel %vm2322_vm3, %v2695_v13, %v9123_v19 }
 0x24a   : > { %v2174_v57 = vpop.f32.mrf.mxu2 }
 0x24b   : > { %v2238_v30 = vadd.f32 %v2174_v57, %v1545_v39 }
 0x24d   : > { %v638_v32 = vpop.permute.xlu1 %637  ;;  %v2274_v14 = vadd.f32 %v10876_v22, %v2238_v30  ;;  %v510_v11 = vpop.permute.xlu0 %509 }
 0x24e   : > { %v10912_v51 = vpop.permute.xlu2 %1777  ;;  %v10915_v25 = vld [vmem:[#allocation2 + $0xc2] sm:$0xff]  ;;  %v709_v8 = vsel %vm683_vm0, %v10758_v60, %v510_v11  ;;  %v10934_v35 = vld [vmem:[#allocation2 + $0xca] sm:$0xff] }
 0x24f   : > { %v2738_v5 = vld [vmem:[#allocation2 + $0xc9] sm:$0xff]  ;;  %8648 = vmatmul.msk.f32.gmra.mxu0 %vm2322_vm3, %v10915_v25  ;;  %v2306_v37 = vmax.f32 %v2274_v14, 0.0  ;;  %3096 = vmatmul.f32.gmra.mxu3 %v2919_v59  ;;  %v742_v29 = vsel %vm716_vm2, %v709_v8, %v638_v32 }
 0x250   : > { %2849 = vrot.lane.b32.xlu2 %v2738_v5, %s9409_s28  ;;  %8472 = vmatmul.msk.f32.gmra.mxu1 %vm1173_vm1, %v742_v29  ;;  %v2698_v11 = vld [vmem:[#allocation2 + $0x68] sm:$0xff]  ;;  %v359_v59 = vld [vmem:[%s9514_s25 + $0x150] sm:$0xff] }
 0x251   : > { %2395 = vst.msk [vmem:[#allocation2 + $0xd9] sm:$0xff] %vm2322_vm3, %v2306_v37  ;;  %v2690_v37 = vld [vmem:[%s14553_s3 + $0xb8] sm:$0xff] }
 0x252   : > { %3511 = vmatpush.msra.mxu2 %v2690_v37 }
 0x253   : > { %v2177_v17 = vpop.f32.mrf.mxu2 }
 0x255   : > { %v512_v52 = vpop.permute.xlu1 %511  ;;  %v1547_v18 = vpop.f32.mrf.mxu1 }
 0x256   : > { %v710_v60 = vsel %vm683_vm0, %v10805_v6, %v512_v52  ;;  %v10928_v46 = vpop.permute.xlu2 %643  ;;  %v1902_v16 = vpop.permute.xlu0 %1901  ;;  %v1548_v42 = vadd.f32 %v1547_v18, %v10187_v48  ;;  %v2920_v6 = vsel %vm2322_vm3, %v2696_v21, %v9124_v40  ;;  %v2688_v21 = vld [vmem:[%s14553_s3 + $0xa8] sm:$0xff] }
 0x257   : > { %v743_v41 = vsel %vm716_vm2, %v710_v60, %v10885_v34  ;;  %v2003_v4 = vsel %vm716_vm2, %v1971_v47, %v1902_v16  ;;  %8649 = vmatmul.msk.f32.gmra.mxu0 %vm2322_vm3, %v10934_v35  ;;  %3099 = vmatmul.f32.gmra.mxu3 %v2920_v6  ;;  %v1973_v47 = vsel %vm683_vm0, %v10781_v2, %v10912_v51  ;;  %v2687_v2 = vld [vmem:[%s14553_s3 + $0xa0] sm:$0xff]  ;;  %v2686_v51 = vld [vmem:[%s14553_s3 + $0x98] sm:$0xff] }
 0x258   : > { %v2239_v24 = vadd.f32 %v2177_v17, %v1548_v42  ;;  %8604 = vmatmul.msk.f32.gmra.mxu2 %vm1173_vm1, %v2003_v4  ;;  %8473 = vmatmul.msk.f32.gmra.mxu1 %vm1173_vm1, %v743_v41  ;;  %v2739_v48 = vld [vmem:[#allocation2 + $0xd9] sm:$0xff]  ;;  %v2685_v17 = vld [vmem:[%s14553_s3 + $0x90] sm:$0xff]  ;;  %v2684_v4 = vld [vmem:[%s14553_s3 + $0x88] sm:$0xff] }
 0x259   : > { %2851 = vrot.lane.b32.xlu0 %v2739_v48, %s9409_s28 }
 0x25a   : > { %v2275_v43 = vadd.f32 %v10876_v22, %v2239_v24 }
 0x25c   : > { %v2307_v34 = vmax.f32 %v2275_v43, 0.0  ;;  %v2699_v43 = vld [vmem:[#allocation2 + $0x78] sm:$0xff] }
 0x25d   : > { %v1904_v61 = vpop.permute.xlu1 %1903 }
 0x25e   : > { %v9127_v55 = vpop.permute.xlu2 %9126  ;;  %2396 = vst.msk [vmem:[#allocation2 + $0xe1] sm:$0xff] %vm2322_vm3, %v2307_v34  ;;  %v1776_v28 = vpop.permute.xlu0 %1775 }
 0x25f   : > { %v9128_v44 = vunpack.i.l.bf16 %v9127_v55  ;;  %v1972_v3 = vsel %vm683_vm0, %v10720_v20, %v1776_v28  ;;  %v9129_v45 = vunpack.i.h.bf16 %v9127_v55 }
 0x260   : > { %v2004_v49 = vsel %vm716_vm2, %v1972_v3, %v1904_v61 }
 0x261   : > { %v2921_v31 = vsel %vm2322_vm3, %v2697_v36, %v9128_v44  ;;  %8605 = vmatmul.msk.f32.gmra.mxu2 %vm1173_vm1, %v2004_v49  ;;  %v2922_v8 = vsel %vm2322_vm3, %v2698_v11, %v9129_v45  ;;  %v2683_v49 = vld [vmem:[%s14553_s3 + $0x80] sm:$0xff]  ;;  %v8509_v11 = vld [vmem:[%s9514_s25 + $0x198] sm:$0xff] }
 0x262   : > { %3102 = vmatmul.f32.gmra.mxu3 %v2921_v31 }
 0x263   : > { %v2180_v32 = vpop.f32.mrf.mxu2 }
 0x265   : > { %v642_v1 = vpop.permute.xlu1 %641  ;;  %v1550_v53 = vpop.f32.mrf.mxu1  ;;  %v2740_v39 = vld [vmem:[#allocation2 + $0xe1] sm:$0xff] }
 0x266   : > { %v10952_v7 = vpop.permute.xlu2 %1781  ;;  %v10954_v19 = vld [vmem:[#allocation2 + $0xda] sm:$0xff]  ;;  %v514_v57 = vpop.permute.xlu0 %513  ;;  %v1551_v30 = vadd.f32 %v1550_v53, %v10014_v50  ;;  %2853 = vrot.lane.b32.xlu1 %v2740_v39, %s9409_s28  ;;  %v10976_v18 = vld [vmem:[#allocation2 + $0xe2] sm:$0xff] }
 0x267   : > { %8650 = vmatmul.msk.f32.gmra.mxu0 %vm2322_vm3, %v10954_v19  ;;  %v711_v14 = vsel %vm683_vm0, %v10846_v33, %v514_v57  ;;  %v2689_v33 = vld [vmem:[%s14553_s3 + $0xb0] sm:$0xff]  ;;  %v2700_v53 = vld [vmem:[#allocation2 + $0x80] sm:$0xff]  ;;  %v8713_v57 = vld [vmem:[%s14553_s3 + $0x1f8] sm:$0xff]  ;;  %v1975_v37 = vsel %vm683_vm0, %v8509_v11, %v10952_v7 }
 0x268   : > { %v2240_v5 = vadd.f32 %v2180_v32, %v1551_v30  ;;  %v744_v13 = vsel %vm716_vm2, %v711_v14, %v642_v1  ;;  %3512 = vmatpush.msra.mxu2 %v2689_v33  ;;  %3994 = vmatpush.msra.mxu3 %v8713_v57  ;;  %v2682_v14 = vld [vmem:[%s14553_s3 + $0x78] sm:$0xff] }
 0x269   : > { %8474 = vmatmul.msk.f32.gmra.mxu1 %vm1173_vm1, %v744_v13  ;;  %v8721_v13 = vld [vmem:[%s14553_s3 + $0x238] sm:$0xff] }
 0x26a   : > { %3105 = vmatmul.f32.gmra.mxu3 %v2922_v8  ;;  %v2276_v50 = vadd.f32 %v10876_v22, %v2240_v5  ;;  %3513 = vmatpush.msra.mxu2 %v2688_v21 }
 0x26b   : > { %3390 = vmatpush.msra.mxu1 %v2682_v14  ;;  %4115 = vmatpush.msra.mxu0 %v8721_v13  ;;  %v2702_v14 = vld [vmem:[#allocation2 + $0x98] sm:$0xff] }
 0x26c   : > { %v2308_v29 = vmax.f32 %v2276_v50, 0.0  ;;  %3514 = vmatpush.msra.mxu2 %v2687_v2  ;;  %v2477_v13 = vld [vmem:[#allocation2 + $0x1a] sm:$0xff] }
 0x26d   : > { %v516_v40 = vpop.permute.xlu1 %515 }
 0x26e   : > { %v712_v52 = vsel %vm683_vm0, %v359_v59, %v516_v40  ;;  %v10974_v60 = vpop.permute.xlu2 %647  ;;  %2397 = vst.msk [vmem:[#allocation2 + $0xf1] sm:$0xff] %vm2322_vm3, %v2308_v29  ;;  %v1906_v16 = vpop.permute.xlu0 %1905  ;;  %3515 = vmatpush.msra.mxu2 %v2686_v51 }
 0x26f   : > { %8651 = vmatmul.msk.f32.gmra.mxu0 %vm2322_vm3, %v10976_v18  ;;  %v745_v42 = vsel %vm716_vm2, %v712_v52, %v10928_v46  ;;  %v2005_v41 = vsel %vm716_vm2, %v1973_v47, %v1906_v16 }
 0x270   : > { %8606 = vmatmul.msk.f32.gmra.mxu2 %vm1173_vm1, %v2005_v41  ;;  %v8712_v41 = vld [vmem:[%s14553_s3 + $0x1f0] sm:$0xff] }
 0x271   : > { %8475 = vmatmul.msk.f32.gmra.mxu1 %vm1173_vm1, %v745_v42  ;;  %3516 = vmatpush.msra.mxu2 %v2685_v17  ;;  %v8510_v42 = vld [vmem:[%s9514_s25 + $0x1a0] sm:$0xff] }
 0x272   : > { %3995 = vmatpush.msra.mxu3 %v8712_v41 }
 0x273   : > { %v2183_v28 = vpop.f32.mrf.mxu2  ;;  %3517 = vmatpush.msra.mxu2 %v2684_v4 }
 0x275   : > { %v1908_v46 = vpop.permute.xlu1 %1907  ;;  %v1553_v6 = vpop.f32.mrf.mxu1  ;;  %v2741_v48 = vld [vmem:[#allocation2 + $0xf1] sm:$0xff]  ;;  %3518 = vmatpush.msra.mxu2 %v2683_v49 }
 0x276   : > { %v2836_v24 = vpop.permute.xlu2 %2835  ;;  %v1780_v34 = vpop.permute.xlu0 %1779  ;;  %v1554_v61 = vadd.f32 %v1553_v6, %v10037_v62  ;;  %2855 = vrot.lane.b32.xlu2 %v2741_v48, %s9409_s28  ;;  %v2701_v49 = vld [vmem:[#allocation2 + $0x90] sm:$0xff] }
 0x277   : > { %v2923_v55 = vsel %vm2322_vm3, %v2699_v43, %v2836_v24  ;;  %v1974_v44 = vsel %vm683_vm0, %v10819_v15, %v1780_v34  ;;  %v2475_v43 = vld [vmem:[#allocation2 + $0x2] sm:$0xff]  ;;  %v11067_v34 = vpop.f32.mrf.mxu0 }
 0x278   : > { %3108 = vmatmul.f32.gmra.mxu3 %v2923_v55  ;;  %v2241_v3 = vadd.f32 %v2183_v28, %v1554_v61  ;;  %v2006_v36 = vsel %vm716_vm2, %v1974_v44, %v1908_v46  ;;  %v2681_v46 = vld [vmem:[%s14553_s3 + $0x70] sm:$0xff] }
 0x279   : > { %8607 = vmatmul.msk.f32.gmra.mxu2 %vm1173_vm1, %v2006_v36  ;;  %3391 = vmatpush.msra.mxu1 %v2681_v46 }
 0x27a   : > { %v2277_v62 = vadd.f32 %v10876_v22, %v2241_v3 }
 0x27c   : > { %v2309_v31 = vmax.f32 %v2277_v62, 0.0  ;;  %v2476_v62 = vld [vmem:[#allocation2 + $0xa] sm:$0xff] }
 0x27d   : > { %v646_v45 = vpop.permute.xlu1 %645 }
 0x27e   : > { %v2838_v1 = vpop.permute.xlu2 %2837  ;;  %2398 = vst.msk [vmem:[#allocation2 + $0xf9] sm:$0xff] %vm2322_vm3, %v2309_v31  ;;  %v518_v15 = vpop.permute.xlu0 %517 }
 0x27f   : > { %v2924_v39 = vsel %vm2322_vm3, %v2700_v53, %v2838_v1  ;;  %v713_v30 = vsel %vm683_vm0, %v10614_v26, %v518_v15  ;;  %v2680_v1 = vld [vmem:[%s14553_s3 + $0x68] sm:$0xff] }
 0x280   : > { %3111 = vmatmul.f32.gmra.mxu3 %v2924_v39  ;;  %v746_v32 = vsel %vm716_vm2, %v713_v30, %v646_v45  ;;  %v11080_v45 = vpop.f32.mrf.mxu0  ;;  %3392 = vmatpush.msra.mxu1 %v2680_v1 }
 0x281   : > { %8476 = vmatmul.msk.f32.gmra.mxu1 %vm1173_vm1, %v746_v32 }
 0x283   : > { %v2186_v33 = vpop.f32.mrf.mxu2 }
 0x285   : > { %v520_v5 = vpop.permute.xlu1 %519  ;;  %v1556_v8 = vpop.f32.mrf.mxu1  ;;  %v2742_v50 = vld [vmem:[#allocation2 + $0xf9] sm:$0xff] }
 0x286   : > { %v714_v26 = vsel %vm683_vm0, %v10656_v63, %v520_v5  ;;  %v11033_v59 = vld [vmem:[#allocation2 + $0xf2] sm:$0xff]  ;;  %v1910_v29 = vpop.permute.xlu0 %1909  ;;  %v1557_v40 = vadd.f32 %v1556_v8, %v10051_v56  ;;  %2857 = vrot.lane.b32.xlu0 %v2742_v50, %s9409_s28  ;;  %v11048_v21 = vld [vmem:[#allocation2 + $0xfa] sm:$0xff] }
 0x287   : > { %8652 = vmatmul.msk.f32.gmra.mxu0 %vm2322_vm3, %v11033_v59  ;;  %v747_v63 = vsel %vm716_vm2, %v714_v26, %v10974_v60  ;;  %v2007_v52 = vsel %vm716_vm2, %v1975_v37, %v1910_v29  ;;  %v8720_v8 = vld [vmem:[%s14553_s3 + $0x230] sm:$0xff]  ;;  %v2443_v37 = vld [vmem:[#allocation2 + $0x1] sm:$0xff] }
 0x288   : > { %v2242_v47 = vadd.f32 %v2186_v33, %v1557_v40  ;;  %8608 = vmatmul.msk.f32.gmra.mxu2 %vm1173_vm1, %v2007_v52  ;;  %v11096_v26 = vpop.f32.mrf.mxu0  ;;  %4116 = vmatpush.msra.mxu0 %v8720_v8  ;;  %v2478_v52 = vld [vmem:[#allocation2 + $0x22] sm:$0xff] }
 0x289   : > { %8477 = vmatmul.msk.f32.gmra.mxu1 %vm1173_vm1, %v747_v63  ;;  %v2844_v29 = vpop.permute.xlu2 %2843  ;;  %v2703_v63 = vld [vmem:[#allocation2 + $0xa8] sm:$0xff] }
 0x28a   : > { %v2278_v7 = vadd.f32 %v10876_v22, %v2242_v47  ;;  %v2927_v33 = vsel %vm2322_vm3, %v2703_v63, %v2844_v29  ;;  %v2707_v29 = vld [vmem:[#allocation2 + $0xd8] sm:$0xff] }
 0x28c   : > { %v2310_v16 = vmax.f32 %v2278_v7, 0.0 }
 0x28d   : > { %v1912_v56 = vpop.permute.xlu1 %1911 }
 0x28e   : > { %2399 = vst.msk [vmem:[#allocation2 + $0x109] sm:$0xff] %vm2322_vm3, %v2310_v16  ;;  %v1784_v60 = vpop.permute.xlu0 %1783 }
 0x28f   : > { %8653 = vmatmul.msk.f32.gmra.mxu0 %vm2322_vm3, %v11048_v21  ;;  %v1976_v2 = vsel %vm683_vm0, %v8510_v42, %v1784_v60  ;;  %v2704_v42 = vld [vmem:[#allocation2 + $0xb0] sm:$0xff] }
 0x290   : > { %v2008_v51 = vsel %vm716_vm2, %v1976_v2, %v1912_v56  ;;  %v11111_v47 = vpop.f32.mrf.mxu0  ;;  %v8710_v2 = vld [vmem:[%s14553_s3 + $0x1e0] sm:$0xff] }
 0x291   : > { %8609 = vmatmul.msk.f32.gmra.mxu2 %vm1173_vm1, %v2008_v51  ;;  %v2679_v51 = vld [vmem:[%s14553_s3 + $0x60] sm:$0xff] }
 0x292   : > { %3393 = vmatpush.msra.mxu1 %v2679_v51 }
 0x293   : > { %v2189_v61 = vpop.f32.mrf.mxu2 }
 0x295   : > { %v650_v17 = vpop.permute.xlu1 %649  ;;  %v1559_v4 = vpop.f32.mrf.mxu1  ;;  %v11062_v6 = vld [vmem:[#allocation2 + $0x109] sm:$0xff] }
 0x296   : > { %v522_v24 = vpop.permute.xlu0 %521  ;;  %v1560_v48 = vadd.f32 %v1559_v4, %v10072_v12  ;;  %2859 = vrot.lane.b32.xlu1 %v11062_v6, %s9409_s28 }
 0x297   : > { %v715_v55 = vsel %vm683_vm0, %v10720_v20, %v522_v24  ;;  %v8711_v20 = vld [vmem:[%s14553_s3 + $0x1e8] sm:$0xff] }
 0x298   : > { %v2243_v28 = vadd.f32 %v2189_v61, %v1560_v48  ;;  %v748_v44 = vsel %vm716_vm2, %v715_v55, %v650_v17  ;;  %3996 = vmatpush.msra.mxu3 %v8711_v20  ;;  %v11125_v17 = vld [vmem:[#allocation2 + $0x32] sm:$0xff]  ;;  %v2705_v61 = vld [vmem:[#allocation2 + $0xc0] sm:$0xff]  ;;  %v8719_v20 = vld [vmem:[%s14553_s3 + $0x228] sm:$0xff] }
 0x299   : > { %8478 = vmatmul.msk.f32.gmra.mxu1 %vm1173_vm1, %v748_v44  ;;  %8666 = vmatmul.msk.f32.vlgmr.msra.gmra.mxu2 %vm2322_vm3, %v2475_v43  ;;  %v11134_v44 = vld [vmem:[#allocation2 + $0x3a] sm:$0xff] }
 0x29a   : > { %v2279_v3 = vadd.f32 %v10876_v22, %v2243_v28  ;;  %3997 = vmatpush.msra.mxu3 %v8710_v2  ;;  %4117 = vmatpush.msra.mxu0 %v8719_v20 }
 0x29c   : > { %v2311_v12 = vmax.f32 %v2279_v3, 0.0 }
 0x29d   : > { %v2842_v53 = vpop.permute.xlu1 %2841 }
 0x29e   : > { %2400 = vst.msk [vmem:[#allocation2 + $0x111] sm:$0xff] %vm2322_vm3, %v2311_v12  ;;  %v2840_v36 = vpop.permute.xlu0 %2839  ;;  %v2926_v5 = vsel %vm2322_vm3, %v2702_v14, %v2842_v53  ;;  %v8709_v12 = vld [vmem:[%s14553_s3 + $0x1d8] sm:$0xff] }
 0x29f   : > { %v2925_v31 = vsel %vm2322_vm3, %v2701_v49, %v2840_v36  ;;  %v2678_v36 = vld [vmem:[%s14553_s3 + $0x58] sm:$0xff]  ;;  %3998 = vmatpush.msra.mxu3 %v8709_v12  ;;  %v2675_v12 = vld [vmem:[%s14553_s3 + $0x40] sm:$0xff] }
 0x2a0   : > { %3114 = vmatmul.f32.gmra.mxu3 %v2925_v31  ;;  %3394 = vmatpush.msra.mxu1 %v2678_v36 }
 0x2a1   : > { %8667 = vmatmul.msk.f32.gmra.mxu2 %vm2322_vm3, %v2476_v62 }
 0x2a3   : > { %v2192_v32 = vpop.f32.mrf.mxu2 }
 0x2a5   : > { %v1562_v15 = vpop.f32.mrf.mxu1  ;;  %v11087_v57 = vld [vmem:[#allocation2 + $0x10a] sm:$0xff]  ;;  %v11104_v40 = vld [vmem:[#allocation2 + $0x112] sm:$0xff] }
 0x2a6   : > { %v1563_v39 = vadd.f32 %v1562_v15, %v10092_v0  ;;  %v11089_v30 = vld [vmem:[#allocation2 + $0x111] sm:$0xff]  ;;  %8654 = vmatmul.msk.f32.gmra.mxu0 %vm2322_vm3, %v11087_v57 }
 0x2a7   : > { %2861 = vrot.lane.b32.xlu2 %v11089_v30, %s9409_s28 }
 0x2a8   : > { %v2244_v11 = vadd.f32 %v2192_v32, %v1563_v39  ;;  %3117 = vmatmul.f32.gmra.mxu3 %v2926_v5  ;;  %v2706_v39 = vld [vmem:[#allocation2 + $0xc8] sm:$0xff]  ;;  %v1365_v5 = vpop.f32.mrf.mxu3 }
 0x2a9   : > { %8668 = vmatmul.msk.f32.gmra.mxu2 %vm2322_vm3, %v2477_v13 }
 0x2aa   : > { %v2280_v0 = vadd.f32 %v10876_v22, %v2244_v11  ;;  %v2850_v62 = vpop.permute.xlu2 %2849  ;;  %v11160_v11 = vld [vmem:[#allocation2 + $0x4a] sm:$0xff] }
 0x2ab   : > { %v2846_v7 = vpop.permute.xlu0 %2845  ;;  %v2930_v32 = vsel %vm2322_vm3, %v2706_v39, %v2850_v62 }
 0x2ac   : > { %v2312_v50 = vmax.f32 %v2280_v0, 0.0  ;;  %v2928_v60 = vsel %vm2322_vm3, %v2704_v42, %v2846_v7  ;;  %v2444_v0 = vld [vmem:[#allocation2 + $0x9] sm:$0xff] }
 0x2ae   : > { %2401 = vst.msk [vmem:[#allocation2 + $0x121] sm:$0xff] %vm2322_vm3, %v2312_v50  ;;  %8655 = vmatmul.msk.f32.gmra.mxu0 %vm2322_vm3, %v11104_v40 }
 0x2af   : > { %2539 = vrot.lane.b32.xlu2 %v2443_v37, %s9409_s28 }
 0x2b0   : > { %3120 = vmatmul.f32.gmra.mxu3 %v2927_v33 }
 0x2b1   : > { %8669 = vmatmul.msk.f32.gmra.mxu2 %vm2322_vm3, %v2478_v52  ;;  %v8708_v52 = vld [vmem:[%s14553_s3 + $0x1d0] sm:$0xff] }
 0x2b2   : > { %3999 = vmatpush.msra.mxu3 %v8708_v52  ;;  %v2671_v52 = vld [vmem:[%s14553_s3 + $0x20] sm:$0xff] }
 0x2b3   : > { %v2195_v46 = vpop.f32.mrf.mxu2 }
 0x2b5   : > { %v11113_v16 = vld [vmem:[#allocation2 + $0x121] sm:$0xff]  ;;  %v1565_v56 = vpop.f32.mrf.mxu1 }
 0x2b6   : > { %2863 = vrot.lane.b32.xlu0 %v11113_v16, %s9409_s28  ;;  %v1566_v41 = vadd.f32 %v1565_v56, %v10115_v58  ;;  %v11129_v58 = vpop.f32.mrf.mxu0  ;;  %v11177_v56 = vld [vmem:[#allocation2 + $0x52] sm:$0xff] }
 0x2b7   : > { %v2848_v48 = vpop.permute.xlu1 %2847 }
 0x2b8   : > { %3123 = vmatmul.f32.gmra.mxu3 %v2928_v60  ;;  %v2245_v4 = vadd.f32 %v2195_v46, %v1566_v41  ;;  %v2929_v28 = vsel %vm2322_vm3, %v2705_v61, %v2848_v48  ;;  %v2677_v41 = vld [vmem:[%s14553_s3 + $0x50] sm:$0xff]  ;;  %v1368_v60 = vpop.f32.mrf.mxu3  ;;  %v11192_v48 = vld [vmem:[#allocation2 + $0x62] sm:$0xff]  ;;  %v2445_v61 = vld [vmem:[#allocation2 + $0x19] sm:$0xff] }
 0x2b9   : > { %8670 = vmatmul.msk.f32.gmra.mxu2 %vm2322_vm3, %v11125_v17  ;;  %3395 = vmatpush.msra.mxu1 %v2677_v41  ;;  %v2446_v41 = vld [vmem:[#allocation2 + $0x21] sm:$0xff] }
 0x2ba   : > { %v2281_v24 = vadd.f32 %v10876_v22, %v2245_v4 }
 0x2bc   : > { %v2313_v43 = vmax.f32 %v2281_v24, 0.0 }
 0x2bd   : > { %v1568_v55 = vpop.f32.mrf.mxu1 }
 0x2be   : > { %2402 = vst.msk [vmem:[#allocation2 + $0x129] sm:$0xff] %vm2322_vm3, %v2313_v43  ;;  %v1569_v3 = vadd.f32 %v1568_v55, %v10150_v38  ;;  %v11148_v1 = vpop.f32.mrf.mxu0  ;;  %v2708_v43 = vld [vmem:[#allocation2 + $0xe0] sm:$0xff] }
 0x2c0   : > { %3126 = vmatmul.f32.gmra.mxu3 %v2929_v28  ;;  %v2676_v28 = vld [vmem:[%s14553_s3 + $0x48] sm:$0xff]  ;;  %v1371_v36 = vpop.f32.mrf.mxu3 }
 0x2c1   : > { %8671 = vmatmul.msk.f32.gmra.mxu2 %vm2322_vm3, %v11134_v44  ;;  %3396 = vmatpush.msra.mxu1 %v2676_v28 }
 0x2c2   : > { %v2198_v49 = vpop.f32.mrf.mxu2 }
 0x2c3   : > { %v2246_v31 = vadd.f32 %v2198_v49, %v1569_v3  ;;  %3397 = vmatpush.msra.mxu1 %v2675_v12  ;;  %v2668_v12 = vld [vmem:[%s14553_s3 + $0x8] sm:$0xff] }
 0x2c5   : > { %v2282_v38 = vadd.f32 %v10876_v22, %v2246_v31  ;;  %v11151_v53 = vld [vmem:[#allocation2 + $0x129] sm:$0xff]  ;;  %v2674_v31 = vld [vmem:[%s14553_s3 + $0x38] sm:$0xff] }
 0x2c6   : > { %v11153_v15 = vld [vmem:[#allocation2 + $0x122] sm:$0xff]  ;;  %2865 = vrot.lane.b32.xlu1 %v11151_v53, %s9409_s28  ;;  %v11165_v8 = vpop.f32.mrf.mxu0  ;;  %v11167_v37 = vld [vmem:[#allocation2 + $0x12a] sm:$0xff]  ;;  %3398 = vmatpush.msra.mxu1 %v2674_v31 }
 0x2c7   : > { %8656 = vmatmul.msk.f32.gmra.mxu0 %vm2322_vm3, %v11153_v15  ;;  %v2314_v14 = vmax.f32 %v2282_v38, 0.0  ;;  %v2667_v31 = vld [vmem:[%s14553_s3] sm:$0xff] }
 0x2c8   : > { %3129 = vmatmul.f32.gmra.mxu3 %v2930_v32 }
 0x2c9   : > { %8672 = vmatmul.msk.f32.gmra.mxu2 %vm2322_vm3, %v11160_v11  ;;  %2403 = vst.msk [vmem:[#allocation2 + $0x139] sm:$0xff] %vm2322_vm3, %v2314_v14 }
 0x2cb   : > { %v2852_v13 = vpop.permute.xlu0 %2851  ;;  %v2201_v7 = vpop.f32.mrf.mxu2 }
 0x2cc   : > { %v2931_v33 = vsel %vm2322_vm3, %v2707_v29, %v2852_v13 }
 0x2cd   : > { %v1571_v50 = vpop.f32.mrf.mxu1 }
 0x2ce   : > { %v1572_v63 = vadd.f32 %v1571_v50, %v10213_v27  ;;  %2541 = vrot.lane.b32.xlu1 %v2444_v0, %s9409_s28  ;;  %v11189_v46 = vpop.f32.mrf.mxu0  ;;  %v11221_v0 = vld [vmem:[#allocation2 + $0x6a] sm:$0xff] }
 0x2cf   : > { %8657 = vmatmul.msk.f32.gmra.mxu0 %vm2322_vm3, %v11167_v37  ;;  %v2709_v50 = vld [vmem:[#allocation2 + $0xf0] sm:$0xff] }
 0x2d0   : > { %3132 = vmatmul.f32.gmra.mxu3 %v2931_v33  ;;  %v2247_v42 = vadd.f32 %v2201_v7, %v1572_v63  ;;  %v11181_v27 = vld [vmem:[#allocation2 + $0x139] sm:$0xff]  ;;  %v2856_v20 = vpop.permute.xlu2 %2855  ;;  %v2672_v63 = vld [vmem:[%s14553_s3 + $0x28] sm:$0xff]  ;;  %v1374_v33 = vpop.f32.mrf.mxu3 }
 0x2d1   : > { %8673 = vmatmul.msk.f32.gmra.mxu2 %vm2322_vm3, %v11177_v56  ;;  %2867 = vrot.lane.b32.xlu0 %v11181_v27, %s9409_s28  ;;  %v2933_v29 = vsel %vm2322_vm3, %v2709_v50, %v2856_v20  ;;  %v2670_v7 = vld [vmem:[%s14553_s3 + $0x18] sm:$0xff] }
 0x2d2   : > { %v2283_v2 = vadd.f32 %v10876_v22, %v2247_v42  ;;  %v11276_v50 = vld [vmem:[#allocation2 + $0x31] sm:$0xff] }
 0x2d4   : > { %v2315_v51 = vmax.f32 %v2283_v2, 0.0 }
 0x2d5   : > { %v1574_v4 = vpop.f32.mrf.mxu1 }
 0x2d6   : > { %2404 = vst.msk [vmem:[#allocation2 + $0x141] sm:$0xff] %vm2322_vm3, %v2315_v51  ;;  %v1575_v3 = vadd.f32 %v1574_v4, %v1365_v5  ;;  %v11212_v14 = vpop.f32.mrf.mxu0  ;;  %v2673_v5 = vld [vmem:[%s14553_s3 + $0x30] sm:$0xff]  ;;  %v8707_v4 = vld [vmem:[%s14553_s3 + $0x1c8] sm:$0xff] }
 0x2d7   : > { %14563 = vst [vmem:[#allocation6_spill] sm:$0xff] %v11212_v14  ;;  %3399 = vmatpush.msra.mxu1 %v2673_v5  ;;  %4000 = vmatpush.msra.mxu3 %v8707_v4  ;;  %v11270_v5 = vld [vmem:[#allocation2 + $0x82] sm:$0xff] }
 0x2d8   : > { %v2854_v24 = vpop.permute.xlu1 %2853 }
 0x2d9   : > { %8674 = vmatmul.msk.f32.gmra.mxu2 %vm2322_vm3, %v11192_v48  ;;  %v2932_v55 = vsel %vm2322_vm3, %v2708_v43, %v2854_v24  ;;  %2543 = vrot.lane.b32.xlu0 %v2445_v61, %s9409_s28  ;;  %v8718_v24 = vld [vmem:[%s14553_s3 + $0x220] sm:$0xff]  ;;  %v2669_v43 = vld [vmem:[%s14553_s3 + $0x10] sm:$0xff] }
 0x2da   : > { %3135 = vmatmul.f32.gmra.mxu3 %v2932_v55  ;;  %3400 = vmatpush.msra.mxu1 %v2672_v63  ;;  %v11250_v55 = vld [vmem:[#allocation2 + $0x7a] sm:$0xff] }
 0x2db   : > { %v2204_v49 = vpop.f32.mrf.mxu2  ;;  %4118 = vmatpush.msra.mxu0 %v8718_v24  ;;  %v8706_v63 = vld [vmem:[%s14553_s3 + $0x1c0] sm:$0xff] }
 0x2dc   : > { %v2248_v62 = vadd.f32 %v2204_v49, %v1575_v3  ;;  %3401 = vmatpush.msra.mxu1 %v2671_v52  ;;  %v11263_v49 = vpop.f32.mrf.mxu3  ;;  %4001 = vmatpush.msra.mxu3 %v8706_v63 }
 0x2dd   : > { %v11208_v39 = vld [vmem:[#allocation2 + $0x141] sm:$0xff] }
 0x2de   : > { %v2284_v38 = vadd.f32 %v10876_v22, %v2248_v62  ;;  %v11210_v32 = vld [vmem:[#allocation2 + $0x13a] sm:$0xff]  ;;  %2869 = vrot.lane.b32.xlu2 %v11208_v39, %s9409_s28  ;;  %v11236_v2 = vld [vmem:[#allocation2 + $0x142] sm:$0xff]  ;;  %3402 = vmatpush.msra.mxu1 %v2670_v7 }
 0x2df   : > { %8658 = vmatmul.msk.f32.gmra.mxu0 %vm2322_vm3, %v11210_v32 }
 0x2e0   : > { %v2316_v13 = vmax.f32 %v2284_v38, 0.0  ;;  %3403 = vmatpush.msra.mxu1 %v2669_v43  ;;  %v2710_v43 = vld [vmem:[#allocation2 + $0xf8] sm:$0xff] }
 0x2e1   : > { %8675 = vmatmul.msk.f32.gmra.mxu2 %vm2322_vm3, %v11221_v0 }
 0x2e2   : > { %2405 = vst.msk [vmem:[#allocation2 + $0x151] sm:$0xff] %vm2322_vm3, %v2316_v13  ;;  %3138 = vmatmul.f32.gmra.mxu3 %v2933_v29  ;;  %3404 = vmatpush.msra.mxu1 %v2668_v12 }
 0x2e4   : > { %v2207_v61 = vpop.f32.mrf.mxu2  ;;  %3405 = vmatpush.msra.mxu1 %v2667_v31  ;;  %v11283_v52 = vpop.f32.mrf.mxu3 }
 0x2e6   : > { %v1577_v42 = vpop.f32.mrf.mxu1  ;;  %2545 = vrot.lane.b32.xlu2 %v2446_v41, %s9409_s28 }
 0x2e7   : > { %v1578_v51 = vadd.f32 %v1577_v42, %v1368_v60  ;;  %8659 = vmatmul.msk.f32.gmra.mxu0 %vm2322_vm3, %v11236_v2  ;;  %v11252_v60 = vpop.f32.mrf.mxu0 }
 0x2e8   : > { %14564 = vst [vmem:[#allocation7_spill] sm:$0xff] %v11252_v60 }
 0x2e9   : > { %v2249_v28 = vadd.f32 %v2207_v61, %v1578_v51  ;;  %8676 = vmatmul.msk.f32.gmra.mxu2 %vm2322_vm3, %v11250_v55  ;;  %v11256_v3 = vld [vmem:[#allocation2 + $0x151] sm:$0xff] }
 0x2ea   : > { %2871 = vrot.lane.b32.xlu1 %v11256_v3, %s9409_s28 }
 0x2eb   : > { %v2285_v62 = vadd.f32 %v10876_v22, %v2249_v28 }
 0x2ec   : > { %v11300_v12 = vpop.f32.mrf.mxu3 }
 0x2ed   : > { %v2317_v20 = vmax.f32 %v2285_v62, 0.0 }
 0x2ee   : > { %v1580_v38 = vpop.f32.mrf.mxu1 }
 0x2ef   : > { %2406 = vst.msk [vmem:[#allocation2 + $0x159] sm:$0xff] %vm2322_vm3, %v2317_v20  ;;  %v11272_v13 = vpop.f32.mrf.mxu0  ;;  %v1581_v29 = vadd.f32 %v1580_v38, %v1371_v36  ;;  %v11304_v20 = vld [vmem:[#allocation2 + $0x39] sm:$0xff] }
 0x2f0   : > { %14565 = vst [vmem:[#allocation8_spill] sm:$0xff] %v11272_v13 }
 0x2f1   : > { %8677 = vmatmul.msk.f32.gmra.mxu2 %vm2322_vm3, %v11270_v5 }
 0x2f2   : > { %2547 = vrot.lane.b32.xlu1 %v11276_v50, %s9409_s28 }
 0x2f3   : > { %v2210_v7 = vpop.f32.mrf.mxu2 }
 0x2f4   : > { %v2250_v42 = vadd.f32 %v2210_v7, %v1581_v29 }
 0x2f6   : > { %v2286_v41 = vadd.f32 %v10876_v22, %v2250_v42  ;;  %v11286_v51 = vld [vmem:[#allocation2 + $0x152] sm:$0xff]  ;;  %v11302_v31 = vld [vmem:[#allocation2 + $0x15a] sm:$0xff] }
 0x2f7   : > { %v11288_v4 = vld [vmem:[#allocation2 + $0x159] sm:$0xff]  ;;  %8660 = vmatmul.msk.f32.gmra.mxu0 %vm2322_vm3, %v11286_v51  ;;  %v11298_v28 = vpop.f32.mrf.mxu0 }
 0x2f8   : > { %2873 = vrot.lane.b32.xlu0 %v11288_v4, %s9409_s28  ;;  %v2318_v36 = vmax.f32 %v2286_v41, 0.0  ;;  %v2858_v24 = vpop.permute.xlu0 %2857  ;;  %14566 = vst [vmem:[#allocation9_spill] sm:$0xff] %v11298_v28 }
 0x2f9   : > { %8678 = vmatmul.msk.f32.gmra.mxu2 %vm2322_vm3, %v10826_v54  ;;  %v2934_v61 = vsel %vm2322_vm3, %v2710_v43, %v2858_v24  ;;  %v8705_v54 = vld [vmem:[%s14553_s3 + $0x1b8] sm:$0xff]  ;;  %v2411_v43 = vld [vmem:[#allocation2] sm:$0xff] }
 0x2fa   : > { %2407 = vst.msk [vmem:[#allocation2 + $0x169] sm:$0xff] %vm2322_vm3, %v2318_v36  ;;  %3141 = vmatmul.f32.gmra.mxu3 %v2934_v61  ;;  %v8717_v36 = vld [vmem:[%s14553_s3 + $0x218] sm:$0xff]  ;;  %v11325_v61 = vpop.f32.mrf.mxu3 }
 0x2fb   : > { %4002 = vmatpush.msra.mxu3 %v8705_v54  ;;  %4119 = vmatpush.msra.mxu0 %v8717_v36  ;;  %v2711_v54 = vld [vmem:[#allocation2 + $0x108] sm:$0xff] }
 0x2fc   : > { %v2213_v29 = vpop.f32.mrf.mxu2 }
 0x2fe   : > { %v1583_v62 = vpop.f32.mrf.mxu1 }
 0x2ff   : > { %v1584_v38 = vadd.f32 %v1583_v62, %v1374_v33  ;;  %8661 = vmatmul.msk.f32.gmra.mxu0 %vm2322_vm3, %v11302_v31  ;;  %v11319_v33 = vpop.f32.mrf.mxu0 }
 0x300   : > { %2549 = vrot.lane.b32.xlu0 %v11304_v20, %s9409_s28  ;;  %14567 = vst [vmem:[#allocation10_spill] sm:$0xff] %v11319_v33 }
 0x301   : > { %v2862_v63 = vpop.permute.xlu2 %2861  ;;  %v2251_v7 = vadd.f32 %v2213_v29, %v1584_v38  ;;  %8679 = vmatmul.msk.f32.gmra.mxu2 %vm2322_vm3, %v10848_v9  ;;  %v11315_v42 = vld [vmem:[#allocation2 + $0x169] sm:$0xff] }
 0x302   : > { %2875 = vrot.lane.b32.xlu2 %v11315_v42, %s9409_s28 }
 0x303   : > { %v2287_v41 = vadd.f32 %v10876_v22, %v2251_v7  ;;  %v11331_v7 = vld [vmem:[#allocation2 + $0x49] sm:$0xff] }
 0x305   : > { %v2319_v24 = vmax.f32 %v2287_v41, 0.0 }
 0x306   : > { %v1586_v9 = vpop.f32.mrf.mxu1 }
 0x307   : > { %2408 = vst.msk [vmem:[#allocation2 + $0x171] sm:$0xff] %vm2322_vm3, %v2319_v24  ;;  %v1587_v41 = vadd.f32 %v1586_v9, %v11263_v49 }
 0x308   : > { %v2860_v62 = vpop.permute.xlu1 %2859 }
 0x309   : > { %v2540_v38 = vpop.permute.xlu2 %2539  ;;  %8680 = vmatmul.msk.f32.gmra.mxu2 %vm2322_vm3, %v10871_v10  ;;  %v2935_v33 = vsel %vm2322_vm3, %v2711_v54, %v2860_v62  ;;  %v8716_v54 = vld [vmem:[%s14553_s3 + $0x210] sm:$0xff] }
 0x30a   : > { %v2635_v29 = vsel %vm2322_vm3, %v2411_v43, %v2540_v38  ;;  %2551 = vrot.lane.b32.xlu2 %v11331_v7, %s9409_s28  ;;  %3144 = vmatmul.f32.gmra.mxu3 %v2935_v33  ;;  %v8704_v43 = vld [vmem:[%s14553_s3 + $0x1b0] sm:$0xff]  ;;  %v11340_v38 = vpop.f32.mrf.mxu0 }
 0x30b   : > { %v2216_v36 = vpop.f32.mrf.mxu2  ;;  %3406 = vmatmul.f32.vlgmr.msra.gmra.mxu1 %v2635_v29  ;;  %14568 = vst [vmem:[#allocation11_spill] sm:$0xff] %v11340_v38  ;;  %4003 = vmatpush.msra.mxu3 %v8704_v43  ;;  %v2712_v33 = vld [vmem:[#allocation2 + $0x110] sm:$0xff]  ;;  %v11357_v29 = vpop.f32.mrf.mxu3 }
 0x30c   : > { %v2252_v24 = vadd.f32 %v2216_v36, %v1587_v41  ;;  %v2936_v9 = vsel %vm2322_vm3, %v2712_v33, %v2862_v63  ;;  %4120 = vmatpush.msra.mxu0 %v8716_v54  ;;  %v8715_v41 = vld [vmem:[%s14553_s3 + $0x208] sm:$0xff] }
 0x30e   : > { %v2288_v10 = vadd.f32 %v10876_v22, %v2252_v24  ;;  %v11343_v28 = vld [vmem:[#allocation2 + $0x171] sm:$0xff]  ;;  %4121 = vmatpush.msra.mxu0 %v8715_v41 }
 0x30f   : > { %v11345_v62 = vld [vmem:[#allocation2 + $0x16a] sm:$0xff]  ;;  %2877 = vrot.lane.b32.xlu1 %v11343_v28, %s9409_s28  ;;  %v11368_v43 = vld [vmem:[#allocation2 + $0x172] sm:$0xff] }
 0x310   : > { %8662 = vmatmul.msk.f32.gmra.mxu0 %vm2322_vm3, %v11345_v62  ;;  %v2320_v49 = vmax.f32 %v2288_v10, 0.0  ;;  %v2450_v24 = vld [vmem:[#allocation2 + $0x51] sm:$0xff] }
 0x311   : > { %8681 = vmatmul.msk.f32.gmra.mxu2 %vm2322_vm3, %v10898_v23  ;;  %v8714_v23 = vld [vmem:[%s14553_s3 + $0x200] sm:$0xff] }
 0x312   : > { %2409 = vst.msk [vmem:[#allocation2 + $0x181] sm:$0xff] %vm2322_vm3, %v2320_v49  ;;  %3147 = vmatmul.f32.gmra.mxu3 %v2936_v9  ;;  %v11363_v36 = vpop.f32.mrf.mxu0  ;;  %4122 = vmatpush.msra.mxu0 %v8714_v23  ;;  %v2453_v23 = vld [vmem:[#allocation2 + $0x79] sm:$0xff] }
 0x313   : > { %14569 = vst [vmem:[#allocation12_spill] sm:$0xff] %v11363_v36  ;;  %v11378_v41 = vpop.f32.mrf.mxu3 }
 0x314   : > { %v2219_v49 = vpop.f32.mrf.mxu2 }
 0x316   : > { %v1589_v63 = vpop.f32.mrf.mxu1 }
 0x317   : > { %v1590_v10 = vadd.f32 %v1589_v63, %v11283_v52  ;;  %2553 = vrot.lane.b32.xlu1 %v2450_v24, %s9409_s28  ;;  %v8703_v52 = vld [vmem:[%s14553_s3 + $0x1a8] sm:$0xff] }
 0x318   : > { %8663 = vmatmul.msk.f32.gmra.mxu0 %vm2322_vm3, %v11368_v43  ;;  %4004 = vmatpush.msra.mxu3 %v8703_v52  ;;  %v8702_v52 = vld [vmem:[%s14553_s3 + $0x1a0] sm:$0xff] }
 0x319   : > { %v2253_v33 = vadd.f32 %v2219_v49, %v1590_v10  ;;  %8682 = vmatmul.msk.f32.gmra.mxu2 %vm2322_vm3, %v10915_v25  ;;  %v2753_v9 = vld [vmem:[#allocation2 + $0x181] sm:$0xff] }
 0x31a   : > { %2879 = vrot.lane.b32.xlu0 %v2753_v9, %s9409_s28  ;;  %v11383_v36 = vpop.f32.mrf.mxu0  ;;  %v2451_v25 = vld [vmem:[#allocation2 + $0x61] sm:$0xff]  ;;  %4005 = vmatpush.msra.mxu3 %v8702_v52  ;;  %v8701_v52 = vld [vmem:[%s14553_s3 + $0x198] sm:$0xff] }
 0x31b   : > { %v2289_v54 = vadd.f32 %v10876_v22, %v2253_v33  ;;  %14570 = vst [vmem:[#allocation13_spill] sm:$0xff] %v11383_v36  ;;  %v11391_v22 = vpop.f32.mrf.mxu3 }
 0x31c   : > { %4006 = vmatpush.msra.mxu3 %v8701_v52  ;;  %v2459_v52 = vld [vmem:[#allocation2 + $0xc1] sm:$0xff] }
 0x31d   : > { %v2321_v63 = vmax.f32 %v2289_v54, 0.0  ;;  %v2713_v54 = vld [vmem:[#allocation2 + $0x120] sm:$0xff] }
 0x31f   : > { %2410 = vst.msk [vmem:[#allocation2 + $0x189] sm:$0xff] %vm2322_vm3, %v2321_v63  ;;  %3745 = vrot.lane.b32.xlu1 %v11276_v50, %s9409_s28  ;;  %v2452_v50 = vld [vmem:[#allocation2 + $0x69] sm:$0xff] }
 0x321   : > { %8683 = vmatmul.msk.f32.gmra.mxu2 %vm2322_vm3, %v10934_v35 }
 0x322   : > { %2555 = vrot.lane.b32.xlu0 %v2451_v25, %s9409_s28  ;;  %v11393_v33 = vpop.f32.mrf.mxu0 }
 0x323   : > { %14571 = vst [vmem:[#allocation14_spill] sm:$0xff] %v11393_v33 }
 0x326   : > { %v2754_v10 = vld [vmem:[#allocation2 + $0x189] sm:$0xff] }
 0x327   : > { %v2785_v49 = vld [vmem:[#allocation2 + $0x182] sm:$0xff]  ;;  %2559 = vrot.lane.b32.xlu1 %v2453_v23, %s9409_s28  ;;  %2881 = vrot.lane.b32.xlu2 %v2754_v10, %s9409_s28  ;;  %v2786_v63 = vld [vmem:[#allocation2 + $0x18a] sm:$0xff]  ;;  %v11408_v10 = vpop.f32.mrf.mxu3 }
 0x328   : > { %v2864_v9 = vpop.permute.xlu0 %2863  ;;  %8664 = vmatmul.msk.f32.gmra.mxu0 %vm2322_vm3, %v2785_v49  ;;  %v2456_v49 = vld [vmem:[#allocation2 + $0x99] sm:$0xff] }
 0x329   : > { %v2937_v35 = vsel %vm2322_vm3, %v2713_v54, %v2864_v9  ;;  %8684 = vmatmul.msk.f32.gmra.mxu2 %vm2322_vm3, %v10954_v19 }
 0x32a   : > { %3150 = vmatmul.f32.gmra.mxu3 %v2937_v35  ;;  %3747 = vrot.lane.b32.xlu0 %v11304_v20, %s9409_s28  ;;  %v11411_v19 = vpop.f32.mrf.mxu0  ;;  %v2454_v20 = vld [vmem:[#allocation2 + $0x81] sm:$0xff] }
 0x32b   : > { %14572 = vst [vmem:[#allocation15_spill] sm:$0xff] %v11411_v19  ;;  %v2462_v19 = vld [vmem:[#allocation2 + $0xe1] sm:$0xff] }
 0x32f   : > { %3751 = vrot.lane.b32.xlu1 %v2450_v24, %s9409_s28  ;;  %2557 = vrot.lane.b32.xlu2 %v2452_v50, %s9409_s28  ;;  %v11419_v24 = vpop.f32.mrf.mxu3 }
 0x330   : > { %8665 = vmatmul.msk.f32.gmra.mxu0 %vm2322_vm3, %v2786_v63 }
 0x331   : > { %8685 = vmatmul.msk.f32.gmra.mxu2 %vm2322_vm3, %v10976_v18  ;;  %v11427_v18 = vld [vmem:[#allocation2 + $0x128] sm:$0xff] }
 0x332   : > { %2561 = vrot.lane.b32.xlu0 %v2454_v20, %s9409_s28  ;;  %v11423_v9 = vpop.f32.mrf.mxu0 }
 0x333   : > { %14573 = vst [vmem:[#allocation16_spill] sm:$0xff] %v11423_v9  ;;  %v11447_v9 = vld [vmem:[#allocation2 + $0x138] sm:$0xff] }
 0x337   : > { %2565 = vrot.lane.b32.xlu1 %v2456_v49, %s9409_s28  ;;  %3749 = vrot.lane.b32.xlu2 %v11331_v7, %s9409_s28  ;;  %v2455_v7 = vld [vmem:[#allocation2 + $0x91] sm:$0xff]  ;;  %v11441_v63 = vpop.f32.mrf.mxu3 }
 0x338   : > { %8722 = vmatmul.msk.f32.vlgmr.msra.gmra.mxu0 %vm2322_vm3, %v11125_v17  ;;  %v2866_v54 = vpop.permute.xlu1 %2865  ;;  %v2412_v17 = vld [vmem:[#allocation2 + $0x8] sm:$0xff] }
 0x339   : > { %8686 = vmatmul.msk.f32.gmra.mxu2 %vm2322_vm3, %v11033_v59  ;;  %v2938_v35 = vsel %vm2322_vm3, %v11427_v18, %v2866_v54 }
 0x33a   : > { %3753 = vrot.lane.b32.xlu0 %v2451_v25, %s9409_s28  ;;  %3153 = vmatmul.f32.gmra.mxu3 %v2938_v35  ;;  %v2457_v25 = vld [vmem:[#allocation2 + $0xa9] sm:$0xff]  ;;  %v11445_v54 = vpop.f32.mrf.mxu0 }
 0x33b   : > { %14574 = vst [vmem:[#allocation17_spill] sm:$0xff] %v11445_v54  ;;  %v2413_v54 = vld [vmem:[#allocation2 + $0x18] sm:$0xff] }
 0x33f   : > { %3757 = vrot.lane.b32.xlu1 %v2453_v23, %s9409_s28  ;;  %2563 = vrot.lane.b32.xlu2 %v2455_v7, %s9409_s28 }
 0x340   : > { %8723 = vmatmul.msk.f32.gmra.mxu0 %vm2322_vm3, %v11134_v44  ;;  %v2542_v59 = vpop.permute.xlu1 %2541 }
 0x341   : > { %8687 = vmatmul.msk.f32.gmra.mxu2 %vm2322_vm3, %v11048_v21  ;;  %v2636_v23 = vsel %vm2322_vm3, %v2412_v17, %v2542_v59  ;;  %v2870_v21 = vpop.permute.xlu2 %2869  ;;  %v11457_v17 = vpop.f32.mrf.mxu3 }
 0x342   : > { %2567 = vrot.lane.b32.xlu0 %v2457_v25, %s9409_s28  ;;  %3409 = vmatmul.f32.gmra.mxu1 %v2636_v23  ;;  %14575 = vst [vmem:[#allocation18_spill] sm:$0xff] %v11457_v17  ;;  %v11460_v59 = vpop.f32.mrf.mxu2  ;;  %v11462_v23 = vpop.f32.mrf.mxu0 }
 0x343   : > { %v2868_v35 = vpop.permute.xlu0 %2867  ;;  %14576 = vst [vmem:[#allocation19_spill] sm:$0xff] %v11462_v23 }
 0x344   : > { %v2939_v44 = vsel %vm2322_vm3, %v11447_v9, %v2868_v35 }
 0x345   : > { %3156 = vmatmul.f32.gmra.mxu3 %v2939_v44  ;;  %v11464_v44 = vld [vmem:[#allocation2 + $0x140] sm:$0xff] }
 0x347   : > { %2571 = vrot.lane.b32.xlu1 %v2459_v52, %s9409_s28  ;;  %3755 = vrot.lane.b32.xlu2 %v2452_v50, %s9409_s28  ;;  %v2940_v50 = vsel %vm2322_vm3, %v11464_v44, %v2870_v21  ;;  %v2460_v21 = vld [vmem:[#allocation2 + $0xc9] sm:$0xff] }
 0x348   : > { %8724 = vmatmul.msk.f32.gmra.mxu0 %vm2322_vm3, %v11160_v11 }
 0x349   : > { %8688 = vmatmul.msk.f32.gmra.mxu2 %vm2322_vm3, %v11087_v57  ;;  %v8700_v57 = vld [vmem:[%s14553_s3 + $0x190] sm:$0xff] }
 0x34a   : > { %3759 = vrot.lane.b32.xlu0 %v2454_v20, %s9409_s28  ;;  %v2458_v20 = vld [vmem:[#allocation2 + $0xb1] sm:$0xff]  ;;  %4007 = vmatpush.msra.mxu3 %v8700_v57  ;;  %v11483_v23 = vpop.f32.mrf.mxu0 }
 0x34b   : > { %v2544_v35 = vpop.permute.xlu0 %2543  ;;  %14578 = vst [vmem:[#allocation21_spill] sm:$0xff] %v11483_v23 }
 0x34c   : > { %v2637_v11 = vsel %vm2322_vm3, %v2413_v54, %v2544_v35  ;;  %v2546_v54 = vpop.permute.xlu2 %2545  ;;  %v11479_v35 = vpop.f32.mrf.mxu3 }
 0x34d   : > { %3159 = vmatmul.f32.gmra.mxu3 %v2940_v50  ;;  %3412 = vmatmul.f32.gmra.mxu1 %v2637_v11  ;;  %14577 = vst [vmem:[#allocation20_spill] sm:$0xff] %v11479_v35  ;;  %v2414_v50 = vld [vmem:[#allocation2 + $0x20] sm:$0xff]  ;;  %v11481_v11 = vpop.f32.mrf.mxu2  ;;  %v11796_v35 = vld [vmem:[#allocation2 + $0xf8] sm:$0xff] }
 0x34f   : > { %3763 = vrot.lane.b32.xlu1 %v2456_v49, %s9409_s28  ;;  %2569 = vrot.lane.b32.xlu2 %v2458_v20, %s9409_s28  ;;  %v2638_v49 = vsel %vm2322_vm3, %v2414_v50, %v2546_v54 }
 0x350   : > { %8725 = vmatmul.msk.f32.gmra.mxu0 %vm2322_vm3, %v11177_v56  ;;  %v11493_v56 = vld [vmem:[#allocation2 + $0x150] sm:$0xff] }
 0x351   : > { %8689 = vmatmul.msk.f32.gmra.mxu2 %vm2322_vm3, %v11104_v40 }
 0x352   : > { %2573 = vrot.lane.b32.xlu0 %v2460_v21, %s9409_s28  ;;  %v11497_v54 = vpop.f32.mrf.mxu0 }
 0x353   : > { %14580 = vst [vmem:[#allocation23_spill] sm:$0xff] %v11497_v54 }
 0x354   : > { %v11495_v57 = vpop.f32.mrf.mxu3 }
 0x355   : > { %3415 = vmatmul.f32.gmra.mxu1 %v2638_v49  ;;  %14579 = vst [vmem:[#allocation22_spill] sm:$0xff] %v11495_v57  ;;  %v11504_v49 = vpop.f32.mrf.mxu2 }
 0x357   : > { %2577 = vrot.lane.b32.xlu1 %v2462_v19, %s9409_s28  ;;  %3761 = vrot.lane.b32.xlu2 %v2455_v7, %s9409_s28  ;;  %v2461_v7 = vld [vmem:[#allocation2 + $0xd9] sm:$0xff] }
 0x358   : > { %8726 = vmatmul.msk.f32.gmra.mxu0 %vm2322_vm3, %v11192_v48  ;;  %v8699_v48 = vld [vmem:[%s14553_s3 + $0x188] sm:$0xff] }
 0x359   : > { %8690 = vmatmul.msk.f32.gmra.mxu2 %vm2322_vm3, %v11153_v15  ;;  %4008 = vmatpush.msra.mxu3 %v8699_v48  ;;  %v2463_v15 = vld [vmem:[#allocation2 + $0xf1] sm:$0xff] }
 0x35a   : > { %3765 = vrot.lane.b32.xlu0 %v2457_v25, %s9409_s28  ;;  %v11519_v54 = vpop.f32.mrf.mxu0  ;;  %v11530_v48 = vld [vmem:[#allocation2 + $0x158] sm:$0xff] }
 0x35b   : > { %14582 = vst [vmem:[#allocation25_spill] sm:$0xff] %v11519_v54 }
 0x35c   : > { %v2872_v40 = vpop.permute.xlu1 %2871 }
 0x35d   : > { %v2941_v50 = vsel %vm2322_vm3, %v11493_v56, %v2872_v40  ;;  %v11513_v40 = vld [vmem:[#allocation2 + $0x30] sm:$0xff] }
 0x35e   : > { %3162 = vmatmul.f32.gmra.mxu3 %v2941_v50 }
 0x35f   : > { %3769 = vrot.lane.b32.xlu1 %v2459_v52, %s9409_s28  ;;  %2575 = vrot.lane.b32.xlu2 %v2461_v7, %s9409_s28  ;;  %v11517_v52 = vpop.f32.mrf.mxu3 }
 0x360   : > { %8727 = vmatmul.msk.f32.gmra.mxu0 %vm2322_vm3, %v11221_v0  ;;  %14581 = vst [vmem:[#allocation24_spill] sm:$0xff] %v11517_v52 }
 0x361   : > { %8691 = vmatmul.msk.f32.gmra.mxu2 %vm2322_vm3, %v11167_v37  ;;  %v11526_v37 = vpop.f32.mrf.mxu2 }
 0x362   : > { %2579 = vrot.lane.b32.xlu0 %v2463_v15, %s9409_s28 }
 0x364   : > { %v2548_v25 = vpop.permute.xlu1 %2547 }
 0x365   : > { %v2639_v50 = vsel %vm2322_vm3, %v11513_v40, %v2548_v25 }
 0x366   : > { %3418 = vmatmul.f32.gmra.mxu1 %v2639_v50  ;;  %v2464_v50 = vld [vmem:[#allocation2 + $0xf9] sm:$0xff] }
 0x367   : > { %2583 = vrot.lane.b32.xlu1 %v11062_v6, %s9409_s28  ;;  %3767 = vrot.lane.b32.xlu2 %v2458_v20, %s9409_s28  ;;  %v2876_v6 = vpop.permute.xlu2 %2875  ;;  %v11538_v20 = vpop.f32.mrf.mxu0 }
 0x368   : > { %8728 = vmatmul.msk.f32.gmra.mxu0 %vm2322_vm3, %v11250_v55  ;;  %v8698_v55 = vld [vmem:[%s14553_s3 + $0x180] sm:$0xff]  ;;  %14583 = vst [vmem:[#allocation26_spill] sm:$0xff] %v11538_v20 }
 0x369   : > { %8692 = vmatmul.msk.f32.gmra.mxu2 %vm2322_vm3, %v11210_v32  ;;  %4009 = vmatpush.msra.mxu3 %v8698_v55  ;;  %v11544_v32 = vpop.f32.mrf.mxu3  ;;  %v11558_v55 = vpop.f32.mrf.mxu2 }
 0x36a   : > { %v2874_v0 = vpop.permute.xlu0 %2873  ;;  %3771 = vrot.lane.b32.xlu0 %v2460_v21, %s9409_s28  ;;  %14584 = vst [vmem:[#allocation27_spill] sm:$0xff] %v11544_v32  ;;  %v11760_v32 = vld [vmem:[#allocation2 + $0xe0] sm:$0xff] }
 0x36b   : > { %v2942_v25 = vsel %vm2322_vm3, %v11530_v48, %v2874_v0  ;;  %v11548_v0 = vld [vmem:[#allocation2 + $0x168] sm:$0xff] }
 0x36c   : > { %3165 = vmatmul.f32.gmra.mxu3 %v2942_v25  ;;  %v11550_v25 = vld [vmem:[#allocation2 + $0x38] sm:$0xff] }
 0x36f   : > { %3775 = vrot.lane.b32.xlu1 %v2462_v19, %s9409_s28  ;;  %2581 = vrot.lane.b32.xlu2 %v2464_v50, %s9409_s28  ;;  %v2943_v19 = vsel %vm2322_vm3, %v11548_v0, %v2876_v6  ;;  %v2552_v20 = vpop.permute.xlu2 %2551  ;;  %v11568_v6 = vld [vmem:[#allocation2 + $0x48] sm:$0xff] }
 0x370   : > { %8729 = vmatmul.msk.f32.gmra.mxu0 %vm2322_vm3, %v11270_v5 }
 0x371   : > { %8693 = vmatmul.msk.f32.gmra.mxu2 %vm2322_vm3, %v11236_v2  ;;  %v3689_v2 = vld [vmem:[#allocation2 + $0x92] sm:$0xff] }
 0x372   : > { %v2550_v21 = vpop.permute.xlu0 %2549  ;;  %2585 = vrot.lane.b32.xlu0 %v11089_v30, %s9409_s28  ;;  %v11564_v30 = vpop.f32.mrf.mxu0 }
 0x373   : > { %v2640_v5 = vsel %vm2322_vm3, %v11550_v25, %v2550_v21  ;;  %14585 = vst [vmem:[#allocation28_spill] sm:$0xff] %v11564_v30  ;;  %v2641_v21 = vsel %vm2322_vm3, %v11568_v6, %v2552_v20  ;;  %v11585_v20 = vld [vmem:[#allocation2 + $0x170] sm:$0xff] }
 0x374   : > { %3168 = vmatmul.f32.gmra.mxu3 %v2943_v19  ;;  %3421 = vmatmul.f32.gmra.mxu1 %v2640_v5  ;;  %v11573_v19 = vpop.f32.mrf.mxu3  ;;  %v11575_v5 = vpop.f32.mrf.mxu2  ;;  %v11601_v30 = vld [vmem:[#allocation2 + $0x50] sm:$0xff] }
 0x375   : > { %14586 = vst [vmem:[#allocation29_spill] sm:$0xff] %v11573_v19 }
 0x377   : > { %2589 = vrot.lane.b32.xlu1 %v11151_v53, %s9409_s28  ;;  %3773 = vrot.lane.b32.xlu2 %v2461_v7, %s9409_s28  ;;  %v3667_v7 = vld [vmem:[#allocation2 + $0x109] sm:$0xff] }
 0x378   : > { %8730 = vmatmul.msk.f32.gmra.mxu0 %vm2322_vm3, %v3689_v2  ;;  %v3690_v2 = vld [vmem:[#allocation2 + $0x9a] sm:$0xff] }
 0x379   : > { %8694 = vmatmul.msk.f32.gmra.mxu2 %vm2322_vm3, %v11286_v51 }
 0x37a   : > { %3777 = vrot.lane.b32.xlu0 %v2463_v15, %s9409_s28  ;;  %v11581_v51 = vpop.f32.mrf.mxu0 }
 0x37b   : > { %14587 = vst [vmem:[#allocation30_spill] sm:$0xff] %v11581_v51  ;;  %v3668_v51 = vld [vmem:[#allocation2 + $0x111] sm:$0xff] }
 0x37c   : > { %3424 = vmatmul.f32.gmra.mxu1 %v2641_v21 }
 0x37f   : > { %3781 = vrot.lane.b32.xlu1 %v3667_v7, %s9409_s28  ;;  %2587 = vrot.lane.b32.xlu2 %v11113_v16, %s9409_s28  ;;  %v11591_v7 = vpop.f32.mrf.mxu3  ;;  %v11593_v16 = vpop.f32.mrf.mxu2 }
 0x380   : > { %8731 = vmatmul.msk.f32.gmra.mxu0 %vm2322_vm3, %v3690_v2  ;;  %14588 = vst [vmem:[#allocation31_spill] sm:$0xff] %v11591_v7  ;;  %v3691_v2 = vld [vmem:[#allocation2 + $0xaa] sm:$0xff] }
 0x381   : > { %v2878_v15 = vpop.permute.xlu1 %2877  ;;  %8695 = vmatmul.msk.f32.gmra.mxu2 %vm2322_vm3, %v11302_v31 }
 0x382   : > { %2591 = vrot.lane.b32.xlu0 %v11181_v27, %s9409_s28  ;;  %v2944_v21 = vsel %vm2322_vm3, %v11585_v20, %v2878_v15 }
 0x383   : > { %3171 = vmatmul.f32.gmra.mxu3 %v2944_v21  ;;  %v11606_v21 = vpop.f32.mrf.mxu0 }
 0x384   : > { %14589 = vst [vmem:[#allocation32_spill] sm:$0xff] %v11606_v21 }
 0x387   : > { %2595 = vrot.lane.b32.xlu1 %v11256_v3, %s9409_s28  ;;  %3779 = vrot.lane.b32.xlu2 %v2464_v50, %s9409_s28  ;;  %v2721_v50 = vld [vmem:[#allocation2 + $0x180] sm:$0xff] }
 0x388   : > { %8732 = vmatmul.msk.f32.gmra.mxu0 %vm2322_vm3, %v3691_v2  ;;  %v11609_v2 = vpop.f32.mrf.mxu3 }
 0x389   : > { %v2554_v31 = vpop.permute.xlu1 %2553  ;;  %8696 = vmatmul.msk.f32.gmra.mxu2 %vm2322_vm3, %v11345_v62  ;;  %14590 = vst [vmem:[#allocation33_spill] sm:$0xff] %v11609_v2  ;;  %v3692_v62 = vld [vmem:[#allocation2 + $0xb2] sm:$0xff]  ;;  %v11729_v2 = vld [vmem:[#allocation2 + $0xc8] sm:$0xff] }
 0x38a   : > { %3783 = vrot.lane.b32.xlu0 %v3668_v51, %s9409_s28  ;;  %v2642_v15 = vsel %vm2322_vm3, %v11601_v30, %v2554_v31  ;;  %v2882_v51 = vpop.permute.xlu2 %2881  ;;  %v11616_v31 = vpop.f32.mrf.mxu2 }
 0x38b   : > { %3427 = vmatmul.f32.gmra.mxu1 %v2642_v15  ;;  %v2722_v15 = vld [vmem:[#allocation2 + $0x188] sm:$0xff] }
 0x38c   : > { %v2880_v54 = vpop.permute.xlu0 %2879 }
 0x38d   : > { %v2945_v23 = vsel %vm2322_vm3, %v2721_v50, %v2880_v54  ;;  %v2946_v50 = vsel %vm2322_vm3, %v2722_v15, %v2882_v51  ;;  %v2420_v51 = vld [vmem:[#allocation2 + $0x68] sm:$0xff] }
 0x38e   : > { %3174 = vmatmul.f32.gmra.mxu3 %v2945_v23  ;;  %v11622_v23 = vpop.f32.mrf.mxu0  ;;  %v3694_v15 = vld [vmem:[#allocation2 + $0xca] sm:$0xff] }
 0x38f   : > { %3787 = vrot.lane.b32.xlu1 %v11151_v53, %s9409_s28  ;;  %2593 = vrot.lane.b32.xlu2 %v11208_v39, %s9409_s28  ;;  %14591 = vst [vmem:[#allocation34_spill] sm:$0xff] %v11622_v23  ;;  %v11624_v53 = vld [vmem:[#allocation2 + $0x60] sm:$0xff] }
 0x390   : > { %8733 = vmatmul.msk.f32.gmra.mxu0 %vm2322_vm3, %v3692_v62  ;;  %v3669_v62 = vld [vmem:[#allocation2 + $0x121] sm:$0xff]  ;;  %v11633_v23 = vpop.f32.mrf.mxu3 }
 0x391   : > { %8697 = vmatmul.msk.f32.gmra.mxu2 %vm2322_vm3, %v11368_v43  ;;  %v3746_v43 = vpop.permute.xlu1 %3745  ;;  %14592 = vst [vmem:[#allocation35_spill] sm:$0xff] %v11633_v23 }
 0x392   : > { %2597 = vrot.lane.b32.xlu0 %v11288_v4, %s9409_s28  ;;  %v3693_v4 = vld [vmem:[#allocation2 + $0xc2] sm:$0xff]  ;;  %v2558_v33 = vpop.permute.xlu2 %2557 }
 0x394   : > { %v2556_v54 = vpop.permute.xlu0 %2555 }
 0x395   : > { %v2643_v21 = vsel %vm2322_vm3, %v11624_v53, %v2556_v54 }
 0x396   : > { %3177 = vmatmul.f32.gmra.mxu3 %v2946_v50  ;;  %3430 = vmatmul.f32.gmra.mxu1 %v2643_v21  ;;  %v3841_v21 = vsel %vm2322_vm3, %v11513_v40, %v3746_v43  ;;  %v11639_v54 = vpop.f32.mrf.mxu0  ;;  %v2421_v40 = vld [vmem:[#allocation2 + $0x78] sm:$0xff] }
 0x397   : > { %2601 = vrot.lane.b32.xlu1 %v11343_v28, %s9409_s28  ;;  %3785 = vrot.lane.b32.xlu2 %v3669_v62, %s9409_s28  ;;  %14593 = vst [vmem:[#allocation36_spill] sm:$0xff] %v11639_v54  ;;  %v2644_v28 = vsel %vm2322_vm3, %v2420_v51, %v2558_v33 }
 0x398   : > { %8734 = vmatmul.msk.f32.gmra.mxu0 %vm2322_vm3, %v3693_v4 }
 0x399   : > { %v2560_v62 = vpop.permute.xlu1 %2559 }
 0x39a   : > { %3789 = vrot.lane.b32.xlu0 %v11181_v27, %s9409_s28  ;;  %v11647_v27 = vpop.f32.mrf.mxu3  ;;  %v2645_v33 = vsel %vm2322_vm3, %v2421_v40, %v2560_v62 }
 0x39b   : > { %14594 = vst [vmem:[#allocation37_spill] sm:$0xff] %v11647_v27 }
 0x39c   : > { %v3748_v50 = vpop.permute.xlu0 %3747 }
 0x39d   : > { %v3842_v43 = vsel %vm2322_vm3, %v11550_v25, %v3748_v50 }
 0x39e   : > { %3433 = vmatmul.f32.gmra.mxu1 %v2644_v28  ;;  %4010 = vmatmul.f32.vlgmr.msra.gmra.mxu3 %v3841_v21 }
 0x39f   : > { %3793 = vrot.lane.b32.xlu1 %v11256_v3, %s9409_s28  ;;  %2599 = vrot.lane.b32.xlu2 %v11315_v42, %s9409_s28  ;;  %v3695_v3 = vld [vmem:[#allocation2 + $0xda] sm:$0xff]  ;;  %v3750_v42 = vpop.permute.xlu2 %3749 }
 0x3a0   : > { %8735 = vmatmul.msk.f32.gmra.mxu0 %vm2322_vm3, %v3694_v15  ;;  %v11659_v15 = vld [vmem:[#allocation2 + $0x80] sm:$0xff]  ;;  %v3843_v25 = vsel %vm2322_vm3, %v11568_v6, %v3750_v42  ;;  %v3697_v6 = vld [vmem:[#allocation2 + $0xf2] sm:$0xff] }
 0x3a1   : > { %v3752_v50 = vpop.permute.xlu1 %3751 }
 0x3a2   : > { %v11657_v28 = vpop.f32.mrf.mxu3 }
 0x3a3   : > { %14596 = vst [vmem:[#allocation39_spill] sm:$0xff] %v11657_v28 }
 0x3a4   : > { %v2562_v21 = vpop.permute.xlu0 %2561 }
 0x3a5   : > { %v11649_v4 = vpop.f32.mrf.mxu0  ;;  %v2646_v62 = vsel %vm2322_vm3, %v11659_v15, %v2562_v21  ;;  %v3844_v21 = vsel %vm2322_vm3, %v11601_v30, %v3752_v50  ;;  %v3698_v30 = vld [vmem:[#allocation2 + $0xfa] sm:$0xff] }
 0x3a6   : > { %14595 = vst [vmem:[#allocation38_spill] sm:$0xff] %v11649_v4  ;;  %3436 = vmatmul.f32.gmra.mxu1 %v2645_v33  ;;  %4013 = vmatmul.f32.gmra.mxu3 %v3842_v43 }
 0x3a7   : > { %3791 = vrot.lane.b32.xlu2 %v11208_v39, %s9409_s28  ;;  %v3696_v39 = vld [vmem:[#allocation2 + $0xe2] sm:$0xff]  ;;  %v2564_v33 = vpop.permute.xlu2 %2563 }
 0x3a8   : > { %8736 = vmatmul.msk.f32.gmra.mxu0 %vm2322_vm3, %v3695_v3  ;;  %v11670_v3 = vld [vmem:[#allocation2 + $0x90] sm:$0xff] }
 0x3a9   : > { %v2647_v54 = vsel %vm2322_vm3, %v11670_v3, %v2564_v33 }
 0x3aa   : > { %v11668_v43 = vpop.f32.mrf.mxu3 }
 0x3ab   : > { %14598 = vst [vmem:[#allocation41_spill] sm:$0xff] %v11668_v43 }
 0x3ac   : > { %v3754_v42 = vpop.permute.xlu0 %3753 }
 0x3ad   : > { %v11661_v4 = vpop.f32.mrf.mxu0  ;;  %v3845_v33 = vsel %vm2322_vm3, %v11624_v53, %v3754_v42  ;;  %v3699_v53 = vld [vmem:[#allocation2 + $0x10a] sm:$0xff] }
 0x3ae   : > { %14597 = vst [vmem:[#allocation40_spill] sm:$0xff] %v11661_v4  ;;  %3439 = vmatmul.f32.gmra.mxu1 %v2646_v62  ;;  %4016 = vmatmul.f32.gmra.mxu3 %v3843_v25  ;;  %v2566_v62 = vpop.permute.xlu1 %2565 }
 0x3b0   : > { %8737 = vmatmul.msk.f32.gmra.mxu0 %vm2322_vm3, %v3696_v39  ;;  %v11681_v39 = vld [vmem:[#allocation2 + $0x98] sm:$0xff] }
 0x3b1   : > { %v2648_v43 = vsel %vm2322_vm3, %v11681_v39, %v2566_v62 }
 0x3b2   : > { %v11679_v25 = vpop.f32.mrf.mxu3 }
 0x3b3   : > { %14599 = vst [vmem:[#allocation42_spill] sm:$0xff] %v11679_v25 }
 0x3b5   : > { %v11676_v4 = vpop.f32.mrf.mxu0 }
 0x3b6   : > { %3442 = vmatmul.f32.gmra.mxu1 %v2647_v54  ;;  %4019 = vmatmul.f32.gmra.mxu3 %v3844_v21  ;;  %v3756_v54 = vpop.permute.xlu2 %3755  ;;  %v2568_v21 = vpop.permute.xlu0 %2567 }
 0x3b7   : > { %v3846_v62 = vsel %vm2322_vm3, %v2420_v51, %v3756_v54  ;;  %v8777_v51 = vld [vmem:[%s14555_s5 + $0x178] sm:$0xff] }
 0x3b8   : > { %8738 = vmatmul.msk.f32.gmra.mxu0 %vm2322_vm3, %v3697_v6  ;;  %v11690_v6 = vld [vmem:[#allocation2 + $0xa8] sm:$0xff]  ;;  %v3700_v54 = vld [vmem:[#allocation2 + $0x112] sm:$0xff]  ;;  %5130 = vmatpush.msrb.mxu2 %v8777_v51 }
 0x3b9   : > { %v2649_v28 = vsel %vm2322_vm3, %v11690_v6, %v2568_v21 }
 0x3ba   : > { %v11692_v25 = vpop.f32.mrf.mxu3 }
 0x3bb   : > { %14600 = vst [vmem:[#allocation43_spill] sm:$0xff] %v11692_v25 }
 0x3bd   : > { %v11687_v50 = vpop.f32.mrf.mxu0 }
 0x3be   : > { %3445 = vmatmul.f32.gmra.mxu1 %v2648_v43  ;;  %4022 = vmatmul.f32.gmra.mxu3 %v3845_v33  ;;  %v3758_v43 = vpop.permute.xlu1 %3757  ;;  %v2570_v42 = vpop.permute.xlu2 %2569 }
 0x3bf   : > { %v3847_v21 = vsel %vm2322_vm3, %v2421_v40, %v3758_v43  ;;  %v11718_v40 = vld [vmem:[#allocation2 + $0xc0] sm:$0xff] }
 0x3c0   : > { %8739 = vmatmul.msk.f32.gmra.mxu0 %vm2322_vm3, %v3698_v30  ;;  %v11700_v30 = vld [vmem:[#allocation2 + $0xb0] sm:$0xff] }
 0x3c1   : > { %v2650_v25 = vsel %vm2322_vm3, %v11700_v30, %v2570_v42  ;;  %v8769_v42 = vld [vmem:[%s14555_s5 + $0x138] sm:$0xff] }
 0x3c2   : > { %v11702_v27 = vpop.f32.mrf.mxu3  ;;  %5009 = vmatpush.msrb.mxu1 %v8769_v42 }
 0x3c3   : > { %14601 = vst [vmem:[#allocation44_spill] sm:$0xff] %v11702_v27 }
 0x3c5   : > { %v11698_v33 = vpop.f32.mrf.mxu0 }
 0x3c6   : > { %3448 = vmatmul.f32.gmra.mxu1 %v2649_v28  ;;  %4025 = vmatmul.f32.gmra.mxu3 %v3846_v62  ;;  %v11710_v28 = vpop.f32.mrf.mxu1  ;;  %v3760_v62 = vpop.permute.xlu0 %3759 }
 0x3c7   : > { %v3762_v23 = vpop.permute.xlu2 %3761 }
 0x3c8   : > { %8740 = vmatmul.msk.f32.gmra.mxu0 %vm2322_vm3, %v3699_v53  ;;  %v2572_v53 = vpop.permute.xlu1 %2571 }
 0x3ca   : > { %v11720_v43 = vpop.f32.mrf.mxu3 }
 0x3cb   : > { %14602 = vst [vmem:[#allocation45_spill] sm:$0xff] %v11720_v43 }
 0x3cd   : > { %v11716_v27 = vpop.f32.mrf.mxu0 }
 0x3ce   : > { %3451 = vmatmul.f32.gmra.mxu1 %v2650_v25  ;;  %4028 = vmatmul.f32.gmra.mxu3 %v3847_v21  ;;  %v2651_v25 = vsel %vm2322_vm3, %v11718_v40, %v2572_v53  ;;  %v3848_v21 = vsel %vm2322_vm3, %v11659_v15, %v3760_v62  ;;  %v11726_v51 = vpop.f32.mrf.mxu1  ;;  %v2574_v36 = vpop.permute.xlu0 %2573  ;;  %v3849_v53 = vsel %vm2322_vm3, %v11670_v3, %v3762_v23 }
 0x3cf   : > { %v2652_v43 = vsel %vm2322_vm3, %v11729_v2, %v2574_v36  ;;  %v11745_v36 = vld [vmem:[#allocation2 + $0xd8] sm:$0xff] }
 0x3d0   : > { %8741 = vmatmul.msk.f32.gmra.mxu0 %vm2322_vm3, %v3700_v54  ;;  %v3701_v54 = vld [vmem:[#allocation2 + $0x122] sm:$0xff] }
 0x3d2   : > { %v11731_v42 = vpop.f32.mrf.mxu3 }
 0x3d3   : > { %14603 = vst [vmem:[#allocation46_spill] sm:$0xff] %v11731_v42  ;;  %v2576_v42 = vpop.permute.xlu2 %2575 }
 0x3d4   : > { %v2653_v23 = vsel %vm2322_vm3, %v11745_v36, %v2576_v42 }
 0x3d5   : > { %v11737_v15 = vpop.f32.mrf.mxu0 }
 0x3d6   : > { %3454 = vmatmul.f32.gmra.mxu1 %v2651_v25  ;;  %4031 = vmatmul.f32.gmra.mxu3 %v3848_v21  ;;  %v11739_v62 = vpop.f32.mrf.mxu1  ;;  %v3702_v25 = vld [vmem:[#allocation2 + $0x12a] sm:$0xff]  ;;  %v3764_v21 = vpop.permute.xlu1 %3763 }
 0x3d7   : > { %v3850_v3 = vsel %vm2322_vm3, %v11681_v39, %v3764_v21  ;;  %v3766_v7 = vpop.permute.xlu0 %3765  ;;  %v8776_v21 = vld [vmem:[%s14555_s5 + $0x170] sm:$0xff] }
 0x3d8   : > { %8742 = vmatmul.msk.f32.gmra.mxu0 %vm2322_vm3, %v3701_v54  ;;  %v8768_v54 = vld [vmem:[%s14555_s5 + $0x130] sm:$0xff]  ;;  %v3851_v42 = vsel %vm2322_vm3, %v11690_v6, %v3766_v7  ;;  %5131 = vmatpush.msrb.mxu2 %v8776_v21  ;;  %v8767_v7 = vld [vmem:[%s14555_s5 + $0x128] sm:$0xff] }
 0x3d9   : > { %5010 = vmatpush.msrb.mxu1 %v8768_v54  ;;  %v11781_v6 = vld [vmem:[#allocation2 + $0xf0] sm:$0xff] }
 0x3db   : > { %5011 = vmatpush.msrb.mxu1 %v8767_v7 }
 0x3dd   : > { %v11755_v38 = vpop.f32.mrf.mxu0 }
 0x3de   : > { %3457 = vmatmul.f32.gmra.mxu1 %v2652_v43  ;;  %4034 = vmatmul.f32.gmra.mxu3 %v3849_v53  ;;  %v11751_v43 = vpop.f32.mrf.mxu2  ;;  %v11753_v53 = vpop.f32.mrf.mxu3 }
 0x3df   : > { %14604 = vst [vmem:[#allocation47_spill] sm:$0xff] %v11751_v43  ;;  %v11758_v54 = vpop.f32.mrf.mxu1  ;;  %v2578_v19 = vpop.permute.xlu1 %2577 }
 0x3e0   : > { %8743 = vmatmul.msk.f32.gmra.mxu0 %vm2322_vm3, %v3702_v25  ;;  %14605 = vst [vmem:[#allocation48_spill] sm:$0xff] %v11753_v53  ;;  %v3703_v25 = vld [vmem:[#allocation2 + $0x13a] sm:$0xff]  ;;  %v2654_v39 = vsel %vm2322_vm3, %v11760_v32, %v2578_v19  ;;  %v2580_v19 = vpop.permute.xlu0 %2579 }
 0x3e5   : > { %v11776_v13 = vpop.f32.mrf.mxu0 }
 0x3e6   : > { %3460 = vmatmul.f32.gmra.mxu1 %v2653_v23  ;;  %4037 = vmatmul.f32.gmra.mxu3 %v3850_v3  ;;  %v11769_v23 = vpop.f32.mrf.mxu3  ;;  %v3704_v3 = vld [vmem:[#allocation2 + $0x142] sm:$0xff]  ;;  %v11772_v53 = vpop.f32.mrf.mxu2 }
 0x3e7   : > { %14606 = vst [vmem:[#allocation49_spill] sm:$0xff] %v11769_v23  ;;  %v11774_v52 = vpop.f32.mrf.mxu1  ;;  %v3770_v23 = vpop.permute.xlu1 %3769 }
 0x3e8   : > { %8744 = vmatmul.msk.f32.gmra.mxu0 %vm2322_vm3, %v3703_v25  ;;  %v3768_v25 = vpop.permute.xlu2 %3767  ;;  %14607 = vst [vmem:[#allocation50_spill] sm:$0xff] %v11772_v53 }
 0x3ed   : > { %v11794_v60 = vpop.f32.mrf.mxu0 }
 0x3ee   : > { %3463 = vmatmul.f32.gmra.mxu1 %v2654_v39  ;;  %4040 = vmatmul.f32.gmra.mxu3 %v3851_v42  ;;  %v2655_v39 = vsel %vm2322_vm3, %v11781_v6, %v2580_v19  ;;  %v3852_v42 = vsel %vm2322_vm3, %v11700_v30, %v3768_v25  ;;  %v11792_v7 = vpop.f32.mrf.mxu2  ;;  %v3853_v25 = vsel %vm2322_vm3, %v11718_v40, %v3770_v23  ;;  %v3706_v19 = vld [vmem:[#allocation2 + $0x15a] sm:$0xff] }
 0x3ef   : > { %v11787_v21 = vpop.f32.mrf.mxu3  ;;  %14609 = vst [vmem:[#allocation52_spill] sm:$0xff] %v11792_v7  ;;  %v11807_v7 = vld [vmem:[#allocation2 + $0x108] sm:$0xff] }
 0x3f0   : > { %8745 = vmatmul.msk.f32.gmra.mxu0 %vm2322_vm3, %v3704_v3  ;;  %14608 = vst [vmem:[#allocation51_spill] sm:$0xff] %v11787_v21  ;;  %v3705_v3 = vld [vmem:[#allocation2 + $0x152] sm:$0xff]  ;;  %v2582_v53 = vpop.permute.xlu2 %2581 }
 0x3f1   : > { %v11790_v57 = vpop.f32.mrf.mxu1  ;;  %v2656_v30 = vsel %vm2322_vm3, %v11796_v35, %v2582_v53 }
 0x3f5   : > { %v11815_v23 = vpop.f32.mrf.mxu0 }
 0x3f6   : > { %3466 = vmatmul.f32.gmra.mxu1 %v2655_v39  ;;  %4043 = vmatmul.f32.gmra.mxu3 %v3852_v42  ;;  %v3772_v39 = vpop.permute.xlu0 %3771  ;;  %v11809_v43 = vpop.f32.mrf.mxu2  ;;  %14612 = vst [vmem:[#allocation55_spill] sm:$0xff] %v11815_v23 }
 0x3f7   : > { %v11803_v42 = vpop.f32.mrf.mxu3  ;;  %14611 = vst [vmem:[#allocation54_spill] sm:$0xff] %v11809_v43  ;;  %v3854_v40 = vsel %vm2322_vm3, %v11729_v2, %v3772_v39  ;;  %v8766_v43 = vld [vmem:[%s14555_s5 + $0x120] sm:$0xff]  ;;  %v11828_v39 = vld [vmem:[#allocation2 + $0x110] sm:$0xff] }
 0x3f8   : > { %8746 = vmatmul.msk.f32.gmra.mxu0 %vm2322_vm3, %v3705_v3  ;;  %14610 = vst [vmem:[#allocation53_spill] sm:$0xff] %v11803_v42  ;;  %v2584_v3 = vpop.permute.xlu1 %2583  ;;  %5012 = vmatpush.msrb.mxu1 %v8766_v43  ;;  %v4629_v43 = vld [vmem:[%s14555_s5 + $0xa8] sm:$0xff] }
 0x3f9   : > { %v11805_v21 = vpop.f32.mrf.mxu1  ;;  %v2657_v53 = vsel %vm2322_vm3, %v11807_v7, %v2584_v3  ;;  %v4631_v3 = vld [vmem:[%s14555_s5 + $0xb8] sm:$0xff] }
 0x3fa   : > { %5452 = vmatpush.msrb.mxu0 %v4631_v3 }
 0x3fd   : > { %v11842_v14 = vpop.f32.mrf.mxu0 }
 0x3fe   : > { %3469 = vmatmul.f32.gmra.mxu1 %v2656_v30  ;;  %4046 = vmatmul.f32.gmra.mxu3 %v3853_v25  ;;  %v3707_v30 = vld [vmem:[#allocation2 + $0x16a] sm:$0xff]  ;;  %v3774_v25 = vpop.permute.xlu2 %3773  ;;  %v2586_v42 = vpop.permute.xlu0 %2585  ;;  %14615 = vst [vmem:[#allocation58_spill] sm:$0xff] %v11842_v14 }
 0x3ff   : > { %v11840_v3 = vpop.f32.mrf.mxu2 }
 0x400   : > { %8747 = vmatmul.msk.f32.gmra.mxu0 %vm2322_vm3, %v3706_v19  ;;  %14614 = vst [vmem:[#allocation57_spill] sm:$0xff] %v11840_v3  ;;  %v3776_v23 = vpop.permute.xlu1 %3775  ;;  %v3709_v3 = vld [vmem:[#allocation2 + $0x182] sm:$0xff] }
 0x406   : > { %3472 = vmatmul.f32.gmra.mxu1 %v2657_v53  ;;  %4049 = vmatmul.f32.gmra.mxu3 %v3854_v40  ;;  %v11818_v19 = vpop.f32.mrf.mxu3  ;;  %v4630_v53 = vld [vmem:[%s14555_s5 + $0xb0] sm:$0xff]  ;;  %v2658_v40 = vsel %vm2322_vm3, %v11828_v39, %v2586_v42  ;;  %v3778_v14 = vpop.permute.xlu0 %3777 }
 0x407   : > { %14613 = vst [vmem:[#allocation56_spill] sm:$0xff] %v11818_v19  ;;  %5453 = vmatpush.msrb.mxu0 %v4630_v53  ;;  %v3708_v19 = vld [vmem:[#allocation2 + $0x172] sm:$0xff]  ;;  %v2588_v53 = vpop.permute.xlu2 %2587 }
 0x408   : > { %8748 = vmatmul.msk.f32.gmra.mxu0 %vm2322_vm3, %v3707_v30  ;;  %v11826_v2 = vpop.f32.mrf.mxu1  ;;  %v3855_v30 = vsel %vm2322_vm3, %v11745_v36, %v3774_v25  ;;  %v4628_v36 = vld [vmem:[%s14555_s5 + $0xa0] sm:$0xff]  ;;  %v8775_v25 = vld [vmem:[%s14555_s5 + $0x168] sm:$0xff] }
 0x409   : > { %5454 = vmatpush.msrb.mxu0 %v4629_v43  ;;  %5132 = vmatpush.msrb.mxu2 %v8775_v25  ;;  %v11861_v43 = vld [vmem:[#allocation2 + $0x120] sm:$0xff] }
 0x40a   : > { %v2659_v25 = vsel %vm2322_vm3, %v11861_v43, %v2588_v53  ;;  %v8772_v53 = vld [vmem:[%s14555_s5 + $0x150] sm:$0xff] }
 0x40b   : > { %5455 = vmatpush.msrb.mxu0 %v4628_v36  ;;  %v4626_v36 = vld [vmem:[%s14555_s5 + $0x90] sm:$0xff] }
 0x40e   : > { %3475 = vmatmul.f32.gmra.mxu1 %v2658_v40  ;;  %4052 = vmatmul.f32.gmra.mxu3 %v3855_v30  ;;  %v4627_v40 = vld [vmem:[%s14555_s5 + $0x98] sm:$0xff]  ;;  %v2592_v17 = vpop.permute.xlu0 %2591 }
 0x40f   : > { %5456 = vmatpush.msrb.mxu0 %v4627_v40  ;;  %v8773_v40 = vld [vmem:[%s14555_s5 + $0x158] sm:$0xff] }
 0x410   : > { %8749 = vmatmul.msk.f32.gmra.mxu0 %vm2322_vm3, %v3708_v19  ;;  %v8774_v19 = vld [vmem:[%s14555_s5 + $0x160] sm:$0xff] }
 0x411   : > { %v11848_v42 = vpop.f32.mrf.mxu3  ;;  %5133 = vmatpush.msrb.mxu2 %v8774_v19  ;;  %5457 = vmatpush.msrb.mxu0 %v4626_v36  ;;  %v4625_v19 = vld [vmem:[%s14555_s5 + $0x88] sm:$0xff] }
 0x412   : > { %14616 = vst [vmem:[#allocation59_spill] sm:$0xff] %v11848_v42  ;;  %v3856_v42 = vsel %vm2322_vm3, %v11760_v32, %v3776_v23  ;;  %v4624_v32 = vld [vmem:[%s14555_s5 + $0x80] sm:$0xff]  ;;  %v11883_v23 = vpop.f32.mrf.mxu2  ;;  %v8771_v36 = vld [vmem:[%s14555_s5 + $0x148] sm:$0xff] }
 0x413   : > { %v11856_v30 = vpop.f32.mrf.mxu1  ;;  %5134 = vmatpush.msrb.mxu2 %v8773_v40  ;;  %5458 = vmatpush.msrb.mxu0 %v4625_v19  ;;  %14618 = vst [vmem:[#allocation61_spill] sm:$0xff] %v11883_v23  ;;  %v11890_v40 = vpop.f32.mrf.mxu0  ;;  %v3857_v23 = vsel %vm2322_vm3, %v11781_v6, %v3778_v14 }
 0x414   : > { %14617 = vst [vmem:[#allocation60_spill] sm:$0xff] %v11856_v30 }
 0x415   : > { %5135 = vmatpush.msrb.mxu2 %v8772_v53  ;;  %5459 = vmatpush.msrb.mxu0 %v4624_v32  ;;  %14620 = vst [vmem:[#allocation63_spill] sm:$0xff] %v11890_v40  ;;  %v8770_v53 = vld [vmem:[%s14555_s5 + $0x140] sm:$0xff]  ;;  %v3199_v32 = vadd.f32 %v11067_v34, %v11300_v12 }
 0x416   : > { %3478 = vmatmul.f32.gmra.mxu1 %v2659_v25  ;;  %4055 = vmatmul.f32.gmra.mxu3 %v3856_v42  ;;  %v2590_v25 = vpop.permute.xlu1 %2589  ;;  %v11913_v12 = vld [vmem:[%s14554_s4] ss:$0 sm:$0xff] }
 0x417   : > { %5136 = vmatpush.msrb.mxu2 %v8771_v36  ;;  %v3408_v40 = vadd.f32 %v11710_v28, %v3199_v32  ;;  %v3780_v36 = vpop.permute.xlu2 %3779  ;;  %v3202_v28 = vadd.f32 %v11080_v45, %v11325_v61 }
 0x418   : > { %8750 = vmatmul.msk.f32.gmra.mxu0 %vm2322_vm3, %v3709_v3  ;;  %v8765_v3 = vld [vmem:[%s14555_s5 + $0x118] sm:$0xff] }
 0x419   : > { %v11885_v42 = vpop.f32.mrf.mxu3  ;;  %5013 = vmatpush.msrb.mxu1 %v8765_v3  ;;  %5137 = vmatpush.msrb.mxu2 %v8770_v53  ;;  %v3710_v3 = vld [vmem:[#allocation2 + $0x18a] sm:$0xff]  ;;  %v3521_v30 = vadd.f32 %v11460_v59, %v3408_v40  ;;  %v2661_v59 = vsel %vm2322_vm3, %v11447_v9, %v2592_v17 }
 0x41a   : > { %14619 = vst [vmem:[#allocation62_spill] sm:$0xff] %v11885_v42  ;;  %v2660_v42 = vsel %vm2322_vm3, %v11427_v18, %v2590_v25  ;;  %v11915_v14 = vpop.f32.mrf.mxu2  ;;  %v3411_v25 = vadd.f32 %v11726_v51, %v3202_v28  ;;  %v8764_v17 = vld [vmem:[%s14555_s5 + $0x110] sm:$0xff]  ;;  %v3205_v51 = vadd.f32 %v11096_v26, %v11357_v29 }
 0x41b   : > { %v11895_v19 = vpop.f32.mrf.mxu1  ;;  %v11921_v6 = vpop.f32.mrf.mxu0  ;;  %5014 = vmatpush.msrb.mxu1 %v8764_v17 }
 0x41c   : > { %14621 = vst [vmem:[#allocation64_spill] sm:$0xff] %v11895_v19  ;;  %v3524_v61 = vadd.f32 %v11481_v11, %v3411_v25  ;;  %v3208_v25 = vadd.f32 %v11111_v47, %v11378_v41 }
 0x41e   : > { %3481 = vmatmul.f32.gmra.mxu1 %v2660_v42  ;;  %4058 = vmatmul.f32.gmra.mxu3 %v3857_v23  ;;  %v3711_v42 = vld [vmem:[#allocation2 + $0x19a] sm:$0xff] }
 0x420   : > { %8751 = vmatmul.msk.f32.gmra.mxu0 %vm2322_vm3, %v3710_v3 }
 0x421   : > { %v4011_v19 = vpop.f32.mrf.mxu3 }
 0x422   : > { %v4125_v34 = vadd.f32 %v11676_v4, %v4011_v19  ;;  %v3858_v4 = vsel %vm2322_vm3, %v11796_v35, %v3780_v36  ;;  %v3782_v19 = vpop.permute.xlu1 %3781  ;;  %v11940_v3 = vpop.f32.mrf.mxu2 }
 0x423   : > { %v11917_v18 = vpop.f32.mrf.mxu1  ;;  %v3859_v36 = vsel %vm2322_vm3, %v11807_v7, %v3782_v19  ;;  %v11947_v28 = vpop.f32.mrf.mxu0 }
 0x424   : > { %v4220_v23 = vadd.f32 %v4125_v34, %v3521_v30  ;;  %v2594_v30 = vpop.permute.xlu2 %2593  ;;  %v3414_v34 = vadd.f32 %v11739_v62, %v3205_v51 }
 0x425   : > { %v2662_v11 = vsel %vm2322_vm3, %v11464_v44, %v2594_v30 }
 0x426   : > { %v4256_v40 = vadd.f32 %v11913_v12, %v4220_v23  ;;  %3484 = vmatmul.f32.gmra.mxu1 %v2661_v59  ;;  %4061 = vmatmul.f32.gmra.mxu3 %v3858_v4  ;;  %v3784_v59 = vpop.permute.xlu0 %3783  ;;  %v3527_v44 = vadd.f32 %v11504_v49, %v3414_v34  ;;  %v4416_v49 = vld [vmem:[#allocation2 + $0x2] sm:$0xff] }
 0x428   : > { %v4288_v53 = vmax.f32 %v4256_v40, 0.0  ;;  %8752 = vmatmul.msk.f32.gmra.mxu0 %vm2322_vm3, %v3711_v42 }
 0x429   : > { %v4014_v45 = vpop.f32.mrf.mxu3 }
 0x42a   : > { %4320 = vst.msk [vmem:[#allocation2 + $0x19] sm:$0xff] %vm2322_vm3, %v4288_v53  ;;  %v4128_v9 = vadd.f32 %v11687_v50, %v4014_v45  ;;  %v3712_v50 = vld [vmem:[#allocation2 + $0x1a2] sm:$0xff]  ;;  %v2596_v42 = vpop.permute.xlu1 %2595  ;;  %v3860_v53 = vsel %vm2322_vm3, %v11828_v39, %v3784_v59  ;;  %v3417_v45 = vadd.f32 %v11758_v54, %v3208_v25 }
 0x42b   : > { %v11936_v35 = vpop.f32.mrf.mxu1  ;;  %v2663_v19 = vsel %vm2322_vm3, %v11493_v56, %v2596_v42 }
 0x42c   : > { %v4221_v32 = vadd.f32 %v4128_v9, %v3524_v61  ;;  %v3786_v30 = vpop.permute.xlu2 %3785  ;;  %v11967_v9 = vpop.f32.mrf.mxu0  ;;  %v3530_v39 = vadd.f32 %v11526_v37, %v3417_v45  ;;  %v3211_v37 = vadd.f32 %v11129_v58, %v11391_v22  ;;  %v3675_v22 = vld [vmem:[#allocation2 + $0x169] sm:$0xff] }
 0x42d   : > { %v3861_v34 = vsel %vm2322_vm3, %v11861_v43, %v3786_v30 }
 0x42e   : > { %v4257_v23 = vadd.f32 %v11913_v12, %v4221_v32  ;;  %3487 = vmatmul.f32.gmra.mxu1 %v2662_v11  ;;  %4064 = vmatmul.f32.gmra.mxu3 %v3859_v36  ;;  %v2598_v51 = vpop.permute.xlu0 %2597  ;;  %v3674_v32 = vld [vmem:[#allocation2 + $0x159] sm:$0xff]  ;;  %v8763_v11 = vld [vmem:[%s14555_s5 + $0x108] sm:$0xff]  ;;  %v3420_v59 = vadd.f32 %v11774_v52, %v3211_v37 }
 0x42f   : > { %5015 = vmatpush.msrb.mxu1 %v8763_v11  ;;  %v3639_v11 = vld [vmem:[#allocation2 + $0x138] sm:$0xff] }
 0x430   : > { %v4289_v26 = vmax.f32 %v4257_v23, 0.0  ;;  %8753 = vmatmul.msk.f32.gmra.mxu0 %vm2322_vm3, %v3712_v50  ;;  %v4417_v23 = vld [vmem:[#allocation2 + $0xa] sm:$0xff] }
 0x431   : > { %v4017_v29 = vpop.f32.mrf.mxu3  ;;  %v4664_v4 = vld [vmem:[#allocation2 + $0x19] sm:$0xff] }
 0x432   : > { %4321 = vst.msk [vmem:[#allocation2 + $0x21] sm:$0xff] %vm2322_vm3, %v4289_v26  ;;  %v4131_v7 = vadd.f32 %v11698_v33, %v4017_v29  ;;  %4760 = vrot.lane.b32.xlu0 %v4664_v4, %s9409_s28  ;;  %v11965_v33 = vpop.f32.mrf.mxu2  ;;  %v3788_v29 = vpop.permute.xlu1 %3787 }
 0x433   : > { %v11955_v62 = vpop.f32.mrf.mxu1 }
 0x434   : > { %v4222_v40 = vadd.f32 %v4131_v7, %v3527_v44  ;;  %v3533_v7 = vadd.f32 %v11558_v55, %v3420_v59  ;;  %v2600_v43 = vpop.permute.xlu2 %2599  ;;  %v11993_v25 = vpop.f32.mrf.mxu0  ;;  %v3638_v55 = vld [vmem:[#allocation2 + $0x128] sm:$0xff] }
 0x435   : > { %v3862_v45 = vsel %vm2322_vm3, %v3638_v55, %v3788_v29 }
 0x436   : > { %v4258_v61 = vadd.f32 %v11913_v12, %v4222_v40  ;;  %3490 = vmatmul.f32.gmra.mxu1 %v2663_v19  ;;  %4067 = vmatmul.f32.gmra.mxu3 %v3860_v53  ;;  %v3214_v19 = vadd.f32 %v11148_v1, %v11408_v10 }
 0x438   : > { %v4290_v47 = vmax.f32 %v4258_v61, 0.0  ;;  %8810 = vmatmul.msk.f32.vlgmr.msrb.gmra.mxu0 %vm2322_vm3, %v4416_v49  ;;  %v2665_v49 = vsel %vm2322_vm3, %v11548_v0, %v2600_v43 }
 0x439   : > { %v4020_v41 = vpop.f32.mrf.mxu3  ;;  %v4665_v56 = vld [vmem:[#allocation2 + $0x21] sm:$0xff] }
 0x43a   : > { %v4696_v17 = vld [vmem:[#allocation2 + $0x1a] sm:$0xff]  ;;  %4322 = vst.msk [vmem:[#allocation2 + $0x31] sm:$0xff] %vm2322_vm3, %v4290_v47  ;;  %v4134_v54 = vadd.f32 %v11716_v27, %v4020_v41  ;;  %4762 = vrot.lane.b32.xlu2 %v4665_v56, %s9409_s28  ;;  %3795 = vrot.lane.b32.xlu0 %v3674_v32, %s9409_s28  ;;  %v2664_v27 = vsel %vm2322_vm3, %v11530_v48, %v2598_v51  ;;  %v11990_v44 = vpop.f32.mrf.mxu2  ;;  %v4697_v42 = vld [vmem:[#allocation2 + $0x22] sm:$0xff]  ;;  %v2602_v10 = vpop.permute.xlu1 %2601 }
 0x43b   : > { %8778 = vmatmul.msk.f32.vlgmr.msrb.gmra.mxu2 %vm2322_vm3, %v4696_v17  ;;  %v11979_v36 = vpop.f32.mrf.mxu1  ;;  %v2666_v37 = vsel %vm2322_vm3, %v11585_v20, %v2602_v10 }
 0x43c   : > { %v4223_v50 = vadd.f32 %v4134_v54, %v3530_v39  ;;  %v3790_v39 = vpop.permute.xlu0 %3789  ;;  %v3217_v54 = vadd.f32 %v11165_v8, %v11419_v24  ;;  %v3677_v24 = vld [vmem:[#allocation2 + $0x181] sm:$0xff]  ;;  %v3792_v29 = vpop.permute.xlu2 %3791 }
 0x43e   : > { %v4259_v26 = vadd.f32 %v11913_v12, %v4223_v50  ;;  %3493 = vmatmul.f32.gmra.mxu1 %v2664_v27  ;;  %4070 = vmatmul.f32.gmra.mxu3 %v3861_v34  ;;  %v3863_v50 = vsel %vm2322_vm3, %v3639_v11, %v3790_v39  ;;  %v3426_v27 = vadd.f32 %v11805_v21, %v3217_v54  ;;  %v14625_v11 = vld [vmem:[#allocation47_spill] sm:$0xff] }
 0x440   : > { %v4291_v4 = vmax.f32 %v4259_v26, 0.0  ;;  %8811 = vmatmul.msk.f32.gmra.mxu0 %vm2322_vm3, %v4417_v23  ;;  %v3539_v26 = vadd.f32 %v11593_v16, %v3426_v27 }
 0x441   : > { %v4023_v58 = vpop.f32.mrf.mxu3  ;;  %v4666_v48 = vld [vmem:[#allocation2 + $0x31] sm:$0xff] }
 0x442   : > { %4323 = vst.msk [vmem:[#allocation2 + $0x39] sm:$0xff] %vm2322_vm3, %v4291_v4  ;;  %v4137_v52 = vadd.f32 %v11737_v15, %v4023_v58  ;;  %3797 = vrot.lane.b32.xlu2 %v3675_v22, %s9409_s28  ;;  %4764 = vrot.lane.b32.xlu1 %v4666_v48, %s9409_s28  ;;  %v3423_v15 = vadd.f32 %v11790_v57, %v3214_v19  ;;  %v3676_v57 = vld [vmem:[#allocation2 + $0x171] sm:$0xff]  ;;  %v12018_v51 = vpop.f32.mrf.mxu2 }
 0x443   : > { %8779 = vmatmul.msk.f32.gmra.mxu2 %vm2322_vm3, %v4697_v42  ;;  %v12000_v40 = vpop.f32.mrf.mxu1  ;;  %v3220_v58 = vadd.f32 %v11189_v46, %v11441_v63 }
 0x444   : > { %v4224_v53 = vadd.f32 %v4137_v52, %v3533_v7  ;;  %v3536_v1 = vadd.f32 %v11575_v5, %v3423_v15 }
 0x446   : > { %v4260_v61 = vadd.f32 %v11913_v12, %v4224_v53  ;;  %3496 = vmatmul.f32.gmra.mxu1 %v2665_v49  ;;  %4073 = vmatmul.f32.gmra.mxu3 %v3862_v45  ;;  %v3678_v53 = vld [vmem:[#allocation2 + $0x189] sm:$0xff]  ;;  %v3794_v49 = vpop.permute.xlu1 %3793 }
 0x448   : > { %v4292_v30 = vmax.f32 %v4260_v61, 0.0  ;;  %8812 = vmatmul.msk.f32.gmra.mxu0 %vm2322_vm3, %v4696_v17  ;;  %v8762_v17 = vld [vmem:[%s14555_s5 + $0x100] sm:$0xff]  ;;  %v14622_v61 = vld [vmem:[#allocation18_spill] sm:$0xff] }
 0x449   : > { %v4026_v47 = vpop.f32.mrf.mxu3  ;;  %v4667_v41 = vld [vmem:[#allocation2 + $0x39] sm:$0xff]  ;;  %5016 = vmatpush.msrb.mxu1 %v8762_v17 }
 0x44a   : > { %v4698_v56 = vld [vmem:[#allocation2 + $0x32] sm:$0xff]  ;;  %4324 = vst.msk [vmem:[#allocation2 + $0x49] sm:$0xff] %vm2322_vm3, %v4292_v30  ;;  %v4140_v0 = vadd.f32 %v11755_v38, %v4026_v47  ;;  %4766 = vrot.lane.b32.xlu0 %v4667_v41, %s9409_s28  ;;  %3799 = vrot.lane.b32.xlu1 %v3676_v57, %s9409_s28  ;;  %v12025_v38 = vpop.f32.mrf.mxu0  ;;  %v4699_v21 = vld [vmem:[#allocation2 + $0x3a] sm:$0xff]  ;;  %v12043_v16 = vpop.f32.mrf.mxu2 }
 0x44b   : > { %8780 = vmatmul.msk.f32.gmra.mxu2 %vm2322_vm3, %v4698_v56  ;;  %v12021_v5 = vpop.f32.mrf.mxu1  ;;  %v3641_v41 = vld [vmem:[#allocation2 + $0x150] sm:$0xff] }
 0x44c   : > { %v4225_v32 = vadd.f32 %v4140_v0, %v3536_v1  ;;  %v3679_v0 = vld [vmem:[#allocation2 + $0x199] sm:$0xff] }
 0x44e   : > { %v4261_v34 = vadd.f32 %v11913_v12, %v4225_v32  ;;  %3499 = vmatmul.f32.gmra.mxu1 %v2666_v37  ;;  %4076 = vmatmul.f32.gmra.mxu3 %v3863_v50  ;;  %v14626_v50 = vld [vmem:[#allocation55_spill] sm:$0xff] }
 0x450   : > { %v4293_v23 = vmax.f32 %v4261_v34, 0.0  ;;  %8813 = vmatmul.msk.f32.gmra.mxu0 %vm2322_vm3, %v4697_v42  ;;  %v3640_v42 = vld [vmem:[#allocation2 + $0x140] sm:$0xff] }
 0x451   : > { %v4029_v59 = vpop.f32.mrf.mxu3  ;;  %v4668_v8 = vld [vmem:[#allocation2 + $0x49] sm:$0xff]  ;;  %v3864_v48 = vsel %vm2322_vm3, %v3640_v42, %v3792_v29  ;;  %v14629_v29 = vld [vmem:[#allocation64_spill] sm:$0xff] }
 0x452   : > { %4325 = vst.msk [vmem:[#allocation2 + $0x51] sm:$0xff] %vm2322_vm3, %v4293_v23  ;;  %v4143_v20 = vadd.f32 %v11776_v13, %v4029_v59  ;;  %4768 = vrot.lane.b32.xlu2 %v4668_v8, %s9409_s28  ;;  %3801 = vrot.lane.b32.xlu0 %v3677_v24, %s9409_s28  ;;  %v3429_v13 = vadd.f32 %v11826_v2, %v3220_v58  ;;  %v12047_v7 = vpop.f32.mrf.mxu0  ;;  %v8761_v2 = vld [vmem:[%s14555_s5 + $0xf8] sm:$0xff]  ;;  %v12067_v39 = vpop.f32.mrf.mxu2  ;;  %v14627_v59 = vld [vmem:[#allocation20_spill] sm:$0xff] }
 0x453   : > { %8781 = vmatmul.msk.f32.gmra.mxu2 %vm2322_vm3, %v4699_v21  ;;  %v12039_v4 = vpop.f32.mrf.mxu1  ;;  %5017 = vmatpush.msrb.mxu1 %v8761_v2  ;;  %v14628_v8 = vld [vmem:[#allocation7_spill] sm:$0xff]  ;;  %v3680_v58 = vld [vmem:[#allocation2 + $0x1a1] sm:$0xff] }
 0x454   : > { %v4226_v22 = vadd.f32 %v4143_v20, %v3539_v26  ;;  %v3542_v63 = vadd.f32 %v11616_v31, %v3429_v13  ;;  %v14623_v31 = vld [vmem:[#allocation6_spill] sm:$0xff]  ;;  %v3226_v24 = vadd.f32 %v14628_v8, %v14627_v59  ;;  %v14633_v2 = vld [vmem:[#allocation8_spill] sm:$0xff] }
 0x455   : > { %v3223_v30 = vadd.f32 %v14623_v31, %v14622_v61 }
 0x456   : > { %v4262_v43 = vadd.f32 %v11913_v12, %v4226_v22  ;;  %4079 = vmatmul.f32.gmra.mxu3 %v3864_v48  ;;  %v3435_v20 = vadd.f32 %v14629_v29, %v3226_v24 }
 0x458   : > { %v4294_v52 = vmax.f32 %v4262_v43, 0.0  ;;  %8814 = vmatmul.msk.f32.gmra.mxu0 %vm2322_vm3, %v4698_v56  ;;  %v14624_v56 = vld [vmem:[#allocation60_spill] sm:$0xff] }
 0x459   : > { %v4032_v19 = vpop.f32.mrf.mxu3  ;;  %v4700_v55 = vld [vmem:[#allocation2 + $0x4a] sm:$0xff]  ;;  %v3432_v1 = vadd.f32 %v14624_v56, %v3223_v30  ;;  %v4701_v34 = vld [vmem:[#allocation2 + $0x52] sm:$0xff] }
 0x45a   : > { %v4669_v46 = vld [vmem:[#allocation2 + $0x51] sm:$0xff]  ;;  %4326 = vst.msk [vmem:[#allocation2 + $0x61] sm:$0xff] %vm2322_vm3, %v4294_v52  ;;  %v4146_v45 = vadd.f32 %v11794_v60, %v4032_v19  ;;  %3803 = vrot.lane.b32.xlu2 %v3678_v53, %s9409_s28  ;;  %v3865_v60 = vsel %vm2322_vm3, %v3641_v41, %v3794_v49  ;;  %v12069_v57 = vpop.f32.mrf.mxu0  ;;  %v12085_v42 = vpop.f32.mrf.mxu2 }
 0x45b   : > { %4770 = vrot.lane.b32.xlu1 %v4669_v46, %s9409_s28  ;;  %8782 = vmatmul.msk.f32.gmra.mxu2 %vm2322_vm3, %v4700_v55  ;;  %v12060_v15 = vpop.f32.mrf.mxu1  ;;  %v3545_v37 = vadd.f32 %v14625_v11, %v3432_v1  ;;  %v14630_v52 = vld [vmem:[#allocation50_spill] sm:$0xff]  ;;  %v14634_v1 = vld [vmem:[#allocation52_spill] sm:$0xff] }
 0x45c   : > { %v4227_v47 = vadd.f32 %v4146_v45, %v3542_v63  ;;  %v3548_v19 = vadd.f32 %v14630_v52, %v3435_v20  ;;  %v14631_v46 = vld [vmem:[#allocation58_spill] sm:$0xff]  ;;  %v14636_v11 = vld [vmem:[#allocation24_spill] sm:$0xff] }
 0x45d   : > { %v14632_v45 = vld [vmem:[#allocation22_spill] sm:$0xff] }
 0x45e   : > { %v4263_v10 = vadd.f32 %v11913_v12, %v4227_v47  ;;  %4082 = vmatmul.f32.gmra.mxu3 %v3865_v60  ;;  %v3229_v61 = vadd.f32 %v14633_v2, %v14632_v45  ;;  %v8758_v45 = vld [vmem:[%s14555_s5 + $0xe0] sm:$0xff] }
 0x460   : > { %v4295_v17 = vmax.f32 %v4263_v10, 0.0  ;;  %8815 = vmatmul.msk.f32.gmra.mxu0 %vm2322_vm3, %v4699_v21  ;;  %v3438_v30 = vadd.f32 %v11917_v18, %v3229_v61 }
 0x461   : > { %v4035_v54 = vpop.f32.mrf.mxu3  ;;  %v4670_v32 = vld [vmem:[#allocation2 + $0x61] sm:$0xff] }
 0x462   : > { %4327 = vst.msk [vmem:[#allocation2 + $0x69] sm:$0xff] %vm2322_vm3, %v4295_v17  ;;  %v4149_v27 = vadd.f32 %v14626_v50, %v4035_v54  ;;  %4772 = vrot.lane.b32.xlu0 %v4670_v32, %s9409_s28  ;;  %v12088_v53 = vpop.f32.mrf.mxu0  ;;  %v3551_v10 = vadd.f32 %v14634_v1, %v3438_v30  ;;  %v12109_v32 = vpop.f32.mrf.mxu2  ;;  %v8757_v30 = vld [vmem:[%s14555_s5 + $0xd8] sm:$0xff]  ;;  %v8756_v1 = vld [vmem:[%s14555_s5 + $0xd0] sm:$0xff] }
 0x463   : > { %3805 = vrot.lane.b32.xlu1 %v3679_v0, %s9409_s28  ;;  %8783 = vmatmul.msk.f32.gmra.mxu2 %vm2322_vm3, %v4701_v34  ;;  %v12078_v23 = vpop.f32.mrf.mxu1  ;;  %v14635_v0 = vld [vmem:[#allocation63_spill] sm:$0xff] }
 0x464   : > { %v4228_v26 = vadd.f32 %v4149_v27, %v3545_v37  ;;  %v14637_v37 = vld [vmem:[#allocation9_spill] sm:$0xff] }
 0x465   : > { %v3232_v50 = vadd.f32 %v14637_v37, %v14636_v11 }
 0x466   : > { %v4264_v21 = vadd.f32 %v11913_v12, %v4228_v26 }
 0x467   : > { %v3441_v59 = vadd.f32 %v11936_v35, %v3232_v50  ;;  %v8759_v35 = vld [vmem:[%s14555_s5 + $0xe8] sm:$0xff] }
 0x468   : > { %v4296_v22 = vmax.f32 %v4264_v21, 0.0  ;;  %8816 = vmatmul.msk.f32.gmra.mxu0 %vm2322_vm3, %v4700_v55  ;;  %v8760_v55 = vld [vmem:[%s14555_s5 + $0xf0] sm:$0xff] }
 0x469   : > { %v4038_v48 = vpop.f32.mrf.mxu3  ;;  %v4671_v13 = vld [vmem:[#allocation2 + $0x69] sm:$0xff]  ;;  %5018 = vmatpush.msrb.mxu1 %v8760_v55 }
 0x46a   : > { %v4702_v43 = vld [vmem:[#allocation2 + $0x62] sm:$0xff]  ;;  %4328 = vst.msk [vmem:[#allocation2 + $0x79] sm:$0xff] %vm2322_vm3, %v4296_v22  ;;  %v4152_v63 = vadd.f32 %v14631_v46, %v4038_v48  ;;  %4774 = vrot.lane.b32.xlu2 %v4671_v13, %s9409_s28  ;;  %3807 = vrot.lane.b32.xlu0 %v3680_v58, %s9409_s28  ;;  %v4703_v54 = vld [vmem:[#allocation2 + $0x6a] sm:$0xff]  ;;  %v12116_v27 = vpop.f32.mrf.mxu0  ;;  %v14639_v13 = vld [vmem:[#allocation27_spill] sm:$0xff]  ;;  %v12133_v46 = vpop.f32.mrf.mxu2 }
 0x46b   : > { %8784 = vmatmul.msk.f32.gmra.mxu2 %vm2322_vm3, %v4702_v43  ;;  %v12098_v49 = vpop.f32.mrf.mxu1  ;;  %v14638_v21 = vld [vmem:[#allocation54_spill] sm:$0xff]  ;;  %5019 = vmatpush.msrb.mxu1 %v8759_v35  ;;  %v14645_v35 = vld [vmem:[#allocation31_spill] sm:$0xff] }
 0x46c   : > { %v4229_v31 = vadd.f32 %v4152_v63, %v3548_v19  ;;  %v3554_v58 = vadd.f32 %v14638_v21, %v3441_v59  ;;  %v14644_v21 = vld [vmem:[#allocation61_spill] sm:$0xff] }
 0x46d   : > { %5020 = vmatpush.msrb.mxu1 %v8758_v45 }
 0x46e   : > { %v4265_v47 = vadd.f32 %v11913_v12, %v4229_v31 }
 0x46f   : > { %5021 = vmatpush.msrb.mxu1 %v8757_v30 }
 0x470   : > { %v4297_v41 = vmax.f32 %v4265_v47, 0.0  ;;  %8817 = vmatmul.msk.f32.gmra.mxu0 %vm2322_vm3, %v4701_v34  ;;  %v14641_v47 = vld [vmem:[#allocation57_spill] sm:$0xff] }
 0x471   : > { %v4041_v60 = vpop.f32.mrf.mxu3  ;;  %v4672_v56 = vld [vmem:[#allocation2 + $0x79] sm:$0xff]  ;;  %5022 = vmatpush.msrb.mxu1 %v8756_v1 }
 0x472   : > { %4329 = vst.msk [vmem:[#allocation2 + $0x81] sm:$0xff] %vm2322_vm3, %v4297_v41  ;;  %v4155_v17 = vadd.f32 %v14635_v0, %v4041_v60  ;;  %4776 = vrot.lane.b32.xlu1 %v4672_v56, %s9409_s28  ;;  %v14643_v0 = vld [vmem:[#allocation11_spill] sm:$0xff]  ;;  %v12163_v50 = vpop.f32.mrf.mxu2 }
 0x473   : > { %8785 = vmatmul.msk.f32.gmra.mxu2 %vm2322_vm3, %v4703_v54  ;;  %v12112_v18 = vpop.f32.mrf.mxu1 }
 0x474   : > { %v4230_v34 = vadd.f32 %v4155_v17, %v3551_v10  ;;  %v14642_v10 = vld [vmem:[#allocation29_spill] sm:$0xff] }
 0x475   : > { %v3238_v17 = vadd.f32 %v14643_v0, %v14642_v10 }
 0x476   : > { %v4266_v8 = vadd.f32 %v11913_v12, %v4230_v34  ;;  %v8754_v34 = vld [vmem:[%s14555_s5 + $0xc0] sm:$0xff] }
 0x477   : > { %v3447_v11 = vadd.f32 %v11979_v36, %v3238_v17 }
 0x478   : > { %v4298_v24 = vmax.f32 %v4266_v8, 0.0  ;;  %8818 = vmatmul.msk.f32.gmra.mxu0 %vm2322_vm3, %v4702_v43  ;;  %v14640_v43 = vld [vmem:[#allocation10_spill] sm:$0xff] }
 0x479   : > { %v4044_v26 = vpop.f32.mrf.mxu3  ;;  %v4673_v29 = vld [vmem:[#allocation2 + $0x81] sm:$0xff]  ;;  %v3235_v52 = vadd.f32 %v14640_v43, %v14639_v13  ;;  %v3560_v36 = vadd.f32 %v14644_v21, %v3447_v11 }
 0x47a   : > { %v4704_v20 = vld [vmem:[#allocation2 + $0x7a] sm:$0xff]  ;;  %4330 = vst.msk [vmem:[#allocation2 + $0x91] sm:$0xff] %vm2322_vm3, %v4298_v24  ;;  %v4158_v22 = vadd.f32 %v11921_v6, %v4044_v26  ;;  %4778 = vrot.lane.b32.xlu2 %v4673_v29, %s9409_s28  ;;  %v12136_v6 = vpop.f32.mrf.mxu0  ;;  %v4705_v60 = vld [vmem:[#allocation2 + $0x82] sm:$0xff] }
 0x47b   : > { %8786 = vmatmul.msk.f32.gmra.mxu2 %vm2322_vm3, %v4704_v20  ;;  %v12129_v48 = vpop.f32.mrf.mxu1  ;;  %v3444_v63 = vadd.f32 %v11955_v62, %v3235_v52  ;;  %v14646_v13 = vld [vmem:[#allocation12_spill] sm:$0xff] }
 0x47c   : > { %v4231_v19 = vadd.f32 %v4158_v22, %v3554_v58  ;;  %v3241_v43 = vadd.f32 %v14646_v13, %v14645_v35 }
 0x47d   : > { %v3557_v62 = vadd.f32 %v14641_v47, %v3444_v63  ;;  %v14647_v47 = vld [vmem:[#allocation33_spill] sm:$0xff] }
 0x47e   : > { %v4267_v55 = vadd.f32 %v11913_v12, %v4231_v19  ;;  %v3450_v52 = vadd.f32 %v12000_v40, %v3241_v43 }
 0x480   : > { %v4299_v2 = vmax.f32 %v4267_v55, 0.0  ;;  %8819 = vmatmul.msk.f32.gmra.mxu0 %vm2322_vm3, %v4703_v54  ;;  %v12183_v55 = vpop.f32.mrf.mxu2 }
 0x481   : > { %v4047_v61 = vpop.f32.mrf.mxu3  ;;  %v4674_v31 = vld [vmem:[#allocation2 + $0x91] sm:$0xff] }
 0x482   : > { %4331 = vst.msk [vmem:[#allocation2 + $0x99] sm:$0xff] %vm2322_vm3, %v4299_v2  ;;  %v4161_v41 = vadd.f32 %v11947_v28, %v4047_v61  ;;  %4780 = vrot.lane.b32.xlu0 %v4674_v31, %s9409_s28  ;;  %v8755_v28 = vld [vmem:[%s14555_s5 + $0xc8] sm:$0xff]  ;;  %v12168_v59 = vpop.f32.mrf.mxu0  ;;  %v3563_v2 = vadd.f32 %v11915_v14, %v3450_v52 }
 0x483   : > { %8787 = vmatmul.msk.f32.gmra.mxu2 %vm2322_vm3, %v4705_v60  ;;  %v12151_v56 = vpop.f32.mrf.mxu1  ;;  %5023 = vmatpush.msrb.mxu1 %v8755_v28 }
 0x484   : > { %v4232_v54 = vadd.f32 %v4161_v41, %v3557_v62  ;;  %v14648_v62 = vld [vmem:[#allocation13_spill] sm:$0xff] }
 0x485   : > { %5024 = vmatpush.msrb.mxu1 %v8754_v34  ;;  %v3244_v41 = vadd.f32 %v14648_v62, %v14647_v47  ;;  %v14650_v34 = vld [vmem:[#allocation14_spill] sm:$0xff] }
 0x486   : > { %v4268_v37 = vadd.f32 %v11913_v12, %v4232_v54 }
 0x487   : > { %v3453_v1 = vadd.f32 %v12021_v5, %v3244_v41 }
 0x488   : > { %v4300_v8 = vmax.f32 %v4268_v37, 0.0  ;;  %8820 = vmatmul.msk.f32.gmra.mxu0 %vm2322_vm3, %v4704_v20  ;;  %v12203_v11 = vpop.f32.mrf.mxu2  ;;  %v14649_v37 = vld [vmem:[#allocation35_spill] sm:$0xff] }
 0x489   : > { %v4050_v24 = vpop.f32.mrf.mxu3  ;;  %v4706_v26 = vld [vmem:[#allocation2 + $0x92] sm:$0xff]  ;;  %v4707_v40 = vld [vmem:[#allocation2 + $0x9a] sm:$0xff]  ;;  %v3566_v54 = vadd.f32 %v11940_v3, %v3453_v1 }
 0x48a   : > { %v4675_v29 = vld [vmem:[#allocation2 + $0x99] sm:$0xff]  ;;  %4332 = vst.msk [vmem:[#allocation2 + $0xa9] sm:$0xff] %vm2322_vm3, %v4300_v8  ;;  %v4164_v58 = vadd.f32 %v11967_v9, %v4050_v24  ;;  %v12186_v61 = vpop.f32.mrf.mxu0  ;;  %v3247_v8 = vadd.f32 %v14650_v34, %v14649_v37 }
 0x48b   : > { %4782 = vrot.lane.b32.xlu1 %v4675_v29, %s9409_s28  ;;  %8788 = vmatmul.msk.f32.gmra.mxu2 %vm2322_vm3, %v4706_v26  ;;  %v12176_v22 = vpop.f32.mrf.mxu1  ;;  %v3642_v37 = vld [vmem:[#allocation2 + $0x158] sm:$0xff] }
 0x48c   : > { %v4233_v20 = vadd.f32 %v4164_v58, %v3560_v36  ;;  %v3456_v3 = vadd.f32 %v12039_v4, %v3247_v8  ;;  %v14651_v4 = vld [vmem:[#allocation37_spill] sm:$0xff] }
 0x48e   : > { %v4269_v19 = vadd.f32 %v11913_v12, %v4233_v20  ;;  %v3569_v58 = vadd.f32 %v11965_v33, %v3456_v3  ;;  %v14652_v20 = vld [vmem:[#allocation15_spill] sm:$0xff] }
 0x48f   : > { %v3250_v52 = vadd.f32 %v14652_v20, %v14651_v4  ;;  %v14655_v20 = vld [vmem:[#allocation41_spill] sm:$0xff] }
 0x490   : > { %v4301_v63 = vmax.f32 %v4269_v19, 0.0  ;;  %8821 = vmatmul.msk.f32.gmra.mxu0 %vm2322_vm3, %v4705_v60 }
 0x491   : > { %v4053_v9 = vpop.f32.mrf.mxu3  ;;  %v4676_v45 = vld [vmem:[#allocation2 + $0xa9] sm:$0xff] }
 0x492   : > { %4333 = vst.msk [vmem:[#allocation2 + $0xb1] sm:$0xff] %vm2322_vm3, %v4301_v63  ;;  %v4167_v31 = vadd.f32 %v11993_v25, %v4053_v9  ;;  %4784 = vrot.lane.b32.xlu2 %v4676_v45, %s9409_s28  ;;  %v12210_v24 = vpop.f32.mrf.mxu0  ;;  %v4632_v9 = vld [vmem:[#allocation2 + $0x18] sm:$0xff]  ;;  %v12224_v45 = vpop.f32.mrf.mxu2 }
 0x493   : > { %8789 = vmatmul.msk.f32.gmra.mxu2 %vm2322_vm3, %v4707_v40  ;;  %v12192_v30 = vpop.f32.mrf.mxu1 }
 0x494   : > { %v4234_v60 = vadd.f32 %v4167_v31, %v3563_v2  ;;  %v3459_v2 = vadd.f32 %v12060_v15, %v3250_v52  ;;  %v4763_v47 = vpop.permute.xlu2 %4762 }
 0x496   : > { %v4270_v14 = vadd.f32 %v11913_v12, %v4234_v60  ;;  %v3572_v1 = vadd.f32 %v11990_v44, %v3459_v2 }
 0x498   : > { %v4302_v10 = vmax.f32 %v4270_v14, 0.0  ;;  %8822 = vmatmul.msk.f32.gmra.mxu0 %vm2322_vm3, %v4706_v26 }
 0x499   : > { %v4056_v0 = vpop.f32.mrf.mxu3  ;;  %v4677_v25 = vld [vmem:[#allocation2 + $0xb1] sm:$0xff] }
 0x49a   : > { %v4708_v17 = vld [vmem:[#allocation2 + $0xaa] sm:$0xff]  ;;  %4334 = vst.msk [vmem:[#allocation2 + $0xc1] sm:$0xff] %vm2322_vm3, %v4302_v10  ;;  %v4170_v28 = vadd.f32 %v12025_v38, %v4056_v0  ;;  %4786 = vrot.lane.b32.xlu0 %v4677_v25, %s9409_s28  ;;  %v4709_v13 = vld [vmem:[#allocation2 + $0xb2] sm:$0xff]  ;;  %v14654_v0 = vld [vmem:[#allocation16_spill] sm:$0xff] }
 0x49b   : > { %8790 = vmatmul.msk.f32.gmra.mxu2 %vm2322_vm3, %v4708_v17  ;;  %v12206_v5 = vpop.f32.mrf.mxu1  ;;  %v14653_v10 = vld [vmem:[#allocation39_spill] sm:$0xff] }
 0x49c   : > { %v4235_v26 = vadd.f32 %v4170_v28, %v3566_v54  ;;  %v3253_v25 = vadd.f32 %v14654_v0, %v14653_v10  ;;  %v4633_v54 = vld [vmem:[#allocation2 + $0x20] sm:$0xff]  ;;  %v14657_v0 = vld [vmem:[#allocation42_spill] sm:$0xff] }
 0x49d   : > { %v4857_v34 = vsel %vm2322_vm3, %v4633_v54, %v4763_v47 }
 0x49e   : > { %v4271_v29 = vadd.f32 %v11913_v12, %v4235_v26  ;;  %v3462_v44 = vadd.f32 %v12078_v23, %v3253_v25  ;;  %v12245_v26 = vpop.f32.mrf.mxu2  ;;  %v14658_v25 = vld [vmem:[#allocation19_spill] sm:$0xff] }
 0x4a0   : > { %v4303_v21 = vmax.f32 %v4271_v29, 0.0  ;;  %8823 = vmatmul.msk.f32.gmra.mxu0 %vm2322_vm3, %v4707_v40 }
 0x4a1   : > { %v4059_v38 = vpop.f32.mrf.mxu3  ;;  %v4678_v36 = vld [vmem:[#allocation2 + $0xc1] sm:$0xff] }
 0x4a2   : > { %4335 = vst.msk [vmem:[#allocation2 + $0xc9] sm:$0xff] %vm2322_vm3, %v4303_v21  ;;  %v4173_v35 = vadd.f32 %v12047_v7, %v4059_v38  ;;  %4788 = vrot.lane.b32.xlu1 %v4678_v36, %s9409_s28  ;;  %v12228_v7 = vpop.f32.mrf.mxu0  ;;  %v3575_v36 = vadd.f32 %v12018_v51, %v3462_v44  ;;  %v4634_v51 = vld [vmem:[#allocation2 + $0x30] sm:$0xff] }
 0x4a3   : > { %8791 = vmatmul.msk.f32.gmra.mxu2 %vm2322_vm3, %v4709_v13  ;;  %v12220_v43 = vpop.f32.mrf.mxu1 }
 0x4a4   : > { %v4236_v19 = vadd.f32 %v4173_v35, %v3569_v58  ;;  %v4761_v63 = vpop.permute.xlu0 %4760  ;;  %v3798_v35 = vpop.permute.xlu2 %3797 }
 0x4a5   : > { %v4856_v33 = vsel %vm2322_vm3, %v4632_v9, %v4761_v63  ;;  %v3643_v9 = vld [vmem:[#allocation2 + $0x168] sm:$0xff] }
 0x4a6   : > { %v4272_v31 = vadd.f32 %v11913_v12, %v4236_v19  ;;  %5025 = vmatmul.f32.vlgmr.msrb.gmra.mxu1 %v4856_v33  ;;  %v3867_v2 = vsel %vm2322_vm3, %v3643_v9, %v3798_v35  ;;  %v12267_v47 = vpop.f32.mrf.mxu2 }
 0x4a8   : > { %v4304_v40 = vmax.f32 %v4272_v31, 0.0  ;;  %8824 = vmatmul.msk.f32.gmra.mxu0 %vm2322_vm3, %v4708_v17 }
 0x4a9   : > { %v4062_v62 = vpop.f32.mrf.mxu3  ;;  %v4679_v41 = vld [vmem:[#allocation2 + $0xc9] sm:$0xff] }
 0x4aa   : > { %v4710_v60 = vld [vmem:[#allocation2 + $0xc2] sm:$0xff]  ;;  %4336 = vst.msk [vmem:[#allocation2 + $0xd9] sm:$0xff] %vm2322_vm3, %v4304_v40  ;;  %v4176_v14 = vadd.f32 %v12069_v57, %v4062_v62  ;;  %4790 = vrot.lane.b32.xlu2 %v4679_v41, %s9409_s28  ;;  %v12247_v3 = vpop.f32.mrf.mxu0  ;;  %v4711_v58 = vld [vmem:[#allocation2 + $0xca] sm:$0xff] }
 0x4ab   : > { %8792 = vmatmul.msk.f32.gmra.mxu2 %vm2322_vm3, %v4710_v60  ;;  %v12237_v15 = vpop.f32.mrf.mxu1 }
 0x4ac   : > { %v4237_v17 = vadd.f32 %v4176_v14, %v3572_v1  ;;  %v3796_v28 = vpop.permute.xlu0 %3795 }
 0x4ad   : > { %v3866_v57 = vsel %vm2322_vm3, %v3642_v37, %v3796_v28  ;;  %v4635_v37 = vld [vmem:[#allocation2 + $0x38] sm:$0xff] }
 0x4ae   : > { %v4273_v8 = vadd.f32 %v11913_v12, %v4237_v17  ;;  %5028 = vmatmul.f32.gmra.mxu1 %v4857_v34  ;;  %4085 = vmatmul.f32.gmra.mxu3 %v3866_v57  ;;  %v3259_v17 = vadd.f32 %v14658_v25, %v14657_v0  ;;  %v3644_v34 = vld [vmem:[#allocation2 + $0x170] sm:$0xff] }
 0x4af   : > { %v14661_v25 = vld [vmem:[#allocation62_spill] sm:$0xff] }
 0x4b0   : > { %v4305_v29 = vmax.f32 %v4273_v8, 0.0  ;;  %8825 = vmatmul.msk.f32.gmra.mxu0 %vm2322_vm3, %v4709_v13  ;;  %v14656_v13 = vld [vmem:[#allocation17_spill] sm:$0xff]  ;;  %v3468_v8 = vadd.f32 %v12112_v18, %v3259_v17  ;;  %v14662_v17 = vld [vmem:[#allocation40_spill] sm:$0xff] }
 0x4b1   : > { %v4065_v21 = vpop.f32.mrf.mxu3  ;;  %v12250_v38 = vld [vmem:[#allocation2 + $0xd9] sm:$0xff]  ;;  %v3256_v52 = vadd.f32 %v14656_v13, %v14655_v20  ;;  %v12295_v13 = vpop.f32.mrf.mxu2 }
 0x4b2   : > { %4337 = vst.msk [vmem:[#allocation2 + $0xe1] sm:$0xff] %vm2322_vm3, %v4305_v29  ;;  %v4179_v23 = vadd.f32 %v12088_v53, %v4065_v21  ;;  %4792 = vrot.lane.b32.xlu0 %v12250_v38, %s9409_s28  ;;  %v4769_v21 = vpop.permute.xlu2 %4768  ;;  %v3581_v35 = vadd.f32 %v12067_v39, %v3468_v8 }
 0x4b3   : > { %8793 = vmatmul.msk.f32.gmra.mxu2 %vm2322_vm3, %v4711_v58  ;;  %v12258_v4 = vpop.f32.mrf.mxu1  ;;  %v3465_v33 = vadd.f32 %v12098_v49, %v3256_v52  ;;  %v12272_v49 = vpop.f32.mrf.mxu0 }
 0x4b4   : > { %v4238_v19 = vadd.f32 %v4179_v23, %v3575_v36  ;;  %v4765_v63 = vpop.permute.xlu1 %4764 }
 0x4b5   : > { %v4858_v31 = vsel %vm2322_vm3, %v4634_v51, %v4765_v63  ;;  %v3578_v14 = vadd.f32 %v12043_v16, %v3465_v33  ;;  %v3645_v33 = vld [vmem:[#allocation2 + $0x180] sm:$0xff] }
 0x4b6   : > { %v4274_v53 = vadd.f32 %v11913_v12, %v4238_v19  ;;  %4088 = vmatmul.f32.gmra.mxu3 %v3867_v2  ;;  %5031 = vmatmul.f32.gmra.mxu1 %v4858_v31  ;;  %v14660_v19 = vld [vmem:[#allocation21_spill] sm:$0xff] }
 0x4b8   : > { %v4306_v40 = vmax.f32 %v4274_v53, 0.0  ;;  %8826 = vmatmul.msk.f32.gmra.mxu0 %vm2322_vm3, %v4710_v60  ;;  %v4636_v53 = vld [vmem:[#allocation2 + $0x48] sm:$0xff] }
 0x4b9   : > { %v4068_v62 = vpop.f32.mrf.mxu3  ;;  %v4712_v41 = vld [vmem:[#allocation2 + $0xda] sm:$0xff]  ;;  %v4713_v18 = vld [vmem:[#allocation2 + $0xe2] sm:$0xff] }
 0x4ba   : > { %v12269_v1 = vld [vmem:[#allocation2 + $0xe1] sm:$0xff]  ;;  %4338 = vst.msk [vmem:[#allocation2 + $0xf1] sm:$0xff] %vm2322_vm3, %v4306_v40  ;;  %v4182_v10 = vadd.f32 %v12116_v27, %v4068_v62  ;;  %v4860_v40 = vsel %vm2322_vm3, %v4636_v53, %v4769_v21  ;;  %v3613_v21 = vpop.f32.mrf.mxu2 }
 0x4bb   : > { %4794 = vrot.lane.b32.xlu1 %v12269_v1, %s9409_s28  ;;  %8794 = vmatmul.msk.f32.gmra.mxu2 %vm2322_vm3, %v4712_v41  ;;  %v12279_v60 = vpop.f32.mrf.mxu1  ;;  %v12302_v9 = vpop.f32.mrf.mxu0 }
 0x4bc   : > { %v4239_v54 = vadd.f32 %v4182_v10, %v3578_v14  ;;  %v4767_v28 = vpop.permute.xlu0 %4766  ;;  %v3800_v16 = vpop.permute.xlu1 %3799 }
 0x4bd   : > { %v4859_v44 = vsel %vm2322_vm3, %v4635_v37, %v4767_v28  ;;  %v3868_v57 = vsel %vm2322_vm3, %v3644_v34, %v3800_v16  ;;  %v3804_v37 = vpop.permute.xlu2 %3803  ;;  %v4623_v16 = vld [vmem:[%s14555_s5 + $0x78] sm:$0xff] }
 0x4be   : > { %v4275_v27 = vadd.f32 %v11913_v12, %v4239_v54  ;;  %4091 = vmatmul.f32.gmra.mxu3 %v3868_v57  ;;  %5034 = vmatmul.f32.gmra.mxu1 %v4859_v44  ;;  %v3292_v54 = vadd.f32 %v14662_v17, %v14661_v25  ;;  %v8865_v34 = vld [vmem:[%s14555_s5 + $0x238] sm:$0xff]  ;;  %v4638_v17 = vld [vmem:[#allocation2 + $0x60] sm:$0xff] }
 0x4bf   : > { %v14664_v44 = vld [vmem:[#allocation23_spill] sm:$0xff]  ;;  %5331 = vmatpush.msrb.mxu3 %v4623_v16  ;;  %6055 = vmatpush.msra.mxu2 %v8865_v34 }
 0x4c0   : > { %v4307_v29 = vmax.f32 %v4275_v27, 0.0  ;;  %8827 = vmatmul.msk.f32.gmra.mxu0 %vm2322_vm3, %v4711_v58  ;;  %v14659_v58 = vld [vmem:[#allocation43_spill] sm:$0xff] }
 0x4c1   : > { %v4071_v36 = vpop.f32.mrf.mxu3  ;;  %v12288_v23 = vld [vmem:[#allocation2 + $0xf1] sm:$0xff]  ;;  %v3262_v63 = vadd.f32 %v14660_v19, %v14659_v58 }
 0x4c2   : > { %4339 = vst.msk [vmem:[#allocation2 + $0xf9] sm:$0xff] %vm2322_vm3, %v4307_v29  ;;  %v4185_v20 = vadd.f32 %v12136_v6, %v4071_v36  ;;  %4796 = vrot.lane.b32.xlu2 %v12288_v23, %s9409_s28  ;;  %v4637_v29 = vld [vmem:[#allocation2 + $0x50] sm:$0xff]  ;;  %v3646_v36 = vld [vmem:[#allocation2 + $0x188] sm:$0xff]  ;;  %v12355_v16 = vpop.f32.mrf.mxu2 }
 0x4c3   : > { %8795 = vmatmul.msk.f32.gmra.mxu2 %vm2322_vm3, %v4713_v18  ;;  %v12298_v52 = vpop.f32.mrf.mxu1  ;;  %v3471_v2 = vadd.f32 %v12129_v48, %v3262_v63  ;;  %v12329_v58 = vpop.f32.mrf.mxu0 }
 0x4c4   : > { %v4240_v39 = vadd.f32 %v4185_v20, %v3581_v35  ;;  %v3802_v51 = vpop.permute.xlu0 %3801 }
 0x4c5   : > { %v3869_v6 = vsel %vm2322_vm3, %v3645_v33, %v3802_v51  ;;  %v3584_v28 = vadd.f32 %v12085_v42, %v3471_v2  ;;  %v14663_v42 = vld [vmem:[#allocation44_spill] sm:$0xff] }
 0x4c6   : > { %v4276_v31 = vadd.f32 %v11913_v12, %v4240_v39  ;;  %4094 = vmatmul.f32.gmra.mxu3 %v3869_v6  ;;  %5037 = vmatmul.f32.gmra.mxu1 %v4860_v40  ;;  %v3265_v8 = vadd.f32 %v14664_v44, %v14663_v42  ;;  %v3870_v39 = vsel %vm2322_vm3, %v3646_v36, %v3804_v37  ;;  %v14665_v40 = vld [vmem:[#allocation45_spill] sm:$0xff]  ;;  %v4622_v42 = vld [vmem:[%s14555_s5 + $0x70] sm:$0xff] }
 0x4c7   : > { %5332 = vmatpush.msrb.mxu3 %v4622_v42 }
 0x4c8   : > { %v4308_v62 = vmax.f32 %v4276_v31, 0.0  ;;  %8828 = vmatmul.msk.f32.gmra.mxu0 %vm2322_vm3, %v4712_v41  ;;  %v3474_v20 = vadd.f32 %v12151_v56, %v3265_v8  ;;  %v3647_v31 = vld [vmem:[#allocation2 + $0x198] sm:$0xff] }
 0x4c9   : > { %v4074_v14 = vpop.f32.mrf.mxu3  ;;  %v12309_v10 = vld [vmem:[#allocation2 + $0xf9] sm:$0xff] }
 0x4ca   : > { %v4714_v0 = vld [vmem:[#allocation2 + $0xf2] sm:$0xff]  ;;  %4340 = vst.msk [vmem:[#allocation2 + $0x109] sm:$0xff] %vm2322_vm3, %v4308_v62  ;;  %v4188_v48 = vadd.f32 %v12168_v59, %v4074_v14  ;;  %4798 = vrot.lane.b32.xlu0 %v12309_v10, %s9409_s28  ;;  %v3587_v53 = vadd.f32 %v12109_v32, %v3474_v20  ;;  %v4715_v2 = vld [vmem:[#allocation2 + $0xfa] sm:$0xff]  ;;  %v14666_v62 = vld [vmem:[#allocation25_spill] sm:$0xff] }
 0x4cb   : > { %8796 = vmatmul.msk.f32.gmra.mxu2 %vm2322_vm3, %v4714_v0  ;;  %v3500_v41 = vpop.f32.mrf.mxu1  ;;  %v3268_v14 = vadd.f32 %v14666_v62, %v14665_v40  ;;  %v12389_v40 = vpop.f32.mrf.mxu2 }
 0x4cc   : > { %v4241_v27 = vadd.f32 %v4188_v48, %v3584_v28  ;;  %v3501_v59 = vadd.f32 %v3500_v41, %v3292_v54  ;;  %v12353_v41 = vpop.f32.mrf.mxu0 }
 0x4cd   : > { %v4771_v57 = vpop.permute.xlu1 %4770  ;;  %v3477_v28 = vadd.f32 %v12176_v22, %v3268_v14 }
 0x4ce   : > { %v4861_v35 = vsel %vm2322_vm3, %v4637_v29, %v4771_v57  ;;  %v4277_v19 = vadd.f32 %v11913_v12, %v4241_v27  ;;  %v12332_v63 = vadd.f32 %v3613_v21, %v3501_v59  ;;  %4097 = vmatmul.f32.gmra.mxu3 %v3870_v39  ;;  %v3648_v59 = vld [vmem:[#allocation2 + $0x1a0] sm:$0xff]  ;;  %v14667_v57 = vld [vmem:[#allocation46_spill] sm:$0xff] }
 0x4cf   : > { %5040 = vmatmul.f32.gmra.mxu1 %v4861_v35  ;;  %v14668_v29 = vld [vmem:[#allocation26_spill] sm:$0xff] }
 0x4d0   : > { %v4309_v51 = vmax.f32 %v4277_v19, 0.0  ;;  %8829 = vmatmul.msk.f32.gmra.mxu0 %vm2322_vm3, %v4713_v18  ;;  %v8857_v18 = vld [vmem:[%s14555_s5 + $0x1f8] sm:$0xff]  ;;  %v3271_v21 = vadd.f32 %v14668_v29, %v14667_v57  ;;  %v4639_v19 = vld [vmem:[#allocation2 + $0x68] sm:$0xff] }
 0x4d1   : > { %v4077_v33 = vpop.f32.mrf.mxu3  ;;  %v12336_v6 = vld [vmem:[#allocation2 + $0x109] sm:$0xff]  ;;  %5934 = vmatpush.msra.mxu1 %v8857_v18 }
 0x4d2   : > { %4341 = vst.msk [vmem:[#allocation2 + $0x111] sm:$0xff] %vm2322_vm3, %v4309_v51  ;;  %v4191_v56 = vadd.f32 %v12186_v61, %v4077_v33  ;;  %4800 = vrot.lane.b32.xlu1 %v12336_v6, %s9409_s28 }
 0x4d3   : > { %8797 = vmatmul.msk.f32.gmra.mxu2 %vm2322_vm3, %v4715_v2 }
 0x4d4   : > { %v4242_v25 = vadd.f32 %v4191_v56, %v3587_v53  ;;  %v4773_v32 = vpop.permute.xlu0 %4772  ;;  %v8856_v53 = vld [vmem:[%s14555_s5 + $0x1f0] sm:$0xff]  ;;  %v12387_v18 = vpop.f32.mrf.mxu0 }
 0x4d5   : > { %v3806_v54 = vpop.permute.xlu1 %3805  ;;  %v4862_v61 = vsel %vm2322_vm3, %v4638_v17, %v4773_v32  ;;  %5935 = vmatpush.msra.mxu1 %v8856_v53  ;;  %v4640_v32 = vld [vmem:[#allocation2 + $0x78] sm:$0xff] }
 0x4d6   : > { %v4278_v48 = vadd.f32 %v11913_v12, %v4242_v25  ;;  %v3871_v37 = vsel %vm2322_vm3, %v3647_v31, %v3806_v54  ;;  %v3590_v12 = vadd.f32 %v12133_v46, %v3477_v28  ;;  %v3480_v46 = vadd.f32 %v12192_v30, %v3271_v21  ;;  %v4384_v54 = vld [vmem:[#allocation2 + $0x1] sm:$0xff] }
 0x4d7   : > { %4100 = vmatmul.f32.gmra.mxu3 %v3871_v37  ;;  %5043 = vmatmul.f32.gmra.mxu1 %v4862_v61  ;;  %v4621_v61 = vld [vmem:[%s14555_s5 + $0x68] sm:$0xff] }
 0x4d8   : > { %v4310_v34 = vmax.f32 %v4278_v48, 0.0  ;;  %8830 = vmatmul.msk.f32.gmra.mxu0 %vm2322_vm3, %v4714_v0  ;;  %v4775_v0 = vpop.permute.xlu2 %4774  ;;  %v3593_v31 = vadd.f32 %v12163_v50, %v3480_v46  ;;  %5333 = vmatpush.msrb.mxu3 %v4621_v61  ;;  %v8863_v61 = vld [vmem:[%s14555_s5 + $0x228] sm:$0xff] }
 0x4d9   : > { %v4080_v44 = vpop.f32.mrf.mxu3  ;;  %v12361_v8 = vld [vmem:[#allocation2 + $0x111] sm:$0xff]  ;;  %v4863_v51 = vsel %vm2322_vm3, %v4639_v19, %v4775_v0  ;;  %v8855_v0 = vld [vmem:[%s14555_s5 + $0x1e8] sm:$0xff] }
 0x4da   : > { %v4716_v22 = vld [vmem:[#allocation2 + $0x10a] sm:$0xff]  ;;  %4342 = vst.msk [vmem:[#allocation2 + $0x121] sm:$0xff] %vm2322_vm3, %v4310_v34  ;;  %v4194_v27 = vadd.f32 %v12210_v24, %v4080_v44  ;;  %4802 = vrot.lane.b32.xlu2 %v12361_v8, %s9409_s28  ;;  %v12376_v24 = vld [vmem:[%s14554_s4] ss:$0 sm:$0xff]  ;;  %5936 = vmatpush.msra.mxu1 %v8855_v0 }
 0x4db   : > { %8798 = vmatmul.msk.f32.gmra.mxu2 %vm2322_vm3, %v4716_v22 }
 0x4dc   : > { %v4243_v36 = vadd.f32 %v4194_v27, %v3590_v12  ;;  %v3808_v35 = vpop.permute.xlu0 %3807  ;;  %v12410_v44 = vpop.f32.mrf.mxu0  ;;  %v4641_v27 = vld [vmem:[#allocation2 + $0x80] sm:$0xff] }
 0x4dd   : > { %v3872_v20 = vsel %vm2322_vm3, %v3648_v59, %v3808_v35  ;;  %v12412_v12 = vpop.f32.mrf.mxu2  ;;  %v4385_v59 = vld [vmem:[#allocation2 + $0x9] sm:$0xff] }
 0x4de   : > { %v4279_v39 = vadd.f32 %v12376_v24, %v4243_v36  ;;  %v4642_v35 = vld [vmem:[#allocation2 + $0x90] sm:$0xff] }
 0x4df   : > { %4103 = vmatmul.f32.gmra.mxu3 %v3872_v20  ;;  %5046 = vmatmul.f32.gmra.mxu1 %v4863_v51 }
 0x4e0   : > { %v4311_v33 = vmax.f32 %v4279_v39, 0.0  ;;  %8831 = vmatmul.msk.f32.gmra.mxu0 %vm2322_vm3, %v4715_v2  ;;  %v4717_v2 = vld [vmem:[#allocation2 + $0x112] sm:$0xff]  ;;  %v4779_v42 = vpop.permute.xlu2 %4778  ;;  %v4620_v39 = vld [vmem:[%s14555_s5 + $0x60] sm:$0xff] }
 0x4e1   : > { %v4083_v56 = vpop.f32.mrf.mxu3  ;;  %v12384_v30 = vld [vmem:[#allocation2 + $0x121] sm:$0xff]  ;;  %5334 = vmatpush.msrb.mxu3 %v4620_v39 }
 0x4e2   : > { %4343 = vst.msk [vmem:[#allocation2 + $0x129] sm:$0xff] %vm2322_vm3, %v4311_v33  ;;  %v4197_v62 = vadd.f32 %v12228_v7, %v4083_v56  ;;  %4804 = vrot.lane.b32.xlu0 %v12384_v30, %s9409_s28  ;;  %v8864_v7 = vld [vmem:[%s14555_s5 + $0x230] sm:$0xff]  ;;  %v4643_v33 = vld [vmem:[#allocation2 + $0x98] sm:$0xff]  ;;  %v8854_v56 = vld [vmem:[%s14555_s5 + $0x1e0] sm:$0xff] }
 0x4e3   : > { %8799 = vmatmul.msk.f32.gmra.mxu2 %vm2322_vm3, %v4717_v2  ;;  %5937 = vmatpush.msra.mxu1 %v8854_v56  ;;  %v14669_v56 = vld [vmem:[#allocation48_spill] sm:$0xff] }
 0x4e4   : > { %v4244_v14 = vadd.f32 %v4197_v62, %v3593_v31  ;;  %v4777_v25 = vpop.permute.xlu1 %4776  ;;  %6056 = vmatpush.msra.mxu2 %v8864_v7  ;;  %v12426_v19 = vpop.f32.mrf.mxu0 }
 0x4e5   : > { %v4864_v17 = vsel %vm2322_vm3, %v4640_v32, %v4777_v25  ;;  %v12428_v46 = vpop.f32.mrf.mxu2  ;;  %v4619_v32 = vld [vmem:[%s14555_s5 + $0x58] sm:$0xff] }
 0x4e6   : > { %v4280_v50 = vadd.f32 %v12376_v24, %v4244_v14  ;;  %v4644_v14 = vld [vmem:[#allocation2 + $0xa8] sm:$0xff]  ;;  %5335 = vmatpush.msrb.mxu3 %v4619_v32  ;;  %6057 = vmatpush.msra.mxu2 %v8863_v61 }
 0x4e7   : > { %5049 = vmatmul.f32.gmra.mxu1 %v4864_v17 }
 0x4e8   : > { %v4312_v28 = vmax.f32 %v4280_v50, 0.0  ;;  %8832 = vmatmul.msk.f32.gmra.mxu0 %vm2322_vm3, %v4716_v22  ;;  %v4865_v22 = vsel %vm2322_vm3, %v4641_v27, %v4779_v42 }
 0x4e9   : > { %v4718_v48 = vld [vmem:[#allocation2 + $0x122] sm:$0xff]  ;;  %v4719_v29 = vld [vmem:[#allocation2 + $0x12a] sm:$0xff] }
 0x4ea   : > { %v12405_v37 = vld [vmem:[#allocation2 + $0x129] sm:$0xff]  ;;  %4344 = vst.msk [vmem:[#allocation2 + $0x139] sm:$0xff] %vm2322_vm3, %v4312_v28 }
 0x4eb   : > { %v9130_v34 = vpack.i.bf16 %v12405_v37, %v4384_v54  ;;  %8800 = vmatmul.msk.f32.gmra.mxu2 %vm2322_vm3, %v4718_v48  ;;  %v4645_v54 = vld [vmem:[#allocation2 + $0xb0] sm:$0xff] }
 0x4ec   : > { %v12438_v31 = vpop.f32.mrf.mxu0 }
 0x4ed   : > { %9131 = vrot.lane.b32.xlu1 %v9130_v34, %s9409_s28  ;;  %v12440_v62 = vpop.f32.mrf.mxu2  ;;  %v4646_v34 = vld [vmem:[#allocation2 + $0xc0] sm:$0xff] }
 0x4ef   : > { %5052 = vmatmul.f32.gmra.mxu1 %v4865_v22  ;;  %v8853_v22 = vld [vmem:[%s14555_s5 + $0x1d8] sm:$0xff] }
 0x4f0   : > { %8833 = vmatmul.msk.f32.gmra.mxu0 %vm2322_vm3, %v4717_v2  ;;  %v4785_v2 = vpop.permute.xlu2 %4784  ;;  %5938 = vmatpush.msra.mxu1 %v8853_v22  ;;  %v14673_v22 = vld [vmem:[#allocation30_spill] sm:$0xff] }
 0x4f1   : > { %v12420_v57 = vld [vmem:[#allocation2 + $0x139] sm:$0xff]  ;;  %v4868_v25 = vsel %vm2322_vm3, %v4644_v14, %v4785_v2 }
 0x4f2   : > { %v9135_v21 = vpack.i.bf16 %v12420_v57, %v4385_v59  ;;  %v4647_v59 = vld [vmem:[#allocation2 + $0xc8] sm:$0xff]  ;;  %v14670_v2 = vld [vmem:[#allocation28_spill] sm:$0xff] }
 0x4f3   : > { %8801 = vmatmul.msk.f32.gmra.mxu2 %vm2322_vm3, %v4719_v29  ;;  %v3274_v14 = vadd.f32 %v14670_v2, %v14669_v56 }
 0x4f4   : > { %9136 = vrot.lane.b32.xlu2 %v9135_v21, %s9409_s28  ;;  %v4781_v36 = vpop.permute.xlu0 %4780  ;;  %v4618_v21 = vld [vmem:[%s14555_s5 + $0x50] sm:$0xff] }
 0x4f5   : > { %v4866_v20 = vsel %vm2322_vm3, %v4642_v35, %v4781_v36  ;;  %v12447_v17 = vpop.f32.mrf.mxu2  ;;  %v4648_v35 = vld [vmem:[#allocation2 + $0xd8] sm:$0xff]  ;;  %5336 = vmatpush.msrb.mxu3 %v4618_v21  ;;  %v3483_v32 = vadd.f32 %v12206_v5, %v3274_v14  ;;  %v4616_v5 = vld [vmem:[%s14555_s5 + $0x40] sm:$0xff]  ;;  %v4650_v21 = vld [vmem:[#allocation2 + $0xf0] sm:$0xff] }
 0x4f6   : > { %v8851_v14 = vld [vmem:[%s14555_s5 + $0x1c8] sm:$0xff] }
 0x4f7   : > { %5055 = vmatmul.f32.gmra.mxu1 %v4866_v20 }
 0x4f8   : > { %8834 = vmatmul.msk.f32.gmra.mxu0 %vm2322_vm3, %v4718_v48 }
 0x4fd   : > { %v4783_v51 = vpop.permute.xlu1 %4782  ;;  %v12453_v28 = vpop.f32.mrf.mxu2 }
 0x4fe   : > { %v4867_v53 = vsel %vm2322_vm3, %v4643_v33, %v4783_v51  ;;  %v8852_v51 = vld [vmem:[%s14555_s5 + $0x1d0] sm:$0xff] }
 0x4ff   : > { %5058 = vmatmul.f32.gmra.mxu1 %v4867_v53  ;;  %v4649_v53 = vld [vmem:[#allocation2 + $0xe0] sm:$0xff] }
 0x500   : > { %8835 = vmatmul.msk.f32.gmra.mxu0 %vm2322_vm3, %v4719_v29  ;;  %5939 = vmatpush.msra.mxu1 %v8852_v51  ;;  %v12499_v51 = vpop.f32.mrf.mxu0 }
 0x502   : > { %5940 = vmatpush.msra.mxu1 %v8851_v14  ;;  %v14678_v14 = vld [vmem:[#allocation34_spill] sm:$0xff] }
 0x504   : > { %v4791_v27 = vpop.permute.xlu2 %4790 }
 0x505   : > { %v12459_v0 = vpop.f32.mrf.mxu2  ;;  %v4871_v29 = vsel %vm2322_vm3, %v4647_v59, %v4791_v27  ;;  %v14672_v27 = vld [vmem:[#allocation49_spill] sm:$0xff] }
 0x506   : > { %v3277_v59 = vadd.f32 %v14673_v22, %v14672_v27  ;;  %v4610_v22 = vld [vmem:[%s14555_s5 + $0x10] sm:$0xff] }
 0x507   : > { %5061 = vmatmul.f32.gmra.mxu1 %v4868_v25 }
 0x50c   : > { %v4787_v50 = vpop.permute.xlu0 %4786 }
 0x50d   : > { %v4869_v7 = vsel %vm2322_vm3, %v4645_v54, %v4787_v50  ;;  %v12466_v39 = vpop.f32.mrf.mxu2  ;;  %v4617_v50 = vld [vmem:[%s14555_s5 + $0x48] sm:$0xff] }
 0x50e   : > { %5337 = vmatpush.msrb.mxu3 %v4617_v50 }
 0x50f   : > { %5064 = vmatmul.f32.gmra.mxu1 %v4869_v7  ;;  %v3596_v7 = vadd.f32 %v12183_v55, %v3483_v32  ;;  %v4615_v55 = vld [vmem:[%s14555_s5 + $0x38] sm:$0xff] }
 0x510   : > { %5338 = vmatpush.msrb.mxu3 %v4616_v5 }
 0x512   : > { %5339 = vmatpush.msrb.mxu3 %v4615_v55 }
 0x514   : > { %v4789_v48 = vpop.permute.xlu1 %4788 }
 0x515   : > { %v4870_v42 = vsel %vm2322_vm3, %v4646_v34, %v4789_v48  ;;  %v12478_v54 = vpop.f32.mrf.mxu2 }
 0x516   : > { %14671 = vst [vmem:[#allocation18_spill] sm:$0xff] %v12478_v54 }
 0x517   : > { %5067 = vmatmul.f32.gmra.mxu1 %v4870_v42  ;;  %v8862_v42 = vld [vmem:[%s14555_s5 + $0x220] sm:$0xff] }
 0x518   : > { %6058 = vmatpush.msra.mxu2 %v8862_v42  ;;  %v4611_v42 = vld [vmem:[%s14555_s5 + $0x18] sm:$0xff] }
 0x51c   : > { %v4797_v48 = vpop.permute.xlu2 %4796 }
 0x51d   : > { %v12513_v32 = vpop.f32.mrf.mxu2 }
 0x51e   : > { %14674 = vst [vmem:[#allocation6_spill] sm:$0xff] %v12513_v32  ;;  %v12983_v32 = vld [vmem:[#allocation2 + $0xf8] sm:$0xff] }
 0x51f   : > { %5070 = vmatmul.f32.gmra.mxu1 %v4871_v29 }
 0x524   : > { %v4793_v36 = vpop.permute.xlu0 %4792 }
 0x525   : > { %v4872_v20 = vsel %vm2322_vm3, %v4648_v35, %v4793_v36  ;;  %v3486_v36 = vadd.f32 %v12220_v43, %v3277_v59 }
 0x527   : > { %5073 = vmatmul.f32.gmra.mxu1 %v4872_v20  ;;  %v4614_v20 = vld [vmem:[%s14555_s5 + $0x30] sm:$0xff]  ;;  %v3599_v2 = vadd.f32 %v12203_v11, %v3486_v36  ;;  %v14676_v11 = vld [vmem:[#allocation32_spill] sm:$0xff] }
 0x528   : > { %5340 = vmatpush.msrb.mxu3 %v4614_v20  ;;  %v4386_v36 = vld [vmem:[#allocation2 + $0x19] sm:$0xff]  ;;  %v12534_v20 = vpop.f32.mrf.mxu0 }
 0x52d   : > { %v4795_v33 = vpop.permute.xlu1 %4794 }
 0x52e   : > { %v4873_v25 = vsel %vm2322_vm3, %v4649_v53, %v4795_v33  ;;  %v4613_v53 = vld [vmem:[%s14555_s5 + $0x28] sm:$0xff] }
 0x52f   : > { %5076 = vmatmul.f32.gmra.mxu1 %v4873_v25  ;;  %5341 = vmatpush.msrb.mxu3 %v4613_v53  ;;  %v4612_v25 = vld [vmem:[%s14555_s5 + $0x20] sm:$0xff] }
 0x531   : > { %v4086_v61 = vpop.f32.mrf.mxu3  ;;  %5342 = vmatpush.msrb.mxu3 %v4612_v25 }
 0x532   : > { %v4200_v34 = vadd.f32 %v12247_v3, %v4086_v61  ;;  %v4874_v3 = vsel %vm2322_vm3, %v4650_v21, %v4797_v48  ;;  %v4651_v61 = vld [vmem:[#allocation2 + $0xf8] sm:$0xff]  ;;  %v12529_v21 = vpop.f32.mrf.mxu1 }
 0x533   : > { %5343 = vmatpush.msrb.mxu3 %v4611_v42  ;;  %v4387_v42 = vld [vmem:[#allocation2 + $0x21] sm:$0xff] }
 0x534   : > { %v4245_v29 = vadd.f32 %v4200_v34, %v3596_v7  ;;  %v14675_v7 = vld [vmem:[#allocation51_spill] sm:$0xff] }
 0x535   : > { %v3280_v48 = vadd.f32 %v14676_v11, %v14675_v7  ;;  %5344 = vmatpush.msrb.mxu3 %v4610_v22  ;;  %v4803_v22 = vpop.permute.xlu2 %4802 }
 0x536   : > { %v4281_v35 = vadd.f32 %v12376_v24, %v4245_v29  ;;  %v4609_v29 = vld [vmem:[%s14555_s5 + $0x8] sm:$0xff] }
 0x537   : > { %5079 = vmatmul.f32.gmra.mxu1 %v4874_v3  ;;  %v3489_v5 = vadd.f32 %v12237_v15, %v3280_v48  ;;  %5345 = vmatpush.msrb.mxu3 %v4609_v29  ;;  %v8850_v29 = vld [vmem:[%s14555_s5 + $0x1c0] sm:$0xff] }
 0x538   : > { %v4313_v33 = vmax.f32 %v4281_v35, 0.0  ;;  %5941 = vmatpush.msra.mxu1 %v8850_v29 }
 0x539   : > { %v4089_v56 = vpop.f32.mrf.mxu3  ;;  %v3602_v15 = vadd.f32 %v12224_v45, %v3489_v5  ;;  %v14677_v45 = vld [vmem:[#allocation53_spill] sm:$0xff] }
 0x53a   : > { %4345 = vst.msk [vmem:[#allocation2 + $0x141] sm:$0xff] %vm2322_vm3, %v4313_v33  ;;  %v4203_v43 = vadd.f32 %v12272_v49, %v4089_v56  ;;  %v4608_v56 = vld [vmem:[%s14555_s5] sm:$0xff]  ;;  %v3283_v25 = vadd.f32 %v14678_v14, %v14677_v45 }
 0x53b   : > { %5346 = vmatpush.msrb.mxu3 %v4608_v56 }
 0x53c   : > { %v4799_v50 = vpop.permute.xlu0 %4798  ;;  %v4246_v34 = vadd.f32 %v4203_v43, %v3599_v2  ;;  %v4652_v43 = vld [vmem:[#allocation2 + $0x108] sm:$0xff]  ;;  %v3492_v7 = vadd.f32 %v12258_v4, %v3283_v25 }
 0x53d   : > { %v4875_v49 = vsel %vm2322_vm3, %v4651_v61, %v4799_v50  ;;  %v12548_v61 = vpop.f32.mrf.mxu2 }
 0x53e   : > { %v4282_v27 = vadd.f32 %v12376_v24, %v4246_v34  ;;  %14679 = vst [vmem:[#allocation60_spill] sm:$0xff] %v12548_v61  ;;  %v12956_v61 = vld [vmem:[#allocation2 + $0xe0] sm:$0xff] }
 0x53f   : > { %5082 = vmatmul.f32.gmra.mxu1 %v4875_v49 }
 0x540   : > { %v4314_v59 = vmax.f32 %v4282_v27, 0.0  ;;  %v3605_v27 = vadd.f32 %v12245_v26, %v3492_v7  ;;  %v14681_v26 = vld [vmem:[#allocation36_spill] sm:$0xff] }
 0x541   : > { %v4092_v55 = vpop.f32.mrf.mxu3  ;;  %v4720_v3 = vld [vmem:[#allocation2 + $0x13a] sm:$0xff]  ;;  %v4721_v49 = vld [vmem:[#allocation2 + $0x142] sm:$0xff] }
 0x542   : > { %v12531_v35 = vld [vmem:[#allocation2 + $0x141] sm:$0xff]  ;;  %4346 = vst.msk [vmem:[#allocation2 + $0x151] sm:$0xff] %vm2322_vm3, %v4314_v59  ;;  %v4206_v33 = vadd.f32 %v12302_v9, %v4092_v55  ;;  %8802 = vmatmul.msk.f32.gmra.mxu2 %vm2322_vm3, %v4720_v3  ;;  %8836 = vmatmul.msk.f32.gmra.mxu0 %vm2322_vm3, %v4720_v3  ;;  %v12563_v55 = vpop.f32.mrf.mxu1 }
 0x543   : > { %v9140_v53 = vpack.i.bf16 %v12531_v35, %v4386_v36  ;;  %v14680_v3 = vld [vmem:[#allocation56_spill] sm:$0xff] }
 0x544   : > { %v4801_v2 = vpop.permute.xlu1 %4800  ;;  %v4247_v50 = vadd.f32 %v4206_v33, %v3602_v15  ;;  %v3286_v36 = vadd.f32 %v14681_v26, %v14680_v3  ;;  %v12567_v15 = vpop.f32.mrf.mxu0 }
 0x545   : > { %9141 = vrot.lane.b32.xlu0 %v9140_v53, %s9409_s28  ;;  %v4876_v9 = vsel %vm2322_vm3, %v4652_v43, %v4801_v2  ;;  %v8861_v53 = vld [vmem:[%s14555_s5 + $0x218] sm:$0xff]  ;;  %v12576_v45 = vpop.f32.mrf.mxu2 }
 0x546   : > { %v4283_v11 = vadd.f32 %v12376_v24, %v4247_v50  ;;  %6059 = vmatpush.msra.mxu2 %v8861_v53  ;;  %v3495_v2 = vadd.f32 %v12279_v60, %v3286_v36  ;;  %14682 = vst [vmem:[#allocation47_spill] sm:$0xff] %v12576_v45 }
 0x547   : > { %5085 = vmatmul.f32.gmra.mxu1 %v4876_v9  ;;  %v12578_v9 = vld [vmem:[#allocation2 + $0x31] sm:$0xff] }
 0x548   : > { %v4315_v48 = vmax.f32 %v4283_v11, 0.0  ;;  %v3608_v11 = vadd.f32 %v12267_v47, %v3495_v2  ;;  %v14684_v47 = vld [vmem:[#allocation38_spill] sm:$0xff] }
 0x549   : > { %v4095_v34 = vpop.f32.mrf.mxu3  ;;  %v12552_v5 = vld [vmem:[#allocation2 + $0x151] sm:$0xff] }
 0x54a   : > { %4347 = vst.msk [vmem:[#allocation2 + $0x159] sm:$0xff] %vm2322_vm3, %v4315_v48  ;;  %v4209_v59 = vadd.f32 %v12329_v58, %v4095_v34  ;;  %8803 = vmatmul.msk.f32.gmra.mxu2 %vm2322_vm3, %v4721_v49  ;;  %8837 = vmatmul.msk.f32.gmra.mxu0 %vm2322_vm3, %v4721_v49  ;;  %v9145_v4 = vpack.i.bf16 %v12552_v5, %v4387_v42  ;;  %v4653_v58 = vld [vmem:[#allocation2 + $0x110] sm:$0xff]  ;;  %v8849_v34 = vld [vmem:[%s14555_s5 + $0x1b8] sm:$0xff]  ;;  %v4654_v42 = vld [vmem:[#allocation2 + $0x120] sm:$0xff] }
 0x54b   : > { %v4877_v56 = vsel %vm2322_vm3, %v4653_v58, %v4803_v22  ;;  %5942 = vmatpush.msra.mxu1 %v8849_v34 }
 0x54c   : > { %v4248_v33 = vadd.f32 %v4209_v59, %v3605_v27  ;;  %9146 = vrot.lane.b32.xlu1 %v9145_v4, %s9409_s28  ;;  %v14683_v27 = vld [vmem:[#allocation59_spill] sm:$0xff]  ;;  %v12596_v4 = vpop.f32.mrf.mxu1  ;;  %v12599_v3 = vpop.f32.mrf.mxu0 }
 0x54d   : > { %v3289_v22 = vadd.f32 %v14684_v47, %v14683_v27  ;;  %v4655_v27 = vld [vmem:[#allocation2 + $0x128] sm:$0xff] }
 0x54e   : > { %v4284_v43 = vadd.f32 %v12376_v24, %v4248_v33  ;;  %v12602_v33 = vpop.f32.mrf.mxu2 }
 0x54f   : > { %5088 = vmatmul.f32.gmra.mxu1 %v4877_v56  ;;  %v3498_v29 = vadd.f32 %v12298_v52, %v3289_v22  ;;  %14685 = vst [vmem:[#allocation55_spill] sm:$0xff] %v12602_v33  ;;  %v12604_v56 = vld [vmem:[#allocation2 + $0x39] sm:$0xff] }
 0x550   : > { %v4316_v14 = vmax.f32 %v4284_v43, 0.0 }
 0x551   : > { %v4098_v25 = vpop.f32.mrf.mxu3  ;;  %v4722_v50 = vld [vmem:[#allocation2 + $0x152] sm:$0xff]  ;;  %v4723_v53 = vld [vmem:[#allocation2 + $0x15a] sm:$0xff]  ;;  %v3611_v43 = vadd.f32 %v12295_v13, %v3498_v29 }
 0x552   : > { %v12580_v7 = vld [vmem:[#allocation2 + $0x159] sm:$0xff]  ;;  %4348 = vst.msk [vmem:[#allocation2 + $0x169] sm:$0xff] %vm2322_vm3, %v4316_v14  ;;  %v4212_v48 = vadd.f32 %v12353_v41, %v4098_v25  ;;  %8804 = vmatmul.msk.f32.gmra.mxu2 %vm2322_vm3, %v4722_v50  ;;  %8838 = vmatmul.msk.f32.gmra.mxu0 %vm2322_vm3, %v4722_v50  ;;  %v8860_v13 = vld [vmem:[%s14555_s5 + $0x210] sm:$0xff] }
 0x553   : > { %v9150_v60 = vpack.i.bf16 %v12580_v7, %v12578_v9  ;;  %6060 = vmatpush.msra.mxu2 %v8860_v13  ;;  %v8858_v29 = vld [vmem:[%s14555_s5 + $0x200] sm:$0xff] }
 0x554   : > { %v4805_v49 = vpop.permute.xlu0 %4804  ;;  %v4249_v59 = vadd.f32 %v4212_v48, %v3608_v11  ;;  %v4352_v11 = vld [vmem:[#allocation2] sm:$0xff]  ;;  %v12628_v47 = vpop.f32.mrf.mxu0 }
 0x555   : > { %9151 = vrot.lane.b32.xlu2 %v9150_v60, %s9409_s28  ;;  %v4878_v41 = vsel %vm2322_vm3, %v4654_v42, %v4805_v49  ;;  %v8848_v49 = vld [vmem:[%s14555_s5 + $0x1b0] sm:$0xff]  ;;  %v12626_v42 = vpop.f32.mrf.mxu1 }
 0x556   : > { %v4285_v26 = vadd.f32 %v12376_v24, %v4249_v59  ;;  %5943 = vmatpush.msra.mxu1 %v8848_v49 }
 0x557   : > { %5091 = vmatmul.f32.gmra.mxu1 %v4878_v41 }
 0x558   : > { %v4317_v36 = vmax.f32 %v4285_v26, 0.0  ;;  %v9137_v26 = vpop.permute.xlu2 %9136 }
 0x559   : > { %v12606_v2 = vld [vmem:[#allocation2 + $0x169] sm:$0xff] }
 0x55a   : > { %v4101_v58 = vpop.f32.mrf.mxu3  ;;  %4349 = vst.msk [vmem:[#allocation2 + $0x171] sm:$0xff] %vm2322_vm3, %v4317_v36  ;;  %8805 = vmatmul.msk.f32.gmra.mxu2 %vm2322_vm3, %v4723_v53  ;;  %8839 = vmatmul.msk.f32.gmra.mxu0 %vm2322_vm3, %v4723_v53  ;;  %v9155_v14 = vpack.i.bf16 %v12606_v2, %v12604_v56  ;;  %v4390_v53 = vld [vmem:[#allocation2 + $0x49] sm:$0xff] }
 0x55b   : > { %v4215_v52 = vadd.f32 %v12387_v18, %v4101_v58  ;;  %v8859_v18 = vld [vmem:[%s14555_s5 + $0x208] sm:$0xff] }
 0x55c   : > { %9156 = vrot.lane.b32.xlu0 %v9155_v14, %s9409_s28  ;;  %6061 = vmatpush.msra.mxu2 %v8859_v18  ;;  %v4353_v18 = vld [vmem:[#allocation2 + $0x8] sm:$0xff] }
 0x55d   : > { %v4250_v25 = vadd.f32 %v4215_v52, %v3611_v43 }
 0x55e   : > { %6062 = vmatpush.msra.mxu2 %v8858_v29  ;;  %v12657_v29 = vpop.f32.mrf.mxu0 }
 0x55f   : > { %v9132_v50 = vpop.permute.xlu1 %9131  ;;  %v4286_v48 = vadd.f32 %v12376_v24, %v4250_v25  ;;  %v12646_v25 = vpop.f32.mrf.mxu2 }
 0x560   : > { %v9134_v60 = vunpack.i.h.bf16 %v9132_v50  ;;  %v9133_v34 = vunpack.i.l.bf16 %v9132_v50  ;;  %14686 = vst [vmem:[#allocation20_spill] sm:$0xff] %v12646_v25  ;;  %v9139_v50 = vunpack.i.h.bf16 %v9137_v26 }
 0x561   : > { %v4318_v22 = vmax.f32 %v4286_v48, 0.0  ;;  %v12635_v58 = vld [vmem:[#allocation2 + $0x16a] sm:$0xff]  ;;  %v4656_v48 = vld [vmem:[#allocation2 + $0x138] sm:$0xff] }
 0x562   : > { %v4879_v59 = vsel %vm2322_vm3, %v4655_v27, %v9134_v60  ;;  %v4576_v41 = vsel %vm2322_vm3, %v4352_v11, %v9133_v34  ;;  %v4104_v36 = vpop.f32.mrf.mxu3  ;;  %v12637_v43 = vld [vmem:[#allocation2 + $0x171] sm:$0xff]  ;;  %8806 = vmatmul.msk.f32.gmra.mxu2 %vm2322_vm3, %v12635_v58  ;;  %8840 = vmatmul.msk.f32.gmra.mxu0 %vm2322_vm3, %v12635_v58  ;;  %v9138_v11 = vunpack.i.l.bf16 %v9137_v26  ;;  %v4393_v60 = vld [vmem:[#allocation2 + $0x69] sm:$0xff]  ;;  %v4880_v49 = vsel %vm2322_vm3, %v4656_v48, %v9139_v50  ;;  %v4394_v50 = vld [vmem:[#allocation2 + $0x79] sm:$0xff] }
 0x563   : > { %5094 = vmatmul.f32.gmra.mxu1 %v4879_v59  ;;  %5347 = vmatmul.f32.vlgmr.msrb.gmra.mxu3 %v4576_v41  ;;  %4350 = vst.msk [vmem:[#allocation2 + $0x181] sm:$0xff] %vm2322_vm3, %v4318_v22  ;;  %v4218_v52 = vadd.f32 %v12410_v44, %v4104_v36  ;;  %v9160_v14 = vpack.i.bf16 %v12637_v43, %v4390_v53  ;;  %v12653_v22 = vpop.f32.mrf.mxu1  ;;  %v12655_v59 = vld [vmem:[#allocation2 + $0x172] sm:$0xff] }
 0x564   : > { %v4577_v27 = vsel %vm2322_vm3, %v4353_v18, %v9138_v11  ;;  %v4391_v41 = vld [vmem:[#allocation2 + $0x51] sm:$0xff] }
 0x565   : > { %v4251_v13 = vadd.f32 %v4218_v52, %v12332_v63  ;;  %9161 = vrot.lane.b32.xlu1 %v9160_v14, %s9409_s28  ;;  %v8847_v52 = vld [vmem:[%s14555_s5 + $0x1a8] sm:$0xff]  ;;  %v4396_v14 = vld [vmem:[#allocation2 + $0x91] sm:$0xff] }
 0x566   : > { %5944 = vmatpush.msra.mxu1 %v8847_v52 }
 0x567   : > { %v4287_v44 = vadd.f32 %v12376_v24, %v4251_v13  ;;  %v9175_v24 = vpack.i.bf16 %v12578_v9, %v4393_v60  ;;  %v12667_v36 = vpop.f32.mrf.mxu2  ;;  %v4392_v13 = vld [vmem:[#allocation2 + $0x61] sm:$0xff]  ;;  %v9190_v9 = vpack.i.bf16 %v4391_v41, %v4396_v14 }
 0x568   : > { %14687 = vst [vmem:[#allocation7_spill] sm:$0xff] %v12667_v36 }
 0x569   : > { %v4319_v34 = vmax.f32 %v4287_v44, 0.0 }
 0x56a   : > { %v4694_v63 = vld [vmem:[#allocation2 + $0x181] sm:$0xff]  ;;  %8807 = vmatmul.msk.f32.gmra.mxu2 %vm2322_vm3, %v12655_v59  ;;  %8841 = vmatmul.msk.f32.gmra.mxu0 %vm2322_vm3, %v12655_v59 }
 0x56b   : > { %5097 = vmatmul.f32.gmra.mxu1 %v4880_v49  ;;  %5350 = vmatmul.f32.gmra.mxu3 %v4577_v27  ;;  %4351 = vst.msk [vmem:[#allocation2 + $0x189] sm:$0xff] %vm2322_vm3, %v4319_v34  ;;  %v9165_v26 = vpack.i.bf16 %v4694_v63, %v4391_v41  ;;  %v12676_v48 = vpop.f32.mrf.mxu1  ;;  %v9180_v34 = vpack.i.bf16 %v12604_v56, %v4394_v50  ;;  %v4399_v27 = vld [vmem:[#allocation2 + $0xb1] sm:$0xff]  ;;  %v4395_v63 = vld [vmem:[#allocation2 + $0x81] sm:$0xff] }
 0x56c   : > { %v9205_v41 = vpack.i.bf16 %v4394_v50, %v4399_v27  ;;  %v9185_v52 = vpack.i.bf16 %v4390_v53, %v4395_v63  ;;  %v5621_v50 = vld [vmem:[#allocation2 + $0x32] sm:$0xff] }
 0x56d   : > { %9176 = vrot.lane.b32.xlu1 %v9175_v24, %s9409_s28  ;;  %9166 = vrot.lane.b32.xlu2 %v9165_v26, %s9409_s28  ;;  %v4397_v24 = vld [vmem:[#allocation2 + $0x99] sm:$0xff] }
 0x56e   : > { %v9220_v53 = vpack.i.bf16 %v4397_v24, %v12250_v38 }
 0x56f   : > { %v12682_v49 = vpop.f32.mrf.mxu2 }
 0x570   : > { %14688 = vst [vmem:[#allocation64_spill] sm:$0xff] %v12682_v49 }
 0x572   : > { %v12672_v11 = vld [vmem:[#allocation2 + $0x182] sm:$0xff]  ;;  %v12684_v26 = vld [vmem:[#allocation2 + $0x18a] sm:$0xff] }
 0x573   : > { %v4695_v18 = vld [vmem:[#allocation2 + $0x189] sm:$0xff]  ;;  %8808 = vmatmul.msk.f32.gmra.mxu2 %vm2322_vm3, %v12672_v11  ;;  %v12690_v56 = vpop.f32.mrf.mxu1 }
 0x574   : > { %v9170_v44 = vpack.i.bf16 %v4695_v18, %v4392_v13  ;;  %v9195_v18 = vpack.i.bf16 %v4392_v13, %v4397_v24  ;;  %v5623_v24 = vld [vmem:[#allocation2 + $0x4a] sm:$0xff] }
 0x575   : > { %9191 = vrot.lane.b32.xlu1 %v9190_v9, %s9409_s28  ;;  %9181 = vrot.lane.b32.xlu2 %v9180_v34, %s9409_s28  ;;  %v8846_v9 = vld [vmem:[%s14555_s5 + $0x1a0] sm:$0xff] }
 0x576   : > { %9171 = vrot.lane.b32.xlu0 %v9170_v44, %s9409_s28  ;;  %5945 = vmatpush.msra.mxu1 %v8846_v9  ;;  %v4398_v44 = vld [vmem:[#allocation2 + $0xa9] sm:$0xff]  ;;  %v4400_v34 = vld [vmem:[#allocation2 + $0xc1] sm:$0xff] }
 0x577   : > { %v12696_v49 = vpop.f32.mrf.mxu2  ;;  %v9200_v13 = vpack.i.bf16 %v4393_v60, %v4398_v44  ;;  %v5622_v9 = vld [vmem:[#allocation2 + $0x3a] sm:$0xff]  ;;  %v9225_v38 = vpack.i.bf16 %v4398_v44, %v12269_v1  ;;  %v9230_v44 = vpack.i.bf16 %v4399_v27, %v12288_v23 }
 0x578   : > { %14689 = vst [vmem:[#allocation50_spill] sm:$0xff] %v12696_v49  ;;  %v9235_v49 = vpack.i.bf16 %v4400_v34, %v12309_v10  ;;  %v8845_v60 = vld [vmem:[%s14555_s5 + $0x198] sm:$0xff] }
 0x579   : > { %5946 = vmatpush.msra.mxu1 %v8845_v60 }
 0x57b   : > { %8809 = vmatmul.msk.f32.gmra.mxu2 %vm2322_vm3, %v12684_v26 }
 0x57d   : > { %9206 = vrot.lane.b32.xlu1 %v9205_v41, %s9409_s28  ;;  %9196 = vrot.lane.b32.xlu2 %v9195_v18, %s9409_s28  ;;  %v9210_v41 = vpack.i.bf16 %v4395_v63, %v4400_v34  ;;  %v4401_v18 = vld [vmem:[#allocation2 + $0xc9] sm:$0xff]  ;;  %v5624_v34 = vld [vmem:[#allocation2 + $0x52] sm:$0xff] }
 0x57e   : > { %9186 = vrot.lane.b32.xlu0 %v9185_v52, %s9409_s28  ;;  %v12703_v52 = vpop.f32.mrf.mxu1  ;;  %v9215_v36 = vpack.i.bf16 %v4396_v14, %v4401_v18  ;;  %v9250_v14 = vpack.i.bf16 %v12269_v1, %v12384_v30 }
 0x583   : > { %8866 = vmatmul.msk.f32.vlgmr.msra.gmra.mxu2 %vm2322_vm3, %v5621_v50  ;;  %v12707_v50 = vpop.f32.mrf.mxu2 }
 0x584   : > { %14690 = vst [vmem:[#allocation58_spill] sm:$0xff] %v12707_v50  ;;  %v4663_v50 = vld [vmem:[#allocation2 + $0x188] sm:$0xff] }
 0x585   : > { %9221 = vrot.lane.b32.xlu1 %v9220_v53, %s9409_s28  ;;  %9211 = vrot.lane.b32.xlu2 %v9210_v41, %s9409_s28  ;;  %v5603_v53 = vld [vmem:[#allocation2 + $0xd9] sm:$0xff]  ;;  %v9255_v41 = vpack.i.bf16 %v12288_v23, %v12405_v37  ;;  %v8844_v23 = vld [vmem:[%s14555_s5 + $0x190] sm:$0xff] }
 0x586   : > { %9201 = vrot.lane.b32.xlu0 %v9200_v13, %s9409_s28  ;;  %v12716_v63 = vpop.f32.mrf.mxu1  ;;  %v9265_v13 = vpack.i.bf16 %v12336_v6, %v12531_v35  ;;  %v9245_v1 = vpack.i.bf16 %v5603_v53, %v12361_v8  ;;  %v9260_v35 = vpack.i.bf16 %v12309_v10, %v12420_v57  ;;  %5947 = vmatpush.msra.mxu1 %v8844_v23  ;;  %v12783_v23 = vld [vmem:[#allocation2 + $0x150] sm:$0xff] }
 0x587   : > { %v9275_v10 = vpack.i.bf16 %v12384_v30, %v12580_v7 }
 0x58b   : > { %8867 = vmatmul.msk.f32.gmra.mxu2 %vm2322_vm3, %v5622_v9  ;;  %v5625_v9 = vld [vmem:[#allocation2 + $0x62] sm:$0xff] }
 0x58d   : > { %9236 = vrot.lane.b32.xlu1 %v9235_v49, %s9409_s28  ;;  %9226 = vrot.lane.b32.xlu2 %v9225_v38, %s9409_s28  ;;  %v9240_v49 = vpack.i.bf16 %v4401_v18, %v12336_v6  ;;  %v9280_v6 = vpack.i.bf16 %v12405_v37, %v12606_v2  ;;  %v9270_v38 = vpack.i.bf16 %v12361_v8, %v12552_v5  ;;  %v5626_v2 = vld [vmem:[#allocation2 + $0x6a] sm:$0xff] }
 0x58e   : > { %9216 = vrot.lane.b32.xlu0 %v9215_v36, %s9409_s28  ;;  %v12725_v36 = vpop.f32.mrf.mxu2  ;;  %v12732_v27 = vpop.f32.mrf.mxu1  ;;  %v9285_v8 = vpack.i.bf16 %v12420_v57, %v12637_v43  ;;  %v12773_v57 = vld [vmem:[#allocation2 + $0x140] sm:$0xff]  ;;  %v4354_v43 = vld [vmem:[#allocation2 + $0x18] sm:$0xff] }
 0x58f   : > { %14691 = vst [vmem:[#allocation22_spill] sm:$0xff] %v12725_v36 }
 0x590   : > { %14692 = vst [vmem:[#allocation8_spill] sm:$0xff] %v12732_v27 }
 0x593   : > { %8868 = vmatmul.msk.f32.gmra.mxu2 %vm2322_vm3, %v5623_v24  ;;  %v5627_v24 = vld [vmem:[#allocation2 + $0x7a] sm:$0xff] }
 0x595   : > { %9251 = vrot.lane.b32.xlu1 %v9250_v14, %s9409_s28  ;;  %9241 = vrot.lane.b32.xlu2 %v9240_v49, %s9409_s28  ;;  %v8843_v14 = vld [vmem:[%s14555_s5 + $0x188] sm:$0xff] }
 0x596   : > { %9231 = vrot.lane.b32.xlu0 %v9230_v44, %s9409_s28  ;;  %v12739_v18 = vpop.f32.mrf.mxu2  ;;  %v12753_v60 = vpop.f32.mrf.mxu1  ;;  %5948 = vmatpush.msra.mxu1 %v8843_v14  ;;  %v8842_v14 = vld [vmem:[%s14555_s5 + $0x180] sm:$0xff] }
 0x597   : > { %14693 = vst [vmem:[#allocation52_spill] sm:$0xff] %v12739_v18  ;;  %v12833_v18 = vld [vmem:[#allocation2 + $0x50] sm:$0xff] }
 0x598   : > { %14694 = vst [vmem:[#allocation63_spill] sm:$0xff] %v12753_v60  ;;  %5949 = vmatpush.msra.mxu1 %v8842_v14  ;;  %v12811_v14 = vld [vmem:[#allocation2 + $0x38] sm:$0xff] }
 0x59b   : > { %8869 = vmatmul.msk.f32.gmra.mxu2 %vm2322_vm3, %v5624_v34 }
 0x59d   : > { %9266 = vrot.lane.b32.xlu1 %v9265_v13, %s9409_s28  ;;  %9256 = vrot.lane.b32.xlu2 %v9255_v41, %s9409_s28 }
 0x59e   : > { %9246 = vrot.lane.b32.xlu0 %v9245_v1, %s9409_s28  ;;  %v12756_v37 = vpop.f32.mrf.mxu2  ;;  %v12765_v5 = vpop.f32.mrf.mxu1  ;;  %v5628_v1 = vld [vmem:[#allocation2 + $0x82] sm:$0xff] }
 0x59f   : > { %14695 = vst [vmem:[#allocation24_spill] sm:$0xff] %v12756_v37 }
 0x5a0   : > { %14696 = vst [vmem:[#allocation9_spill] sm:$0xff] %v12765_v5 }
 0x5a3   : > { %8870 = vmatmul.msk.f32.gmra.mxu2 %vm2322_vm3, %v5625_v9 }
 0x5a5   : > { %9281 = vrot.lane.b32.xlu1 %v9280_v6, %s9409_s28  ;;  %9271 = vrot.lane.b32.xlu2 %v9270_v38, %s9409_s28  ;;  %v4355_v38 = vld [vmem:[#allocation2 + $0x20] sm:$0xff] }
 0x5a6   : > { %9261 = vrot.lane.b32.xlu0 %v9260_v35, %s9409_s28  ;;  %v12771_v44 = vpop.f32.mrf.mxu2  ;;  %v12775_v34 = vpop.f32.mrf.mxu1 }
 0x5a7   : > { %14697 = vst [vmem:[#allocation54_spill] sm:$0xff] %v12771_v44  ;;  %v12824_v44 = vld [vmem:[#allocation2 + $0x48] sm:$0xff] }
 0x5a8   : > { %14698 = vst [vmem:[#allocation27_spill] sm:$0xff] %v12775_v34 }
 0x5ab   : > { %8871 = vmatmul.msk.f32.gmra.mxu2 %vm2322_vm3, %v5626_v2 }
 0x5ad   : > { %9286 = vrot.lane.b32.xlu2 %v9285_v8, %s9409_s28 }
 0x5ae   : > { %9276 = vrot.lane.b32.xlu0 %v9275_v10, %s9409_s28  ;;  %v12781_v41 = vpop.f32.mrf.mxu2 }
 0x5af   : > { %14699 = vst [vmem:[#allocation10_spill] sm:$0xff] %v12781_v41  ;;  %v9152_v8 = vpop.permute.xlu2 %9151  ;;  %v12822_v41 = vld [vmem:[#allocation2 + $0x170] sm:$0xff] }
 0x5b3   : > { %8872 = vmatmul.msk.f32.gmra.mxu2 %vm2322_vm3, %v5627_v24  ;;  %v5629_v24 = vld [vmem:[#allocation2 + $0x92] sm:$0xff] }
 0x5b7   : > { %v9142_v30 = vpop.permute.xlu0 %9141 }
 0x5b8   : > { %v9144_v7 = vunpack.i.h.bf16 %v9142_v30  ;;  %v9143_v49 = vunpack.i.l.bf16 %v9142_v30  ;;  %v12791_v30 = vpop.f32.mrf.mxu1 }
 0x5b9   : > { %14700 = vst [vmem:[#allocation57_spill] sm:$0xff] %v12791_v30 }
 0x5ba   : > { %v4881_v53 = vsel %vm2322_vm3, %v12773_v57, %v9144_v7  ;;  %v4578_v13 = vsel %vm2322_vm3, %v4354_v43, %v9143_v49  ;;  %v9154_v7 = vunpack.i.h.bf16 %v9152_v8  ;;  %v9153_v49 = vunpack.i.l.bf16 %v9152_v8 }
 0x5bb   : > { %5100 = vmatmul.f32.gmra.mxu1 %v4881_v53  ;;  %5353 = vmatmul.f32.gmra.mxu3 %v4578_v13  ;;  %v12796_v53 = vld [vmem:[#allocation2 + $0x158] sm:$0xff]  ;;  %v12798_v13 = vld [vmem:[#allocation2 + $0x30] sm:$0xff] }
 0x5bc   : > { %8873 = vmatmul.msk.f32.gmra.mxu2 %vm2322_vm3, %v5628_v1  ;;  %v4883_v1 = vsel %vm2322_vm3, %v12796_v53, %v9154_v7 }
 0x5be   : > { %v9147_v9 = vpop.permute.xlu1 %9146 }
 0x5bf   : > { %v9149_v6 = vunpack.i.h.bf16 %v9147_v9  ;;  %v9148_v35 = vunpack.i.l.bf16 %v9147_v9  ;;  %v4580_v9 = vsel %vm2322_vm3, %v12798_v13, %v9153_v49 }
 0x5c1   : > { %v4882_v2 = vsel %vm2322_vm3, %v12783_v23, %v9149_v6  ;;  %v4579_v10 = vsel %vm2322_vm3, %v4355_v38, %v9148_v35  ;;  %v5630_v6 = vld [vmem:[#allocation2 + $0x9a] sm:$0xff]  ;;  %v12805_v35 = vpop.f32.mrf.mxu1 }
 0x5c2   : > { %14702 = vst [vmem:[#allocation11_spill] sm:$0xff] %v12805_v35 }
 0x5c3   : > { %5103 = vmatmul.f32.gmra.mxu1 %v4882_v2  ;;  %5356 = vmatmul.f32.gmra.mxu3 %v4579_v10 }
 0x5c4   : > { %8874 = vmatmul.msk.f32.gmra.mxu2 %vm2322_vm3, %v5629_v24  ;;  %v12809_v24 = vld [vmem:[#allocation2 + $0x168] sm:$0xff] }
 0x5c5   : > { %v12794_v43 = vpop.f32.mrf.mxu2 }
 0x5c6   : > { %14701 = vst [vmem:[#allocation29_spill] sm:$0xff] %v12794_v43 }
 0x5cb   : > { %5106 = vmatmul.f32.gmra.mxu1 %v4883_v1  ;;  %5359 = vmatmul.f32.gmra.mxu3 %v4580_v9  ;;  %v5631_v1 = vld [vmem:[#allocation2 + $0xaa] sm:$0xff] }
 0x5cc   : > { %8875 = vmatmul.msk.f32.gmra.mxu2 %vm2322_vm3, %v5630_v6 }
 0x5cd   : > { %v12807_v38 = vpop.f32.mrf.mxu2 }
 0x5ce   : > { %14703 = vst [vmem:[#allocation61_spill] sm:$0xff] %v12807_v38  ;;  %v9157_v2 = vpop.permute.xlu0 %9156  ;;  %v12820_v38 = vpop.f32.mrf.mxu1 }
 0x5cf   : > { %v9159_v10 = vunpack.i.h.bf16 %v9157_v2  ;;  %v9158_v8 = vunpack.i.l.bf16 %v9157_v2  ;;  %14705 = vst [vmem:[#allocation12_spill] sm:$0xff] %v12820_v38  ;;  %v4360_v38 = vld [vmem:[#allocation2 + $0x60] sm:$0xff] }
 0x5d1   : > { %v4884_v7 = vsel %vm2322_vm3, %v12809_v24, %v9159_v10  ;;  %v4581_v49 = vsel %vm2322_vm3, %v12811_v14, %v9158_v8 }
 0x5d3   : > { %5109 = vmatmul.f32.gmra.mxu1 %v4884_v7  ;;  %5362 = vmatmul.f32.gmra.mxu3 %v4581_v49  ;;  %v9167_v7 = vpop.permute.xlu2 %9166  ;;  %v5632_v49 = vld [vmem:[#allocation2 + $0xb2] sm:$0xff] }
 0x5d4   : > { %8876 = vmatmul.msk.f32.gmra.mxu2 %vm2322_vm3, %v5631_v1  ;;  %v9169_v1 = vunpack.i.h.bf16 %v9167_v7 }
 0x5d5   : > { %v12818_v9 = vpop.f32.mrf.mxu2 }
 0x5d6   : > { %14704 = vst [vmem:[#allocation31_spill] sm:$0xff] %v12818_v9  ;;  %v9168_v9 = vunpack.i.l.bf16 %v9167_v7  ;;  %v12835_v36 = vpop.f32.mrf.mxu1 }
 0x5d7   : > { %v9162_v6 = vpop.permute.xlu1 %9161  ;;  %14707 = vst [vmem:[#allocation13_spill] sm:$0xff] %v12835_v36 }
 0x5d8   : > { %v9164_v2 = vunpack.i.h.bf16 %v9162_v6  ;;  %v9163_v43 = vunpack.i.l.bf16 %v9162_v6  ;;  %v4662_v6 = vld [vmem:[#allocation2 + $0x180] sm:$0xff] }
 0x5da   : > { %v4885_v10 = vsel %vm2322_vm3, %v12822_v41, %v9164_v2  ;;  %v4582_v8 = vsel %vm2322_vm3, %v12824_v44, %v9163_v43  ;;  %v4886_v2 = vsel %vm2322_vm3, %v4662_v6, %v9169_v1  ;;  %v4583_v43 = vsel %vm2322_vm3, %v12833_v18, %v9168_v9  ;;  %v5634_v9 = vld [vmem:[#allocation2 + $0xca] sm:$0xff] }
 0x5db   : > { %5112 = vmatmul.f32.gmra.mxu1 %v4885_v10  ;;  %5365 = vmatmul.f32.gmra.mxu3 %v4582_v8  ;;  %v5633_v10 = vld [vmem:[#allocation2 + $0xc2] sm:$0xff] }
 0x5dc   : > { %8877 = vmatmul.msk.f32.gmra.mxu2 %vm2322_vm3, %v5632_v49 }
 0x5dd   : > { %v12831_v37 = vpop.f32.mrf.mxu2 }
 0x5de   : > { %14706 = vst [vmem:[#allocation33_spill] sm:$0xff] %v12831_v37  ;;  %v12845_v6 = vpop.f32.mrf.mxu1 }
 0x5df   : > { %v9177_v1 = vpop.permute.xlu1 %9176  ;;  %14709 = vst [vmem:[#allocation14_spill] sm:$0xff] %v12845_v6 }
 0x5e3   : > { %5115 = vmatmul.f32.gmra.mxu1 %v4886_v2  ;;  %5368 = vmatmul.f32.gmra.mxu3 %v4583_v43  ;;  %v9179_v2 = vunpack.i.h.bf16 %v9177_v1  ;;  %v9178_v43 = vunpack.i.l.bf16 %v9177_v1  ;;  %v4362_v1 = vld [vmem:[#allocation2 + $0x78] sm:$0xff] }
 0x5e4   : > { %8878 = vmatmul.msk.f32.gmra.mxu2 %vm2322_vm3, %v5633_v10 }
 0x5e5   : > { %v12841_v8 = vpop.f32.mrf.mxu2 }
 0x5e6   : > { %14708 = vst [vmem:[#allocation35_spill] sm:$0xff] %v12841_v8  ;;  %v4361_v8 = vld [vmem:[#allocation2 + $0x68] sm:$0xff] }
 0x5e8   : > { %v9172_v7 = vpop.permute.xlu0 %9171 }
 0x5e9   : > { %v9174_v49 = vunpack.i.h.bf16 %v9172_v7  ;;  %v9173_v37 = vunpack.i.l.bf16 %v9172_v7  ;;  %v4585_v7 = vsel %vm2322_vm3, %v4361_v8, %v9178_v43 }
 0x5eb   : > { %v4887_v25 = vsel %vm2322_vm3, %v4663_v50, %v9174_v49  ;;  %v4584_v36 = vsel %vm2322_vm3, %v4360_v38, %v9173_v37  ;;  %v5781_v50 = vsel %vm2322_vm3, %v12798_v13, %v9179_v2  ;;  %v9182_v49 = vpop.permute.xlu2 %9181  ;;  %v5636_v13 = vld [vmem:[#allocation2 + $0xe2] sm:$0xff] }
 0x5ec   : > { %5118 = vmatmul.f32.gmra.mxu1 %v4887_v25  ;;  %5371 = vmatmul.f32.gmra.mxu3 %v4584_v36  ;;  %v5635_v25 = vld [vmem:[#allocation2 + $0xda] sm:$0xff]  ;;  %v12854_v36 = vpop.f32.mrf.mxu1  ;;  %v9184_v37 = vunpack.i.h.bf16 %v9182_v49 }
 0x5ed   : > { %8879 = vmatmul.msk.f32.gmra.mxu2 %vm2322_vm3, %v5634_v9  ;;  %v12848_v10 = vpop.f32.mrf.mxu2  ;;  %14711 = vst [vmem:[#allocation15_spill] sm:$0xff] %v12854_v36  ;;  %v9183_v9 = vunpack.i.l.bf16 %v9182_v49  ;;  %v12866_v49 = vld [vmem:[#allocation2 + $0x80] sm:$0xff] }
 0x5ee   : > { %14710 = vst [vmem:[#allocation37_spill] sm:$0xff] %v12848_v10  ;;  %v5782_v43 = vsel %vm2322_vm3, %v12811_v14, %v9184_v37  ;;  %v9192_v37 = vpop.permute.xlu1 %9191 }
 0x5ef   : > { %v4586_v10 = vsel %vm2322_vm3, %v4362_v1, %v9183_v9 }
 0x5f0   : > { %v9187_v35 = vpop.permute.xlu0 %9186 }
 0x5f1   : > { %v9189_v2 = vunpack.i.h.bf16 %v9187_v35 }
 0x5f3   : > { %v5783_v14 = vsel %vm2322_vm3, %v12824_v44, %v9189_v2  ;;  %v9197_v2 = vpop.permute.xlu2 %9196 }
 0x5f4   : > { %5374 = vmatmul.f32.gmra.mxu3 %v4585_v7  ;;  %5950 = vmatmul.f32.vlgmr.msra.gmra.mxu1 %v5781_v50  ;;  %v9188_v7 = vunpack.i.l.bf16 %v9187_v35  ;;  %v9193_v35 = vunpack.i.l.bf16 %v9192_v37 }
 0x5f5   : > { %8880 = vmatmul.msk.f32.gmra.mxu2 %vm2322_vm3, %v5635_v25  ;;  %v12864_v25 = vpop.f32.mrf.mxu1 }
 0x5f6   : > { %v12856_v6 = vpop.f32.mrf.mxu2  ;;  %14714 = vst [vmem:[#allocation41_spill] sm:$0xff] %v12864_v25  ;;  %v4587_v9 = vsel %vm2322_vm3, %v12866_v49, %v9188_v7  ;;  %v12886_v25 = vld [vmem:[#allocation2 + $0x98] sm:$0xff] }
 0x5f7   : > { %14712 = vst [vmem:[#allocation39_spill] sm:$0xff] %v12856_v6 }
 0x5f8   : > { %v9202_v36 = vpop.permute.xlu0 %9201 }
 0x5fc   : > { %5377 = vmatmul.f32.gmra.mxu3 %v4586_v10  ;;  %5953 = vmatmul.f32.gmra.mxu1 %v5782_v43  ;;  %v5637_v10 = vld [vmem:[#allocation2 + $0xf2] sm:$0xff]  ;;  %v9194_v43 = vunpack.i.h.bf16 %v9192_v37  ;;  %v9198_v37 = vunpack.i.l.bf16 %v9197_v2 }
 0x5fd   : > { %8881 = vmatmul.msk.f32.gmra.mxu2 %vm2322_vm3, %v5636_v13  ;;  %v12877_v6 = vpop.f32.mrf.mxu1 }
 0x5fe   : > { %v12862_v50 = vpop.f32.mrf.mxu2  ;;  %14715 = vst [vmem:[#allocation17_spill] sm:$0xff] %v12877_v6  ;;  %v5784_v44 = vsel %vm2322_vm3, %v12833_v18, %v9194_v43  ;;  %v4589_v6 = vsel %vm2322_vm3, %v12886_v25, %v9198_v37  ;;  %v5639_v18 = vld [vmem:[#allocation2 + $0x10a] sm:$0xff] }
 0x5ff   : > { %14713 = vst [vmem:[#allocation16_spill] sm:$0xff] %v12862_v50  ;;  %v12875_v50 = vld [vmem:[#allocation2 + $0x90] sm:$0xff] }
 0x600   : > { %v4588_v7 = vsel %vm2322_vm3, %v12875_v50, %v9193_v35 }
 0x604   : > { %5380 = vmatmul.f32.gmra.mxu3 %v4587_v9  ;;  %5956 = vmatmul.f32.gmra.mxu1 %v5783_v14  ;;  %v5638_v9 = vld [vmem:[#allocation2 + $0xfa] sm:$0xff]  ;;  %v9199_v14 = vunpack.i.h.bf16 %v9197_v2  ;;  %v12894_v2 = vld [vmem:[#allocation2 + $0xa8] sm:$0xff] }
 0x605   : > { %8882 = vmatmul.msk.f32.gmra.mxu2 %vm2322_vm3, %v5637_v10  ;;  %v12891_v43 = vpop.f32.mrf.mxu1 }
 0x606   : > { %v12873_v13 = vpop.f32.mrf.mxu2  ;;  %v5785_v35 = vsel %vm2322_vm3, %v4360_v38, %v9199_v14  ;;  %14716 = vst [vmem:[#allocation42_spill] sm:$0xff] %v12891_v43  ;;  %v9207_v38 = vpop.permute.xlu1 %9206 }
 0x60c   : > { %5383 = vmatmul.f32.gmra.mxu3 %v4588_v7  ;;  %5959 = vmatmul.f32.gmra.mxu1 %v5784_v44  ;;  %v9204_v7 = vunpack.i.h.bf16 %v9202_v36  ;;  %v9203_v44 = vunpack.i.l.bf16 %v9202_v36  ;;  %v12904_v36 = vld [vmem:[#allocation2 + $0xb0] sm:$0xff] }
 0x60d   : > { %8883 = vmatmul.msk.f32.gmra.mxu2 %vm2322_vm3, %v5638_v9  ;;  %v12902_v14 = vpop.f32.mrf.mxu1 }
 0x60e   : > { %v12884_v10 = vpop.f32.mrf.mxu2  ;;  %v4590_v33 = vsel %vm2322_vm3, %v12894_v2, %v9203_v44  ;;  %v5786_v37 = vsel %vm2322_vm3, %v4361_v8, %v9204_v7  ;;  %14717 = vst [vmem:[#allocation19_spill] sm:$0xff] %v12902_v14  ;;  %v9212_v44 = vpop.permute.xlu2 %9211  ;;  %v5641_v8 = vld [vmem:[#allocation2 + $0x122] sm:$0xff]  ;;  %v8913_v7 = vld [vmem:[%s14557_s7 + $0x138] sm:$0xff] }
 0x60f   : > { %6949 = vmatpush.msra.mxu3 %v8913_v7 }
 0x614   : > { %5386 = vmatmul.f32.gmra.mxu3 %v4589_v6  ;;  %5962 = vmatmul.f32.gmra.mxu1 %v5785_v35  ;;  %v5640_v6 = vld [vmem:[#allocation2 + $0x112] sm:$0xff]  ;;  %v9209_v35 = vunpack.i.h.bf16 %v9207_v38 }
 0x615   : > { %8884 = vmatmul.msk.f32.gmra.mxu2 %vm2322_vm3, %v5639_v18  ;;  %v9208_v18 = vunpack.i.l.bf16 %v9207_v38  ;;  %v9213_v38 = vunpack.i.l.bf16 %v9212_v44 }
 0x616   : > { %v12896_v9 = vpop.f32.mrf.mxu2  ;;  %v5787_v30 = vsel %vm2322_vm3, %v4362_v1, %v9209_v35  ;;  %v5642_v35 = vld [vmem:[#allocation2 + $0x12a] sm:$0xff] }
 0x617   : > { %v4591_v43 = vsel %vm2322_vm3, %v12904_v36, %v9208_v18  ;;  %v12917_v18 = vld [vmem:[#allocation2 + $0xc0] sm:$0xff] }
 0x618   : > { %v4592_v1 = vsel %vm2322_vm3, %v12917_v18, %v9213_v38 }
 0x61c   : > { %5389 = vmatmul.f32.gmra.mxu3 %v4590_v33  ;;  %5965 = vmatmul.f32.gmra.mxu1 %v5786_v37  ;;  %v9214_v37 = vunpack.i.h.bf16 %v9212_v44 }
 0x61d   : > { %8885 = vmatmul.msk.f32.gmra.mxu2 %vm2322_vm3, %v5640_v6  ;;  %v12915_v6 = vpop.f32.mrf.mxu1 }
 0x61e   : > { %v12909_v33 = vpop.f32.mrf.mxu2  ;;  %14718 = vst [vmem:[#allocation43_spill] sm:$0xff] %v12915_v6  ;;  %v12928_v6 = vld [vmem:[#allocation2 + $0xc8] sm:$0xff] }
 0x624   : > { %5392 = vmatmul.f32.gmra.mxu3 %v4591_v43  ;;  %5968 = vmatmul.f32.gmra.mxu1 %v5787_v30  ;;  %v5788_v30 = vsel %vm2322_vm3, %v12866_v49, %v9214_v37  ;;  %v9217_v43 = vpop.permute.xlu0 %9216  ;;  %v9222_v37 = vpop.permute.xlu1 %9221 }
 0x625   : > { %8886 = vmatmul.msk.f32.gmra.mxu2 %vm2322_vm3, %v5641_v8  ;;  %v9219_v8 = vunpack.i.h.bf16 %v9217_v43  ;;  %v9218_v7 = vunpack.i.l.bf16 %v9217_v43  ;;  %v12926_v44 = vpop.f32.mrf.mxu1  ;;  %v9224_v43 = vunpack.i.h.bf16 %v9222_v37 }
 0x626   : > { %v12924_v14 = vpop.f32.mrf.mxu2  ;;  %14719 = vst [vmem:[#allocation21_spill] sm:$0xff] %v12926_v44 }
 0x627   : > { %v4593_v38 = vsel %vm2322_vm3, %v12928_v6, %v9218_v7  ;;  %v5789_v49 = vsel %vm2322_vm3, %v12875_v50, %v9219_v8  ;;  %v12942_v7 = vld [vmem:[#allocation2 + $0xd8] sm:$0xff] }
 0x628   : > { %v8921_v50 = vld [vmem:[%s14557_s7 + $0x178] sm:$0xff] }
 0x629   : > { %7070 = vmatpush.msra.mxu0 %v8921_v50  ;;  %v5645_v50 = vld [vmem:[#allocation2 + $0x152] sm:$0xff] }
 0x62c   : > { %5395 = vmatmul.f32.gmra.mxu3 %v4592_v1  ;;  %5971 = vmatmul.f32.gmra.mxu1 %v5788_v30  ;;  %v5643_v1 = vld [vmem:[#allocation2 + $0x13a] sm:$0xff]  ;;  %v8912_v30 = vld [vmem:[%s14557_s7 + $0x130] sm:$0xff] }
 0x62d   : > { %8887 = vmatmul.msk.f32.gmra.mxu2 %vm2322_vm3, %v5642_v35  ;;  %6950 = vmatpush.msra.mxu3 %v8912_v30  ;;  %v9223_v35 = vunpack.i.l.bf16 %v9222_v37  ;;  %v5644_v37 = vld [vmem:[#allocation2 + $0x142] sm:$0xff] }
 0x62e   : > { %v12938_v44 = vpop.f32.mrf.mxu2 }
 0x62f   : > { %v4594_v8 = vsel %vm2322_vm3, %v12942_v7, %v9223_v35  ;;  %v9232_v35 = vpop.permute.xlu0 %9231 }
 0x634   : > { %5398 = vmatmul.f32.gmra.mxu3 %v4593_v38  ;;  %5974 = vmatmul.f32.gmra.mxu1 %v5789_v49  ;;  %v5790_v38 = vsel %vm2322_vm3, %v12886_v25, %v9224_v43  ;;  %v9227_v49 = vpop.permute.xlu2 %9226 }
 0x635   : > { %8888 = vmatmul.msk.f32.gmra.mxu2 %vm2322_vm3, %v5643_v1  ;;  %v9229_v1 = vunpack.i.h.bf16 %v9227_v49  ;;  %v9228_v30 = vunpack.i.l.bf16 %v9227_v49  ;;  %v9233_v49 = vunpack.i.l.bf16 %v9232_v35 }
 0x636   : > { %v12958_v5 = vpop.f32.mrf.mxu2 }
 0x637   : > { %v4595_v25 = vsel %vm2322_vm3, %v12956_v61, %v9228_v30  ;;  %v5791_v43 = vsel %vm2322_vm3, %v12894_v2, %v9229_v1 }
 0x638   : > { %v12940_v45 = vpop.f32.mrf.mxu1 }
 0x639   : > { %14720 = vst [vmem:[#allocation62_spill] sm:$0xff] %v12940_v45  ;;  %v12952_v45 = vpop.f32.mrf.mxu3 }
 0x63c   : > { %5401 = vmatmul.f32.gmra.mxu3 %v4594_v8  ;;  %5977 = vmatmul.f32.gmra.mxu1 %v5790_v38  ;;  %v8911_v8 = vld [vmem:[%s14557_s7 + $0x128] sm:$0xff]  ;;  %v9234_v38 = vunpack.i.h.bf16 %v9232_v35 }
 0x63d   : > { %8889 = vmatmul.msk.f32.gmra.mxu2 %vm2322_vm3, %v5644_v37  ;;  %6951 = vmatpush.msra.mxu3 %v8911_v8 }
 0x63e   : > { %v5792_v1 = vsel %vm2322_vm3, %v12904_v36, %v9234_v38  ;;  %v9242_v38 = vpop.permute.xlu2 %9241 }
 0x640   : > { %v12954_v34 = vpop.f32.mrf.mxu1 }
 0x641   : > { %14721 = vst [vmem:[#allocation40_spill] sm:$0xff] %v12954_v34  ;;  %v12970_v34 = vld [vmem:[#allocation2 + $0xf0] sm:$0xff]  ;;  %v12972_v30 = vpop.f32.mrf.mxu3 }
 0x642   : > { %v4596_v2 = vsel %vm2322_vm3, %v12970_v34, %v9233_v49 }
 0x644   : > { %5404 = vmatmul.f32.gmra.mxu3 %v4595_v25  ;;  %5980 = vmatmul.f32.gmra.mxu1 %v5791_v43  ;;  %v9237_v25 = vpop.permute.xlu1 %9236  ;;  %v5646_v43 = vld [vmem:[#allocation2 + $0x15a] sm:$0xff] }
 0x645   : > { %8890 = vmatmul.msk.f32.gmra.mxu2 %vm2322_vm3, %v5645_v50  ;;  %v12978_v50 = vpop.f32.mrf.mxu2  ;;  %v9239_v35 = vunpack.i.h.bf16 %v9237_v25  ;;  %v9238_v8 = vunpack.i.l.bf16 %v9237_v25  ;;  %v9243_v25 = vunpack.i.l.bf16 %v9242_v38 }
 0x646   : > { %v9257_v54 = vpop.permute.xlu2 %9256 }
 0x647   : > { %v4597_v49 = vsel %vm2322_vm3, %v12983_v32, %v9238_v8  ;;  %v5793_v36 = vsel %vm2322_vm3, %v12917_v18, %v9239_v35  ;;  %v6570_v8 = vld [vmem:[%s14557_s7 + $0xb0] sm:$0xff]  ;;  %v13003_v35 = vld [vmem:[#allocation2 + $0x108] sm:$0xff]  ;;  %v9259_v27 = vunpack.i.h.bf16 %v9257_v54 }
 0x648   : > { %v12968_v37 = vpop.f32.mrf.mxu1 }
 0x649   : > { %14722 = vst [vmem:[#allocation44_spill] sm:$0xff] %v12968_v37  ;;  %v12985_v60 = vpop.f32.mrf.mxu3 }
 0x64c   : > { %5407 = vmatmul.f32.gmra.mxu3 %v4596_v2  ;;  %5983 = vmatmul.f32.gmra.mxu1 %v5792_v1  ;;  %v6571_v2 = vld [vmem:[%s14557_s7 + $0xb8] sm:$0xff]  ;;  %v9244_v1 = vunpack.i.h.bf16 %v9242_v38 }
 0x64d   : > { %8891 = vmatmul.msk.f32.gmra.mxu2 %vm2322_vm3, %v5646_v43  ;;  %v12996_v43 = vpop.f32.mrf.mxu2 }
 0x64e   : > { %14724 = vst [vmem:[#allocation45_spill] sm:$0xff] %v12996_v43  ;;  %7392 = vmatpush.msrb.mxu2 %v6571_v2  ;;  %v5794_v38 = vsel %vm2322_vm3, %v12928_v6, %v9244_v1  ;;  %v9247_v2 = vpop.permute.xlu0 %9246  ;;  %v6567_v6 = vld [vmem:[%s14557_s7 + $0x98] sm:$0xff] }
 0x64f   : > { %v9249_v1 = vunpack.i.h.bf16 %v9247_v2 }
 0x650   : > { %v12981_v37 = vpop.f32.mrf.mxu1  ;;  %7393 = vmatpush.msrb.mxu2 %v6570_v8  ;;  %v6568_v8 = vld [vmem:[%s14557_s7 + $0xa0] sm:$0xff] }
 0x651   : > { %14723 = vst [vmem:[#allocation23_spill] sm:$0xff] %v12981_v37  ;;  %v13040_v37 = vld [vmem:[#allocation2 + $0x110] sm:$0xff] }
 0x654   : > { %5410 = vmatmul.f32.gmra.mxu3 %v4597_v49  ;;  %5986 = vmatmul.f32.gmra.mxu1 %v5793_v36  ;;  %v6569_v49 = vld [vmem:[%s14557_s7 + $0xa8] sm:$0xff]  ;;  %v4598_v36 = vsel %vm2322_vm3, %v13003_v35, %v9243_v25  ;;  %v8920_v25 = vld [vmem:[%s14557_s7 + $0x170] sm:$0xff] }
 0x655   : > { %8892 = vmatmul.msk.f32.gmra.mxu2 %vm2322_vm3, %v12635_v58  ;;  %v8910_v58 = vld [vmem:[%s14557_s7 + $0x120] sm:$0xff]  ;;  %7071 = vmatpush.msra.mxu0 %v8920_v25 }
 0x656   : > { %6952 = vmatpush.msra.mxu3 %v8910_v58  ;;  %7394 = vmatpush.msrb.mxu2 %v6569_v49  ;;  %v9248_v58 = vunpack.i.l.bf16 %v9247_v2  ;;  %v8919_v49 = vld [vmem:[%s14557_s7 + $0x168] sm:$0xff]  ;;  %v8918_v2 = vld [vmem:[%s14557_s7 + $0x160] sm:$0xff] }
 0x657   : > { %7072 = vmatpush.msra.mxu0 %v8919_v49  ;;  %v6565_v49 = vld [vmem:[%s14557_s7 + $0x88] sm:$0xff] }
 0x658   : > { %v13001_v18 = vpop.f32.mrf.mxu1  ;;  %7395 = vmatpush.msrb.mxu2 %v6568_v8  ;;  %v13038_v8 = vpop.f32.mrf.mxu0  ;;  %v4599_v25 = vsel %vm2322_vm3, %v13040_v37, %v9248_v58 }
 0x659   : > { %14725 = vst [vmem:[#allocation25_spill] sm:$0xff] %v13001_v18  ;;  %v13018_v18 = vpop.f32.mrf.mxu3  ;;  %7073 = vmatpush.msra.mxu0 %v8918_v2 }
 0x65a   : > { %7396 = vmatpush.msrb.mxu2 %v6567_v6  ;;  %v5795_v6 = vsel %vm2322_vm3, %v12942_v7, %v9249_v1  ;;  %v6564_v7 = vld [vmem:[%s14557_s7 + $0x80] sm:$0xff]  ;;  %v8916_v1 = vld [vmem:[%s14557_s7 + $0x150] sm:$0xff] }
 0x65c   : > { %5413 = vmatmul.f32.gmra.mxu3 %v4598_v36  ;;  %5989 = vmatmul.f32.gmra.mxu1 %v5794_v38  ;;  %v13034_v36 = vpop.f32.mrf.mxu2 }
 0x65d   : > { %8893 = vmatmul.msk.f32.gmra.mxu2 %vm2322_vm3, %v12655_v59  ;;  %v6566_v59 = vld [vmem:[%s14557_s7 + $0x90] sm:$0xff]  ;;  %14726 = vst [vmem:[#allocation46_spill] sm:$0xff] %v13034_v36 }
 0x65e   : > { %7397 = vmatpush.msrb.mxu2 %v6566_v59  ;;  %v8917_v59 = vld [vmem:[%s14557_s7 + $0x158] sm:$0xff] }
 0x65f   : > { %7074 = vmatpush.msra.mxu0 %v8917_v59  ;;  %v13070_v59 = vld [vmem:[#allocation2 + $0x120] sm:$0xff] }
 0x660   : > { %v13036_v38 = vpop.f32.mrf.mxu1  ;;  %7398 = vmatpush.msrb.mxu2 %v6565_v49  ;;  %v8909_v49 = vld [vmem:[%s14557_s7 + $0x118] sm:$0xff] }
 0x661   : > { %14727 = vst [vmem:[#allocation26_spill] sm:$0xff] %v13036_v38  ;;  %v9252_v38 = vpop.permute.xlu1 %9251  ;;  %7075 = vmatpush.msra.mxu0 %v8916_v1  ;;  %6953 = vmatpush.msra.mxu3 %v8909_v49 }
 0x662   : > { %v9254_v58 = vunpack.i.h.bf16 %v9252_v38  ;;  %v9253_v2 = vunpack.i.l.bf16 %v9252_v38  ;;  %7399 = vmatpush.msrb.mxu2 %v6564_v7  ;;  %v8914_v38 = vld [vmem:[%s14557_s7 + $0x140] sm:$0xff] }
 0x664   : > { %5416 = vmatmul.f32.gmra.mxu3 %v4599_v25  ;;  %5992 = vmatmul.f32.gmra.mxu1 %v5795_v6  ;;  %v13063_v25 = vpop.f32.mrf.mxu3  ;;  %v13078_v36 = vpop.f32.mrf.mxu2  ;;  %v4600_v7 = vsel %vm2322_vm3, %v13070_v59, %v9253_v2  ;;  %v5796_v1 = vsel %vm2322_vm3, %v12956_v61, %v9254_v58  ;;  %v9258_v2 = vunpack.i.l.bf16 %v9257_v54  ;;  %v5797_v54 = vsel %vm2322_vm3, %v12970_v34, %v9259_v27 }
 0x665   : > { %8894 = vmatmul.msk.f32.gmra.mxu2 %vm2322_vm3, %v12672_v11  ;;  %v8915_v11 = vld [vmem:[%s14557_s7 + $0x148] sm:$0xff]  ;;  %14729 = vst [vmem:[#allocation28_spill] sm:$0xff] %v13078_v36 }
 0x666   : > { %7076 = vmatpush.msra.mxu0 %v8915_v11  ;;  %v13084_v11 = vpop.f32.mrf.mxu0 }
 0x668   : > { %7077 = vmatpush.msra.mxu0 %v8914_v38  ;;  %v5651_v38 = vld [vmem:[#allocation2 + $0x19a] sm:$0xff] }
 0x669   : > { %v13068_v6 = vpop.f32.mrf.mxu1 }
 0x66a   : > { %14728 = vst [vmem:[#allocation48_spill] sm:$0xff] %v13068_v6  ;;  %v5140_v6 = vadd.f32 %v12355_v16, %v12529_v21  ;;  %v13098_v16 = vld [vmem:[%s14556_s6] ss:$0 sm:$0xff]  ;;  %v13100_v21 = vld [vmem:[#allocation2 + $0x128] sm:$0xff] }
 0x66c   : > { %5419 = vmatmul.f32.gmra.mxu3 %v4600_v7  ;;  %5995 = vmatmul.f32.gmra.mxu1 %v5796_v1  ;;  %v5349_v36 = vadd.f32 %v12952_v45, %v5140_v6  ;;  %v13091_v43 = vpop.f32.mrf.mxu3  ;;  %v4601_v45 = vsel %vm2322_vm3, %v13100_v21, %v9258_v2 }
 0x66d   : > { %8895 = vmatmul.msk.f32.gmra.mxu2 %vm2322_vm3, %v12684_v26  ;;  %v5143_v26 = vadd.f32 %v12389_v40, %v12563_v55 }
 0x66e   : > { %v5462_v58 = vadd.f32 %v12426_v19, %v5349_v36  ;;  %v9262_v19 = vpop.permute.xlu0 %9261  ;;  %v13111_v6 = vpop.f32.mrf.mxu0 }
 0x66f   : > { %v5352_v7 = vadd.f32 %v12972_v30, %v5143_v26  ;;  %v9264_v2 = vunpack.i.h.bf16 %v9262_v19 }
 0x671   : > { %v5951_v61 = vpop.f32.mrf.mxu1  ;;  %v5465_v40 = vadd.f32 %v12438_v31, %v5352_v7  ;;  %v5146_v31 = vadd.f32 %v12412_v12, %v12596_v4 }
 0x672   : > { %v6065_v49 = vadd.f32 %v12873_v13, %v5951_v61  ;;  %v13108_v13 = vpop.f32.mrf.mxu2  ;;  %v9263_v61 = vunpack.i.l.bf16 %v9262_v19 }
 0x673   : > { %v5355_v19 = vadd.f32 %v12985_v60, %v5146_v31 }
 0x674   : > { %v6160_v36 = vadd.f32 %v6065_v49, %v5462_v58  ;;  %5422 = vmatmul.f32.gmra.mxu3 %v4601_v45  ;;  %5998 = vmatmul.f32.gmra.mxu1 %v5797_v54  ;;  %v13118_v58 = vld [vmem:[#allocation2 + $0x138] sm:$0xff]  ;;  %v5652_v49 = vld [vmem:[#allocation2 + $0x1a2] sm:$0xff]  ;;  %v13123_v30 = vpop.f32.mrf.mxu3  ;;  %v5798_v54 = vsel %vm2322_vm3, %v12983_v32, %v9264_v2 }
 0x675   : > { %8896 = vmatmul.msk.f32.gmra.mxu2 %vm2322_vm3, %v5651_v38  ;;  %v8908_v38 = vld [vmem:[%s14557_s7 + $0x110] sm:$0xff]  ;;  %v4602_v45 = vsel %vm2322_vm3, %v13118_v58, %v9263_v61  ;;  %v5468_v4 = vadd.f32 %v12499_v51, %v5355_v19 }
 0x676   : > { %v6196_v1 = vadd.f32 %v13098_v16, %v6160_v36  ;;  %6954 = vmatpush.msra.mxu3 %v8908_v38  ;;  %v13136_v61 = vpop.f32.mrf.mxu0  ;;  %v5149_v38 = vadd.f32 %v12428_v46, %v12626_v42 }
 0x678   : > { %v6228_v27 = vmax.f32 %v6196_v1, 0.0 }
 0x679   : > { %v5954_v34 = vpop.f32.mrf.mxu1 }
 0x67a   : > { %6260 = vst.msk [vmem:[#allocation2 + $0x19] sm:$0xff] %vm2322_vm3, %v6228_v27  ;;  %v6068_v55 = vadd.f32 %v12884_v10, %v5954_v34  ;;  %v9267_v10 = vpop.permute.xlu1 %9266  ;;  %v13134_v1 = vpop.f32.mrf.mxu2  ;;  %v5612_v34 = vld [vmem:[#allocation2 + $0x141] sm:$0xff] }
 0x67b   : > { %v9269_v7 = vunpack.i.h.bf16 %v9267_v10  ;;  %v9268_v32 = vunpack.i.l.bf16 %v9267_v10 }
 0x67c   : > { %v6161_v26 = vadd.f32 %v6068_v55, %v5465_v40  ;;  %5425 = vmatmul.f32.gmra.mxu3 %v4602_v45  ;;  %6001 = vmatmul.f32.gmra.mxu1 %v5798_v54  ;;  %v6356_v55 = vld [vmem:[#allocation2 + $0x2] sm:$0xff]  ;;  %v9272_v45 = vpop.permute.xlu2 %9271  ;;  %v13148_v31 = vpop.f32.mrf.mxu3 }
 0x67d   : > { %8897 = vmatmul.msk.f32.gmra.mxu2 %vm2322_vm3, %v5652_v49  ;;  %v5799_v49 = vsel %vm2322_vm3, %v13003_v35, %v9269_v7  ;;  %v4603_v51 = vsel %vm2322_vm3, %v12773_v57, %v9268_v32  ;;  %v9274_v10 = vunpack.i.h.bf16 %v9272_v45  ;;  %v5613_v7 = vld [vmem:[#allocation2 + $0x151] sm:$0xff] }
 0x67e   : > { %v6197_v36 = vadd.f32 %v13098_v16, %v6161_v26  ;;  %v9273_v26 = vunpack.i.l.bf16 %v9272_v45 }
 0x680   : > { %v6229_v2 = vmax.f32 %v6197_v36, 0.0 }
 0x681   : > { %v5957_v27 = vpop.f32.mrf.mxu1  ;;  %v6604_v12 = vld [vmem:[#allocation2 + $0x19] sm:$0xff] }
 0x682   : > { %6261 = vst.msk [vmem:[#allocation2 + $0x21] sm:$0xff] %vm2322_vm3, %v6229_v2  ;;  %v6071_v40 = vadd.f32 %v12896_v9, %v5957_v27  ;;  %v9290_v60 = vpack.i.bf16 %v5612_v34, %v6604_v12  ;;  %v5358_v9 = vadd.f32 %v13018_v18, %v5149_v38  ;;  %v13153_v42 = vpop.f32.mrf.mxu2  ;;  %v13155_v27 = vpop.f32.mrf.mxu0  ;;  %v6357_v18 = vld [vmem:[#allocation2 + $0xa] sm:$0xff] }
 0x683   : > { %v8907_v12 = vld [vmem:[%s14557_s7 + $0x108] sm:$0xff] }
 0x684   : > { %v6162_v54 = vadd.f32 %v6071_v40, %v5468_v4  ;;  %6004 = vmatmul.f32.gmra.mxu1 %v5799_v49  ;;  %9291 = vrot.lane.b32.xlu0 %v9290_v60, %s9409_s28  ;;  %v5471_v57 = vadd.f32 %v12534_v20, %v5358_v9  ;;  %v5800_v4 = vsel %vm2322_vm3, %v13040_v37, %v9274_v10  ;;  %v9277_v20 = vpop.permute.xlu0 %9276  ;;  %v13174_v38 = vpop.f32.mrf.mxu3 }
 0x685   : > { %8954 = vmatmul.msk.f32.vlgmr.msrb.gmra.mxu2 %vm2322_vm3, %v6356_v55  ;;  %5428 = vmatmul.f32.gmra.mxu3 %v4603_v51  ;;  %v5152_v40 = vadd.f32 %v12440_v62, %v12653_v22  ;;  %v9279_v37 = vunpack.i.h.bf16 %v9277_v20  ;;  %v9278_v45 = vunpack.i.l.bf16 %v9277_v20  ;;  %v5614_v51 = vld [vmem:[#allocation2 + $0x159] sm:$0xff] }
 0x686   : > { %v6198_v35 = vadd.f32 %v13098_v16, %v6162_v54  ;;  %6955 = vmatpush.msra.mxu3 %v8907_v12  ;;  %v5615_v12 = vld [vmem:[#allocation2 + $0x169] sm:$0xff] }
 0x687   : > { %v5361_v60 = vadd.f32 %v13063_v25, %v5152_v40 }
 0x688   : > { %v6230_v46 = vmax.f32 %v6198_v35, 0.0 }
 0x689   : > { %v5960_v19 = vpop.f32.mrf.mxu1  ;;  %v6636_v36 = vld [vmem:[#allocation2 + $0x1a] sm:$0xff]  ;;  %v6637_v54 = vld [vmem:[#allocation2 + $0x22] sm:$0xff]  ;;  %v5474_v35 = vadd.f32 %v12567_v15, %v5361_v60  ;;  %v4605_v15 = vsel %vm2322_vm3, %v12796_v53, %v9278_v45 }
 0x68a   : > { %v6605_v2 = vld [vmem:[#allocation2 + $0x21] sm:$0xff]  ;;  %6262 = vst.msk [vmem:[#allocation2 + $0x31] sm:$0xff] %vm2322_vm3, %v6230_v46  ;;  %v6074_v32 = vadd.f32 %v12909_v33, %v5960_v19  ;;  %8922 = vmatmul.msk.f32.vlgmr.msra.gmra.mxu0 %vm2322_vm3, %v6636_v36  ;;  %v4604_v33 = vsel %vm2322_vm3, %v12783_v23, %v9273_v26  ;;  %v13180_v10 = vpop.f32.mrf.mxu2  ;;  %v5801_v26 = vsel %vm2322_vm3, %v13070_v59, %v9279_v37  ;;  %v13184_v46 = vpop.f32.mrf.mxu0 }
 0x68b   : > { %v9295_v34 = vpack.i.bf16 %v5613_v7, %v6605_v2  ;;  %v5155_v19 = vadd.f32 %v12447_v17, %v12676_v48  ;;  %v9282_v7 = vpop.permute.xlu1 %9281 }
 0x68c   : > { %v6163_v55 = vadd.f32 %v6074_v32, %v5471_v57  ;;  %6007 = vmatmul.f32.gmra.mxu1 %v5800_v4  ;;  %v9284_v57 = vunpack.i.h.bf16 %v9282_v7  ;;  %v9283_v32 = vunpack.i.l.bf16 %v9282_v7 }
 0x68d   : > { %9296 = vrot.lane.b32.xlu1 %v9295_v34, %s9409_s28  ;;  %8955 = vmatmul.msk.f32.gmra.mxu2 %vm2322_vm3, %v6357_v18  ;;  %v13194_v34 = vpop.f32.mrf.mxu3 }
 0x68e   : > { %5431 = vmatmul.f32.gmra.mxu3 %v4604_v33  ;;  %v6199_v49 = vadd.f32 %v13098_v16, %v6163_v55  ;;  %v5802_v20 = vsel %vm2322_vm3, %v13100_v21, %v9284_v57  ;;  %v5158_v55 = vadd.f32 %v12453_v28, %v12690_v56  ;;  %v9287_v33 = vpop.permute.xlu2 %9286  ;;  %v8905_v57 = vld [vmem:[%s14557_s7 + $0xf8] sm:$0xff] }
 0x68f   : > { %v9289_v28 = vunpack.i.h.bf16 %v9287_v33  ;;  %v9288_v56 = vunpack.i.l.bf16 %v9287_v33  ;;  %v14732_v33 = vld [vmem:[#allocation18_spill] sm:$0xff] }
 0x690   : > { %v6231_v62 = vmax.f32 %v6199_v49, 0.0  ;;  %v5367_v21 = vadd.f32 %v13123_v30, %v5158_v55  ;;  %v14731_v55 = vld [vmem:[#allocation8_spill] sm:$0xff] }
 0x691   : > { %v5963_v22 = vpop.f32.mrf.mxu1  ;;  %v6606_v9 = vld [vmem:[#allocation2 + $0x31] sm:$0xff]  ;;  %v5803_v30 = vsel %vm2322_vm3, %v13118_v58, %v9289_v28  ;;  %v5619_v28 = vld [vmem:[#allocation2 + $0x199] sm:$0xff] }
 0x692   : > { %6263 = vst.msk [vmem:[#allocation2 + $0x39] sm:$0xff] %vm2322_vm3, %v6231_v62  ;;  %v6077_v23 = vadd.f32 %v12924_v14, %v5963_v22  ;;  %8923 = vmatmul.msk.f32.gmra.mxu0 %vm2322_vm3, %v6637_v54  ;;  %v9300_v25 = vpack.i.bf16 %v5614_v51, %v6606_v9  ;;  %v5364_v14 = vadd.f32 %v13091_v43, %v5155_v19  ;;  %v13210_v60 = vpop.f32.mrf.mxu2  ;;  %v13213_v49 = vpop.f32.mrf.mxu0  ;;  %v5616_v51 = vld [vmem:[#allocation2 + $0x171] sm:$0xff] }
 0x693   : > { %v4607_v19 = vsel %vm2322_vm3, %v12822_v41, %v9288_v56 }
 0x694   : > { %v6164_v2 = vadd.f32 %v6077_v23, %v5474_v35  ;;  %6010 = vmatmul.f32.gmra.mxu1 %v5801_v26  ;;  %9301 = vrot.lane.b32.xlu2 %v9300_v25, %s9409_s28  ;;  %v5477_v40 = vadd.f32 %v12599_v3, %v5364_v14  ;;  %v5161_v25 = vadd.f32 %v12459_v0, %v12703_v52 }
 0x695   : > { %8956 = vmatmul.msk.f32.gmra.mxu2 %vm2322_vm3, %v6636_v36  ;;  %v8906_v36 = vld [vmem:[%s14557_s7 + $0x100] sm:$0xff]  ;;  %v13221_v23 = vpop.f32.mrf.mxu3 }
 0x696   : > { %5434 = vmatmul.f32.gmra.mxu3 %v4605_v15  ;;  %v6200_v59 = vadd.f32 %v13098_v16, %v6164_v2  ;;  %v5617_v15 = vld [vmem:[#allocation2 + $0x181] sm:$0xff] }
 0x697   : > { %6956 = vmatpush.msra.mxu3 %v8906_v36 }
 0x698   : > { %v6232_v18 = vmax.f32 %v6200_v59, 0.0 }
 0x699   : > { %v5966_v17 = vpop.f32.mrf.mxu1  ;;  %v6638_v48 = vld [vmem:[#allocation2 + $0x32] sm:$0xff]  ;;  %v6639_v22 = vld [vmem:[#allocation2 + $0x3a] sm:$0xff]  ;;  %6957 = vmatpush.msra.mxu3 %v8905_v57 }
 0x69a   : > { %v6607_v4 = vld [vmem:[#allocation2 + $0x39] sm:$0xff]  ;;  %6264 = vst.msk [vmem:[#allocation2 + $0x49] sm:$0xff] %vm2322_vm3, %v6232_v18  ;;  %v6080_v53 = vadd.f32 %v12938_v44, %v5966_v17  ;;  %8924 = vmatmul.msk.f32.gmra.mxu0 %vm2322_vm3, %v6638_v48  ;;  %v4606_v44 = vsel %vm2322_vm3, %v12809_v24, %v9283_v32  ;;  %v5480_v24 = vadd.f32 %v12628_v47, %v5367_v21  ;;  %v13233_v7 = vpop.f32.mrf.mxu2  ;;  %v13235_v58 = vpop.f32.mrf.mxu0 }
 0x69b   : > { %v9305_v43 = vpack.i.bf16 %v5615_v12, %v6607_v4  ;;  %v5370_v47 = vadd.f32 %v13148_v31, %v5161_v25  ;;  %v5164_v32 = vadd.f32 %v12466_v39, %v12716_v63  ;;  %v14730_v63 = vld [vmem:[#allocation45_spill] sm:$0xff]  ;;  %v14734_v25 = vld [vmem:[#allocation63_spill] sm:$0xff] }
 0x69c   : > { %v6165_v3 = vadd.f32 %v6080_v53, %v5477_v40  ;;  %6013 = vmatmul.f32.gmra.mxu1 %v5802_v20  ;;  %v5618_v53 = vld [vmem:[#allocation2 + $0x189] sm:$0xff] }
 0x69d   : > { %9306 = vrot.lane.b32.xlu0 %v9305_v43, %s9409_s28  ;;  %8957 = vmatmul.msk.f32.gmra.mxu2 %vm2322_vm3, %v6637_v54  ;;  %v5483_v41 = vadd.f32 %v12657_v29, %v5370_v47  ;;  %v5381_v17 = vpop.f32.mrf.mxu3  ;;  %v5373_v29 = vadd.f32 %v13174_v38, %v5164_v32 }
 0x69e   : > { %5437 = vmatmul.f32.gmra.mxu3 %v4606_v44  ;;  %v6201_v37 = vadd.f32 %v13098_v16, %v6165_v3  ;;  %v5167_v3 = vadd.f32 %v14732_v33, %v14731_v55  ;;  %v14739_v33 = vld [vmem:[#allocation27_spill] sm:$0xff] }
 0x69f   : > { %v5486_v39 = vadd.f32 %v13038_v8, %v5373_v29  ;;  %v14738_v29 = vld [vmem:[#allocation60_spill] sm:$0xff] }
 0x6a0   : > { %v6233_v45 = vmax.f32 %v6201_v37, 0.0  ;;  %v5376_v21 = vadd.f32 %v13194_v34, %v5167_v3  ;;  %v8904_v34 = vld [vmem:[%s14557_s7 + $0xf0] sm:$0xff]  ;;  %v14740_v3 = vld [vmem:[#allocation47_spill] sm:$0xff] }
 0x6a1   : > { %v5969_v62 = vpop.f32.mrf.mxu1  ;;  %v6608_v9 = vld [vmem:[#allocation2 + $0x49] sm:$0xff]  ;;  %6958 = vmatpush.msra.mxu3 %v8904_v34 }
 0x6a2   : > { %6265 = vst.msk [vmem:[#allocation2 + $0x51] sm:$0xff] %vm2322_vm3, %v6233_v45  ;;  %v6083_v54 = vadd.f32 %v12958_v5, %v5969_v62  ;;  %8925 = vmatmul.msk.f32.gmra.mxu0 %vm2322_vm3, %v6639_v22  ;;  %v9310_v35 = vpack.i.bf16 %v5616_v51, %v6608_v9  ;;  %v13250_v12 = vpop.f32.mrf.mxu2  ;;  %v13252_v36 = vpop.f32.mrf.mxu0  ;;  %v5489_v51 = vadd.f32 %v13084_v11, %v5376_v21  ;;  %v14733_v9 = vld [vmem:[#allocation46_spill] sm:$0xff] }
 0x6a4   : > { %v6166_v26 = vadd.f32 %v6083_v54, %v5480_v24  ;;  %6016 = vmatmul.f32.gmra.mxu1 %v5803_v30  ;;  %9311 = vrot.lane.b32.xlu1 %v9310_v35, %s9409_s28 }
 0x6a5   : > { %8958 = vmatmul.msk.f32.gmra.mxu2 %vm2322_vm3, %v6638_v48  ;;  %v5384_v8 = vpop.f32.mrf.mxu3 }
 0x6a6   : > { %5440 = vmatmul.f32.gmra.mxu3 %v4607_v19  ;;  %v6202_v5 = vadd.f32 %v13098_v16, %v6166_v26  ;;  %v14735_v26 = vld [vmem:[#allocation6_spill] sm:$0xff] }
 0x6a7   : > { %v5170_v19 = vadd.f32 %v14735_v26, %v14734_v25 }
 0x6a8   : > { %v6234_v2 = vmax.f32 %v6202_v5, 0.0 }
 0x6a9   : > { %v5972_v0 = vpop.f32.mrf.mxu1  ;;  %v6640_v52 = vld [vmem:[#allocation2 + $0x4a] sm:$0xff]  ;;  %v6641_v40 = vld [vmem:[#allocation2 + $0x52] sm:$0xff]  ;;  %v5379_v47 = vadd.f32 %v13221_v23, %v5170_v19 }
 0x6aa   : > { %v6609_v14 = vld [vmem:[#allocation2 + $0x51] sm:$0xff]  ;;  %6266 = vst.msk [vmem:[#allocation2 + $0x61] sm:$0xff] %vm2322_vm3, %v6234_v2  ;;  %v6086_v59 = vadd.f32 %v12978_v50, %v5972_v0  ;;  %8926 = vmatmul.msk.f32.gmra.mxu0 %vm2322_vm3, %v6640_v52  ;;  %v13271_v35 = vpop.f32.mrf.mxu2  ;;  %v13273_v30 = vpop.f32.mrf.mxu0  ;;  %v5620_v2 = vld [vmem:[#allocation2 + $0x1a1] sm:$0xff] }
 0x6ab   : > { %v9315_v31 = vpack.i.bf16 %v5617_v15, %v6609_v14 }
 0x6ac   : > { %v6167_v18 = vadd.f32 %v6086_v59, %v5483_v41  ;;  %v5492_v59 = vadd.f32 %v13111_v6, %v5379_v47 }
 0x6ad   : > { %9316 = vrot.lane.b32.xlu2 %v9315_v31, %s9409_s28  ;;  %8959 = vmatmul.msk.f32.gmra.mxu2 %vm2322_vm3, %v6639_v22  ;;  %v14736_v31 = vld [vmem:[#allocation28_spill] sm:$0xff] }
 0x6ae   : > { %v6203_v50 = vadd.f32 %v13098_v16, %v6167_v18  ;;  %v14737_v18 = vld [vmem:[#allocation9_spill] sm:$0xff] }
 0x6af   : > { %v5173_v23 = vadd.f32 %v14738_v29, %v14737_v18 }
 0x6b0   : > { %v6235_v48 = vmax.f32 %v6203_v50, 0.0 }
 0x6b1   : > { %v5975_v4 = vpop.f32.mrf.mxu1  ;;  %v6610_v43 = vld [vmem:[#allocation2 + $0x61] sm:$0xff]  ;;  %v5382_v6 = vadd.f32 %v5381_v17, %v5173_v23 }
 0x6b2   : > { %6267 = vst.msk [vmem:[#allocation2 + $0x69] sm:$0xff] %vm2322_vm3, %v6235_v48  ;;  %v6089_v20 = vadd.f32 %v14730_v63, %v5975_v4  ;;  %8927 = vmatmul.msk.f32.gmra.mxu0 %vm2322_vm3, %v6641_v40  ;;  %v9320_v38 = vpack.i.bf16 %v5618_v53, %v6610_v43  ;;  %v13288_v48 = vpop.f32.mrf.mxu2  ;;  %v13291_v4 = vpop.f32.mrf.mxu0  ;;  %v8903_v17 = vld [vmem:[%s14557_s7 + $0xe8] sm:$0xff] }
 0x6b3   : > { %6959 = vmatpush.msra.mxu3 %v8903_v17  ;;  %v14746_v17 = vld [vmem:[#allocation7_spill] sm:$0xff] }
 0x6b4   : > { %v6168_v44 = vadd.f32 %v6089_v20, %v5486_v39  ;;  %9321 = vrot.lane.b32.xlu0 %v9320_v38, %s9409_s28  ;;  %v5495_v20 = vadd.f32 %v13136_v61, %v5382_v6 }
 0x6b5   : > { %8960 = vmatmul.msk.f32.gmra.mxu2 %vm2322_vm3, %v6640_v52  ;;  %v5387_v52 = vpop.f32.mrf.mxu3 }
 0x6b6   : > { %v6204_v37 = vadd.f32 %v13098_v16, %v6168_v44  ;;  %v5176_v44 = vadd.f32 %v14740_v3, %v14739_v33 }
 0x6b8   : > { %v6236_v56 = vmax.f32 %v6204_v37, 0.0  ;;  %v5385_v61 = vadd.f32 %v5384_v8, %v5176_v44  ;;  %v8902_v8 = vld [vmem:[%s14557_s7 + $0xe0] sm:$0xff] }
 0x6b9   : > { %v5978_v45 = vpop.f32.mrf.mxu1  ;;  %v6642_v62 = vld [vmem:[#allocation2 + $0x62] sm:$0xff]  ;;  %v6643_v14 = vld [vmem:[#allocation2 + $0x6a] sm:$0xff]  ;;  %6960 = vmatpush.msra.mxu3 %v8902_v8 }
 0x6ba   : > { %v6611_v22 = vld [vmem:[#allocation2 + $0x69] sm:$0xff]  ;;  %6268 = vst.msk [vmem:[#allocation2 + $0x79] sm:$0xff] %vm2322_vm3, %v6236_v56  ;;  %v6092_v24 = vadd.f32 %v14733_v9, %v5978_v45  ;;  %8928 = vmatmul.msk.f32.gmra.mxu0 %vm2322_vm3, %v6642_v62 }
 0x6bb   : > { %v9325_v54 = vpack.i.bf16 %v5619_v28, %v6611_v22  ;;  %v13308_v28 = vpop.f32.mrf.mxu0 }
 0x6bc   : > { %v6169_v11 = vadd.f32 %v6092_v24, %v5489_v51  ;;  %v5498_v51 = vadd.f32 %v13155_v27, %v5385_v61  ;;  %v14741_v24 = vld [vmem:[#allocation57_spill] sm:$0xff]  ;;  %v8901_v27 = vld [vmem:[%s14557_s7 + $0xd8] sm:$0xff] }
 0x6bd   : > { %9326 = vrot.lane.b32.xlu1 %v9325_v54, %s9409_s28  ;;  %8961 = vmatmul.msk.f32.gmra.mxu2 %vm2322_vm3, %v6641_v40  ;;  %v5390_v55 = vpop.f32.mrf.mxu3  ;;  %v14742_v54 = vld [vmem:[#allocation55_spill] sm:$0xff] }
 0x6be   : > { %v6205_v5 = vadd.f32 %v13098_v16, %v6169_v11  ;;  %v5179_v34 = vadd.f32 %v14742_v54, %v14741_v24  ;;  %6961 = vmatpush.msra.mxu3 %v8901_v27  ;;  %v8900_v11 = vld [vmem:[%s14557_s7 + $0xd0] sm:$0xff] }
 0x6c0   : > { %v6237_v0 = vmax.f32 %v6205_v5, 0.0  ;;  %6962 = vmatpush.msra.mxu3 %v8900_v11  ;;  %v8899_v5 = vld [vmem:[%s14557_s7 + $0xc8] sm:$0xff]  ;;  %v14749_v11 = vld [vmem:[#allocation14_spill] sm:$0xff] }
 0x6c1   : > { %v5981_v15 = vpop.f32.mrf.mxu1  ;;  %v6612_v41 = vld [vmem:[#allocation2 + $0x79] sm:$0xff] }
 0x6c2   : > { %6269 = vst.msk [vmem:[#allocation2 + $0x81] sm:$0xff] %vm2322_vm3, %v6237_v0  ;;  %v6095_v57 = vadd.f32 %v14736_v31, %v5981_v15  ;;  %8929 = vmatmul.msk.f32.gmra.mxu0 %vm2322_vm3, %v6643_v14  ;;  %v9330_v32 = vpack.i.bf16 %v5620_v2, %v6612_v41  ;;  %6963 = vmatpush.msra.mxu3 %v8899_v5  ;;  %v8898_v31 = vld [vmem:[%s14557_s7 + $0xc0] sm:$0xff] }
 0x6c3   : > { %v13333_v41 = vpop.f32.mrf.mxu0 }
 0x6c4   : > { %v6170_v50 = vadd.f32 %v6095_v57, %v5492_v59  ;;  %9331 = vrot.lane.b32.xlu2 %v9330_v32, %s9409_s28  ;;  %6964 = vmatpush.msra.mxu3 %v8898_v31  ;;  %v14743_v57 = vld [vmem:[#allocation11_spill] sm:$0xff]  ;;  %v14744_v32 = vld [vmem:[#allocation20_spill] sm:$0xff] }
 0x6c5   : > { %8962 = vmatmul.msk.f32.gmra.mxu2 %vm2322_vm3, %v6642_v62  ;;  %v5393_v26 = vpop.f32.mrf.mxu3  ;;  %v5182_v18 = vadd.f32 %v14744_v32, %v14743_v57  ;;  %v5580_v32 = vld [vmem:[#allocation2 + $0x140] sm:$0xff] }
 0x6c6   : > { %v6206_v40 = vadd.f32 %v13098_v16, %v6170_v50 }
 0x6c8   : > { %v6238_v53 = vmax.f32 %v6206_v40, 0.0 }
 0x6c9   : > { %v5984_v43 = vpop.f32.mrf.mxu1  ;;  %v6613_v39 = vld [vmem:[#allocation2 + $0x81] sm:$0xff] }
 0x6ca   : > { %v6644_v63 = vld [vmem:[#allocation2 + $0x7a] sm:$0xff]  ;;  %6270 = vst.msk [vmem:[#allocation2 + $0x91] sm:$0xff] %vm2322_vm3, %v6238_v53  ;;  %v6098_v38 = vadd.f32 %v13108_v13, %v5984_v43  ;;  %6718 = vrot.lane.b32.xlu0 %v6613_v39, %s9409_s28  ;;  %v13306_v13 = vpop.f32.mrf.mxu2  ;;  %v6645_v62 = vld [vmem:[#allocation2 + $0x82] sm:$0xff] }
 0x6cb   : > { %8930 = vmatmul.msk.f32.gmra.mxu0 %vm2322_vm3, %v6644_v63 }
 0x6cc   : > { %v6171_v21 = vadd.f32 %v6098_v38, %v5495_v20  ;;  %v13354_v20 = vpop.f32.mrf.mxu0  ;;  %v14745_v38 = vld [vmem:[#allocation12_spill] sm:$0xff] }
 0x6cd   : > { %8963 = vmatmul.msk.f32.gmra.mxu2 %vm2322_vm3, %v6643_v14  ;;  %v5396_v50 = vpop.f32.mrf.mxu3 }
 0x6ce   : > { %v6207_v37 = vadd.f32 %v13098_v16, %v6171_v21 }
 0x6d0   : > { %v6239_v56 = vmax.f32 %v6207_v37, 0.0 }
 0x6d1   : > { %v5987_v45 = vpop.f32.mrf.mxu1  ;;  %v6614_v22 = vld [vmem:[#allocation2 + $0x91] sm:$0xff] }
 0x6d2   : > { %6271 = vst.msk [vmem:[#allocation2 + $0x99] sm:$0xff] %vm2322_vm3, %v6239_v56  ;;  %v6101_v9 = vadd.f32 %v13134_v1, %v5987_v45  ;;  %6720 = vrot.lane.b32.xlu1 %v6614_v22, %s9409_s28  ;;  %v5388_v1 = vadd.f32 %v5387_v52, %v5179_v34  ;;  %v13331_v2 = vpop.f32.mrf.mxu2  ;;  %v14748_v22 = vld [vmem:[#allocation64_spill] sm:$0xff] }
 0x6d3   : > { %8931 = vmatmul.msk.f32.gmra.mxu0 %vm2322_vm3, %v6645_v62 }
 0x6d4   : > { %v6172_v25 = vadd.f32 %v6101_v9, %v5498_v51  ;;  %v5501_v52 = vadd.f32 %v13184_v46, %v5388_v1  ;;  %v5391_v46 = vadd.f32 %v5390_v55, %v5182_v18  ;;  %v5185_v55 = vadd.f32 %v14746_v17, %v14745_v38  ;;  %v13370_v24 = vpop.f32.mrf.mxu0  ;;  %v6572_v18 = vld [vmem:[#allocation2 + $0x18] sm:$0xff] }
 0x6d5   : > { %8964 = vmatmul.msk.f32.gmra.mxu2 %vm2322_vm3, %v6644_v63  ;;  %v5399_v21 = vpop.f32.mrf.mxu3 }
 0x6d6   : > { %v6208_v19 = vadd.f32 %v13098_v16, %v6172_v25  ;;  %v5504_v43 = vadd.f32 %v13213_v49, %v5391_v46  ;;  %v5394_v3 = vadd.f32 %v5393_v26, %v5185_v55 }
 0x6d8   : > { %v6240_v47 = vmax.f32 %v6208_v19, 0.0  ;;  %v5507_v56 = vadd.f32 %v13235_v58, %v5394_v3 }
 0x6d9   : > { %v5990_v0 = vpop.f32.mrf.mxu1  ;;  %v6615_v15 = vld [vmem:[#allocation2 + $0x99] sm:$0xff] }
 0x6da   : > { %v6646_v14 = vld [vmem:[#allocation2 + $0x92] sm:$0xff]  ;;  %6272 = vst.msk [vmem:[#allocation2 + $0xa9] sm:$0xff] %vm2322_vm3, %v6240_v47  ;;  %v6104_v59 = vadd.f32 %v13153_v42, %v5990_v0  ;;  %6722 = vrot.lane.b32.xlu2 %v6615_v15, %s9409_s28  ;;  %v6647_v53 = vld [vmem:[#allocation2 + $0x9a] sm:$0xff]  ;;  %v13352_v63 = vpop.f32.mrf.mxu2 }
 0x6db   : > { %8932 = vmatmul.msk.f32.gmra.mxu0 %vm2322_vm3, %v6646_v14  ;;  %v14750_v47 = vld [vmem:[#allocation50_spill] sm:$0xff] }
 0x6dc   : > { %v6173_v29 = vadd.f32 %v6104_v59, %v5501_v52  ;;  %v5191_v5 = vadd.f32 %v14750_v47, %v14749_v11  ;;  %v5582_v11 = vld [vmem:[#allocation2 + $0x158] sm:$0xff]  ;;  %v6574_v47 = vld [vmem:[#allocation2 + $0x30] sm:$0xff] }
 0x6dd   : > { %8965 = vmatmul.msk.f32.gmra.mxu2 %vm2322_vm3, %v6645_v62  ;;  %v14747_v62 = vld [vmem:[#allocation13_spill] sm:$0xff]  ;;  %v5402_v19 = vpop.f32.mrf.mxu3 }
 0x6de   : > { %v6209_v23 = vadd.f32 %v13098_v16, %v6173_v29  ;;  %v5188_v51 = vadd.f32 %v14748_v22, %v14747_v62  ;;  %v5400_v15 = vadd.f32 %v5399_v21, %v5191_v5  ;;  %v6573_v21 = vld [vmem:[#allocation2 + $0x20] sm:$0xff] }
 0x6e0   : > { %v6241_v42 = vmax.f32 %v6209_v23, 0.0  ;;  %v5397_v54 = vadd.f32 %v5396_v50, %v5188_v51 }
 0x6e1   : > { %v5993_v6 = vpop.f32.mrf.mxu1  ;;  %v6616_v40 = vld [vmem:[#allocation2 + $0xa9] sm:$0xff] }
 0x6e2   : > { %6273 = vst.msk [vmem:[#allocation2 + $0xb1] sm:$0xff] %vm2322_vm3, %v6241_v42  ;;  %v6107_v39 = vadd.f32 %v13180_v10, %v5993_v6  ;;  %6724 = vrot.lane.b32.xlu0 %v6616_v40, %s9409_s28  ;;  %v13367_v8 = vpop.f32.mrf.mxu2  ;;  %v5510_v26 = vadd.f32 %v13252_v36, %v5397_v54  ;;  %v5513_v6 = vadd.f32 %v13273_v30, %v5400_v15 }
 0x6e3   : > { %8933 = vmatmul.msk.f32.gmra.mxu0 %vm2322_vm3, %v6647_v53 }
 0x6e4   : > { %v6174_v33 = vadd.f32 %v6107_v39, %v5504_v43  ;;  %v14752_v43 = vld [vmem:[#allocation58_spill] sm:$0xff] }
 0x6e5   : > { %8966 = vmatmul.msk.f32.gmra.mxu2 %vm2322_vm3, %v6646_v14  ;;  %v5405_v17 = vpop.f32.mrf.mxu3 }
 0x6e6   : > { %v6210_v49 = vadd.f32 %v13098_v16, %v6174_v33 }
 0x6e8   : > { %v6242_v44 = vmax.f32 %v6210_v49, 0.0 }
 0x6e9   : > { %v5996_v10 = vpop.f32.mrf.mxu1  ;;  %v6648_v61 = vld [vmem:[#allocation2 + $0xaa] sm:$0xff]  ;;  %v6649_v27 = vld [vmem:[#allocation2 + $0xb2] sm:$0xff] }
 0x6ea   : > { %v6617_v37 = vld [vmem:[#allocation2 + $0xb1] sm:$0xff]  ;;  %6274 = vst.msk [vmem:[#allocation2 + $0xc1] sm:$0xff] %vm2322_vm3, %v6242_v44  ;;  %v6110_v45 = vadd.f32 %v13210_v60, %v5996_v10  ;;  %v13382_v36 = vpop.f32.mrf.mxu2 }
 0x6eb   : > { %8934 = vmatmul.msk.f32.gmra.mxu0 %vm2322_vm3, %v6648_v61  ;;  %6726 = vrot.lane.b32.xlu1 %v6617_v37, %s9409_s28  ;;  %v5581_v44 = vld [vmem:[#allocation2 + $0x150] sm:$0xff] }
 0x6ec   : > { %v6175_v9 = vadd.f32 %v6110_v45, %v5507_v56 }
 0x6ed   : > { %8967 = vmatmul.msk.f32.gmra.mxu2 %vm2322_vm3, %v6647_v53  ;;  %v14751_v53 = vld [vmem:[#allocation15_spill] sm:$0xff] }
 0x6ee   : > { %v6211_v58 = vadd.f32 %v13098_v16, %v6175_v9  ;;  %v5194_v39 = vadd.f32 %v14752_v43, %v14751_v53  ;;  %v9302_v51 = vpop.permute.xlu2 %9301  ;;  %v5583_v53 = vld [vmem:[#allocation2 + $0x168] sm:$0xff]  ;;  %v6575_v43 = vld [vmem:[#allocation2 + $0x38] sm:$0xff] }
 0x6f0   : > { %v6243_v34 = vmax.f32 %v6211_v58, 0.0  ;;  %v5403_v55 = vadd.f32 %v5402_v19, %v5194_v39  ;;  %v14753_v58 = vld [vmem:[#allocation41_spill] sm:$0xff]  ;;  %v5408_v19 = vpop.f32.mrf.mxu3 }
 0x6f1   : > { %v5999_v25 = vpop.f32.mrf.mxu1  ;;  %v6618_v60 = vld [vmem:[#allocation2 + $0xc1] sm:$0xff] }
 0x6f2   : > { %6275 = vst.msk [vmem:[#allocation2 + $0xc9] sm:$0xff] %vm2322_vm3, %v6243_v34  ;;  %v6113_v1 = vadd.f32 %v13233_v7, %v5999_v25  ;;  %6728 = vrot.lane.b32.xlu2 %v6618_v60, %s9409_s28  ;;  %v13384_v7 = vpop.f32.mrf.mxu0  ;;  %v13397_v10 = vpop.f32.mrf.mxu2  ;;  %v5516_v22 = vadd.f32 %v13291_v4, %v5403_v55  ;;  %v14754_v34 = vld [vmem:[#allocation22_spill] sm:$0xff] }
 0x6f3   : > { %8935 = vmatmul.msk.f32.gmra.mxu0 %vm2322_vm3, %v6649_v27  ;;  %v5197_v25 = vadd.f32 %v14754_v34, %v14753_v58  ;;  %v6576_v58 = vld [vmem:[#allocation2 + $0x48] sm:$0xff] }
 0x6f4   : > { %v6176_v0 = vadd.f32 %v6113_v1, %v5510_v26  ;;  %v9303_v26 = vunpack.i.l.bf16 %v9302_v51 }
 0x6f5   : > { %8968 = vmatmul.msk.f32.gmra.mxu2 %vm2322_vm3, %v6648_v61  ;;  %v5406_v4 = vadd.f32 %v5405_v17, %v5197_v25 }
 0x6f6   : > { %v6212_v14 = vadd.f32 %v13098_v16, %v6176_v0  ;;  %v9292_v52 = vpop.permute.xlu0 %9291  ;;  %v6798_v15 = vsel %vm2322_vm3, %v6574_v47, %v9303_v26  ;;  %v14760_v47 = vld [vmem:[#allocation54_spill] sm:$0xff] }
 0x6f7   : > { %v9294_v59 = vunpack.i.h.bf16 %v9292_v52  ;;  %v9293_v31 = vunpack.i.l.bf16 %v9292_v52 }
 0x6f8   : > { %v6244_v57 = vmax.f32 %v6212_v14, 0.0  ;;  %v5411_v39 = vpop.f32.mrf.mxu3 }
 0x6f9   : > { %v6002_v29 = vpop.f32.mrf.mxu1  ;;  %v5804_v46 = vsel %vm2322_vm3, %v5580_v32, %v9294_v59  ;;  %v6796_v23 = vsel %vm2322_vm3, %v6572_v18, %v9293_v31  ;;  %v6619_v50 = vld [vmem:[#allocation2 + $0xc9] sm:$0xff]  ;;  %v5519_v59 = vadd.f32 %v13308_v28, %v5406_v4 }
 0x6fa   : > { %v6650_v42 = vld [vmem:[#allocation2 + $0xc2] sm:$0xff]  ;;  %6276 = vst.msk [vmem:[#allocation2 + $0xd9] sm:$0xff] %vm2322_vm3, %v6244_v57  ;;  %v6116_v40 = vadd.f32 %v13250_v12, %v6002_v29  ;;  %6019 = vmatmul.f32.gmra.mxu1 %v5804_v46  ;;  %6965 = vmatmul.f32.vlgmr.msra.gmra.mxu3 %v6796_v23  ;;  %v13401_v62 = vpop.f32.mrf.mxu0  ;;  %v6651_v54 = vld [vmem:[#allocation2 + $0xca] sm:$0xff]  ;;  %v13417_v57 = vpop.f32.mrf.mxu2 }
 0x6fb   : > { %6730 = vrot.lane.b32.xlu0 %v6619_v50, %s9409_s28  ;;  %8936 = vmatmul.msk.f32.gmra.mxu0 %vm2322_vm3, %v6650_v42  ;;  %v14755_v18 = vld [vmem:[#allocation17_spill] sm:$0xff]  ;;  %v14756_v29 = vld [vmem:[#allocation52_spill] sm:$0xff] }
 0x6fc   : > { %v6177_v38 = vadd.f32 %v6116_v40, %v5513_v6  ;;  %v5200_v46 = vadd.f32 %v14756_v29, %v14755_v18  ;;  %v5585_v18 = vld [vmem:[#allocation2 + $0x180] sm:$0xff] }
 0x6fd   : > { %8969 = vmatmul.msk.f32.gmra.mxu2 %vm2322_vm3, %v6649_v27  ;;  %v9304_v27 = vunpack.i.h.bf16 %v9302_v51 }
 0x6fe   : > { %v6213_v30 = vadd.f32 %v13098_v16, %v6177_v38  ;;  %v5409_v28 = vadd.f32 %v5408_v19, %v5200_v46 }
 0x6ff   : > { %v9297_v33 = vpop.permute.xlu1 %9296  ;;  %v5806_v0 = vsel %vm2322_vm3, %v5582_v11, %v9304_v27  ;;  %v14759_v11 = vld [vmem:[#allocation19_spill] sm:$0xff] }
 0x700   : > { %v9299_v3 = vunpack.i.h.bf16 %v9297_v33  ;;  %v9298_v49 = vunpack.i.l.bf16 %v9297_v33  ;;  %v6245_v12 = vmax.f32 %v6213_v30, 0.0  ;;  %v5522_v33 = vadd.f32 %v13333_v41, %v5409_v28  ;;  %v6577_v28 = vld [vmem:[#allocation2 + $0x50] sm:$0xff] }
 0x701   : > { %v6005_v61 = vpop.f32.mrf.mxu1  ;;  %v6620_v45 = vld [vmem:[#allocation2 + $0xd9] sm:$0xff] }
 0x702   : > { %v5805_v37 = vsel %vm2322_vm3, %v5581_v44, %v9299_v3  ;;  %v6797_v56 = vsel %vm2322_vm3, %v6573_v21, %v9298_v49  ;;  %6277 = vst.msk [vmem:[#allocation2 + $0xe1] sm:$0xff] %vm2322_vm3, %v6245_v12  ;;  %v6119_v9 = vadd.f32 %v13271_v35, %v6005_v61  ;;  %6732 = vrot.lane.b32.xlu1 %v6620_v45, %s9409_s28  ;;  %v13421_v32 = vpop.f32.mrf.mxu0  ;;  %v14757_v44 = vld [vmem:[#allocation42_spill] sm:$0xff]  ;;  %v14758_v21 = vld [vmem:[#allocation24_spill] sm:$0xff] }
 0x703   : > { %6022 = vmatmul.f32.gmra.mxu1 %v5805_v37  ;;  %6968 = vmatmul.f32.gmra.mxu3 %v6797_v56  ;;  %v5203_v61 = vadd.f32 %v14758_v21, %v14757_v44  ;;  %v13441_v56 = vpop.f32.mrf.mxu2 }
 0x704   : > { %8937 = vmatmul.msk.f32.gmra.mxu0 %vm2322_vm3, %v6651_v54  ;;  %v6178_v60 = vadd.f32 %v6119_v9, %v5516_v22 }
 0x705   : > { %8970 = vmatmul.msk.f32.gmra.mxu2 %vm2322_vm3, %v6650_v42  ;;  %v5412_v41 = vadd.f32 %v5411_v39, %v5203_v61 }
 0x706   : > { %v6214_v1 = vadd.f32 %v13098_v16, %v6178_v60 }
 0x707   : > { %v5525_v4 = vadd.f32 %v13354_v20, %v5412_v41 }
 0x708   : > { %v6246_v35 = vmax.f32 %v6214_v1, 0.0  ;;  %v9317_v1 = vpop.permute.xlu2 %9316 }
 0x709   : > { %v6008_v5 = vpop.f32.mrf.mxu1  ;;  %v6621_v14 = vld [vmem:[#allocation2 + $0xe1] sm:$0xff] }
 0x70a   : > { %v6652_v52 = vld [vmem:[#allocation2 + $0xda] sm:$0xff]  ;;  %6278 = vst.msk [vmem:[#allocation2 + $0xf1] sm:$0xff] %vm2322_vm3, %v6246_v35  ;;  %v6122_v31 = vadd.f32 %v13288_v48, %v6008_v5  ;;  %6734 = vrot.lane.b32.xlu2 %v6621_v14, %s9409_s28  ;;  %v6653_v49 = vld [vmem:[#allocation2 + $0xe2] sm:$0xff]  ;;  %v13437_v12 = vpop.f32.mrf.mxu0  ;;  %v5414_v35 = vpop.f32.mrf.mxu3  ;;  %v5206_v5 = vadd.f32 %v14760_v47, %v14759_v11 }
 0x70b   : > { %6025 = vmatmul.f32.gmra.mxu1 %v5806_v0  ;;  %6971 = vmatmul.f32.gmra.mxu3 %v6798_v15  ;;  %v9319_v15 = vunpack.i.h.bf16 %v9317_v1  ;;  %v6580_v11 = vld [vmem:[#allocation2 + $0x78] sm:$0xff] }
 0x70c   : > { %8938 = vmatmul.msk.f32.gmra.mxu0 %vm2322_vm3, %v6652_v52  ;;  %v6179_v23 = vadd.f32 %v6122_v31, %v5519_v59  ;;  %v5415_v14 = vadd.f32 %v5414_v35, %v5206_v5  ;;  %v13461_v59 = vpop.f32.mrf.mxu2  ;;  %v13514_v5 = vld [vmem:[%s14557_s7 + $0x238] sm:$0xff] }
 0x70d   : > { %8971 = vmatmul.msk.f32.gmra.mxu2 %vm2322_vm3, %v6651_v54  ;;  %v5584_v54 = vld [vmem:[#allocation2 + $0x170] sm:$0xff]  ;;  %7995 = vmatpush.msrb.mxu0 %v13514_v5 }
 0x70e   : > { %v6215_v50 = vadd.f32 %v13098_v16, %v6179_v23  ;;  %v5809_v23 = vsel %vm2322_vm3, %v5585_v18, %v9319_v15 }
 0x70f   : > { %v9307_v48 = vpop.permute.xlu0 %9306 }
 0x710   : > { %v9309_v42 = vunpack.i.h.bf16 %v9307_v48  ;;  %v9308_v6 = vunpack.i.l.bf16 %v9307_v48  ;;  %v6247_v40 = vmax.f32 %v6215_v50, 0.0  ;;  %v5528_v50 = vadd.f32 %v13370_v24, %v5415_v14 }
 0x711   : > { %v6011_v38 = vpop.f32.mrf.mxu1  ;;  %v13429_v30 = vld [vmem:[#allocation2 + $0xf1] sm:$0xff] }
 0x712   : > { %v5807_v17 = vsel %vm2322_vm3, %v5583_v53, %v9309_v42  ;;  %v6799_v55 = vsel %vm2322_vm3, %v6575_v43, %v9308_v6  ;;  %6279 = vst.msk [vmem:[#allocation2 + $0xf9] sm:$0xff] %vm2322_vm3, %v6247_v40  ;;  %v6125_v3 = vadd.f32 %v13306_v13, %v6011_v38  ;;  %6736 = vrot.lane.b32.xlu0 %v13429_v30, %s9409_s28  ;;  %v13458_v20 = vpop.f32.mrf.mxu0  ;;  %v9001_v40 = vld [vmem:[%s14557_s7 + $0x1f8] sm:$0xff] }
 0x713   : > { %6028 = vmatmul.f32.gmra.mxu1 %v5807_v17  ;;  %6974 = vmatmul.f32.gmra.mxu3 %v6799_v55  ;;  %v5586_v55 = vld [vmem:[#allocation2 + $0x188] sm:$0xff] }
 0x714   : > { %8939 = vmatmul.msk.f32.gmra.mxu0 %vm2322_vm3, %v6653_v49  ;;  %v6180_v37 = vadd.f32 %v6125_v3, %v5522_v33  ;;  %7874 = vmatpush.msrb.mxu3 %v9001_v40  ;;  %v6578_v33 = vld [vmem:[#allocation2 + $0x60] sm:$0xff]  ;;  %v13480_v3 = vpop.f32.mrf.mxu2 }
 0x715   : > { %8972 = vmatmul.msk.f32.gmra.mxu2 %vm2322_vm3, %v6652_v52  ;;  %v9318_v52 = vunpack.i.l.bf16 %v9317_v1 }
 0x716   : > { %v6216_v13 = vadd.f32 %v13098_v16, %v6180_v37  ;;  %v9312_v45 = vpop.permute.xlu1 %9311  ;;  %v5587_v37 = vld [vmem:[#allocation2 + $0x198] sm:$0xff] }
 0x717   : > { %v9314_v22 = vunpack.i.h.bf16 %v9312_v45  ;;  %v9313_v51 = vunpack.i.l.bf16 %v9312_v45  ;;  %v6801_v42 = vsel %vm2322_vm3, %v6577_v28, %v9318_v52  ;;  %v6579_v45 = vld [vmem:[#allocation2 + $0x68] sm:$0xff]  ;;  %v6562_v52 = vld [vmem:[%s14557_s7 + $0x70] sm:$0xff] }
 0x718   : > { %v6248_v9 = vmax.f32 %v6216_v13, 0.0 }
 0x719   : > { %v6014_v34 = vpop.f32.mrf.mxu1  ;;  %v6654_v25 = vld [vmem:[#allocation2 + $0xf2] sm:$0xff]  ;;  %v5808_v27 = vsel %vm2322_vm3, %v5584_v54, %v9314_v22  ;;  %v6800_v26 = vsel %vm2322_vm3, %v6576_v58, %v9313_v51  ;;  %v6655_v6 = vld [vmem:[#allocation2 + $0xfa] sm:$0xff] }
 0x71a   : > { %v13445_v60 = vld [vmem:[#allocation2 + $0xf9] sm:$0xff]  ;;  %6280 = vst.msk [vmem:[#allocation2 + $0x109] sm:$0xff] %vm2322_vm3, %v6248_v9  ;;  %v6128_v19 = vadd.f32 %v13331_v2, %v6014_v34  ;;  %v13478_v38 = vpop.f32.mrf.mxu0 }
 0x71b   : > { %6738 = vrot.lane.b32.xlu1 %v13445_v60, %s9409_s28  ;;  %6031 = vmatmul.f32.gmra.mxu1 %v5808_v27  ;;  %v6563_v22 = vld [vmem:[%s14557_s7 + $0x78] sm:$0xff] }
 0x71c   : > { %8940 = vmatmul.msk.f32.gmra.mxu0 %vm2322_vm3, %v6654_v25  ;;  %6977 = vmatmul.f32.gmra.mxu3 %v6800_v26  ;;  %v6181_v0 = vadd.f32 %v6128_v19, %v5525_v4  ;;  %v13502_v27 = vpop.f32.mrf.mxu2  ;;  %v9000_v26 = vld [vmem:[%s14557_s7 + $0x1f0] sm:$0xff]  ;;  %v5588_v19 = vld [vmem:[#allocation2 + $0x1a0] sm:$0xff] }
 0x71d   : > { %8973 = vmatmul.msk.f32.gmra.mxu2 %vm2322_vm3, %v6653_v49  ;;  %7271 = vmatpush.msrb.mxu1 %v6563_v22  ;;  %v6560_v22 = vld [vmem:[%s14557_s7 + $0x60] sm:$0xff] }
 0x71e   : > { %v6217_v2 = vadd.f32 %v13098_v16, %v6181_v0  ;;  %v9332_v34 = vpop.permute.xlu2 %9331  ;;  %7875 = vmatpush.msrb.mxu3 %v9000_v26 }
 0x71f   : > { %v9334_v4 = vunpack.i.h.bf16 %v9332_v34  ;;  %v9333_v1 = vunpack.i.l.bf16 %v9332_v34  ;;  %7272 = vmatpush.msrb.mxu1 %v6562_v52 }
 0x720   : > { %v6249_v31 = vmax.f32 %v6217_v2, 0.0  ;;  %v6581_v2 = vld [vmem:[#allocation2 + $0x80] sm:$0xff] }
 0x721   : > { %v6017_v29 = vpop.f32.mrf.mxu1  ;;  %v13463_v46 = vld [vmem:[#allocation2 + $0x109] sm:$0xff]  ;;  %v5812_v35 = vsel %vm2322_vm3, %v5588_v19, %v9334_v4  ;;  %v6804_v47 = vsel %vm2322_vm3, %v6580_v11, %v9333_v1  ;;  %v14761_v19 = vld [vmem:[#allocation43_spill] sm:$0xff] }
 0x722   : > { %6281 = vst.msk [vmem:[#allocation2 + $0x111] sm:$0xff] %vm2322_vm3, %v6249_v31  ;;  %v6131_v48 = vadd.f32 %v13352_v63, %v6017_v29  ;;  %6740 = vrot.lane.b32.xlu2 %v13463_v46, %s9409_s28  ;;  %v13498_v58 = vpop.f32.mrf.mxu0  ;;  %v5417_v31 = vpop.f32.mrf.mxu3  ;;  %v8999_v29 = vld [vmem:[%s14557_s7 + $0x1e8] sm:$0xff] }
 0x723   : > { %6034 = vmatmul.f32.gmra.mxu1 %v5809_v23  ;;  %7876 = vmatpush.msrb.mxu3 %v8999_v29  ;;  %v6587_v1 = vld [vmem:[#allocation2 + $0xc8] sm:$0xff] }
 0x724   : > { %6980 = vmatmul.f32.gmra.mxu3 %v6801_v42  ;;  %8941 = vmatmul.msk.f32.gmra.mxu0 %vm2322_vm3, %v6655_v6  ;;  %v6182_v53 = vadd.f32 %v6131_v48, %v5528_v50  ;;  %v13519_v15 = vpop.f32.mrf.mxu2  ;;  %v6582_v50 = vld [vmem:[#allocation2 + $0x90] sm:$0xff] }
 0x725   : > { %8974 = vmatmul.msk.f32.gmra.mxu2 %vm2322_vm3, %v6654_v25 }
 0x726   : > { %v6218_v63 = vadd.f32 %v13098_v16, %v6182_v53  ;;  %v9322_v24 = vpop.permute.xlu0 %9321  ;;  %v6561_v53 = vld [vmem:[%s14557_s7 + $0x68] sm:$0xff] }
 0x727   : > { %v9324_v43 = vunpack.i.h.bf16 %v9322_v24  ;;  %v9323_v39 = vunpack.i.l.bf16 %v9322_v24  ;;  %7273 = vmatpush.msrb.mxu1 %v6561_v53  ;;  %v6588_v53 = vld [vmem:[#allocation2 + $0xd8] sm:$0xff] }
 0x728   : > { %v6250_v17 = vmax.f32 %v6218_v63, 0.0  ;;  %v6583_v63 = vld [vmem:[#allocation2 + $0x98] sm:$0xff] }
 0x729   : > { %v13482_v49 = vld [vmem:[#allocation2 + $0x111] sm:$0xff]  ;;  %v5810_v44 = vsel %vm2322_vm3, %v5586_v55, %v9324_v43  ;;  %v6802_v21 = vsel %vm2322_vm3, %v6578_v33, %v9323_v39  ;;  %v8998_v43 = vld [vmem:[%s14557_s7 + $0x1e0] sm:$0xff]  ;;  %v6584_v33 = vld [vmem:[#allocation2 + $0xa8] sm:$0xff]  ;;  %7274 = vmatpush.msrb.mxu1 %v6560_v22 }
 0x72a   : > { %v6656_v61 = vld [vmem:[#allocation2 + $0x10a] sm:$0xff]  ;;  %6282 = vst.msk [vmem:[#allocation2 + $0x121] sm:$0xff] %vm2322_vm3, %v6250_v17  ;;  %6742 = vrot.lane.b32.xlu0 %v13482_v49, %s9409_s28  ;;  %v6657_v25 = vld [vmem:[#allocation2 + $0x112] sm:$0xff]  ;;  %v13516_v0 = vpop.f32.mrf.mxu0  ;;  %v5420_v42 = vpop.f32.mrf.mxu3  ;;  %7877 = vmatpush.msrb.mxu3 %v8998_v43 }
 0x72b   : > { %6037 = vmatmul.f32.gmra.mxu1 %v5810_v44 }
 0x72c   : > { %6983 = vmatmul.f32.gmra.mxu3 %v6802_v21  ;;  %8942 = vmatmul.msk.f32.gmra.mxu0 %vm2322_vm3, %v6656_v61  ;;  %v13585_v43 = vpop.f32.mrf.mxu2 }
 0x72d   : > { %8975 = vmatmul.msk.f32.gmra.mxu2 %vm2322_vm3, %v6655_v6 }
 0x72f   : > { %v9327_v16 = vpop.permute.xlu1 %9326 }
 0x730   : > { %v9329_v41 = vunpack.i.h.bf16 %v9327_v16  ;;  %v9328_v13 = vunpack.i.l.bf16 %v9327_v16  ;;  %v13551_v16 = vld [vmem:[%s14557_s7 + $0x230] sm:$0xff] }
 0x731   : > { %v13494_v51 = vld [vmem:[#allocation2 + $0x121] sm:$0xff]  ;;  %7996 = vmatpush.msrb.mxu0 %v13551_v16 }
 0x732   : > { %v5811_v9 = vsel %vm2322_vm3, %v5587_v37, %v9329_v41  ;;  %v6803_v54 = vsel %vm2322_vm3, %v6579_v45, %v9328_v13  ;;  %6744 = vrot.lane.b32.xlu1 %v13494_v51, %s9409_s28  ;;  %v13529_v23 = vpop.f32.mrf.mxu0  ;;  %v13541_v39 = vpop.f32.mrf.mxu3  ;;  %v6585_v37 = vld [vmem:[#allocation2 + $0xb0] sm:$0xff] }
 0x733   : > { %6040 = vmatmul.f32.gmra.mxu1 %v5811_v9  ;;  %v8997_v9 = vld [vmem:[%s14557_s7 + $0x1d8] sm:$0xff] }
 0x734   : > { %8943 = vmatmul.msk.f32.gmra.mxu0 %vm2322_vm3, %v6657_v25  ;;  %6986 = vmatmul.f32.gmra.mxu3 %v6803_v54  ;;  %v6723_v40 = vpop.permute.xlu2 %6722  ;;  %v6586_v54 = vld [vmem:[#allocation2 + $0xc0] sm:$0xff] }
 0x735   : > { %8976 = vmatmul.msk.f32.gmra.mxu2 %vm2322_vm3, %v6656_v61  ;;  %v6807_v24 = vsel %vm2322_vm3, %v6583_v63, %v6723_v40  ;;  %7878 = vmatpush.msrb.mxu3 %v8997_v9  ;;  %v8996_v40 = vld [vmem:[%s14557_s7 + $0x1d0] sm:$0xff]  ;;  %v14764_v63 = vld [vmem:[#allocation29_spill] sm:$0xff] }
 0x737   : > { %7879 = vmatpush.msrb.mxu3 %v8996_v40 }
 0x73a   : > { %v13532_v6 = vpop.f32.mrf.mxu0  ;;  %v13546_v61 = vpop.f32.mrf.mxu3 }
 0x73b   : > { %6043 = vmatmul.f32.gmra.mxu1 %v5812_v35  ;;  %v14762_v35 = vld [vmem:[#allocation10_spill] sm:$0xff] }
 0x73c   : > { %6989 = vmatmul.f32.gmra.mxu3 %v6804_v47  ;;  %v6719_v14 = vpop.permute.xlu0 %6718  ;;  %v5209_v11 = vadd.f32 %v14762_v35, %v14761_v19 }
 0x73d   : > { %8977 = vmatmul.msk.f32.gmra.mxu2 %vm2322_vm3, %v6657_v25  ;;  %v6805_v18 = vsel %vm2322_vm3, %v6581_v2, %v6719_v14 }
 0x73e   : > { %v5418_v14 = vadd.f32 %v5417_v31, %v5209_v11  ;;  %v14763_v31 = vld [vmem:[#allocation21_spill] sm:$0xff] }
 0x742   : > { %v13543_v55 = vpop.f32.mrf.mxu0  ;;  %v13563_v34 = vpop.f32.mrf.mxu3 }
 0x744   : > { %6992 = vmatmul.f32.gmra.mxu3 %v6805_v18  ;;  %v6721_v28 = vpop.permute.xlu1 %6720 }
 0x745   : > { %v6806_v48 = vsel %vm2322_vm3, %v6582_v50, %v6721_v28  ;;  %v5531_v28 = vadd.f32 %v13384_v7, %v5418_v14 }
 0x74a   : > { %v13554_v41 = vpop.f32.mrf.mxu0  ;;  %v13571_v52 = vpop.f32.mrf.mxu3 }
 0x74c   : > { %6995 = vmatmul.f32.gmra.mxu3 %v6806_v48  ;;  %v6729_v45 = vpop.permute.xlu2 %6728  ;;  %v6559_v48 = vld [vmem:[%s14557_s7 + $0x58] sm:$0xff] }
 0x74d   : > { %v6810_v25 = vsel %vm2322_vm3, %v6586_v54, %v6729_v45  ;;  %7275 = vmatpush.msrb.mxu1 %v6559_v48  ;;  %v13604_v54 = vld [vmem:[%s14557_s7 + $0x228] sm:$0xff] }
 0x74e   : > { %7997 = vmatpush.msrb.mxu0 %v13604_v54 }
 0x752   : > { %v13566_v26 = vpop.f32.mrf.mxu0 }
 0x754   : > { %6998 = vmatmul.f32.gmra.mxu3 %v6807_v24  ;;  %v6725_v17 = vpop.permute.xlu0 %6724  ;;  %v5212_v24 = vadd.f32 %v14764_v63, %v14763_v31  ;;  %v14768_v63 = vld [vmem:[#allocation31_spill] sm:$0xff] }
 0x755   : > { %v6808_v44 = vsel %vm2322_vm3, %v6584_v33, %v6725_v17  ;;  %v13591_v33 = vld [vmem:[%s14556_s6] ss:$0 sm:$0xff] }
 0x75a   : > { %v13573_v2 = vpop.f32.mrf.mxu0 }
 0x75c   : > { %7001 = vmatmul.f32.gmra.mxu3 %v6808_v44 }
 0x75d   : > { %v6727_v21 = vpop.permute.xlu1 %6726 }
 0x75e   : > { %v6809_v13 = vsel %vm2322_vm3, %v6585_v37, %v6727_v21  ;;  %v13594_v21 = vpop.f32.mrf.mxu3 }
 0x762   : > { %v13597_v9 = vpop.f32.mrf.mxu0 }
 0x764   : > { %7004 = vmatmul.f32.gmra.mxu3 %v6809_v13  ;;  %v6735_v13 = vpop.permute.xlu2 %6734 }
 0x766   : > { %v13628_v31 = vpop.f32.mrf.mxu3 }
 0x76c   : > { %7007 = vmatmul.f32.gmra.mxu3 %v6810_v25  ;;  %v6589_v25 = vld [vmem:[#allocation2 + $0xe0] sm:$0xff] }
 0x76d   : > { %v6731_v4 = vpop.permute.xlu0 %6730 }
 0x76e   : > { %v6811_v47 = vsel %vm2322_vm3, %v6587_v1, %v6731_v4  ;;  %v14765_v4 = vld [vmem:[#allocation62_spill] sm:$0xff]  ;;  %v14766_v1 = vld [vmem:[#allocation61_spill] sm:$0xff] }
 0x76f   : > { %v5215_v19 = vadd.f32 %v14766_v1, %v14765_v4 }
 0x771   : > { %v5424_v11 = vadd.f32 %v13541_v39, %v5215_v19  ;;  %v6558_v39 = vld [vmem:[%s14557_s7 + $0x50] sm:$0xff] }
 0x772   : > { %7276 = vmatpush.msrb.mxu1 %v6558_v39 }
 0x773   : > { %v5537_v48 = vadd.f32 %v13421_v32, %v5424_v11  ;;  %v6590_v32 = vld [vmem:[#allocation2 + $0xf0] sm:$0xff] }
 0x774   : > { %7010 = vmatmul.f32.gmra.mxu3 %v6811_v47  ;;  %v6733_v18 = vpop.permute.xlu1 %6732  ;;  %v13611_v47 = vpop.f32.mrf.mxu2 }
 0x775   : > { %v6812_v7 = vsel %vm2322_vm3, %v6588_v53, %v6733_v18  ;;  %v8995_v53 = vld [vmem:[%s14557_s7 + $0x1c8] sm:$0xff] }
 0x776   : > { %7880 = vmatpush.msrb.mxu3 %v8995_v53 }
 0x777   : > { %v6020_v29 = vpop.f32.mrf.mxu1 }
 0x778   : > { %v6134_v50 = vadd.f32 %v13367_v8, %v6020_v29  ;;  %v5421_v8 = vadd.f32 %v5420_v42, %v5212_v24 }
 0x77a   : > { %v6183_v17 = vadd.f32 %v6134_v50, %v5531_v28  ;;  %v5534_v22 = vadd.f32 %v13401_v62, %v5421_v8  ;;  %v6813_v62 = vsel %vm2322_vm3, %v6589_v25, %v6735_v13 }
 0x77c   : > { %7013 = vmatmul.f32.gmra.mxu3 %v6812_v7  ;;  %v6219_v44 = vadd.f32 %v13591_v33, %v6183_v17  ;;  %v13633_v17 = vpop.f32.mrf.mxu0  ;;  %v13638_v13 = vpop.f32.mrf.mxu2 }
 0x77d   : > { %14769 = vst [vmem:[#allocation49_spill] sm:$0xff] %v13633_v17 }
 0x77e   : > { %v6251_v37 = vmax.f32 %v6219_v44, 0.0 }
 0x780   : > { %v6023_v45 = vpop.f32.mrf.mxu1  ;;  %6283 = vst.msk [vmem:[#allocation2 + $0x129] sm:$0xff] %vm2322_vm3, %v6251_v37 }
 0x781   : > { %v6137_v42 = vadd.f32 %v13382_v36, %v6023_v45 }
 0x783   : > { %v6184_v35 = vadd.f32 %v6137_v42, %v5534_v22 }
 0x784   : > { %7016 = vmatmul.f32.gmra.mxu3 %v6813_v62  ;;  %v6737_v18 = vpop.permute.xlu0 %6736  ;;  %v14771_v62 = vld [vmem:[#allocation33_spill] sm:$0xff] }
 0x785   : > { %v6220_v36 = vadd.f32 %v13591_v33, %v6184_v35  ;;  %v6814_v8 = vsel %vm2322_vm3, %v6590_v32, %v6737_v18  ;;  %v14770_v35 = vld [vmem:[#allocation44_spill] sm:$0xff]  ;;  %v13659_v18 = vpop.f32.mrf.mxu0 }
 0x786   : > { %v5221_v11 = vadd.f32 %v14771_v62, %v14770_v35  ;;  %14772 = vst [vmem:[#allocation30_spill] sm:$0xff] %v13659_v18 }
 0x787   : > { %v6252_v14 = vmax.f32 %v6220_v36, 0.0  ;;  %v13614_v28 = vld [vmem:[#allocation2 + $0x129] sm:$0xff] }
 0x788   : > { %v6026_v29 = vpop.f32.mrf.mxu1  ;;  %v6658_v50 = vld [vmem:[#allocation2 + $0x122] sm:$0xff]  ;;  %6746 = vrot.lane.b32.xlu2 %v13614_v28, %s9409_s28  ;;  %v13642_v4 = vld [vmem:[#allocation2 + $0x12a] sm:$0xff] }
 0x789   : > { %6284 = vst.msk [vmem:[#allocation2 + $0x139] sm:$0xff] %vm2322_vm3, %v6252_v14  ;;  %v6140_v40 = vadd.f32 %v13397_v10, %v6026_v29  ;;  %8944 = vmatmul.msk.f32.gmra.mxu0 %vm2322_vm3, %v6658_v50  ;;  %8978 = vmatmul.msk.f32.gmra.mxu2 %vm2322_vm3, %v6658_v50  ;;  %v14767_v10 = vld [vmem:[#allocation40_spill] sm:$0xff]  ;;  %v13656_v14 = vpop.f32.mrf.mxu3 }
 0x78a   : > { %v5218_v24 = vadd.f32 %v14768_v63, %v14767_v10  ;;  %v8994_v63 = vld [vmem:[%s14557_s7 + $0x1c0] sm:$0xff] }
 0x78b   : > { %v6185_v7 = vadd.f32 %v6140_v40, %v5537_v48  ;;  %v6741_v48 = vpop.permute.xlu2 %6740  ;;  %7881 = vmatpush.msrb.mxu3 %v8994_v63 }
 0x78c   : > { %7019 = vmatmul.f32.gmra.mxu3 %v6814_v8  ;;  %v5427_v44 = vadd.f32 %v13546_v61, %v5218_v24  ;;  %v6591_v61 = vld [vmem:[#allocation2 + $0xf8] sm:$0xff]  ;;  %v13679_v24 = vpop.f32.mrf.mxu2 }
 0x78d   : > { %v6221_v37 = vadd.f32 %v13591_v33, %v6185_v7  ;;  %v6739_v22 = vpop.permute.xlu1 %6738  ;;  %v14774_v7 = vld [vmem:[#allocation35_spill] sm:$0xff] }
 0x78e   : > { %v5540_v1 = vadd.f32 %v13437_v12, %v5427_v44  ;;  %v6815_v12 = vsel %vm2322_vm3, %v6591_v61, %v6739_v22 }
 0x78f   : > { %v6253_v45 = vmax.f32 %v6221_v37, 0.0 }
 0x790   : > { %v6029_v42 = vpop.f32.mrf.mxu1  ;;  %v13640_v25 = vld [vmem:[#allocation2 + $0x139] sm:$0xff] }
 0x791   : > { %6285 = vst.msk [vmem:[#allocation2 + $0x141] sm:$0xff] %vm2322_vm3, %v6253_v45  ;;  %v6143_v19 = vadd.f32 %v13417_v57, %v6029_v42  ;;  %6748 = vrot.lane.b32.xlu0 %v13640_v25, %s9409_s28  ;;  %8945 = vmatmul.msk.f32.gmra.mxu0 %vm2322_vm3, %v13642_v4  ;;  %v5430_v57 = vadd.f32 %v13563_v34, %v5221_v11  ;;  %v6557_v34 = vld [vmem:[%s14557_s7 + $0x48] sm:$0xff]  ;;  %v13686_v45 = vpop.f32.mrf.mxu3 }
 0x792   : > { %8979 = vmatmul.msk.f32.gmra.mxu2 %vm2322_vm3, %v13642_v4  ;;  %7277 = vmatpush.msrb.mxu1 %v6557_v34 }
 0x793   : > { %v6186_v36 = vadd.f32 %v6143_v19, %v5540_v1  ;;  %v5543_v32 = vadd.f32 %v13458_v20, %v5430_v57  ;;  %v14773_v20 = vld [vmem:[#allocation23_spill] sm:$0xff]  ;;  %v13690_v1 = vpop.f32.mrf.mxu0  ;;  %v6556_v57 = vld [vmem:[%s14557_s7 + $0x40] sm:$0xff] }
 0x794   : > { %7022 = vmatmul.f32.gmra.mxu3 %v6815_v12  ;;  %v5224_v8 = vadd.f32 %v14774_v7, %v14773_v20  ;;  %14775 = vst [vmem:[#allocation51_spill] sm:$0xff] %v13690_v1  ;;  %7278 = vmatpush.msrb.mxu1 %v6556_v57  ;;  %v7534_v1 = vld [vmem:[#allocation2 + $0x69] sm:$0xff] }
 0x795   : > { %v6222_v29 = vadd.f32 %v13591_v33, %v6186_v36 }
 0x796   : > { %v5433_v22 = vadd.f32 %v13571_v52, %v5224_v8  ;;  %v13706_v52 = vld [vmem:[%s14557_s7 + $0x220] sm:$0xff] }
 0x797   : > { %v6254_v50 = vmax.f32 %v6222_v29, 0.0  ;;  %7998 = vmatpush.msrb.mxu0 %v13706_v52  ;;  %v14776_v29 = vld [vmem:[#allocation25_spill] sm:$0xff] }
 0x798   : > { %v6032_v40 = vpop.f32.mrf.mxu1  ;;  %v13662_v39 = vld [vmem:[#allocation2 + $0x13a] sm:$0xff]  ;;  %v13694_v11 = vld [vmem:[#allocation2 + $0x142] sm:$0xff]  ;;  %v5546_v36 = vadd.f32 %v13478_v38, %v5433_v22  ;;  %v6593_v38 = vld [vmem:[#allocation2 + $0x110] sm:$0xff] }
 0x799   : > { %v13664_v53 = vld [vmem:[#allocation2 + $0x141] sm:$0xff]  ;;  %6286 = vst.msk [vmem:[#allocation2 + $0x151] sm:$0xff] %vm2322_vm3, %v6254_v50  ;;  %v6146_v10 = vadd.f32 %v13441_v56, %v6032_v40  ;;  %8946 = vmatmul.msk.f32.gmra.mxu0 %vm2322_vm3, %v13662_v39 }
 0x79a   : > { %6750 = vrot.lane.b32.xlu1 %v13664_v53, %s9409_s28  ;;  %8980 = vmatmul.msk.f32.gmra.mxu2 %vm2322_vm3, %v13662_v39  ;;  %v6592_v56 = vld [vmem:[#allocation2 + $0x108] sm:$0xff] }
 0x79b   : > { %v6187_v44 = vadd.f32 %v6146_v10, %v5543_v32  ;;  %v6816_v37 = vsel %vm2322_vm3, %v6592_v56, %v6741_v48  ;;  %v14777_v50 = vld [vmem:[#allocation37_spill] sm:$0xff]  ;;  %v13720_v10 = vpop.f32.mrf.mxu2  ;;  %v13724_v56 = vpop.f32.mrf.mxu3 }
 0x79c   : > { %7025 = vmatmul.f32.gmra.mxu3 %v6816_v37  ;;  %v6743_v61 = vpop.permute.xlu0 %6742  ;;  %v5227_v48 = vadd.f32 %v14777_v50, %v14776_v29 }
 0x79d   : > { %v6223_v42 = vadd.f32 %v13591_v33, %v6187_v44  ;;  %v6817_v32 = vsel %vm2322_vm3, %v6593_v38, %v6743_v61  ;;  %v14779_v61 = vld [vmem:[#allocation26_spill] sm:$0xff] }
 0x79e   : > { %v5436_v34 = vadd.f32 %v13594_v21, %v5227_v48  ;;  %v6594_v21 = vld [vmem:[#allocation2 + $0x120] sm:$0xff] }
 0x79f   : > { %v6255_v19 = vmax.f32 %v6223_v42, 0.0  ;;  %v13731_v42 = vpop.f32.mrf.mxu0 }
 0x7a0   : > { %v6035_v35 = vpop.f32.mrf.mxu1  ;;  %v13692_v62 = vld [vmem:[#allocation2 + $0x151] sm:$0xff]  ;;  %v5549_v22 = vadd.f32 %v13498_v58, %v5436_v34  ;;  %14778 = vst [vmem:[#allocation32_spill] sm:$0xff] %v13731_v42 }
 0x7a1   : > { %6287 = vst.msk [vmem:[#allocation2 + $0x159] sm:$0xff] %vm2322_vm3, %v6255_v19  ;;  %v6149_v12 = vadd.f32 %v13461_v59, %v6035_v35  ;;  %6752 = vrot.lane.b32.xlu2 %v13692_v62, %s9409_s28  ;;  %8947 = vmatmul.msk.f32.gmra.mxu0 %vm2322_vm3, %v13694_v11  ;;  %v8993_v59 = vld [vmem:[%s14557_s7 + $0x1b8] sm:$0xff] }
 0x7a2   : > { %8981 = vmatmul.msk.f32.gmra.mxu2 %vm2322_vm3, %v13694_v11  ;;  %7882 = vmatpush.msrb.mxu3 %v8993_v59  ;;  %v14780_v35 = vld [vmem:[#allocation39_spill] sm:$0xff] }
 0x7a3   : > { %v6188_v40 = vadd.f32 %v6149_v12, %v5546_v36  ;;  %v5230_v36 = vadd.f32 %v14780_v35, %v14779_v61  ;;  %v13746_v38 = vpop.f32.mrf.mxu2  ;;  %v13748_v29 = vpop.f32.mrf.mxu3 }
 0x7a4   : > { %7028 = vmatmul.f32.gmra.mxu3 %v6817_v32  ;;  %v6745_v7 = vpop.permute.xlu1 %6744  ;;  %v6555_v32 = vld [vmem:[%s14557_s7 + $0x38] sm:$0xff] }
 0x7a5   : > { %v6224_v63 = vadd.f32 %v13591_v33, %v6188_v40  ;;  %v6818_v12 = vsel %vm2322_vm3, %v6594_v21, %v6745_v7  ;;  %v5439_v57 = vadd.f32 %v13628_v31, %v5230_v36  ;;  %7279 = vmatpush.msrb.mxu1 %v6555_v32 }
 0x7a7   : > { %v6256_v20 = vmax.f32 %v6224_v63, 0.0  ;;  %v5552_v34 = vadd.f32 %v13516_v0, %v5439_v57  ;;  %v13769_v63 = vld [vmem:[%s14557_s7 + $0x218] sm:$0xff]  ;;  %v13774_v0 = vld [vmem:[%s14557_s7 + $0x210] sm:$0xff] }
 0x7a8   : > { %v6038_v8 = vpop.f32.mrf.mxu1  ;;  %v13726_v44 = vld [vmem:[#allocation2 + $0x152] sm:$0xff]  ;;  %v13750_v48 = vld [vmem:[#allocation2 + $0x15a] sm:$0xff]  ;;  %7999 = vmatpush.msrb.mxu0 %v13769_v63 }
 0x7a9   : > { %v13728_v37 = vld [vmem:[#allocation2 + $0x159] sm:$0xff]  ;;  %6288 = vst.msk [vmem:[#allocation2 + $0x169] sm:$0xff] %vm2322_vm3, %v6256_v20  ;;  %v6152_v19 = vadd.f32 %v13480_v3, %v6038_v8  ;;  %8948 = vmatmul.msk.f32.gmra.mxu0 %vm2322_vm3, %v13726_v44  ;;  %v13778_v8 = vpop.f32.mrf.mxu0 }
 0x7aa   : > { %6754 = vrot.lane.b32.xlu0 %v13728_v37, %s9409_s28  ;;  %8982 = vmatmul.msk.f32.gmra.mxu2 %vm2322_vm3, %v13726_v44  ;;  %v14782_v20 = vld [vmem:[#allocation16_spill] sm:$0xff]  ;;  %14783 = vst [vmem:[#allocation53_spill] sm:$0xff] %v13778_v8 }
 0x7ab   : > { %v6189_v58 = vadd.f32 %v6152_v19, %v5549_v22  ;;  %v8992_v19 = vld [vmem:[%s14557_s7 + $0x1b0] sm:$0xff]  ;;  %8000 = vmatpush.msrb.mxu0 %v13774_v0  ;;  %v13787_v36 = vpop.f32.mrf.mxu2  ;;  %v8990_v8 = vld [vmem:[%s14557_s7 + $0x1a0] sm:$0xff] }
 0x7ac   : > { %7031 = vmatmul.f32.gmra.mxu3 %v6818_v12  ;;  %14784 = vst [vmem:[#allocation34_spill] sm:$0xff] %v13787_v36  ;;  %v6595_v36 = vld [vmem:[#allocation2 + $0x128] sm:$0xff] }
 0x7ad   : > { %v6225_v3 = vadd.f32 %v13591_v33, %v6189_v58  ;;  %7883 = vmatpush.msrb.mxu3 %v8992_v19 }
 0x7af   : > { %v6257_v59 = vmax.f32 %v6225_v3, 0.0 }
 0x7b0   : > { %v6041_v50 = vpop.f32.mrf.mxu1  ;;  %v13752_v40 = vld [vmem:[#allocation2 + $0x169] sm:$0xff] }
 0x7b1   : > { %6289 = vst.msk [vmem:[#allocation2 + $0x171] sm:$0xff] %vm2322_vm3, %v6257_v59  ;;  %v6155_v31 = vadd.f32 %v13502_v27, %v6041_v50  ;;  %8949 = vmatmul.msk.f32.gmra.mxu0 %vm2322_vm3, %v13750_v48  ;;  %6756 = vrot.lane.b32.xlu1 %v13752_v40, %s9409_s28  ;;  %v14781_v27 = vld [vmem:[#allocation48_spill] sm:$0xff]  ;;  %v13816_v32 = vpop.f32.mrf.mxu0 }
 0x7b2   : > { %8983 = vmatmul.msk.f32.gmra.mxu2 %vm2322_vm3, %v13750_v48  ;;  %v5233_v7 = vadd.f32 %v14782_v20, %v14781_v27  ;;  %v13808_v50 = vld [vmem:[%s14557_s7 + $0x200] sm:$0xff]  ;;  %14785 = vst [vmem:[#allocation56_spill] sm:$0xff] %v13816_v32  ;;  %v7529_v27 = vld [vmem:[#allocation2 + $0x31] sm:$0xff] }
 0x7b3   : > { %v6190_v22 = vadd.f32 %v6155_v31, %v5552_v34  ;;  %v13830_v19 = vpop.f32.mrf.mxu2 }
 0x7b4   : > { %v5442_v21 = vadd.f32 %v13656_v14, %v5233_v7  ;;  %v13803_v14 = vld [vmem:[%s14557_s7 + $0x208] sm:$0xff]  ;;  %14786 = vst [vmem:[#allocation36_spill] sm:$0xff] %v13830_v19  ;;  %v7561_v19 = vld [vmem:[#allocation2 + $0x32] sm:$0xff] }
 0x7b5   : > { %v6226_v61 = vadd.f32 %v13591_v33, %v6190_v22  ;;  %8001 = vmatpush.msrb.mxu0 %v13803_v14  ;;  %v6554_v22 = vld [vmem:[%s14557_s7 + $0x30] sm:$0xff] }
 0x7b6   : > { %v5555_v3 = vadd.f32 %v13529_v23, %v5442_v21  ;;  %v13810_v23 = vpop.f32.mrf.mxu3  ;;  %7280 = vmatpush.msrb.mxu1 %v6554_v22  ;;  %v8991_v21 = vld [vmem:[%s14557_s7 + $0x1a8] sm:$0xff]  ;;  %v6326_v22 = vld [vmem:[#allocation2 + $0x19] sm:$0xff] }
 0x7b7   : > { %v6258_v35 = vmax.f32 %v6226_v61, 0.0  ;;  %8002 = vmatpush.msrb.mxu0 %v13808_v50  ;;  %7884 = vmatpush.msrb.mxu3 %v8991_v21 }
 0x7b8   : > { %v6044_v58 = vpop.f32.mrf.mxu1  ;;  %v13789_v12 = vld [vmem:[#allocation2 + $0x16a] sm:$0xff]  ;;  %v13819_v20 = vld [vmem:[#allocation2 + $0x172] sm:$0xff] }
 0x7b9   : > { %v13791_v57 = vld [vmem:[#allocation2 + $0x171] sm:$0xff]  ;;  %6290 = vst.msk [vmem:[#allocation2 + $0x181] sm:$0xff] %vm2322_vm3, %v6258_v35  ;;  %v6158_v59 = vadd.f32 %v13519_v15, %v6044_v58  ;;  %8950 = vmatmul.msk.f32.gmra.mxu0 %vm2322_vm3, %v13789_v12  ;;  %v13841_v61 = vpop.f32.mrf.mxu0  ;;  %v7531_v35 = vld [vmem:[#allocation2 + $0x49] sm:$0xff]  ;;  %7885 = vmatpush.msrb.mxu3 %v8990_v8  ;;  %v6552_v8 = vld [vmem:[%s14557_s7 + $0x20] sm:$0xff] }
 0x7ba   : > { %6758 = vrot.lane.b32.xlu2 %v13791_v57, %s9409_s28  ;;  %8984 = vmatmul.msk.f32.gmra.mxu2 %vm2322_vm3, %v13789_v12  ;;  %14787 = vst [vmem:[#allocation59_spill] sm:$0xff] %v13841_v61  ;;  %v6553_v61 = vld [vmem:[%s14557_s7 + $0x28] sm:$0xff] }
 0x7bb   : > { %v6191_v15 = vadd.f32 %v6158_v59, %v5555_v3  ;;  %v7530_v59 = vld [vmem:[#allocation2 + $0x39] sm:$0xff]  ;;  %7281 = vmatpush.msrb.mxu1 %v6553_v61  ;;  %v6327_v61 = vld [vmem:[#allocation2 + $0x21] sm:$0xff] }
 0x7bd   : > { %v6227_v34 = vadd.f32 %v13591_v33, %v6191_v15  ;;  %7282 = vmatpush.msrb.mxu1 %v6552_v8  ;;  %v7535_v8 = vld [vmem:[#allocation2 + $0x79] sm:$0xff] }
 0x7be   : > { %v13836_v33 = vpop.f32.mrf.mxu3 }
 0x7bf   : > { %v6259_v31 = vmax.f32 %v6227_v34, 0.0  ;;  %v6325_v34 = vld [vmem:[#allocation2 + $0x9] sm:$0xff] }
 0x7c0   : > { %v13821_v7 = vld [vmem:[#allocation2 + $0x181] sm:$0xff] }
 0x7c1   : > { %6291 = vst.msk [vmem:[#allocation2 + $0x189] sm:$0xff] %vm2322_vm3, %v6259_v31  ;;  %8951 = vmatmul.msk.f32.gmra.mxu0 %vm2322_vm3, %v13819_v20  ;;  %6760 = vrot.lane.b32.xlu0 %v13821_v7, %s9409_s28  ;;  %v6324_v31 = vld [vmem:[#allocation2 + $0x1] sm:$0xff]  ;;  %v13860_v32 = vpop.f32.mrf.mxu0 }
 0x7c2   : > { %7625 = vrot.lane.b32.xlu2 %v7529_v27, %s9409_s28  ;;  %8985 = vmatmul.msk.f32.gmra.mxu2 %vm2322_vm3, %v13819_v20  ;;  %14788 = vst [vmem:[#allocation38_spill] sm:$0xff] %v13860_v32  ;;  %v7532_v32 = vld [vmem:[#allocation2 + $0x51] sm:$0xff] }
 0x7c6   : > { %v13853_v15 = vpop.f32.mrf.mxu3 }
 0x7c8   : > { %v13843_v58 = vld [vmem:[#allocation2 + $0x182] sm:$0xff]  ;;  %v13855_v21 = vld [vmem:[#allocation2 + $0x18a] sm:$0xff] }
 0x7c9   : > { %v13845_v3 = vld [vmem:[#allocation2 + $0x189] sm:$0xff]  ;;  %8952 = vmatmul.msk.f32.gmra.mxu0 %vm2322_vm3, %v13843_v58  ;;  %7627 = vrot.lane.b32.xlu0 %v7530_v59, %s9409_s28 }
 0x7ca   : > { %7629 = vrot.lane.b32.xlu2 %v7531_v35, %s9409_s28  ;;  %6762 = vrot.lane.b32.xlu1 %v13845_v3, %s9409_s28 }
 0x7ce   : > { %v13870_v42 = vpop.f32.mrf.mxu3 }
 0x7cf   : > { %14789 = vst [vmem:[#allocation45_spill] sm:$0xff] %v13870_v42 }
 0x7d1   : > { %8953 = vmatmul.msk.f32.gmra.mxu0 %vm2322_vm3, %v13855_v21  ;;  %6422 = vrot.lane.b32.xlu0 %v6325_v34, %s9409_s28  ;;  %v13876_v34 = vpop.f32.mrf.mxu0 }
 0x7d2   : > { %6424 = vrot.lane.b32.xlu2 %v6326_v22, %s9409_s28  ;;  %6420 = vrot.lane.b32.xlu1 %v6324_v31, %s9409_s28  ;;  %v7533_v22 = vld [vmem:[#allocation2 + $0x61] sm:$0xff]  ;;  %14790 = vst [vmem:[#allocation8_spill] sm:$0xff] %v13876_v34 }
 0x7d3   : > { %v7562_v31 = vld [vmem:[#allocation2 + $0x3a] sm:$0xff] }
 0x7d6   : > { %v13883_v18 = vpop.f32.mrf.mxu3 }
 0x7d7   : > { %14791 = vst [vmem:[#allocation18_spill] sm:$0xff] %v13883_v18  ;;  %v7563_v18 = vld [vmem:[#allocation2 + $0x4a] sm:$0xff] }
 0x7d9   : > { %9010 = vmatmul.msk.f32.vlgmr.msrb.gmra.mxu0 %vm2322_vm3, %v7561_v19  ;;  %7633 = vrot.lane.b32.xlu0 %v7533_v22, %s9409_s28  ;;  %v13888_v17 = vpop.f32.mrf.mxu0 }
 0x7da   : > { %7635 = vrot.lane.b32.xlu2 %v7534_v1, %s9409_s28  ;;  %7631 = vrot.lane.b32.xlu1 %v7532_v32, %s9409_s28  ;;  %14792 = vst [vmem:[#allocation46_spill] sm:$0xff] %v13888_v17  ;;  %v7565_v17 = vld [vmem:[#allocation2 + $0x62] sm:$0xff] }
 0x7e1   : > { %9011 = vmatmul.msk.f32.gmra.mxu0 %vm2322_vm3, %v7562_v31  ;;  %6428 = vrot.lane.b32.xlu0 %v7529_v27, %s9409_s28  ;;  %v13893_v31 = vld [vmem:[#allocation2 + $0x91] sm:$0xff]  ;;  %v7536_v27 = vld [vmem:[#allocation2 + $0x81] sm:$0xff] }
 0x7e2   : > { %6430 = vrot.lane.b32.xlu2 %v7530_v59, %s9409_s28  ;;  %6426 = vrot.lane.b32.xlu1 %v6327_v61, %s9409_s28  ;;  %v6747_v19 = vpop.permute.xlu2 %6746  ;;  %v8989_v59 = vld [vmem:[%s14557_s7 + $0x198] sm:$0xff] }
 0x7e3   : > { %v6819_v34 = vsel %vm2322_vm3, %v6595_v36, %v6747_v19  ;;  %7886 = vmatpush.msrb.mxu3 %v8989_v59  ;;  %v13900_v36 = vpop.f32.mrf.mxu3  ;;  %v7564_v61 = vld [vmem:[#allocation2 + $0x52] sm:$0xff] }
 0x7e4   : > { %7034 = vmatmul.f32.gmra.mxu3 %v6819_v34  ;;  %14793 = vst [vmem:[#allocation63_spill] sm:$0xff] %v13900_v36  ;;  %v13902_v34 = vpop.f32.mrf.mxu0  ;;  %v6551_v19 = vld [vmem:[%s14557_s7 + $0x18] sm:$0xff] }
 0x7e5   : > { %14794 = vst [vmem:[#allocation6_spill] sm:$0xff] %v13902_v34  ;;  %7283 = vmatpush.msrb.mxu1 %v6551_v19  ;;  %v13916_v34 = vld [vmem:[#allocation2 + $0xb1] sm:$0xff] }
 0x7e6   : > { %v6550_v19 = vld [vmem:[%s14557_s7 + $0x10] sm:$0xff] }
 0x7e7   : > { %7284 = vmatpush.msrb.mxu1 %v6550_v19 }
 0x7e9   : > { %9012 = vmatmul.msk.f32.gmra.mxu0 %vm2322_vm3, %v7563_v18  ;;  %7639 = vrot.lane.b32.xlu0 %v7536_v27, %s9409_s28  ;;  %v8988_v18 = vld [vmem:[%s14557_s7 + $0x190] sm:$0xff] }
 0x7ea   : > { %7641 = vrot.lane.b32.xlu2 %v13893_v31, %s9409_s28  ;;  %7637 = vrot.lane.b32.xlu1 %v7535_v8, %s9409_s28 }
 0x7eb   : > { %v13914_v59 = vpop.f32.mrf.mxu3  ;;  %7887 = vmatpush.msrb.mxu3 %v8988_v18 }
 0x7ec   : > { %14795 = vst [vmem:[#allocation28_spill] sm:$0xff] %v13914_v59  ;;  %v13918_v36 = vpop.f32.mrf.mxu0 }
 0x7ed   : > { %14796 = vst [vmem:[#allocation9_spill] sm:$0xff] %v13918_v36  ;;  %v13936_v36 = vld [vmem:[#allocation2 + $0x138] sm:$0xff] }
 0x7ee   : > { %14799 = vst [vmem:[#allocation47_spill] sm:$0xff] %v13936_v36 }
 0x7f1   : > { %9013 = vmatmul.msk.f32.gmra.mxu0 %vm2322_vm3, %v7564_v61  ;;  %6434 = vrot.lane.b32.xlu0 %v7532_v32, %s9409_s28  ;;  %v7538_v32 = vld [vmem:[#allocation2 + $0x99] sm:$0xff]  ;;  %v7566_v61 = vld [vmem:[#allocation2 + $0x6a] sm:$0xff] }
 0x7f2   : > { %6436 = vrot.lane.b32.xlu2 %v7533_v22, %s9409_s28  ;;  %6432 = vrot.lane.b32.xlu1 %v7531_v35, %s9409_s28  ;;  %v7539_v22 = vld [vmem:[#allocation2 + $0xa9] sm:$0xff] }
 0x7f3   : > { %v13925_v35 = vpop.f32.mrf.mxu3 }
 0x7f4   : > { %14797 = vst [vmem:[#allocation60_spill] sm:$0xff] %v13925_v35 }
 0x7f9   : > { %9014 = vmatmul.msk.f32.gmra.mxu0 %vm2322_vm3, %v7565_v17  ;;  %7645 = vrot.lane.b32.xlu0 %v7539_v22, %s9409_s28  ;;  %v13934_v17 = vpop.f32.mrf.mxu0 }
 0x7fa   : > { %7647 = vrot.lane.b32.xlu2 %v13916_v34, %s9409_s28  ;;  %7643 = vrot.lane.b32.xlu1 %v7538_v32, %s9409_s28  ;;  %14798 = vst [vmem:[#allocation27_spill] sm:$0xff] %v13934_v17  ;;  %v7541_v17 = vld [vmem:[#allocation2 + $0xc1] sm:$0xff] }
 0x7fb   : > { %v13948_v19 = vpop.f32.mrf.mxu3  ;;  %v6753_v42 = vpop.permute.xlu2 %6752 }
 0x7fc   : > { %14800 = vst [vmem:[#allocation57_spill] sm:$0xff] %v13948_v19  ;;  %v13966_v19 = vld [vmem:[#allocation2 + $0x150] sm:$0xff] }
 0x801   : > { %9015 = vmatmul.msk.f32.gmra.mxu0 %vm2322_vm3, %v7566_v61  ;;  %6440 = vrot.lane.b32.xlu0 %v7535_v8, %s9409_s28  ;;  %v13943_v61 = vld [vmem:[#allocation2 + $0xd9] sm:$0xff]  ;;  %v13956_v59 = vpop.f32.mrf.mxu0 }
 0x802   : > { %6442 = vrot.lane.b32.xlu2 %v7536_v27, %s9409_s28  ;;  %6438 = vrot.lane.b32.xlu1 %v7534_v1, %s9409_s28  ;;  %v8987_v27 = vld [vmem:[%s14557_s7 + $0x188] sm:$0xff]  ;;  %v7567_v8 = vld [vmem:[#allocation2 + $0x7a] sm:$0xff]  ;;  %14801 = vst [vmem:[#allocation55_spill] sm:$0xff] %v13956_v59 }
 0x803   : > { %v6749_v18 = vpop.permute.xlu0 %6748  ;;  %7888 = vmatpush.msrb.mxu3 %v8987_v27  ;;  %v7542_v1 = vld [vmem:[#allocation2 + $0xc9] sm:$0xff] }
 0x804   : > { %v6820_v35 = vsel %vm2322_vm3, %v13936_v36, %v6749_v18  ;;  %v13952_v18 = vld [vmem:[#allocation2 + $0x140] sm:$0xff] }
 0x805   : > { %7037 = vmatmul.f32.gmra.mxu3 %v6820_v35  ;;  %v7568_v36 = vld [vmem:[#allocation2 + $0x82] sm:$0xff] }
 0x809   : > { %9016 = vmatmul.msk.f32.gmra.mxu0 %vm2322_vm3, %v7567_v8  ;;  %7651 = vrot.lane.b32.xlu0 %v7542_v1, %s9409_s28  ;;  %v6549_v8 = vld [vmem:[%s14557_s7 + $0x8] sm:$0xff]  ;;  %v13975_v59 = vpop.f32.mrf.mxu0 }
 0x80a   : > { %7653 = vrot.lane.b32.xlu2 %v13943_v61, %s9409_s28  ;;  %7649 = vrot.lane.b32.xlu1 %v7541_v17, %s9409_s28 }
 0x80b   : > { %7285 = vmatpush.msrb.mxu1 %v6549_v8 }
 0x80c   : > { %v6751_v35 = vpop.permute.xlu1 %6750 }
 0x80d   : > { %v6821_v27 = vsel %vm2322_vm3, %v13952_v18, %v6751_v35  ;;  %v13968_v35 = vpop.f32.mrf.mxu3 }
 0x80e   : > { %7040 = vmatmul.f32.gmra.mxu3 %v6821_v27  ;;  %v6822_v27 = vsel %vm2322_vm3, %v13966_v19, %v6753_v42 }
 0x811   : > { %9017 = vmatmul.msk.f32.gmra.mxu0 %vm2322_vm3, %v7568_v36  ;;  %6446 = vrot.lane.b32.xlu0 %v7538_v32, %s9409_s28  ;;  %v7569_v36 = vld [vmem:[#allocation2 + $0x92] sm:$0xff] }
 0x812   : > { %6448 = vrot.lane.b32.xlu2 %v7539_v22, %s9409_s28  ;;  %6444 = vrot.lane.b32.xlu1 %v13893_v31, %s9409_s28  ;;  %v8986_v22 = vld [vmem:[%s14557_s7 + $0x180] sm:$0xff]  ;;  %v13984_v32 = vld [vmem:[#allocation2 + $0x158] sm:$0xff] }
 0x813   : > { %7889 = vmatpush.msrb.mxu3 %v8986_v22  ;;  %v7544_v31 = vld [vmem:[#allocation2 + $0xe1] sm:$0xff] }
 0x814   : > { %v14003_v22 = vld [vmem:[#allocation2 + $0x168] sm:$0xff] }
 0x815   : > { %9057 = vmatpush.msra.mxu3 %v13514_v5  ;;  %v13989_v5 = vpop.f32.mrf.mxu3 }
 0x816   : > { %7043 = vmatmul.f32.gmra.mxu3 %v6822_v27  ;;  %v13996_v27 = vpop.f32.mrf.mxu0 }
 0x817   : > { %9058 = vmatpush.msra.mxu3 %v13551_v16  ;;  %14802 = vst [vmem:[#allocation11_spill] sm:$0xff] %v13996_v27 }
 0x819   : > { %9018 = vmatmul.msk.f32.gmra.mxu0 %vm2322_vm3, %v7569_v36  ;;  %7657 = vrot.lane.b32.xlu0 %v13429_v30, %s9409_s28  ;;  %v7570_v30 = vld [vmem:[#allocation2 + $0x9a] sm:$0xff]  ;;  %v6759_v36 = vpop.permute.xlu2 %6758 }
 0x81a   : > { %7659 = vrot.lane.b32.xlu2 %v13445_v60, %s9409_s28  ;;  %7655 = vrot.lane.b32.xlu1 %v7544_v31, %s9409_s28  ;;  %v6548_v60 = vld [vmem:[%s14557_s7] sm:$0xff] }
 0x81b   : > { %9059 = vmatpush.msra.mxu3 %v13604_v54  ;;  %7286 = vmatpush.msrb.mxu1 %v6548_v60  ;;  %v14048_v60 = vld [vmem:[#allocation2 + $0x188] sm:$0xff] }
 0x81c   : > { %v6755_v42 = vpop.permute.xlu0 %6754 }
 0x81d   : > { %v6823_v8 = vsel %vm2322_vm3, %v13984_v32, %v6755_v42  ;;  %9060 = vmatpush.msra.mxu3 %v13706_v52  ;;  %v14009_v52 = vpop.f32.mrf.mxu3 }
 0x81e   : > { %7046 = vmatmul.f32.gmra.mxu3 %v6823_v8  ;;  %v7573_v8 = vld [vmem:[#allocation2 + $0xc2] sm:$0xff] }
 0x81f   : > { %9061 = vmatpush.msra.mxu3 %v13769_v63  ;;  %v14021_v63 = vld [vmem:[#allocation2 + $0x170] sm:$0xff] }
 0x821   : > { %9019 = vmatmul.msk.f32.gmra.mxu0 %vm2322_vm3, %v7570_v30  ;;  %6452 = vrot.lane.b32.xlu0 %v7541_v17, %s9409_s28  ;;  %v14012_v17 = vpop.f32.mrf.mxu0 }
 0x822   : > { %6454 = vrot.lane.b32.xlu2 %v7542_v1, %s9409_s28  ;;  %6450 = vrot.lane.b32.xlu1 %v13916_v34, %s9409_s28  ;;  %v7571_v1 = vld [vmem:[#allocation2 + $0xaa] sm:$0xff]  ;;  %14803 = vst [vmem:[#allocation20_spill] sm:$0xff] %v14012_v17  ;;  %v7572_v34 = vld [vmem:[#allocation2 + $0xb2] sm:$0xff] }
 0x823   : > { %v6757_v16 = vpop.permute.xlu1 %6756  ;;  %9062 = vmatpush.msra.mxu3 %v13774_v0  ;;  %v6825_v0 = vsel %vm2322_vm3, %v14021_v63, %v6759_v36  ;;  %v6347_v36 = vld [vmem:[#allocation2 + $0x111] sm:$0xff] }
 0x824   : > { %v6824_v54 = vsel %vm2322_vm3, %v14003_v22, %v6757_v16 }
 0x825   : > { %9063 = vmatpush.msra.mxu3 %v13803_v14  ;;  %v6344_v14 = vld [vmem:[#allocation2 + $0xf1] sm:$0xff] }
 0x826   : > { %7049 = vmatmul.f32.gmra.mxu3 %v6824_v54  ;;  %v7626_v54 = vpop.permute.xlu2 %7625 }
 0x827   : > { %9064 = vmatpush.msra.mxu3 %v13808_v50  ;;  %v14035_v50 = vld [vmem:[#allocation2 + $0x180] sm:$0xff] }
 0x829   : > { %9020 = vmatmul.msk.f32.gmra.mxu0 %vm2322_vm3, %v7571_v1  ;;  %7663 = vrot.lane.b32.xlu0 %v13482_v49, %s9409_s28 }
 0x82a   : > { %7665 = vrot.lane.b32.xlu2 %v13494_v51, %s9409_s28  ;;  %7661 = vrot.lane.b32.xlu1 %v13463_v46, %s9409_s28  ;;  %v14028_v51 = vpop.f32.mrf.mxu3  ;;  %v14033_v46 = vpop.f32.mrf.mxu0 }
 0x82b   : > { %14804 = vst [vmem:[#allocation12_spill] sm:$0xff] %v14033_v46  ;;  %v7575_v46 = vld [vmem:[#allocation2 + $0xda] sm:$0xff] }
 0x82e   : > { %7052 = vmatmul.f32.gmra.mxu3 %v6825_v0  ;;  %v7574_v0 = vld [vmem:[#allocation2 + $0xca] sm:$0xff] }
 0x831   : > { %9021 = vmatmul.msk.f32.gmra.mxu0 %vm2322_vm3, %v7572_v34  ;;  %6458 = vrot.lane.b32.xlu0 %v7544_v31, %s9409_s28  ;;  %v6345_v34 = vld [vmem:[#allocation2 + $0xf9] sm:$0xff] }
 0x832   : > { %6460 = vrot.lane.b32.xlu2 %v6344_v14, %s9409_s28  ;;  %6456 = vrot.lane.b32.xlu1 %v13943_v61, %s9409_s28  ;;  %v14046_v61 = vpop.f32.mrf.mxu3  ;;  %v14050_v30 = vpop.f32.mrf.mxu0  ;;  %v6346_v14 = vld [vmem:[#allocation2 + $0x109] sm:$0xff] }
 0x833   : > { %v6761_v49 = vpop.permute.xlu0 %6760  ;;  %14805 = vst [vmem:[#allocation7_spill] sm:$0xff] %v14050_v30 }
 0x834   : > { %v6826_v42 = vsel %vm2322_vm3, %v14035_v50, %v6761_v49  ;;  %v6292_v49 = vld [vmem:[#allocation2] sm:$0xff] }
 0x836   : > { %7055 = vmatmul.f32.gmra.mxu3 %v6826_v42  ;;  %v14058_v42 = vld [vmem:[#allocation2 + $0x30] sm:$0xff] }
 0x839   : > { %9022 = vmatmul.msk.f32.gmra.mxu0 %vm2322_vm3, %v7573_v8  ;;  %7669 = vrot.lane.b32.xlu0 %v13640_v25, %s9409_s28 }
 0x83a   : > { %7671 = vrot.lane.b32.xlu2 %v13664_v53, %s9409_s28  ;;  %7667 = vrot.lane.b32.xlu1 %v13614_v28, %s9409_s28  ;;  %v14063_v30 = vpop.f32.mrf.mxu3 }
 0x83b   : > { %v7628_v1 = vpop.permute.xlu0 %7627 }
 0x83c   : > { %v6763_v31 = vpop.permute.xlu1 %6762 }
 0x83d   : > { %v6827_v16 = vsel %vm2322_vm3, %v14048_v60, %v6763_v31  ;;  %v7721_v31 = vsel %vm2322_vm3, %v14058_v42, %v7626_v54 }
 0x83e   : > { %7058 = vmatmul.f32.gmra.mxu3 %v6827_v16 }
 0x841   : > { %9023 = vmatmul.msk.f32.gmra.mxu0 %vm2322_vm3, %v7574_v0  ;;  %6464 = vrot.lane.b32.xlu0 %v6346_v14, %s9409_s28  ;;  %v7630_v0 = vpop.permute.xlu2 %7629  ;;  %v6293_v14 = vld [vmem:[#allocation2 + $0x8] sm:$0xff] }
 0x842   : > { %6466 = vrot.lane.b32.xlu2 %v6347_v36, %s9409_s28  ;;  %6462 = vrot.lane.b32.xlu1 %v6345_v34, %s9409_s28  ;;  %v14065_v36 = vpop.f32.mrf.mxu0 }
 0x843   : > { %14806 = vst [vmem:[#allocation13_spill] sm:$0xff] %v14065_v36  ;;  %v6423_v34 = vpop.permute.xlu0 %6422  ;;  %v7576_v36 = vld [vmem:[#allocation2 + $0xe2] sm:$0xff] }
 0x844   : > { %v6421_v8 = vpop.permute.xlu1 %6420  ;;  %v6517_v54 = vsel %vm2322_vm3, %v6293_v14, %v6423_v34  ;;  %v7499_v14 = vld [vmem:[#allocation2 + $0x48] sm:$0xff] }
 0x845   : > { %v6516_v16 = vsel %vm2322_vm3, %v6292_v49, %v6421_v8  ;;  %v7498_v49 = vld [vmem:[#allocation2 + $0x38] sm:$0xff] }
 0x846   : > { %7287 = vmatmul.f32.vlgmr.msrb.gmra.mxu1 %v6516_v16  ;;  %7890 = vmatmul.f32.vlgmr.msrb.gmra.mxu3 %v7721_v31  ;;  %v7722_v8 = vsel %vm2322_vm3, %v7498_v49, %v7628_v1  ;;  %v14076_v31 = vpop.f32.mrf.mxu3  ;;  %v6294_v1 = vld [vmem:[#allocation2 + $0x18] sm:$0xff] }
 0x849   : > { %9024 = vmatmul.msk.f32.gmra.mxu0 %vm2322_vm3, %v7575_v46  ;;  %7675 = vrot.lane.b32.xlu0 %v13728_v37, %s9409_s28  ;;  %v6348_v46 = vld [vmem:[#allocation2 + $0x121] sm:$0xff]  ;;  %v6425_v27 = vpop.permute.xlu2 %6424 }
 0x84a   : > { %7677 = vrot.lane.b32.xlu2 %v13752_v40, %s9409_s28  ;;  %7673 = vrot.lane.b32.xlu1 %v13692_v62, %s9409_s28  ;;  %v14078_v17 = vpop.f32.mrf.mxu0  ;;  %v6518_v34 = vsel %vm2322_vm3, %v6294_v1, %v6425_v27 }
 0x84b   : > { %14807 = vst [vmem:[#allocation64_spill] sm:$0xff] %v14078_v17  ;;  %v7577_v17 = vld [vmem:[#allocation2 + $0xf2] sm:$0xff] }
 0x84c   : > { %v7632_v16 = vpop.permute.xlu1 %7631 }
 0x84e   : > { %7290 = vmatmul.f32.gmra.mxu1 %v6517_v54  ;;  %7893 = vmatmul.f32.gmra.mxu3 %v7722_v8  ;;  %v7723_v54 = vsel %vm2322_vm3, %v7499_v14, %v7630_v0  ;;  %v7634_v8 = vpop.permute.xlu0 %7633  ;;  %v7500_v0 = vld [vmem:[#allocation2 + $0x50] sm:$0xff] }
 0x84f   : > { %v7724_v1 = vsel %vm2322_vm3, %v7500_v0, %v7632_v16 }
 0x851   : > { %9025 = vmatmul.msk.f32.gmra.mxu0 %vm2322_vm3, %v7576_v36  ;;  %6470 = vrot.lane.b32.xlu0 %v13614_v28, %s9409_s28  ;;  %v6295_v36 = vld [vmem:[#allocation2 + $0x20] sm:$0xff] }
 0x852   : > { %6472 = vrot.lane.b32.xlu2 %v13640_v25, %s9409_s28  ;;  %6468 = vrot.lane.b32.xlu1 %v6348_v46, %s9409_s28  ;;  %v14091_v25 = vpop.f32.mrf.mxu3  ;;  %v14097_v27 = vpop.f32.mrf.mxu0 }
 0x853   : > { %14808 = vst [vmem:[#allocation14_spill] sm:$0xff] %v14097_v27 }
 0x854   : > { %v6427_v28 = vpop.permute.xlu1 %6426 }
 0x855   : > { %v6519_v46 = vsel %vm2322_vm3, %v6295_v36, %v6427_v28 }
 0x856   : > { %7293 = vmatmul.f32.gmra.mxu1 %v6518_v34  ;;  %7896 = vmatmul.f32.gmra.mxu3 %v7723_v54  ;;  %v7501_v54 = vld [vmem:[#allocation2 + $0x60] sm:$0xff] }
 0x857   : > { %v7725_v36 = vsel %vm2322_vm3, %v7501_v54, %v7634_v8 }
 0x859   : > { %9026 = vmatmul.msk.f32.gmra.mxu0 %vm2322_vm3, %v7577_v17  ;;  %7681 = vrot.lane.b32.xlu0 %v13821_v7, %s9409_s28  ;;  %v7578_v17 = vld [vmem:[#allocation2 + $0xfa] sm:$0xff]  ;;  %v6429_v7 = vpop.permute.xlu0 %6428 }
 0x85a   : > { %7683 = vrot.lane.b32.xlu2 %v13845_v3, %s9409_s28  ;;  %7679 = vrot.lane.b32.xlu1 %v13791_v57, %s9409_s28  ;;  %v7636_v3 = vpop.permute.xlu2 %7635  ;;  %v14108_v34 = vpop.f32.mrf.mxu3  ;;  %v6520_v28 = vsel %vm2322_vm3, %v14058_v42, %v6429_v7 }
 0x85b   : > { %v14110_v16 = vpop.f32.mrf.mxu0 }
 0x85c   : > { %14809 = vst [vmem:[#allocation50_spill] sm:$0xff] %v14110_v16 }
 0x85e   : > { %7296 = vmatmul.f32.gmra.mxu1 %v6519_v46  ;;  %7899 = vmatmul.f32.gmra.mxu3 %v7724_v1  ;;  %v7638_v46 = vpop.permute.xlu1 %7637  ;;  %v7579_v1 = vld [vmem:[#allocation2 + $0x10a] sm:$0xff] }
 0x861   : > { %9027 = vmatmul.msk.f32.gmra.mxu0 %vm2322_vm3, %v7578_v17  ;;  %6476 = vrot.lane.b32.xlu0 %v13692_v62, %s9409_s28  ;;  %v7502_v62 = vld [vmem:[#allocation2 + $0x68] sm:$0xff] }
 0x862   : > { %6478 = vrot.lane.b32.xlu2 %v13728_v37, %s9409_s28  ;;  %6474 = vrot.lane.b32.xlu1 %v13664_v53, %s9409_s28  ;;  %v7559_v37 = vld [vmem:[#allocation2 + $0x199] sm:$0xff]  ;;  %v6431_v53 = vpop.permute.xlu2 %6430  ;;  %v7726_v42 = vsel %vm2322_vm3, %v7502_v62, %v7636_v3  ;;  %v14121_v7 = vpop.f32.mrf.mxu3 }
 0x863   : > { %v6521_v17 = vsel %vm2322_vm3, %v7498_v49, %v6431_v53  ;;  %v14123_v8 = vpop.f32.mrf.mxu0 }
 0x864   : > { %14810 = vst [vmem:[#allocation15_spill] sm:$0xff] %v14123_v8  ;;  %v7504_v8 = vld [vmem:[#allocation2 + $0x80] sm:$0xff] }
 0x866   : > { %7299 = vmatmul.f32.gmra.mxu1 %v6520_v28  ;;  %7902 = vmatmul.f32.gmra.mxu3 %v7725_v36  ;;  %v7640_v28 = vpop.permute.xlu0 %7639  ;;  %v7580_v36 = vld [vmem:[#allocation2 + $0x112] sm:$0xff] }
 0x869   : > { %9028 = vmatmul.msk.f32.gmra.mxu0 %vm2322_vm3, %v7579_v1 }
 0x86a   : > { %6482 = vrot.lane.b32.xlu2 %v13791_v57, %s9409_s28  ;;  %7685 = vrot.lane.b32.xlu1 %v7559_v37, %s9409_s28  ;;  %v6433_v57 = vpop.permute.xlu1 %6432  ;;  %v7503_v37 = vld [vmem:[#allocation2 + $0x78] sm:$0xff]  ;;  %v14130_v3 = vpop.f32.mrf.mxu3 }
 0x86b   : > { %v6522_v1 = vsel %vm2322_vm3, %v7499_v14, %v6433_v57  ;;  %v7727_v49 = vsel %vm2322_vm3, %v7503_v37, %v7638_v46  ;;  %v7642_v53 = vpop.permute.xlu2 %7641 }
 0x86e   : > { %7302 = vmatmul.f32.gmra.mxu1 %v6521_v17  ;;  %7905 = vmatmul.f32.gmra.mxu3 %v7726_v42  ;;  %v7581_v17 = vld [vmem:[#allocation2 + $0x122] sm:$0xff]  ;;  %v14132_v42 = vpop.f32.mrf.mxu0 }
 0x86f   : > { %14811 = vst [vmem:[#allocation58_spill] sm:$0xff] %v14132_v42 }
 0x871   : > { %9029 = vmatmul.msk.f32.gmra.mxu0 %vm2322_vm3, %v7580_v36  ;;  %v6435_v36 = vpop.permute.xlu0 %6434 }
 0x872   : > { %6480 = vrot.lane.b32.xlu1 %v13752_v40, %s9409_s28  ;;  %v6523_v16 = vsel %vm2322_vm3, %v7500_v0, %v6435_v36  ;;  %v7728_v40 = vsel %vm2322_vm3, %v7504_v8, %v7640_v28  ;;  %v14137_v14 = vpop.f32.mrf.mxu3  ;;  %v7644_v46 = vpop.permute.xlu1 %7643  ;;  %v7506_v36 = vld [vmem:[#allocation2 + $0x98] sm:$0xff] }
 0x873   : > { %v6437_v57 = vpop.permute.xlu2 %6436 }
 0x876   : > { %7305 = vmatmul.f32.gmra.mxu1 %v6522_v1  ;;  %7908 = vmatmul.f32.gmra.mxu3 %v7727_v49  ;;  %v14141_v1 = vpop.f32.mrf.mxu0  ;;  %v7505_v49 = vld [vmem:[#allocation2 + $0x90] sm:$0xff] }
 0x877   : > { %14812 = vst [vmem:[#allocation41_spill] sm:$0xff] %v14141_v1  ;;  %v7729_v42 = vsel %vm2322_vm3, %v7505_v49, %v7642_v53  ;;  %v7730_v1 = vsel %vm2322_vm3, %v7506_v36, %v7644_v46 }
 0x879   : > { %9030 = vmatmul.msk.f32.gmra.mxu0 %vm2322_vm3, %v7581_v17  ;;  %v6524_v17 = vsel %vm2322_vm3, %v7501_v54, %v6437_v57  ;;  %v7646_v0 = vpop.permute.xlu0 %7645  ;;  %v7507_v57 = vld [vmem:[#allocation2 + $0xa8] sm:$0xff] }
 0x87b   : > { %v7648_v54 = vpop.permute.xlu2 %7647 }
 0x87e   : > { %7308 = vmatmul.f32.gmra.mxu1 %v6523_v16  ;;  %7911 = vmatmul.f32.gmra.mxu3 %v7728_v40  ;;  %v6439_v16 = vpop.permute.xlu1 %6438  ;;  %v14149_v40 = vpop.f32.mrf.mxu0 }
 0x881   : > { %9031 = vmatmul.msk.f32.gmra.mxu0 %vm2322_vm3, %v13642_v4  ;;  %v6525_v4 = vsel %vm2322_vm3, %v7502_v62, %v6439_v16  ;;  %v7508_v16 = vld [vmem:[#allocation2 + $0xb0] sm:$0xff] }
 0x886   : > { %7311 = vmatmul.f32.gmra.mxu1 %v6524_v17  ;;  %7914 = vmatmul.f32.gmra.mxu3 %v7729_v42  ;;  %v6441_v42 = vpop.permute.xlu0 %6440  ;;  %v7731_v17 = vsel %vm2322_vm3, %v7507_v57, %v7646_v0  ;;  %v14159_v27 = vpop.f32.mrf.mxu0 }
 0x887   : > { %v7650_v62 = vpop.permute.xlu1 %7649 }
 0x888   : > { %v14145_v28 = vpop.f32.mrf.mxu3 }
 0x889   : > { %9032 = vmatmul.msk.f32.gmra.mxu0 %vm2322_vm3, %v13662_v39  ;;  %v6526_v39 = vsel %vm2322_vm3, %v7503_v37, %v6441_v42 }
 0x88e   : > { %7314 = vmatmul.f32.gmra.mxu1 %v6525_v4  ;;  %7917 = vmatmul.f32.gmra.mxu3 %v7730_v1  ;;  %v6443_v1 = vpop.permute.xlu2 %6442  ;;  %v7732_v4 = vsel %vm2322_vm3, %v7508_v16, %v7648_v54  ;;  %v7652_v37 = vpop.permute.xlu0 %7651 }
 0x88f   : > { %v14169_v42 = vpop.f32.mrf.mxu0 }
 0x891   : > { %v14153_v53 = vpop.f32.mrf.mxu3  ;;  %9033 = vmatmul.msk.f32.gmra.mxu0 %vm2322_vm3, %v13694_v11  ;;  %v6527_v11 = vsel %vm2322_vm3, %v7504_v8, %v6443_v1 }
 0x892   : > { %14813 = vst [vmem:[#allocation22_spill] sm:$0xff] %v14153_v53 }
 0x896   : > { %7317 = vmatmul.f32.gmra.mxu1 %v6526_v39  ;;  %7920 = vmatmul.f32.gmra.mxu3 %v7731_v17  ;;  %v6445_v39 = vpop.permute.xlu1 %6444  ;;  %v7509_v17 = vld [vmem:[#allocation2 + $0xc0] sm:$0xff]  ;;  %v7654_v8 = vpop.permute.xlu2 %7653 }
 0x897   : > { %v6447_v1 = vpop.permute.xlu0 %6446 }
 0x899   : > { %v14161_v46 = vpop.f32.mrf.mxu3  ;;  %9034 = vmatmul.msk.f32.gmra.mxu0 %vm2322_vm3, %v13726_v44  ;;  %v6528_v44 = vsel %vm2322_vm3, %v7505_v49, %v6445_v39  ;;  %v7511_v39 = vld [vmem:[#allocation2 + $0xd8] sm:$0xff] }
 0x89a   : > { %14814 = vst [vmem:[#allocation17_spill] sm:$0xff] %v14161_v46  ;;  %v7733_v46 = vsel %vm2322_vm3, %v7509_v17, %v7650_v62 }
 0x89e   : > { %7320 = vmatmul.f32.gmra.mxu1 %v6527_v11  ;;  %7923 = vmatmul.f32.gmra.mxu3 %v7732_v4  ;;  %v14179_v11 = vpop.f32.mrf.mxu0  ;;  %v7560_v4 = vld [vmem:[#allocation2 + $0x1a1] sm:$0xff]  ;;  %v7656_v62 = vpop.permute.xlu1 %7655 }
 0x89f   : > { %7687 = vrot.lane.b32.xlu0 %v7560_v4, %s9409_s28  ;;  %v7735_v4 = vsel %vm2322_vm3, %v7511_v39, %v7654_v8  ;;  %s323_s28 = sand.u32 1, %s9396_s10  }
 0x8a0   : > { %s8314_s25 = sshll.u32 %s323_s28, 8  ;;  %s8233_s13 = scalar_lea.sflag [#allocation4], %s323_s28 }
 0x8a1   : > { %v14167_v0 = vpop.f32.mrf.mxu3  ;;  %9035 = vmatmul.msk.f32.gmra.mxu0 %vm2322_vm3, %v13750_v48  ;;  %v6529_v48 = vsel %vm2322_vm3, %v7506_v36, %v6447_v1  ;;  %v7658_v36 = vpop.permute.xlu0 %7657  ;;  %s14234_s24 = scalar_lea.vmem [#allocation3], %s8314_s25 }
 0x8a2   : > { %14815 = vst [vmem:[#allocation52_spill] sm:$0xff] %v14167_v0  ;;  %v7510_v0 = vld [vmem:[#allocation2 + $0xc8] sm:$0xff]  ;;  %s8245_s17 = sshll.u32 %s14234_s24, 4  ;;  %s8246_s17 = int_to_ptr.vmem [resolvable:$true] %s8245_s17 }
 0x8a3   : > { %v7734_v49 = vsel %vm2322_vm3, %v7510_v0, %v7652_v37 }
 0x8a6   : > { %7323 = vmatmul.f32.gmra.mxu1 %v6528_v44  ;;  %7926 = vmatmul.f32.gmra.mxu3 %v7733_v46  ;;  %v14188_v44 = vpop.f32.mrf.mxu0  ;;  %v6451_v1 = vpop.permute.xlu1 %6450 }
 0x8a9   : > { %v14175_v54 = vpop.f32.mrf.mxu3  ;;  %9036 = vmatmul.msk.f32.gmra.mxu0 %vm2322_vm3, %v13789_v12  ;;  %v6449_v12 = vpop.permute.xlu2 %6448 }
 0x8aa   : > { %14816 = vst [vmem:[#allocation42_spill] sm:$0xff] %v14175_v54  ;;  %v6530_v54 = vsel %vm2322_vm3, %v7507_v57, %v6449_v12 }
 0x8ae   : > { %7326 = vmatmul.f32.gmra.mxu1 %v6529_v48  ;;  %7929 = vmatmul.f32.gmra.mxu3 %v7734_v49  ;;  %v14196_v48 = vld [vmem:[#allocation2 + $0xe0] sm:$0xff]  ;;  %v14201_v57 = vpop.f32.mrf.mxu0 }
 0x8af   : > { %v7736_v49 = vsel %vm2322_vm3, %v14196_v48, %v7656_v62 }
 0x8b1   : > { %v14184_v46 = vpop.f32.mrf.mxu3  ;;  %9037 = vmatmul.msk.f32.gmra.mxu0 %vm2322_vm3, %v13819_v20  ;;  %v6531_v20 = vsel %vm2322_vm3, %v7508_v16, %v6451_v1  ;;  %v7660_v8 = vpop.permute.xlu2 %7659  ;;  %v14209_v16 = vld [vmem:[#allocation2 + $0xf0] sm:$0xff] }
 0x8b2   : > { %14817 = vst [vmem:[#allocation24_spill] sm:$0xff] %v14184_v46  ;;  %v7737_v1 = vsel %vm2322_vm3, %v14209_v16, %v7658_v36  ;;  %v7083_v36 = vadd.f32 %v13543_v55, %v13724_v56 }
 0x8b6   : > { %7329 = vmatmul.f32.gmra.mxu1 %v6530_v54  ;;  %7932 = vmatmul.f32.gmra.mxu3 %v7735_v4  ;;  %v7080_v4 = vadd.f32 %v13532_v6, %v13686_v45  ;;  %v14222_v45 = vld [vmem:[%s14558_s8] ss:$0 sm:$0xff] }
 0x8b9   : > { %v14192_v37 = vpop.f32.mrf.mxu3  ;;  %9038 = vmatmul.msk.f32.gmra.mxu0 %vm2322_vm3, %v13843_v58  ;;  %v6453_v58 = vpop.permute.xlu0 %6452 }
 0x8ba   : > { %14818 = vst [vmem:[#allocation19_spill] sm:$0xff] %v14192_v37  ;;  %v6532_v62 = vsel %vm2322_vm3, %v7509_v17, %v6453_v58  ;;  %v6455_v37 = vpop.permute.xlu2 %6454 }
 0x8be   : > { %7332 = vmatmul.f32.gmra.mxu1 %v6531_v20  ;;  %7935 = vmatmul.f32.gmra.mxu3 %v7736_v49  ;;  %v7662_v49 = vpop.permute.xlu1 %7661 }
 0x8c1   : > { %v14203_v54 = vpop.f32.mrf.mxu3  ;;  %9039 = vmatmul.msk.f32.gmra.mxu0 %vm2322_vm3, %v13855_v21 }
 0x8c2   : > { %14819 = vst [vmem:[#allocation54_spill] sm:$0xff] %v14203_v54  ;;  %v14214_v54 = vpop.f32.mrf.mxu0 }
 0x8c3   : > { %v7288_v12 = vpop.f32.mrf.mxu1 }
 0x8c4   : > { %v7289_v20 = vadd.f32 %v7288_v12, %v7080_v4  ;;  %v14228_v12 = vld [vmem:[#allocation2 + $0xf8] sm:$0xff]  ;;  %v6533_v4 = vsel %vm2322_vm3, %v7510_v0, %v6455_v37  ;;  %v7086_v37 = vadd.f32 %v13554_v41, %v13748_v29 }
 0x8c6   : > { %7335 = vmatmul.f32.gmra.mxu1 %v6532_v62  ;;  %7938 = vmatmul.f32.gmra.mxu3 %v7737_v1  ;;  %v7402_v46 = vadd.f32 %v13585_v43, %v7289_v20  ;;  %v7738_v43 = vsel %vm2322_vm3, %v14228_v12, %v7660_v8  ;;  %v7664_v1 = vpop.permute.xlu0 %7663  ;;  %v6457_v53 = vpop.permute.xlu1 %6456 }
 0x8c9   : > { %v7891_v21 = vpop.f32.mrf.mxu3 }
 0x8ca   : > { %v8005_v6 = vadd.f32 %v14149_v40, %v7891_v21  ;;  %v14240_v0 = vpop.f32.mrf.mxu0 }
 0x8cb   : > { %v7291_v17 = vpop.f32.mrf.mxu1 }
 0x8cc   : > { %v8100_v58 = vadd.f32 %v8005_v6, %v7402_v46  ;;  %v7292_v62 = vadd.f32 %v7291_v17, %v7083_v36  ;;  %v14244_v6 = vld [vmem:[#allocation2 + $0x108] sm:$0xff]  ;;  %v6534_v17 = vsel %vm2322_vm3, %v7511_v39, %v6457_v53  ;;  %v7089_v53 = vadd.f32 %v13566_v26, %v13810_v23 }
 0x8cd   : > { %v7739_v36 = vsel %vm2322_vm3, %v14244_v6, %v7662_v49  ;;  %v14256_v49 = vld [vmem:[#allocation2 + $0x110] sm:$0xff] }
 0x8ce   : > { %v8136_v40 = vadd.f32 %v14222_v45, %v8100_v58  ;;  %7338 = vmatmul.f32.gmra.mxu1 %v6533_v4  ;;  %7941 = vmatmul.f32.gmra.mxu3 %v7738_v43  ;;  %v7405_v55 = vadd.f32 %v13611_v47, %v7292_v62 }
 0x8d0   : > { %v8168_v20 = vmax.f32 %v8136_v40, 0.0  ;;  %v6459_v40 = vpop.permute.xlu0 %6458 }
 0x8d1   : > { %v7894_v21 = vpop.f32.mrf.mxu3 }
 0x8d2   : > { %8200 = vst.msk [vmem:[%s14234_s24] sm:$0xff] %vm2322_vm3, %v8168_v20  ;;  %v8008_v56 = vadd.f32 %v14159_v27, %v7894_v21  ;;  %v7666_v27 = vpop.permute.xlu2 %7665  ;;  %v14258_v20 = vpop.f32.mrf.mxu0  ;;  %v6535_v21 = vsel %vm2322_vm3, %v14196_v48, %v6459_v40 }
 0x8d3   : > { %v7294_v46 = vpop.f32.mrf.mxu1 }
 0x8d4   : > { %v8101_v8 = vadd.f32 %v8008_v56, %v7405_v55  ;;  %v7295_v47 = vadd.f32 %v7294_v46, %v7086_v37  ;;  %v7740_v55 = vsel %vm2322_vm3, %v14256_v49, %v7664_v1  ;;  %v14264_v56 = vpop.f32.mrf.mxu2  ;;  %v7668_v46 = vpop.permute.xlu1 %7667  ;;  %v7092_v1 = vadd.f32 %v13573_v2, %v13836_v33 }
 0x8d6   : > { %v8137_v58 = vadd.f32 %v14222_v45, %v8101_v8  ;;  %7341 = vmatmul.f32.gmra.mxu1 %v6534_v17  ;;  %7944 = vmatmul.f32.gmra.mxu3 %v7739_v36  ;;  %v7408_v41 = vadd.f32 %v13638_v13, %v7295_v47 }
 0x8d8   : > { %v8169_v4 = vmax.f32 %v8137_v58, 0.0  ;;  %v14273_v58 = vld [vmem:[#allocation2 + $0x120] sm:$0xff] }
 0x8d9   : > { %v7897_v43 = vpop.f32.mrf.mxu3 }
 0x8da   : > { %8201 = vst.msk [vmem:[%s14234_s24 + $0x8] sm:$0xff] %vm2322_vm3, %v8169_v4  ;;  %v8011_v29 = vadd.f32 %v14169_v42, %v7897_v43  ;;  %v6461_v37 = vpop.permute.xlu2 %6460  ;;  %v7741_v4 = vsel %vm2322_vm3, %v14273_v58, %v7666_v27 }
 0x8db   : > { %v7297_v62 = vpop.f32.mrf.mxu1  ;;  %v6536_v47 = vsel %vm2322_vm3, %v14209_v16, %v6461_v37 }
 0x8dc   : > { %v8102_v39 = vadd.f32 %v8011_v29, %v7408_v41  ;;  %v7298_v42 = vadd.f32 %v7297_v62, %v7089_v53  ;;  %v7670_v41 = vpop.permute.xlu0 %7669  ;;  %v6463_v29 = vpop.permute.xlu1 %6462  ;;  %v7095_v53 = vadd.f32 %v13597_v9, %v13853_v15 }
 0x8de   : > { %v8138_v13 = vadd.f32 %v14222_v45, %v8102_v39  ;;  %7344 = vmatmul.f32.gmra.mxu1 %v6535_v21  ;;  %7947 = vmatmul.f32.gmra.mxu3 %v7740_v55  ;;  %v7411_v8 = vadd.f32 %v13679_v24, %v7298_v42  ;;  %v14280_v24 = vpop.f32.mrf.mxu0  ;;  %v14290_v21 = vld [vmem:[#allocation2 + $0x128] sm:$0xff]  ;;  %v6537_v55 = vsel %vm2322_vm3, %v14228_v12, %v6463_v29 }
 0x8e0   : > { %v8170_v26 = vmax.f32 %v8138_v13, 0.0  ;;  %v7742_v13 = vsel %vm2322_vm3, %v14290_v21, %v7668_v46 }
 0x8e1   : > { %v7900_v23 = vpop.f32.mrf.mxu3 }
 0x8e2   : > { %8202 = vst.msk [vmem:[%s14234_s24 + $0x10] sm:$0xff] %vm2322_vm3, %v8170_v26  ;;  %v8014_v48 = vadd.f32 %v14179_v11, %v7900_v23  ;;  %v14282_v11 = vpop.f32.mrf.mxu2 }
 0x8e3   : > { %v7300_v17 = vpop.f32.mrf.mxu1 }
 0x8e4   : > { %v8103_v36 = vadd.f32 %v8014_v48, %v7411_v8  ;;  %v7301_v40 = vadd.f32 %v7300_v17, %v7092_v1  ;;  %v6465_v15 = vpop.permute.xlu0 %6464  ;;  %v14820_v48 = vld [vmem:[#allocation45_spill] sm:$0xff] }
 0x8e5   : > { %v14821_v17 = vld [vmem:[#allocation49_spill] sm:$0xff] }
 0x8e6   : > { %v8139_v43 = vadd.f32 %v14222_v45, %v8103_v36  ;;  %7347 = vmatmul.f32.gmra.mxu1 %v6536_v47  ;;  %7950 = vmatmul.f32.gmra.mxu3 %v7741_v4  ;;  %v7414_v16 = vadd.f32 %v13720_v10, %v7301_v40  ;;  %v7672_v10 = vpop.permute.xlu2 %7671  ;;  %v14297_v23 = vpop.f32.mrf.mxu0  ;;  %v7098_v1 = vadd.f32 %v14821_v17, %v14820_v48  ;;  %v14822_v4 = vld [vmem:[#allocation47_spill] sm:$0xff]  ;;  %v14826_v48 = vld [vmem:[#allocation36_spill] sm:$0xff] }
 0x8e7   : > { %v6538_v47 = vsel %vm2322_vm3, %v14244_v6, %v6465_v15 }
 0x8e8   : > { %v8171_v2 = vmax.f32 %v8139_v43, 0.0  ;;  %v7743_v43 = vsel %vm2322_vm3, %v14822_v4, %v7670_v41 }
 0x8e9   : > { %v7903_v33 = vpop.f32.mrf.mxu3 }
 0x8ea   : > { %8203 = vst.msk [vmem:[%s14234_s24 + $0x18] sm:$0xff] %vm2322_vm3, %v8171_v2  ;;  %v8017_v62 = vadd.f32 %v14188_v44, %v7903_v33  ;;  %v14299_v9 = vpop.f32.mrf.mxu2  ;;  %v7674_v33 = vpop.permute.xlu1 %7673 }
 0x8eb   : > { %v7303_v27 = vpop.f32.mrf.mxu1 }
 0x8ec   : > { %v8104_v39 = vadd.f32 %v8017_v62, %v7414_v16  ;;  %v7304_v26 = vadd.f32 %v7303_v27, %v7095_v53  ;;  %v14823_v16 = vld [vmem:[#allocation34_spill] sm:$0xff] }
 0x8ee   : > { %v8140_v42 = vadd.f32 %v14222_v45, %v8104_v39  ;;  %7350 = vmatmul.f32.gmra.mxu1 %v6537_v55  ;;  %7953 = vmatmul.f32.gmra.mxu3 %v7742_v13  ;;  %v7417_v12 = vadd.f32 %v13746_v38, %v7304_v26  ;;  %v14316_v6 = vpop.f32.mrf.mxu0  ;;  %v14824_v39 = vld [vmem:[#allocation18_spill] sm:$0xff] }
 0x8ef   : > { %v14825_v55 = vld [vmem:[#allocation30_spill] sm:$0xff] }
 0x8f0   : > { %v8172_v44 = vmax.f32 %v8140_v42, 0.0  ;;  %v7101_v13 = vadd.f32 %v14825_v55, %v14824_v39 }
 0x8f1   : > { %v7906_v37 = vpop.f32.mrf.mxu3 }
 0x8f2   : > { %8204 = vst.msk [vmem:[%s14234_s24 + $0x20] sm:$0xff] %vm2322_vm3, %v8172_v44  ;;  %v8020_v46 = vadd.f32 %v14201_v57, %v7906_v37  ;;  %v6467_v57 = vpop.permute.xlu2 %6466  ;;  %v14318_v41 = vpop.f32.mrf.mxu2  ;;  %v7744_v44 = vsel %vm2322_vm3, %v13952_v18, %v7672_v10 }
 0x8f3   : > { %v7306_v8 = vpop.f32.mrf.mxu1  ;;  %v6539_v26 = vsel %vm2322_vm3, %v14256_v49, %v6467_v57 }
 0x8f4   : > { %v8105_v36 = vadd.f32 %v8020_v46, %v7417_v12  ;;  %v7307_v2 = vadd.f32 %v7306_v8, %v7098_v1  ;;  %v6469_v8 = vpop.permute.xlu1 %6468 }
 0x8f6   : > { %v8141_v40 = vadd.f32 %v14222_v45, %v8105_v36  ;;  %7353 = vmatmul.f32.gmra.mxu1 %v6538_v47  ;;  %7956 = vmatmul.f32.gmra.mxu3 %v7743_v43  ;;  %v7420_v62 = vadd.f32 %v14823_v16, %v7307_v2  ;;  %v14827_v36 = vld [vmem:[#allocation63_spill] sm:$0xff]  ;;  %v14333_v4 = vpop.f32.mrf.mxu0  ;;  %v6540_v43 = vsel %vm2322_vm3, %v14273_v58, %v6469_v8 }
 0x8f7   : > { %v14828_v47 = vld [vmem:[#allocation51_spill] sm:$0xff] }
 0x8f8   : > { %v8173_v38 = vmax.f32 %v8141_v40, 0.0  ;;  %v7104_v18 = vadd.f32 %v14828_v47, %v14827_v36  ;;  %v7745_v40 = vsel %vm2322_vm3, %v13966_v19, %v7674_v33  ;;  %v14829_v19 = vld [vmem:[#allocation28_spill] sm:$0xff] }
 0x8f9   : > { %v7909_v29 = vpop.f32.mrf.mxu3  ;;  %v14830_v33 = vld [vmem:[#allocation32_spill] sm:$0xff] }
 0x8fa   : > { %8205 = vst.msk [vmem:[%s14234_s24 + $0x28] sm:$0xff] %vm2322_vm3, %v8173_v38  ;;  %v8023_v27 = vadd.f32 %v14214_v54, %v7909_v29  ;;  %v7676_v54 = vpop.permute.xlu0 %7675  ;;  %v14339_v2 = vpop.f32.mrf.mxu2  ;;  %v7107_v39 = vadd.f32 %v14830_v33, %v14829_v19 }
 0x8fb   : > { %v7309_v53 = vpop.f32.mrf.mxu1 }
 0x8fc   : > { %v8106_v42 = vadd.f32 %v8023_v27, %v7420_v62  ;;  %v7310_v15 = vadd.f32 %v7309_v53, %v7101_v13 }
 0x8fe   : > { %v8142_v37 = vadd.f32 %v14222_v45, %v8106_v42  ;;  %7356 = vmatmul.f32.gmra.mxu1 %v6539_v26  ;;  %7959 = vmatmul.f32.gmra.mxu3 %v7744_v44  ;;  %v7423_v17 = vadd.f32 %v14826_v48, %v7310_v15  ;;  %v7746_v42 = vsel %vm2322_vm3, %v13984_v32, %v7676_v54  ;;  %v14831_v54 = vld [vmem:[#allocation60_spill] sm:$0xff]  ;;  %v14832_v48 = vld [vmem:[#allocation53_spill] sm:$0xff] }
 0x900   : > { %v8174_v12 = vmax.f32 %v8142_v37, 0.0  ;;  %v7680_v37 = vpop.permute.xlu1 %7679 }
 0x901   : > { %v7912_v46 = vpop.f32.mrf.mxu3  ;;  %v7748_v33 = vsel %vm2322_vm3, %v14021_v63, %v7680_v37 }
 0x902   : > { %8206 = vst.msk [vmem:[%s14234_s24 + $0x30] sm:$0xff] %vm2322_vm3, %v8174_v12  ;;  %v8026_v1 = vadd.f32 %v14240_v0, %v7912_v46  ;;  %v7678_v0 = vpop.permute.xlu2 %7677  ;;  %v6471_v62 = vpop.permute.xlu0 %6470 }
 0x903   : > { %v7312_v49 = vpop.f32.mrf.mxu1  ;;  %v6541_v13 = vsel %vm2322_vm3, %v14290_v21, %v6471_v62  ;;  %v7747_v47 = vsel %vm2322_vm3, %v14003_v22, %v7678_v0  ;;  %v14833_v0 = vld [vmem:[#allocation57_spill] sm:$0xff]  ;;  %v14834_v62 = vld [vmem:[#allocation56_spill] sm:$0xff] }
 0x904   : > { %v8107_v10 = vadd.f32 %v8026_v1, %v7423_v17  ;;  %v7313_v29 = vadd.f32 %v7312_v49, %v7104_v18  ;;  %v7110_v17 = vadd.f32 %v14832_v48, %v14831_v54  ;;  %v6318_v49 = vld [vmem:[#allocation2 + $0x138] sm:$0xff] }
 0x906   : > { %v8143_v38 = vadd.f32 %v14222_v45, %v8107_v10  ;;  %7359 = vmatmul.f32.gmra.mxu1 %v6540_v43  ;;  %7962 = vmatmul.f32.gmra.mxu3 %v7745_v40  ;;  %v7426_v27 = vadd.f32 %v14264_v56, %v7313_v29  ;;  %v14353_v56 = vpop.f32.mrf.mxu0 }
 0x908   : > { %v8175_v57 = vmax.f32 %v8143_v38, 0.0  ;;  %v6475_v29 = vpop.permute.xlu1 %6474 }
 0x909   : > { %v7915_v16 = vpop.f32.mrf.mxu3 }
 0x90a   : > { %8207 = vst.msk [vmem:[%s14234_s24 + $0x38] sm:$0xff] %vm2322_vm3, %v8175_v57  ;;  %v8029_v58 = vadd.f32 %v14258_v20, %v7915_v16  ;;  %v14355_v20 = vpop.f32.mrf.mxu2  ;;  %v6473_v46 = vpop.permute.xlu2 %6472 }
 0x90b   : > { %v7315_v53 = vpop.f32.mrf.mxu1  ;;  %v6542_v36 = vsel %vm2322_vm3, %v6318_v49, %v6473_v46  ;;  %v14835_v46 = vld [vmem:[#allocation59_spill] sm:$0xff] }
 0x90c   : > { %v8108_v55 = vadd.f32 %v8029_v58, %v7426_v27  ;;  %v7316_v44 = vadd.f32 %v7315_v53, %v7107_v39  ;;  %v7113_v27 = vadd.f32 %v14834_v62, %v14833_v0  ;;  %v6319_v53 = vld [vmem:[#allocation2 + $0x140] sm:$0xff]  ;;  %v7527_v0 = vld [vmem:[#allocation2 + $0x198] sm:$0xff] }
 0x90d   : > { %v6543_v19 = vsel %vm2322_vm3, %v6319_v53, %v6475_v29  ;;  %v7591_v39 = vld [vmem:[#allocation2 + $0x19a] sm:$0xff] }
 0x90e   : > { %v8144_v26 = vadd.f32 %v14222_v45, %v8108_v55  ;;  %7362 = vmatmul.f32.gmra.mxu1 %v6541_v13  ;;  %7965 = vmatmul.f32.gmra.mxu3 %v7746_v42  ;;  %v7429_v21 = vadd.f32 %v14282_v11, %v7316_v44  ;;  %v7682_v11 = vpop.permute.xlu0 %7681 }
 0x90f   : > { %9040 = vmatmul.msk.f32.gmra.mxu0 %vm2322_vm3, %v7591_v39  ;;  %v7749_v48 = vsel %vm2322_vm3, %v14035_v50, %v7682_v11 }
 0x910   : > { %v8176_v15 = vmax.f32 %v8144_v26, 0.0 }
 0x911   : > { %v7918_v12 = vpop.f32.mrf.mxu3 }
 0x912   : > { %8208 = vst.msk [vmem:[%s14234_s24 + $0x40] sm:$0xff] %vm2322_vm3, %v8176_v15  ;;  %v8032_v8 = vadd.f32 %v14280_v24, %v7918_v12  ;;  %v14367_v24 = vpop.f32.mrf.mxu0  ;;  %v14369_v38 = vpop.f32.mrf.mxu2 }
 0x913   : > { %v7318_v32 = vpop.f32.mrf.mxu1 }
 0x914   : > { %v8109_v1 = vadd.f32 %v8032_v8, %v7429_v21  ;;  %v7319_v10 = vadd.f32 %v7318_v32, %v7110_v17  ;;  %v7116_v21 = vadd.f32 %v14835_v46, %v13968_v35  ;;  %v6320_v32 = vld [vmem:[#allocation2 + $0x150] sm:$0xff] }
 0x916   : > { %v8145_v18 = vadd.f32 %v14222_v45, %v8109_v1  ;;  %7365 = vmatmul.f32.gmra.mxu1 %v6542_v36  ;;  %7968 = vmatmul.f32.gmra.mxu3 %v7747_v47  ;;  %v7432_v57 = vadd.f32 %v14299_v9, %v7319_v10  ;;  %v6477_v26 = vpop.permute.xlu0 %6476  ;;  %v14836_v10 = vld [vmem:[#allocation38_spill] sm:$0xff] }
 0x917   : > { %v6544_v54 = vsel %vm2322_vm3, %v6320_v32, %v6477_v26  ;;  %v7119_v50 = vadd.f32 %v14836_v10, %v13989_v5  ;;  %v14838_v32 = vld [vmem:[#allocation46_spill] sm:$0xff] }
 0x918   : > { %v8177_v43 = vmax.f32 %v8145_v18, 0.0  ;;  %v14839_v10 = vld [vmem:[#allocation6_spill] sm:$0xff] }
 0x919   : > { %v7921_v40 = vpop.f32.mrf.mxu3 }
 0x91a   : > { %8209 = vst.msk [vmem:[%s14234_s24 + $0x48] sm:$0xff] %vm2322_vm3, %v8177_v43  ;;  %v8035_v16 = vadd.f32 %v14297_v23, %v7921_v40  ;;  %v7684_v23 = vpop.permute.xlu2 %7683  ;;  %v14386_v12 = vpop.f32.mrf.mxu0  ;;  %v6321_v43 = vld [vmem:[#allocation2 + $0x158] sm:$0xff] }
 0x91b   : > { %v7321_v22 = vpop.f32.mrf.mxu1  ;;  %v14388_v37 = vpop.f32.mrf.mxu2 }
 0x91c   : > { %v8110_v58 = vadd.f32 %v8035_v16, %v7432_v57  ;;  %v7322_v13 = vadd.f32 %v7321_v22, %v7113_v27  ;;  %v7750_v57 = vsel %vm2322_vm3, %v14048_v60, %v7684_v23  ;;  %v14837_v60 = vld [vmem:[#allocation8_spill] sm:$0xff] }
 0x91e   : > { %v8146_v55 = vadd.f32 %v14222_v45, %v8110_v58  ;;  %7368 = vmatmul.f32.gmra.mxu1 %v6543_v19  ;;  %7971 = vmatmul.f32.gmra.mxu3 %v7748_v33  ;;  %v7435_v44 = vadd.f32 %v14318_v41, %v7322_v13  ;;  %v7122_v33 = vadd.f32 %v14837_v60, %v14009_v52 }
 0x920   : > { %v8178_v9 = vmax.f32 %v8146_v55, 0.0  ;;  %v6322_v55 = vld [vmem:[#allocation2 + $0x168] sm:$0xff] }
 0x921   : > { %v7924_v42 = vpop.f32.mrf.mxu3 }
 0x922   : > { %8210 = vst.msk [vmem:[%s14234_s24 + $0x50] sm:$0xff] %vm2322_vm3, %v8178_v9  ;;  %v8038_v15 = vadd.f32 %v14316_v6, %v7924_v42  ;;  %v7686_v6 = vpop.permute.xlu1 %7685  ;;  %v6479_v36 = vpop.permute.xlu2 %6478 }
 0x923   : > { %v7324_v63 = vpop.f32.mrf.mxu1  ;;  %v14402_v40 = vpop.f32.mrf.mxu0  ;;  %v6545_v29 = vsel %vm2322_vm3, %v6321_v43, %v6479_v36  ;;  %v7751_v19 = vsel %vm2322_vm3, %v7527_v0, %v7686_v6 }
 0x924   : > { %v8111_v8 = vadd.f32 %v8038_v15, %v7435_v44  ;;  %v7325_v17 = vadd.f32 %v7324_v63, %v7116_v21  ;;  %v7449_v16 = vpop.f32.mrf.mxu2  ;;  %v7528_v44 = vld [vmem:[#allocation2 + $0x1a0] sm:$0xff] }
 0x926   : > { %v8147_v41 = vadd.f32 %v14222_v45, %v8111_v8  ;;  %7371 = vmatmul.f32.gmra.mxu1 %v6544_v54  ;;  %7974 = vmatmul.f32.gmra.mxu3 %v7749_v48  ;;  %v7438_v35 = vadd.f32 %v14339_v2, %v7325_v17  ;;  %v7125_v54 = vadd.f32 %v14838_v32, %v14028_v51 }
 0x928   : > { %v8179_v1 = vmax.f32 %v8147_v41, 0.0  ;;  %v6323_v41 = vld [vmem:[#allocation2 + $0x170] sm:$0xff] }
 0x929   : > { %v7927_v49 = vpop.f32.mrf.mxu3 }
 0x92a   : > { %8211 = vst.msk [vmem:[%s14234_s24 + $0x58] sm:$0xff] %vm2322_vm3, %v8179_v1  ;;  %v8041_v47 = vadd.f32 %v14333_v4, %v7927_v49  ;;  %v6481_v27 = vpop.permute.xlu1 %6480  ;;  %v6483_v63 = vpop.permute.xlu2 %6482 }
 0x92b   : > { %v7327_v18 = vpop.f32.mrf.mxu1  ;;  %v6546_v13 = vsel %vm2322_vm3, %v6322_v55, %v6481_v27  ;;  %v8055_v42 = vpop.f32.mrf.mxu0  ;;  %v6547_v17 = vsel %vm2322_vm3, %v6323_v41, %v6483_v63 }
 0x92c   : > { %v8112_v11 = vadd.f32 %v8041_v47, %v7438_v35  ;;  %v7328_v2 = vadd.f32 %v7327_v18, %v7119_v50  ;;  %v7592_v18 = vld [vmem:[#allocation2 + $0x1a2] sm:$0xff]  ;;  %v7128_v50 = vadd.f32 %v14839_v10, %v14046_v61  ;;  %v14843_v10 = vld [vmem:[#allocation11_spill] sm:$0xff] }
 0x92e   : > { %v8148_v22 = vadd.f32 %v14222_v45, %v8112_v11  ;;  %7374 = vmatmul.f32.gmra.mxu1 %v6545_v29  ;;  %7977 = vmatmul.f32.gmra.mxu3 %v7750_v57  ;;  %v7441_v5 = vadd.f32 %v14355_v20, %v7328_v2  ;;  %v7452_v20 = vpop.f32.mrf.mxu2 }
 0x930   : > { %v8180_v4 = vmax.f32 %v8148_v22, 0.0 }
 0x931   : > { %v7930_v62 = vpop.f32.mrf.mxu3 }
 0x932   : > { %8212 = vst.msk [vmem:[%s14234_s24 + $0x60] sm:$0xff] %vm2322_vm3, %v8180_v4  ;;  %v8044_v58 = vadd.f32 %v14353_v56, %v7930_v62  ;;  %v7688_v56 = vpop.permute.xlu0 %7687  ;;  %v14840_v62 = vld [vmem:[#allocation9_spill] sm:$0xff] }
 0x933   : > { %v7330_v53 = vpop.f32.mrf.mxu1  ;;  %v7752_v8 = vsel %vm2322_vm3, %v7528_v44, %v7688_v56  ;;  %v7131_v61 = vadd.f32 %v14840_v62, %v14063_v30 }
 0x934   : > { %v8113_v39 = vadd.f32 %v8044_v58, %v7441_v5  ;;  %v7331_v9 = vadd.f32 %v7330_v53, %v7122_v33 }
 0x936   : > { %v8149_v23 = vadd.f32 %v14222_v45, %v8113_v39  ;;  %7377 = vmatmul.f32.gmra.mxu1 %v6546_v13  ;;  %7980 = vmatmul.f32.gmra.mxu3 %v7751_v19  ;;  %v7444_v52 = vadd.f32 %v14369_v38, %v7331_v9  ;;  %v8058_v38 = vpop.f32.mrf.mxu0 }
 0x938   : > { %v8181_v26 = vmax.f32 %v8149_v23, 0.0 }
 0x939   : > { %v7933_v15 = vpop.f32.mrf.mxu3 }
 0x93a   : > { %8213 = vst.msk [vmem:[%s14234_s24 + $0x68] sm:$0xff] %vm2322_vm3, %v8181_v26  ;;  %v8047_v46 = vadd.f32 %v14367_v24, %v7933_v15  ;;  %v7455_v24 = vpop.f32.mrf.mxu2 }
 0x93b   : > { %v7333_v21 = vpop.f32.mrf.mxu1 }
 0x93c   : > { %v8114_v48 = vadd.f32 %v8047_v46, %v7444_v52  ;;  %v7334_v1 = vadd.f32 %v7333_v21, %v7125_v54 }
 0x93e   : > { %v8150_v6 = vadd.f32 %v14222_v45, %v8114_v48  ;;  %7380 = vmatmul.f32.gmra.mxu1 %v6547_v17  ;;  %7983 = vmatmul.f32.gmra.mxu3 %v7752_v8  ;;  %v7447_v35 = vadd.f32 %v14388_v37, %v7334_v1 }
 0x940   : > { %v8182_v49 = vmax.f32 %v8150_v6, 0.0  ;;  %v7140_v6 = vadd.f32 %v13975_v59, %v14108_v34 }
 0x941   : > { %v7936_v36 = vpop.f32.mrf.mxu3 }
 0x942   : > { %8214 = vst.msk [vmem:[%s14234_s24 + $0x70] sm:$0xff] %vm2322_vm3, %v8182_v49  ;;  %v8050_v51 = vadd.f32 %v14386_v12, %v7936_v36  ;;  %v8061_v12 = vpop.f32.mrf.mxu0  ;;  %v7458_v0 = vpop.f32.mrf.mxu2 }
 0x943   : > { %v7336_v47 = vpop.f32.mrf.mxu1 }
 0x944   : > { %v8115_v11 = vadd.f32 %v8050_v51, %v7447_v35  ;;  %v7337_v29 = vadd.f32 %v7336_v47, %v7128_v50  ;;  %v7143_v50 = vadd.f32 %v14843_v10, %v14121_v7 }
 0x946   : > { %v8151_v43 = vadd.f32 %v14222_v45, %v8115_v11  ;;  %9041 = vmatmul.msk.f32.vlgmr.msra.gmra.mxu3 %vm2322_vm3, %v7592_v18  ;;  %v7450_v2 = vadd.f32 %v7449_v16, %v7337_v29 }
 0x948   : > { %v8183_v57 = vmax.f32 %v8151_v43, 0.0 }
 0x949   : > { %v7939_v22 = vpop.f32.mrf.mxu3 }
 0x94a   : > { %8215 = vst.msk [vmem:[%s14234_s24 + $0x78] sm:$0xff] %vm2322_vm3, %v8183_v57  ;;  %v8053_v37 = vadd.f32 %v14402_v40, %v7939_v22  ;;  %v14841_v40 = vld [vmem:[#allocation27_spill] sm:$0xff]  ;;  %v8064_v13 = vpop.f32.mrf.mxu0  ;;  %v7461_v23 = vpop.f32.mrf.mxu2 }
 0x94b   : > { %v7339_v4 = vpop.f32.mrf.mxu1  ;;  %v7134_v39 = vadd.f32 %v14841_v40, %v14076_v31 }
 0x94c   : > { %v8116_v27 = vadd.f32 %v8053_v37, %v7450_v2  ;;  %v7340_v58 = vadd.f32 %v7339_v4, %v7131_v61  ;;  %v14844_v4 = vld [vmem:[#allocation20_spill] sm:$0xff] }
 0x94e   : > { %v8152_v5 = vadd.f32 %v14222_v45, %v8116_v27  ;;  %v7453_v60 = vadd.f32 %v7452_v20, %v7340_v58 }
 0x950   : > { %v8184_v53 = vmax.f32 %v8152_v5, 0.0 }
 0x951   : > { %v7942_v19 = vpop.f32.mrf.mxu3 }
 0x952   : > { %8216 = vst.msk [vmem:[%s14234_s24 + $0x80] sm:$0xff] %vm2322_vm3, %v8184_v53  ;;  %v8056_v33 = vadd.f32 %v8055_v42, %v7942_v19  ;;  %v14842_v42 = vld [vmem:[#allocation55_spill] sm:$0xff]  ;;  %v8067_v21 = vpop.f32.mrf.mxu0  ;;  %v7464_v8 = vpop.f32.mrf.mxu2 }
 0x953   : > { %v7342_v16 = vpop.f32.mrf.mxu1  ;;  %v7137_v20 = vadd.f32 %v14842_v42, %v14091_v25 }
 0x954   : > { %v8117_v55 = vadd.f32 %v8056_v33, %v7453_v60  ;;  %v7343_v9 = vadd.f32 %v7342_v16, %v7134_v39  ;;  %v14845_v33 = vld [vmem:[#allocation12_spill] sm:$0xff] }
 0x955   : > { %v7149_v16 = vadd.f32 %v14845_v33, %v14137_v14 }
 0x956   : > { %v8153_v30 = vadd.f32 %v14222_v45, %v8117_v55  ;;  %v7456_v44 = vadd.f32 %v7455_v24, %v7343_v9 }
 0x958   : > { %v8185_v26 = vmax.f32 %v8153_v30, 0.0 }
 0x959   : > { %v7945_v56 = vpop.f32.mrf.mxu3 }
 0x95a   : > { %8217 = vst.msk [vmem:[%s14234_s24 + $0x88] sm:$0xff] %vm2322_vm3, %v8185_v26  ;;  %v8059_v15 = vadd.f32 %v8058_v38, %v7945_v56  ;;  %v8070_v36 = vpop.f32.mrf.mxu0  ;;  %v7467_v35 = vpop.f32.mrf.mxu2  ;;  %v14846_v56 = vld [vmem:[#allocation7_spill] sm:$0xff] }
 0x95b   : > { %v7345_v63 = vpop.f32.mrf.mxu1 }
 0x95c   : > { %v8118_v52 = vadd.f32 %v8059_v15, %v7456_v44  ;;  %v7346_v46 = vadd.f32 %v7345_v63, %v7137_v20  ;;  %v7152_v44 = vadd.f32 %v14846_v56, %v14145_v28  ;;  %v14856_v56 = vld [vmem:[#allocation15_spill] sm:$0xff] }
 0x95e   : > { %v8154_v31 = vadd.f32 %v14222_v45, %v8118_v52  ;;  %v7459_v48 = vadd.f32 %v7458_v0, %v7346_v46  ;;  %v7146_v0 = vadd.f32 %v14844_v4, %v14130_v3 }
 0x960   : > { %v8186_v32 = vmax.f32 %v8154_v31, 0.0 }
 0x961   : > { %v7948_v54 = vpop.f32.mrf.mxu3 }
 0x962   : > { %8218 = vst.msk [vmem:[%s14234_s24 + $0x90] sm:$0xff] %vm2322_vm3, %v8186_v32  ;;  %v8062_v41 = vadd.f32 %v8061_v12, %v7948_v54  ;;  %v8073_v2 = vpop.f32.mrf.mxu0  ;;  %v7470_v12 = vpop.f32.mrf.mxu2  ;;  %v14847_v32 = vld [vmem:[#allocation22_spill] sm:$0xff]  ;;  %v14848_v54 = vld [vmem:[#allocation13_spill] sm:$0xff] }
 0x963   : > { %v7348_v17 = vpop.f32.mrf.mxu1 }
 0x964   : > { %v8119_v1 = vadd.f32 %v8062_v41, %v7459_v48  ;;  %v7349_v49 = vadd.f32 %v7348_v17, %v7140_v6  ;;  %v7155_v48 = vadd.f32 %v14848_v54, %v14847_v32  ;;  %v14857_v32 = vld [vmem:[#allocation19_spill] sm:$0xff]  ;;  %v14858_v54 = vld [vmem:[#allocation58_spill] sm:$0xff] }
 0x966   : > { %v8155_v25 = vadd.f32 %v14222_v45, %v8119_v1  ;;  %v7462_v51 = vadd.f32 %v7461_v23, %v7349_v49 }
 0x968   : > { %v8187_v38 = vmax.f32 %v8155_v25, 0.0 }
 0x969   : > { %v7951_v24 = vpop.f32.mrf.mxu3 }
 0x96a   : > { %8219 = vst.msk [vmem:[%s14234_s24 + $0x98] sm:$0xff] %vm2322_vm3, %v8187_v38  ;;  %v8065_v47 = vadd.f32 %v8064_v13, %v7951_v24  ;;  %v7473_v60 = vpop.f32.mrf.mxu2  ;;  %v8076_v39 = vpop.f32.mrf.mxu0 }
 0x96b   : > { %v7351_v18 = vpop.f32.mrf.mxu1 }
 0x96c   : > { %v8120_v11 = vadd.f32 %v8065_v47, %v7462_v51  ;;  %v7352_v34 = vadd.f32 %v7351_v18, %v7143_v50  ;;  %v14850_v51 = vld [vmem:[#allocation64_spill] sm:$0xff] }
 0x96e   : > { %v8156_v59 = vadd.f32 %v14222_v45, %v8120_v11  ;;  %v7465_v57 = vadd.f32 %v7464_v8, %v7352_v34 }
 0x970   : > { %v8188_v43 = vmax.f32 %v8156_v59, 0.0 }
 0x971   : > { %v7954_v29 = vpop.f32.mrf.mxu3 }
 0x972   : > { %8220 = vst.msk [vmem:[%s14234_s24 + $0xa0] sm:$0xff] %vm2322_vm3, %v8188_v43  ;;  %v8068_v22 = vadd.f32 %v8067_v21, %v7954_v29  ;;  %v7476_v63 = vpop.f32.mrf.mxu2  ;;  %v8079_v20 = vpop.f32.mrf.mxu0 }
 0x973   : > { %v7354_v37 = vpop.f32.mrf.mxu1 }
 0x974   : > { %v8121_v62 = vadd.f32 %v8068_v22, %v7465_v57  ;;  %v7355_v61 = vadd.f32 %v7354_v37, %v7146_v0  ;;  %v14852_v37 = vld [vmem:[#allocation14_spill] sm:$0xff] }
 0x976   : > { %v8157_v7 = vadd.f32 %v14222_v45, %v8121_v62  ;;  %v7468_v58 = vadd.f32 %v7467_v35, %v7355_v61  ;;  %v14849_v35 = vld [vmem:[#allocation17_spill] sm:$0xff] }
 0x977   : > { %v7158_v47 = vadd.f32 %v14850_v51, %v14849_v35 }
 0x978   : > { %v8189_v27 = vmax.f32 %v8157_v7, 0.0 }
 0x979   : > { %v7957_v5 = vpop.f32.mrf.mxu3 }
 0x97a   : > { %8221 = vst.msk [vmem:[%s14234_s24 + $0xa8] sm:$0xff] %vm2322_vm3, %v8189_v27  ;;  %v8071_v53 = vadd.f32 %v8070_v36, %v7957_v5  ;;  %v7479_v6 = vpop.f32.mrf.mxu2  ;;  %v8082_v25 = vpop.f32.mrf.mxu0 }
 0x97b   : > { %v7357_v19 = vpop.f32.mrf.mxu1 }
 0x97c   : > { %v8122_v40 = vadd.f32 %v8071_v53, %v7468_v58  ;;  %v7358_v55 = vadd.f32 %v7357_v19, %v7149_v16  ;;  %v14853_v53 = vld [vmem:[#allocation42_spill] sm:$0xff] }
 0x97d   : > { %v14854_v19 = vld [vmem:[#allocation50_spill] sm:$0xff] }
 0x97e   : > { %v8158_v3 = vadd.f32 %v14222_v45, %v8122_v40  ;;  %v7471_v30 = vadd.f32 %v7470_v12, %v7358_v55 }
 0x980   : > { %v8190_v13 = vmax.f32 %v8158_v3, 0.0 }
 0x981   : > { %v7960_v23 = vpop.f32.mrf.mxu3 }
 0x982   : > { %8222 = vst.msk [vmem:[%s14234_s24 + $0xb0] sm:$0xff] %vm2322_vm3, %v8190_v13  ;;  %v8074_v9 = vadd.f32 %v8073_v2, %v7960_v23  ;;  %v7482_v34 = vpop.f32.mrf.mxu2  ;;  %v8085_v57 = vpop.f32.mrf.mxu0  ;;  %v14851_v2 = vld [vmem:[#allocation52_spill] sm:$0xff] }
 0x983   : > { %v7360_v26 = vpop.f32.mrf.mxu1  ;;  %v7161_v12 = vadd.f32 %v14852_v37, %v14851_v2 }
 0x984   : > { %v8123_v15 = vadd.f32 %v8074_v9, %v7471_v30  ;;  %v7361_v42 = vadd.f32 %v7360_v26, %v7152_v44  ;;  %v14855_v26 = vld [vmem:[#allocation24_spill] sm:$0xff] }
 0x985   : > { %v7167_v44 = vadd.f32 %v14856_v56, %v14855_v26 }
 0x986   : > { %v8159_v14 = vadd.f32 %v14222_v45, %v8123_v15  ;;  %v7474_v46 = vadd.f32 %v7473_v60, %v7361_v42  ;;  %v7164_v60 = vadd.f32 %v14854_v19, %v14853_v53 }
 0x988   : > { %v8191_v52 = vmax.f32 %v8159_v14, 0.0 }
 0x989   : > { %v7963_v31 = vpop.f32.mrf.mxu3 }
 0x98a   : > { %8223 = vst.msk [vmem:[%s14234_s24 + $0xb8] sm:$0xff] %vm2322_vm3, %v8191_v52  ;;  %v8077_v21 = vadd.f32 %v8076_v39, %v7963_v31  ;;  %v7485_v16 = vpop.f32.mrf.mxu2  ;;  %v8088_v40 = vpop.f32.mrf.mxu0 }
 0x98b   : > { %v7363_v8 = vpop.f32.mrf.mxu1 }
 0x98c   : > { %v8124_v41 = vadd.f32 %v8077_v21, %v7474_v46  ;;  %v7364_v17 = vadd.f32 %v7363_v8, %v7155_v48  ;;  %v7170_v48 = vadd.f32 %v14858_v54, %v14857_v32 }
 0x98e   : > { %v8160_v28 = vadd.f32 %v14222_v45, %v8124_v41  ;;  %v7477_v38 = vadd.f32 %v7476_v63, %v7364_v17 }
 0x990   : > { %v8192_v1 = vmax.f32 %v8160_v28, 0.0 }
 0x991   : > { %v7966_v49 = vpop.f32.mrf.mxu3 }
 0x992   : > { %8224 = vst.msk [vmem:[%s14234_s24 + $0xc0] sm:$0xff] %vm2322_vm3, %v8192_v1  ;;  %v8080_v36 = vadd.f32 %v8079_v20, %v7966_v49  ;;  %v7488_v42 = vpop.f32.mrf.mxu2  ;;  %v8091_v20 = vpop.f32.mrf.mxu0 }
 0x993   : > { %v7366_v24 = vpop.f32.mrf.mxu1 }
 0x994   : > { %v8125_v18 = vadd.f32 %v8080_v36, %v7477_v38  ;;  %v7367_v50 = vadd.f32 %v7366_v24, %v7158_v47 }
 0x996   : > { %v8161_v10 = vadd.f32 %v14222_v45, %v8125_v18  ;;  %v7480_v43 = vadd.f32 %v7479_v6, %v7367_v50  ;;  %v14860_v50 = vld [vmem:[#allocation41_spill] sm:$0xff] }
 0x998   : > { %v8193_v11 = vmax.f32 %v8161_v10, 0.0  ;;  %v14859_v10 = vld [vmem:[#allocation54_spill] sm:$0xff] }
 0x999   : > { %v7969_v59 = vpop.f32.mrf.mxu3 }
 0x99a   : > { %8225 = vst.msk [vmem:[%s14234_s24 + $0xc8] sm:$0xff] %vm2322_vm3, %v8193_v11  ;;  %v8083_v29 = vadd.f32 %v8082_v25, %v7969_v59  ;;  %v8094_v6 = vpop.f32.mrf.mxu0  ;;  %v7491_v25 = vpop.f32.mrf.mxu2  ;;  %v7173_v11 = vadd.f32 %v14860_v50, %v14859_v10 }
 0x99b   : > { %v7369_v22 = vpop.f32.mrf.mxu1 }
 0x99c   : > { %v8126_v4 = vadd.f32 %v8083_v29, %v7480_v43  ;;  %v7370_v62 = vadd.f32 %v7369_v22, %v7161_v12 }
 0x99e   : > { %v8162_v0 = vadd.f32 %v14222_v45, %v8126_v4  ;;  %v7483_v27 = vadd.f32 %v7482_v34, %v7370_v62 }
 0x9a0   : > { %v8194_v7 = vmax.f32 %v8162_v0, 0.0 }
 0x9a1   : > { %v7972_v61 = vpop.f32.mrf.mxu3 }
 0x9a2   : > { %8226 = vst.msk [vmem:[%s14234_s24 + $0xd0] sm:$0xff] %vm2322_vm3, %v8194_v7  ;;  %v8086_v5 = vadd.f32 %v8085_v57, %v7972_v61  ;;  %v7494_v34 = vpop.f32.mrf.mxu2 }
 0x9a3   : > { %v7372_v58 = vpop.f32.mrf.mxu1 }
 0x9a4   : > { %v8127_v33 = vadd.f32 %v8086_v5, %v7483_v27  ;;  %v7373_v3 = vadd.f32 %v7372_v58, %v7164_v60 }
 0x9a6   : > { %v8163_v39 = vadd.f32 %v14222_v45, %v8127_v33  ;;  %v7486_v23 = vadd.f32 %v7485_v16, %v7373_v3 }
 0x9a8   : > { %v8195_v55 = vmax.f32 %v8163_v39, 0.0 }
 0x9a9   : > { %v7975_v13 = vpop.f32.mrf.mxu3 }
 0x9aa   : > { %8227 = vst.msk [vmem:[%s14234_s24 + $0xd8] sm:$0xff] %vm2322_vm3, %v8195_v55  ;;  %v8089_v30 = vadd.f32 %v8088_v40, %v7975_v13 }
 0x9ab   : > { %v7375_v9 = vpop.f32.mrf.mxu1 }
 0x9ac   : > { %v8128_v15 = vadd.f32 %v8089_v30, %v7486_v23  ;;  %v7376_v14 = vadd.f32 %v7375_v9, %v7167_v44 }
 0x9ae   : > { %v8164_v63 = vadd.f32 %v14222_v45, %v8128_v15  ;;  %v7489_v46 = vadd.f32 %v7488_v42, %v7376_v14 }
 0x9b0   : > { %v8196_v52 = vmax.f32 %v8164_v63, 0.0 }
 0x9b1   : > { %v7978_v31 = vpop.f32.mrf.mxu3 }
 0x9b2   : > { %8228 = vst.msk [vmem:[%s14234_s24 + $0xe0] sm:$0xff] %vm2322_vm3, %v8196_v52  ;;  %v8092_v21 = vadd.f32 %v8091_v20, %v7978_v31 }
 0x9b3   : > { %v7378_v8 = vpop.f32.mrf.mxu1 }
 0x9b4   : > { %v8129_v41 = vadd.f32 %v8092_v21, %v7489_v46  ;;  %v7379_v17 = vadd.f32 %v7378_v8, %v7170_v48 }
 0x9b6   : > { %v8165_v28 = vadd.f32 %v14222_v45, %v8129_v41  ;;  %v7492_v38 = vadd.f32 %v7491_v25, %v7379_v17 }
 0x9b8   : > { %v8197_v1 = vmax.f32 %v8165_v28, 0.0 }
 0x9b9   : > { %v7981_v49 = vpop.f32.mrf.mxu3 }
 0x9ba   : > { %8229 = vst.msk [vmem:[%s14234_s24 + $0xe8] sm:$0xff] %vm2322_vm3, %v8197_v1  ;;  %v8095_v36 = vadd.f32 %v8094_v6, %v7981_v49 }
 0x9bb   : > { %v7381_v18 = vpop.f32.mrf.mxu1 }
 0x9bc   : > { %v8130_v24 = vadd.f32 %v8095_v36, %v7492_v38  ;;  %v7382_v59 = vadd.f32 %v7381_v18, %v7173_v11 }
 0x9be   : > { %v8166_v35 = vadd.f32 %v14222_v45, %v8130_v24  ;;  %v7495_v29 = vadd.f32 %v7494_v34, %v7382_v59 }
 0x9c0   : > { %v8198_v51 = vmax.f32 %v8166_v35, 0.0 }
 0x9c1   : > { %v7984_v47 = vpop.f32.mrf.mxu3 }
 0x9c2   : > { %8230 = vst.msk [vmem:[%s14234_s24 + $0xf0] sm:$0xff] %vm2322_vm3, %v8198_v51 }
 0x9c9   : > { %v8097_v43 = vpop.f32.mrf.mxu3 }
 0x9ca   : > { %v8098_v57 = vadd.f32 %v8097_v43, %v7984_v47 }
 0x9cc   : > { %v8131_v22 = vadd.f32 %v8098_v57, %v7495_v29 }
 0x9ce   : > { %v8167_v2 = vadd.f32 %v14222_v45, %v8131_v22 }
 0x9d0   : > { %v8199_v37 = vmax.f32 %v8167_v2, 0.0 }
 0x9d2   : > { %8231 = vst.msk [vmem:[%s14234_s24 + $0xf8] sm:$0xff] %vm2322_vm3, %v8199_v37 }
 0x9d3   : > { %9369 = shalt.err (!%p9366_p3)
}
 0x9d4   : > { %s9410_s28 = smov 128  }
 0x9d5   : > { %9066 = dma.vmem_to_hbm [thread:$0]  (%p9499_p5), %s8246_s17, 4096, %s8248_s21, %s8233_s13, %s9410_s28, %s9410_s28, %s9406_s26  }
 0x9d6 PF: > { %p9072_p4 = scmp.ge.s32.totalorder %s9404_s12, 2  ;;  %s8262_s24 = sand.u32 1, %s9392_s30  }
 0x9d7   : > { %s8263_s25 = scalar_lea.sflag [#allocation4], %s8262_s24 }
 0x9d8   : > { %p9069_p7 = pnand %p9072_p4, %p9503_p6 }
 0x9da   : > { %p9070_p8 = pneg %p9069_p7 }
 0x9dc   : > { %9387 = dma.done.wait (%p9070_p8), %s8263_s25, 4096  }
 0x9dd   : > { %9389 = vsyncadd (%p9070_p8), %s8263_s25, 4294963200  ;;  %p19_p9 = scmp.ge.s32.totalorder %s9486_s15, 4   ;;  %s14861_s30 = smov %s9396_s10 }
 0x9de   : > { %s14862_s10 = smov %s9400_s11  ;;  %s14863_s11 = smov %s9497_s18 }
 0x9df   : > { %s14864_s12 = smov %s9486_s15  ;;  %21 = sbr.rel (!%p19_p9) target bundleno = 3 (0x3), region = 103 }
 0x9e4   :  { %8269 = vsyncpa [#allocation4], 1 }
 0x9e5   :  { %8271 = vsyncpa [#allocation4 + $0x1], 1 }

</bundles_post_ra>
